<compile_context>
chip_gen: v6e
topology: v6e:2x2x1
jax: 0.10.0
libtpu: 0.0.40
codegen_flags: <defaults>
</compile_context>

<pallas_src>
import functools

import jax
import jax.numpy as jnp
from jax import lax
from jax.experimental import pallas as pl
from jax.experimental.pallas import tpu as pltpu


# ----------------------------------------------------------------------------- helpers
_SQRT_2_OVER_PI = 0.7978845608028654
_VMEM_LIMIT = 48 * 1024 * 1024


def _gelu_tanh(x):
    # TODO(synk): PyTorch nn.GELU default is the exact erf form; using the tanh
    # approximation (max abs diff ~1e-3) for Mosaic-safe lowering.
    return 0.5 * x * (1.0 + jnp.tanh(_SQRT_2_OVER_PI * (x + 0.044715 * x * x * x)))


def _round_up(x, m):
    return ((x + m - 1) // m) * m


def _pad2d(a, rows, cols, fill=0.0):
    r, c = a.shape
    if (r, c) == (rows, cols):
        return a
    return jnp.pad(a, ((0, rows - r), (0, cols - c)), constant_values=fill)


def _choose_row_tiling(M, tm_max=512):
    """Pick (Mp, tm) with tm | Mp, tm <= tm_max, minimal padded rows, MXU-aligned tiles."""
    if M <= tm_max:
        Mp = _round_up(M, 8)            # f32 sublane quantum; single row tile
        return Mp, Mp
    Mp = _round_up(M, 256)              # MXU quantum (v6e/v7x); also multiple of 128 (v5e)
    for cand in range(tm_max - tm_max % 256, 255, -256):
        if Mp % cand == 0:
            return Mp, cand
    return Mp, 256


# ----------------------------------------------------------------------------- kernels
def _linear_kernel(x_ref, w_ref, b_ref, o_ref, *, activation):
    # x_ref: (tm, K) f32   w_ref: (K, N) pre-cast   b_ref: (1, N) f32   o_ref: (tm, N) f32
    x = x_ref[...].astype(w_ref.dtype)
    acc = jnp.dot(x, w_ref[...], preferred_element_type=jnp.float32) + b_ref[...]
    if activation == "relu":
        acc = jnp.maximum(acc, 0.0)
    o_ref[...] = acc.astype(o_ref.dtype)


def _conformer_stack_kernel(x_ref, g_ref, be_ref, w1_ref, b1_ref, w2_ref, b2_ref,
                            o_ref, h_ref):
    # grid = (row_tiles, num_layers); activation carry lives in VMEM scratch h_ref.
    l = pl.program_id(1)

    @pl.when(l == 0)
    def _():
        h_ref[...] = x_ref[...]

    x = h_ref[...]                                          # (tm, H) f32
    mu = jnp.mean(x, axis=-1, keepdims=True)
    xc = x - mu
    var = jnp.mean(xc * xc, axis=-1, keepdims=True)
    xn = xc * lax.rsqrt(var + 1e-5) * g_ref[...] + be_ref[...]

    cd = w1_ref.dtype
    h = jnp.dot(xn.astype(cd), w1_ref[...],
                preferred_element_type=jnp.float32) + b1_ref[...]
    h = _gelu_tanh(h)
    y = jnp.dot(h.astype(cd), w2_ref[...],
                preferred_element_type=jnp.float32) + b2_ref[...]
    h_ref[...] = x + y                                      # residual carry

    @pl.when(l == pl.num_programs(1) - 1)
    def _():
        o_ref[...] = h_ref[...]


def _proj_decoder_kernel(x_ref, wp_ref, bp_ref, wd_ref, bd_ref, o_ref):
    # Fused output_projection + CTC decoder: x @ Wp + bp -> @ Wd + bd -> log_softmax.
    cd = wp_ref.dtype
    x = x_ref[...].astype(cd)
    h = jnp.dot(x, wp_ref[...], preferred_element_type=jnp.float32) + bp_ref[...]
    logits = jnp.dot(h.astype(cd), wd_ref[...],
                     preferred_element_type=jnp.float32) + bd_ref[...]
    m = jnp.max(logits, axis=-1, keepdims=True)
    s = logits - m
    o_ref[...] = (s - jnp.log(jnp.sum(jnp.exp(s), axis=-1, keepdims=True))
                  ).astype(o_ref.dtype)


# ----------------------------------------------------------------------------- wrappers
def fused_linear(x2d, w, b2d, *, activation=None, tm_max=512):
    """x2d: (M, K) f32; w: (K, N) pre-cast, N % 128 == 0; b2d: (1, N) f32 -> (M, N) f32."""
    M, K = x2d.shape
    Kw, N = w.shape
    assert Kw == K and b2d.shape == (1, N) and N % 128 == 0
    Mp, tm = _choose_row_tiling(M, tm_max)
    x_p = _pad2d(x2d, Mp, K)

    cost = pl.CostEstimate(
        flops=int(2 * Mp * K * N),
        transcendentals=0,
        bytes_accessed=int(Mp * K * 4 + K * N * w.dtype.itemsize + Mp * N * 4 + N * 4))

    out = pl.pallas_call(
        functools.partial(_linear_kernel, activation=activation),
        out_shape=jax.ShapeDtypeStruct((Mp, N), jnp.float32),
        grid_spec=pltpu.PrefetchScalarGridSpec(
            num_scalar_prefetch=0,
            grid=(Mp // tm,),
            in_specs=[
                pl.BlockSpec((tm, K), lambda i: (i, 0)),   # activation row tile
                pl.BlockSpec((K, N), lambda i: (0, 0)),    # weight, VMEM-resident
                pl.BlockSpec((1, N), lambda i: (0, 0)),    # bias
            ],
            out_specs=pl.BlockSpec((tm, N), lambda i: (i, 0)),
        ),
        compiler_params=pltpu.CompilerParams(
            dimension_semantics=("parallel",),
            vmem_limit_bytes=_VMEM_LIMIT),
        cost_estimate=cost,
    )(x_p, w, b2d)
    return out[:M]


def conformer_stack(x2d, ln_g, ln_b, w1, b1, w2, b2, *, tm_max=512):
    """All conformer layers in one pallas_call.  x2d: (M, H) f32, H % 128 == 0."""
    M, H = x2d.shape
    num_layers = w1.shape[0]
    assert H % 128 == 0
    Mp, tm = _choose_row_tiling(M, tm_max)
    x_p = _pad2d(x2d, Mp, H)

    wbytes = w1.dtype.itemsize
    cost = pl.CostEstimate(
        flops=int(4 * num_layers * Mp * H * H),
        transcendentals=int(num_layers * Mp * (H + 1)),
        bytes_accessed=int(2 * Mp * H * 4
                           + num_layers * (2 * H * H * wbytes + 4 * H * 4)))

    row_spec = pl.BlockSpec((tm, H), lambda i, l: (i, 0))
    vec_spec = pl.BlockSpec((None, 1, H), lambda i, l: (l, 0, 0))   # layer dim squeezed
    mat_spec = pl.BlockSpec((None, H, H), lambda i, l: (l, 0, 0))   # layer dim squeezed

    out = pl.pallas_call(
        _conformer_stack_kernel,
        out_shape=jax.ShapeDtypeStruct((Mp, H), jnp.float32),
        grid_spec=pltpu.PrefetchScalarGridSpec(
            num_scalar_prefetch=0,
            grid=(Mp // tm, num_layers),
            in_specs=[row_spec,            # x
                      vec_spec, vec_spec,  # LN gamma, beta
                      mat_spec, vec_spec,  # W1, b1
                      mat_spec, vec_spec], # W2, b2
            out_specs=pl.BlockSpec((tm, H), lambda i, l: (i, 0)),
            scratch_shapes=[pltpu.VMEM((tm, H), jnp.float32)],
        ),
        compiler_params=pltpu.CompilerParams(
            dimension_semantics=("parallel", "arbitrary"),
            vmem_limit_bytes=_VMEM_LIMIT),
        cost_estimate=cost,
    )(x_p, ln_g, ln_b, w1, b1, w2, b2)
    return out[:M]


def proj_decoder(x2d, wp, bp2d, wd, bd2d, *, tm_max=512):
    """Fused output_projection + CTC decoder.  x2d: (M, H) f32 -> log-probs (M, Vp) f32."""
    M, H = x2d.shape
    D = wp.shape[1]
    V = wd.shape[1]
    Mp, tm = _choose_row_tiling(M, tm_max)
    x_p = _pad2d(x2d, Mp, H)

    cost = pl.CostEstimate(
        flops=int(2 * Mp * H * D + 2 * Mp * D * V),
        transcendentals=int(Mp * V),
        bytes_accessed=int(Mp * H * 4 + H * D * wp.dtype.itemsize
                           + D * V * wd.dtype.itemsize + Mp * V * 4 + (D + V) * 4))

    out = pl.pallas_call(
        _proj_decoder_kernel,
        out_shape=jax.ShapeDtypeStruct((Mp, V), jnp.float32),
        grid_spec=pltpu.PrefetchScalarGridSpec(
            num_scalar_prefetch=0,
            grid=(Mp // tm,),
            in_specs=[
                pl.BlockSpec((tm, H), lambda i: (i, 0)),
                pl.BlockSpec((H, D), lambda i: (0, 0)),
                pl.BlockSpec((1, D), lambda i: (0, 0)),
                pl.BlockSpec((D, V), lambda i: (0, 0)),
                pl.BlockSpec((1, V), lambda i: (0, 0)),
            ],
            out_specs=pl.BlockSpec((tm, V), lambda i: (i, 0)),
        ),
        compiler_params=pltpu.CompilerParams(
            dimension_semantics=("parallel",),
            vmem_limit_bytes=_VMEM_LIMIT),
        cost_estimate=cost,
    )(x_p, wp, bp2d, wd, bd2d)
    return out[:M]


def conv1d_relu(x, w2d, b2d, *, kernel_size=5, stride=2, padding=2, tm_max=512):
    """x: (B, C_in, L) f32; w2d: (Kc_p, C_out) pre-cast; b2d: (1, C_out) f32."""
    B, C_in, L = x.shape
    Kc_p, C_out = w2d.shape
    K = kernel_size
    L_out = (L + 2 * padding - K) // stride + 1
    xp = jnp.pad(x, ((0, 0), (0, 0), (padding, padding)))
    # im2col (layout plumbing in the wrapper); the contraction runs on the MXU in Pallas.
    cols = [xp[:, :, k: k + stride * (L_out - 1) + 1: stride] for k in range(K)]
    patches = jnp.stack(cols, axis=3)                      # (B, C_in, L_out, K)
    patches = patches.transpose(0, 2, 1, 3).reshape(B * L_out, C_in * K)
    if patches.shape[1] != Kc_p:                           # sublane-quantum pad only
        patches = jnp.pad(patches, ((0, 0), (0, Kc_p - patches.shape[1])))
    out2d = fused_linear(patches, w2d, b2d, activation="relu", tm_max=tm_max)
    return out2d.reshape(B, L_out, C_out).transpose(0, 2, 1)   # (B, C_out, L_out)


# ----------------------------------------------------------------------------- params
def prepare_params(params, use_bf16=True):
    """One-time (outside jit) weight pre-cast / reshape / padding into kernel layouts."""
    cd = jnp.bfloat16 if use_bf16 else jnp.float32
    num_layers, H = params["ln_g"].shape
    assert H % 128 == 0

    convs = []
    for (w, b) in params["convs"]:
        C_out, C_in, K = w.shape
        assert C_out % 128 == 0          # holds for hidden_dim=512 (128/256/512 channels)
        Kc = C_in * K
        Kc_p = _round_up(Kc, 8)          # pad contraction only to the sublane quantum
        w2d = _pad2d(w.reshape(C_out, Kc).T, Kc_p, C_out).astype(cd)
        b2d = b.reshape(1, C_out).astype(jnp.float32)
        convs.append((w2d, b2d))

    D = params["proj_w"].shape[1]
    Dp = _round_up(D, 128)
    V = params["dec_w"].shape[1]
    Vp = _round_up(V, 128)
    proj_w = _pad2d(params["proj_w"], H, Dp).astype(cd)
    proj_b = jnp.pad(params["proj_b"], (0, Dp - D)).reshape(1, Dp).astype(jnp.float32)
    dec_w = _pad2d(params["dec_w"], Dp, Vp).astype(cd)
    # Padded vocab columns get a -1e30 bias so the f32 log_softmax ignores them.
    dec_b = jnp.pad(params["dec_b"], (0, Vp - V),
                    constant_values=-1e30).reshape(1, Vp).astype(jnp.float32)

    return {
        "convs": convs,
        "ln_g": params["ln_g"].reshape(num_layers, 1, H).astype(jnp.float32),
        "ln_b": params["ln_b"].reshape(num_layers, 1, H).astype(jnp.float32),
        "w1": params["w1"].astype(cd),
        "b1": params["b1"].reshape(num_layers, 1, H).astype(jnp.float32),
        "w2": params["w2"].astype(cd),
        "b2": params["b2"].reshape(num_layers, 1, H).astype(jnp.float32),
        "proj_w": proj_w, "proj_b": proj_b,
        "dec_w": dec_w, "dec_b": dec_b,
    }


def init_params(key, hidden_dim=512, output_dim=128, vocab_size=128, num_layers=8):
    keys = iter(jax.random.split(key, 64))

    def u(shape, fan_in):
        bound = float(fan_in) ** -0.5
        return jax.random.uniform(next(keys), shape, jnp.float32, -bound, bound)

    convs = []
    c_in = 1
    for c_out in (hidden_dim // 4, hidden_dim // 2, hidden_dim):
        convs.append((u((c_out, c_in, 5), c_in * 5), u((c_out,), c_in * 5)))
        c_in = c_out

    w1 = jnp.stack([u((hidden_dim, hidden_dim), hidden_dim) for _ in range(num_layers)])
    b1 = jnp.stack([u((hidden_dim,), hidden_dim) for _ in range(num_layers)])
    w2 = jnp.stack([u((hidden_dim, hidden_dim), hidden_dim) for _ in range(num_layers)])
    b2 = jnp.stack([u((hidden_dim,), hidden_dim) for _ in range(num_layers)])

    return {
        "convs": convs,                                          # PyTorch (C_out, C_in, K)
        "ln_g": jnp.ones((num_layers, hidden_dim), jnp.float32),
        "ln_b": jnp.zeros((num_layers, hidden_dim), jnp.float32),
        "w1": w1, "b1": b1, "w2": w2, "b2": b2,                  # (in, out) layout
        "proj_w": u((hidden_dim, output_dim), hidden_dim),
        "proj_b": u((output_dim,), hidden_dim),
        "dec_w": u((output_dim, vocab_size), output_dim),
        "dec_b": u((vocab_size,), output_dim),
    }


# ----------------------------------------------------------------------------- model
@functools.partial(jax.jit, static_argnames=("vocab_size", "tm_max"))
def hindi_asr_forward(prepared, audio, *, vocab_size, tm_max=512):
    """audio: (B, 1, L) f32 -> log-probs (B, L//8, vocab_size) f32."""
    x = audio
    for (w2d, b2d) in prepared["convs"]:
        x = conv1d_relu(x, w2d, b2d, tm_max=tm_max)
    x = jnp.transpose(x, (0, 2, 1))                         # (B, T, H)
    B, T, H = x.shape
    h = x.reshape(B * T, H)

    h = conformer_stack(h, prepared["ln_g"], prepared["ln_b"],
                        prepared["w1"], prepared["b1"],
                        prepared["w2"], prepared["b2"], tm_max=tm_max)

    logp = proj_decoder(h, prepared["proj_w"], prepared["proj_b"],
                        prepared["dec_w"], prepared["dec_b"], tm_max=tm_max)
    Vp = prepared["dec_w"].shape[1]
    return logp.reshape(B, T, Vp)[..., :vocab_size]


# ----------------------------------------------------------------------------- reference
def reference_forward(params, audio):
    num_layers = params["w1"].shape[0]
    with jax.default_matmul_precision("highest"):
        x = audio
        for (w, b) in params["convs"]:
            x = jax.lax.conv_general_dilated(
                x, w, window_strides=(2,), padding=[(2, 2)],
                dimension_numbers=("NCH", "OIH", "NCH"))
            x = jnp.maximum(x + b[None, :, None], 0.0)
        x = jnp.transpose(x, (0, 2, 1))
        for i in range(num_layers):
            mu = jnp.mean(x, axis=-1, keepdims=True)
            var = jnp.mean(jnp.square(x - mu), axis=-1, keepdims=True)
            xn = (x - mu) / jnp.sqrt(var + 1e-5) * params["ln_g"][i] + params["ln_b"][i]
            hh = _gelu_tanh(xn @ params["w1"][i] + params["b1"][i])
            x = x + (hh @ params["w2"][i] + params["b2"][i])
        x = x @ params["proj_w"] + params["proj_b"]
        logits = x @ params["dec_w"] + params["dec_b"]
        return jax.nn.log_softmax(logits, axis=-1)


# ----------------------------------------------------------------------------- main
if __name__ == "__main__":
    B, L = 2, 128                      # audio_signal: (batch, 1 channel, L samples)
    hidden_dim, output_dim, vocab_size, num_layers = 512, 128, 128, 8

    key = jax.random.PRNGKey(0)
    kp, kx = jax.random.split(key)
    params = init_params(kp, hidden_dim, output_dim, vocab_size, num_layers)
    audio = jax.random.normal(kx, (B, 1, L), dtype=jnp.float32)

    ref = reference_forward(params, audio)          # pure-JAX f32 reference

    # f32 MXU operands: tight semantic check.
    prep_f32 = prepare_params(params, use_bf16=False)
    out_f32 = jax.block_until_ready(
        hindi_asr_forward(prep_f32, audio, vocab_size=vocab_size))
    assert out_f32.shape == (B, L // 8, vocab_size), out_f32.shape
    err_f32 = float(jnp.max(jnp.abs(out_f32 - ref)))
    assert jnp.allclose(out_f32, ref, atol=2e-3, rtol=2e-3), err_f32

    # bf16 MXU operands (default / optimized path): loose check per review guidance.
    prep_bf16 = prepare_params(params, use_bf16=True)
    out_bf16 = jax.block_until_ready(
        hindi_asr_forward(prep_bf16, audio, vocab_size=vocab_size))
    assert out_bf16.shape == (B, L // 8, vocab_size), out_bf16.shape
    assert bool(jnp.all(jnp.isfinite(out_bf16)))
    err_bf16 = float(jnp.max(jnp.abs(out_bf16 - ref)))
    assert err_bf16 < 0.25, err_bf16

    print("KERNEL_OK")
</pallas_src>

<mosaic_0001>
module attributes {stable_mosaic.version = 11 : i64} {
  func.func @_linear_kernel(%arg0: i32, %arg1: memref<128x8xf32, #tpu.memory_space<vmem>>, %arg2: memref<8x128xf32, #tpu.memory_space<vmem>>, %arg3: memref<1x128xf32, #tpu.memory_space<vmem>>, %arg4: memref<128x128xf32, #tpu.memory_space<vmem>>) attributes {dimension_semantics = [#tpu.dimension_semantics<parallel>], iteration_bounds = array<i64: 1>, scalar_prefetch = 0 : i64, scratch_operands = 0 : i64, tpu.core_type = #tpu.core_type<tc>, window_params = [{transform_indices = @transform_0, window_bounds = array<i64: 128, 8>}, {pipeline_mode = #tpu.pipeline_mode<synchronous>, transform_indices = @transform_1, window_bounds = array<i64: 8, 128>}, {pipeline_mode = #tpu.pipeline_mode<synchronous>, transform_indices = @transform_2, window_bounds = array<i64: 1, 128>}, {transform_indices = @transform_3, window_bounds = array<i64: 128, 128>}]} {
    %c0 = arith.constant 0 : index
    %c0_0 = arith.constant 0 : index
    %0 = vector.load %arg1[%c0, %c0_0] : memref<128x8xf32, #tpu.memory_space<vmem>>, vector<128x8xf32>
    %c0_1 = arith.constant 0 : index
    %c0_2 = arith.constant 0 : index
    %1 = vector.load %arg2[%c0_1, %c0_2] : memref<8x128xf32, #tpu.memory_space<vmem>>, vector<8x128xf32>
    %cst = arith.constant dense<0.000000e+00> : vector<128x128xf32>
    %2 = tpu.matmul %0, %1, %cst {dimension_numbers = #tpu.dot_dimension_numbers<[1], [0], [0], [1], [0, 0, 1, 1], [], []>} : vector<128x8xf32>, vector<8x128xf32>, vector<128x128xf32> -> vector<128x128xf32>
    %c0_3 = arith.constant 0 : index
    %c0_4 = arith.constant 0 : index
    %3 = vector.load %arg3[%c0_3, %c0_4] : memref<1x128xf32, #tpu.memory_space<vmem>>, vector<1x128xf32>
    %4 = vector.broadcast %3 : vector<1x128xf32> to vector<128x128xf32>
    %5 = arith.addf %2, %4 : vector<128x128xf32>
    %cst_5 = arith.constant 0.000000e+00 : f32
    %6 = vector.broadcast %cst_5 : f32 to vector<128x128xf32>
    %7 = arith.maximumf %5, %6 : vector<128x128xf32>
    %c0_6 = arith.constant 0 : index
    %c0_7 = arith.constant 0 : index
    %8 = vector.load %arg4[%c0_6, %c0_7] : memref<128x128xf32, #tpu.memory_space<vmem>>, vector<128x128xf32>
    tpu.vector_store %arg4[%c0_6, %c0_7], %7 {strides = array<i32>} : memref<128x128xf32, #tpu.memory_space<vmem>>, vector<128x128xf32>,
    return
  }
  func.func @transform_0(%arg0: i32) -> (i32, i32) {
    %c0_i32 = arith.constant 0 : i32
    %c0_i32_0 = arith.constant 0 : i32
    return %arg0, %c0_i32 : i32, i32
  }
  func.func @transform_1(%arg0: i32) -> (i32, i32) {
    %c0_i32 = arith.constant 0 : i32
    %c0_i32_0 = arith.constant 0 : i32
    %c0_i32_1 = arith.constant 0 : i32
    return %c0_i32, %c0_i32_0 : i32, i32
  }
  func.func @transform_2(%arg0: i32) -> (i32, i32) {
    %c0_i32 = arith.constant 0 : i32
    %c0_i32_0 = arith.constant 0 : i32
    %c0_i32_1 = arith.constant 0 : i32
    return %c0_i32, %c0_i32_0 : i32, i32
  }
  func.func @transform_3(%arg0: i32) -> (i32, i32) {
    %c0_i32 = arith.constant 0 : i32
    %c0_i32_0 = arith.constant 0 : i32
    return %arg0, %c0_i32 : i32, i32
  }
}

module attributes {stable_mosaic.version = 11 : i64} {
  func.func @_linear_kernel(%arg0: i32, %arg1: memref<64x640xf32, #tpu.memory_space<vmem>>, %arg2: memref<640x256xf32, #tpu.memory_space<vmem>>, %arg3: memref<1x256xf32, #tpu.memory_space<vmem>>, %arg4: memref<64x256xf32, #tpu.memory_space<vmem>>) attributes {dimension_semantics = [#tpu.dimension_semantics<parallel>], iteration_bounds = array<i64: 1>, scalar_prefetch = 0 : i64, scratch_operands = 0 : i64, tpu.core_type = #tpu.core_type<tc>, window_params = [{transform_indices = @transform_0, window_bounds = array<i64: 64, 640>}, {pipeline_mode = #tpu.pipeline_mode<synchronous>, transform_indices = @transform_1, window_bounds = array<i64: 640, 256>}, {pipeline_mode = #tpu.pipeline_mode<synchronous>, transform_indices = @transform_2, window_bounds = array<i64: 1, 256>}, {transform_indices = @transform_3, window_bounds = array<i64: 64, 256>}]} {
    %c0 = arith.constant 0 : index
    %c0_0 = arith.constant 0 : index
    %0 = vector.load %arg1[%c0, %c0_0] : memref<64x640xf32, #tpu.memory_space<vmem>>, vector<64x640xf32>
    %c0_1 = arith.constant 0 : index
    %c0_2 = arith.constant 0 : index
    %1 = vector.load %arg2[%c0_1, %c0_2] : memref<640x256xf32, #tpu.memory_space<vmem>>, vector<640x256xf32>
    %cst = arith.constant dense<0.000000e+00> : vector<64x256xf32>
    %2 = tpu.matmul %0, %1, %cst {dimension_numbers = #tpu.dot_dimension_numbers<[1], [0], [0], [1], [0, 0, 1, 1], [], []>} : vector<64x640xf32>, vector<640x256xf32>, vector<64x256xf32> -> vector<64x256xf32>
    %c0_3 = arith.constant 0 : index
    %c0_4 = arith.constant 0 : index
    %3 = vector.load %arg3[%c0_3, %c0_4] : memref<1x256xf32, #tpu.memory_space<vmem>>, vector<1x256xf32>
    %4 = vector.broadcast %3 : vector<1x256xf32> to vector<64x256xf32>
    %5 = arith.addf %2, %4 : vector<64x256xf32>
    %cst_5 = arith.constant 0.000000e+00 : f32
    %6 = vector.broadcast %cst_5 : f32 to vector<64x256xf32>
    %7 = arith.maximumf %5, %6 : vector<64x256xf32>
    %c0_6 = arith.constant 0 : index
    %c0_7 = arith.constant 0 : index
    %8 = vector.load %arg4[%c0_6, %c0_7] : memref<64x256xf32, #tpu.memory_space<vmem>>, vector<64x256xf32>
    tpu.vector_store %arg4[%c0_6, %c0_7], %7 {strides = array<i32>} : memref<64x256xf32, #tpu.memory_space<vmem>>, vector<64x256xf32>,
    return
  }
  func.func @transform_0(%arg0: i32) -> (i32, i32) {
    %c0_i32 = arith.constant 0 : i32
    %c0_i32_0 = arith.constant 0 : i32
    return %arg0, %c0_i32 : i32, i32
  }
  func.func @transform_1(%arg0: i32) -> (i32, i32) {
    %c0_i32 = arith.constant 0 : i32
    %c0_i32_0 = arith.constant 0 : i32
    %c0_i32_1 = arith.constant 0 : i32
    return %c0_i32, %c0_i32_0 : i32, i32
  }
  func.func @transform_2(%arg0: i32) -> (i32, i32) {
    %c0_i32 = arith.constant 0 : i32
    %c0_i32_0 = arith.constant 0 : i32
    %c0_i32_1 = arith.constant 0 : i32
    return %c0_i32, %c0_i32_0 : i32, i32
  }
  func.func @transform_3(%arg0: i32) -> (i32, i32) {
    %c0_i32 = arith.constant 0 : i32
    %c0_i32_0 = arith.constant 0 : i32
    return %arg0, %c0_i32 : i32, i32
  }
}

module attributes {stable_mosaic.version = 11 : i64} {
  func.func @_linear_kernel(%arg0: i32, %arg1: memref<32x1280xf32, #tpu.memory_space<vmem>>, %arg2: memref<1280x512xf32, #tpu.memory_space<vmem>>, %arg3: memref<1x512xf32, #tpu.memory_space<vmem>>, %arg4: memref<32x512xf32, #tpu.memory_space<vmem>>) attributes {dimension_semantics = [#tpu.dimension_semantics<parallel>], iteration_bounds = array<i64: 1>, scalar_prefetch = 0 : i64, scratch_operands = 0 : i64, tpu.core_type = #tpu.core_type<tc>, window_params = [{transform_indices = @transform_0, window_bounds = array<i64: 32, 1280>}, {pipeline_mode = #tpu.pipeline_mode<synchronous>, transform_indices = @transform_1, window_bounds = array<i64: 1280, 512>}, {pipeline_mode = #tpu.pipeline_mode<synchronous>, transform_indices = @transform_2, window_bounds = array<i64: 1, 512>}, {transform_indices = @transform_3, window_bounds = array<i64: 32, 512>}]} {
    %c0 = arith.constant 0 : index
    %c0_0 = arith.constant 0 : index
    %0 = vector.load %arg1[%c0, %c0_0] : memref<32x1280xf32, #tpu.memory_space<vmem>>, vector<32x1280xf32>
    %c0_1 = arith.constant 0 : index
    %c0_2 = arith.constant 0 : index
    %1 = vector.load %arg2[%c0_1, %c0_2] : memref<1280x512xf32, #tpu.memory_space<vmem>>, vector<1280x512xf32>
    %cst = arith.constant dense<0.000000e+00> : vector<32x512xf32>
    %2 = tpu.matmul %0, %1, %cst {dimension_numbers = #tpu.dot_dimension_numbers<[1], [0], [0], [1], [0, 0, 1, 1], [], []>} : vector<32x1280xf32>, vector<1280x512xf32>, vector<32x512xf32> -> vector<32x512xf32>
    %c0_3 = arith.constant 0 : index
    %c0_4 = arith.constant 0 : index
    %3 = vector.load %arg3[%c0_3, %c0_4] : memref<1x512xf32, #tpu.memory_space<vmem>>, vector<1x512xf32>
    %4 = vector.broadcast %3 : vector<1x512xf32> to vector<32x512xf32>
    %5 = arith.addf %2, %4 : vector<32x512xf32>
    %cst_5 = arith.constant 0.000000e+00 : f32
    %6 = vector.broadcast %cst_5 : f32 to vector<32x512xf32>
    %7 = arith.maximumf %5, %6 : vector<32x512xf32>
    %c0_6 = arith.constant 0 : index
    %c0_7 = arith.constant 0 : index
    %8 = vector.load %arg4[%c0_6, %c0_7] : memref<32x512xf32, #tpu.memory_space<vmem>>, vector<32x512xf32>
    tpu.vector_store %arg4[%c0_6, %c0_7], %7 {strides = array<i32>} : memref<32x512xf32, #tpu.memory_space<vmem>>, vector<32x512xf32>,
    return
  }
  func.func @transform_0(%arg0: i32) -> (i32, i32) {
    %c0_i32 = arith.constant 0 : i32
    %c0_i32_0 = arith.constant 0 : i32
    return %arg0, %c0_i32 : i32, i32
  }
  func.func @transform_1(%arg0: i32) -> (i32, i32) {
    %c0_i32 = arith.constant 0 : i32
    %c0_i32_0 = arith.constant 0 : i32
    %c0_i32_1 = arith.constant 0 : i32
    return %c0_i32, %c0_i32_0 : i32, i32
  }
  func.func @transform_2(%arg0: i32) -> (i32, i32) {
    %c0_i32 = arith.constant 0 : i32
    %c0_i32_0 = arith.constant 0 : i32
    %c0_i32_1 = arith.constant 0 : i32
    return %c0_i32, %c0_i32_0 : i32, i32
  }
  func.func @transform_3(%arg0: i32) -> (i32, i32) {
    %c0_i32 = arith.constant 0 : i32
    %c0_i32_0 = arith.constant 0 : i32
    return %arg0, %c0_i32 : i32, i32
  }
}

module attributes {stable_mosaic.version = 11 : i64} {
  func.func @_conformer_stack_kernel(%arg0: i32, %arg1: i32, %arg2: memref<32x512xf32, #tpu.memory_space<vmem>>, %arg3: memref<1x1x512xf32, #tpu.memory_space<vmem>>, %arg4: memref<1x1x512xf32, #tpu.memory_space<vmem>>, %arg5: memref<1x512x512xf32, #tpu.memory_space<vmem>>, %arg6: memref<1x1x512xf32, #tpu.memory_space<vmem>>, %arg7: memref<1x512x512xf32, #tpu.memory_space<vmem>>, %arg8: memref<1x1x512xf32, #tpu.memory_space<vmem>>, %arg9: memref<32x512xf32, #tpu.memory_space<vmem>>, %arg10: memref<32x512xf32, #tpu.memory_space<vmem>>) attributes {dimension_semantics = [#tpu.dimension_semantics<parallel>, #tpu.dimension_semantics<arbitrary>], iteration_bounds = array<i64: 1, 8>, scalar_prefetch = 0 : i64, scratch_operands = 1 : i64, tpu.core_type = #tpu.core_type<tc>, window_params = [{transform_indices = @transform_0, window_bounds = array<i64: 32, 512>}, {transform_indices = @transform_1, window_bounds = array<i64: 1, 1, 512>}, {transform_indices = @transform_2, window_bounds = array<i64: 1, 1, 512>}, {transform_indices = @transform_3, window_bounds = array<i64: 1, 512, 512>}, {transform_indices = @transform_4, window_bounds = array<i64: 1, 1, 512>}, {transform_indices = @transform_5, window_bounds = array<i64: 1, 512, 512>}, {transform_indices = @transform_6, window_bounds = array<i64: 1, 1, 512>}, {transform_indices = @transform_7, window_bounds = array<i64: 32, 512>}]} {
    %c0_i32 = arith.constant 0 : i32
    %0 = arith.cmpi eq, %arg1, %c0_i32 : i32
    %1 = arith.extui %0 : i1 to i32
    %c0_i32_0 = arith.constant 0 : i32
    %2 = arith.cmpi ne, %1, %c0_i32_0 : i32
    scf.if %2 {
      %c0_33 = arith.constant 0 : index
      %c0_34 = arith.constant 0 : index
      %60 = vector.load %arg2[%c0_33, %c0_34] : memref<32x512xf32, #tpu.memory_space<vmem>>, vector<32x512xf32>
      %c0_35 = arith.constant 0 : index
      %c0_36 = arith.constant 0 : index
      %61 = vector.load %arg10[%c0_35, %c0_36] : memref<32x512xf32, #tpu.memory_space<vmem>>, vector<32x512xf32>
      tpu.vector_store %arg10[%c0_35, %c0_36], %60 {strides = array<i32>} : memref<32x512xf32, #tpu.memory_space<vmem>>, vector<32x512xf32>,
    } else {
    }
    %c0 = arith.constant 0 : index
    %c0_1 = arith.constant 0 : index
    %3 = vector.load %arg10[%c0, %c0_1] : memref<32x512xf32, #tpu.memory_space<vmem>>, vector<32x512xf32>
    %cst = arith.constant dense<0.000000e+00> : vector<32xf32>
    %4 = vector.multi_reduction <add>, %3, %cst [1] : vector<32x512xf32> to vector<32xf32>
    %5 = vector.shape_cast %4 : vector<32xf32> to vector<32x1xf32>
    %cst_2 = arith.constant 5.120000e+02 : f32
    %6 = vector.broadcast %cst_2 : f32 to vector<32x1xf32>
    %7 = arith.divf %5, %6 : vector<32x1xf32>
    %8 = vector.broadcast %7 : vector<32x1xf32> to vector<32x512xf32>
    %9 = arith.subf %3, %8 : vector<32x512xf32>
    %10 = arith.mulf %9, %9 : vector<32x512xf32>
    %cst_3 = arith.constant dense<0.000000e+00> : vector<32xf32>
    %11 = vector.multi_reduction <add>, %10, %cst_3 [1] : vector<32x512xf32> to vector<32xf32>
    %12 = vector.shape_cast %11 : vector<32xf32> to vector<32x1xf32>
    %cst_4 = arith.constant 5.120000e+02 : f32
    %13 = vector.broadcast %cst_4 : f32 to vector<32x1xf32>
    %14 = arith.divf %12, %13 : vector<32x1xf32>
    %cst_5 = arith.constant 9.99999974E-6 : f32
    %15 = vector.broadcast %cst_5 : f32 to vector<32x1xf32>
    %16 = arith.addf %14, %15 : vector<32x1xf32>
    %17 = math.rsqrt %16 : vector<32x1xf32>
    %18 = vector.broadcast %17 : vector<32x1xf32> to vector<32x512xf32>
    %19 = arith.mulf %9, %18 : vector<32x512xf32>
    %c0_6 = arith.constant 0 : index
    %c0_7 = arith.constant 0 : index
    %c0_8 = arith.constant 0 : index
    %20 = vector.load %arg3[%c0_6, %c0_7, %c0_8] : memref<1x1x512xf32, #tpu.memory_space<vmem>>, vector<1x1x512xf32>
    %21 = vector.shape_cast %20 : vector<1x1x512xf32> to vector<1x512xf32>
    %22 = vector.broadcast %21 : vector<1x512xf32> to vector<32x512xf32>
    %23 = arith.mulf %19, %22 : vector<32x512xf32>
    %c0_9 = arith.constant 0 : index
    %c0_10 = arith.constant 0 : index
    %c0_11 = arith.constant 0 : index
    %24 = vector.load %arg4[%c0_9, %c0_10, %c0_11] : memref<1x1x512xf32, #tpu.memory_space<vmem>>, vector<1x1x512xf32>
    %25 = vector.shape_cast %24 : vector<1x1x512xf32> to vector<1x512xf32>
    %26 = vector.broadcast %25 : vector<1x512xf32> to vector<32x512xf32>
    %27 = arith.addf %23, %26 : vector<32x512xf32>
    %c0_12 = arith.constant 0 : index
    %c0_13 = arith.constant 0 : index
    %c0_14 = arith.constant 0 : index
    %28 = vector.load %arg5[%c0_12, %c0_13, %c0_14] : memref<1x512x512xf32, #tpu.memory_space<vmem>>, vector<1x512x512xf32>
    %29 = vector.shape_cast %28 : vector<1x512x512xf32> to vector<512x512xf32>
    %cst_15 = arith.constant dense<0.000000e+00> : vector<32x512xf32>
    %30 = tpu.matmul %27, %29, %cst_15 {dimension_numbers = #tpu.dot_dimension_numbers<[1], [0], [0], [1], [0, 0, 1, 1], [], []>} : vector<32x512xf32>, vector<512x512xf32>, vector<32x512xf32> -> vector<32x512xf32>
    %c0_16 = arith.constant 0 : index
    %c0_17 = arith.constant 0 : index
    %c0_18 = arith.constant 0 : index
    %31 = vector.load %arg6[%c0_16, %c0_17, %c0_18] : memref<1x1x512xf32, #tpu.memory_space<vmem>>, vector<1x1x512xf32>
    %32 = vector.shape_cast %31 : vector<1x1x512xf32> to vector<1x512xf32>
    %33 = vector.broadcast %32 : vector<1x512xf32> to vector<32x512xf32>
    %34 = arith.addf %30, %33 : vector<32x512xf32>
    %cst_19 = arith.constant 5.000000e-01 : f32
    %35 = vector.broadcast %cst_19 : f32 to vector<32x512xf32>
    %36 = arith.mulf %35, %34 : vector<32x512xf32>
    %cst_20 = arith.constant 4.471500e-02 : f32
    %37 = vector.broadcast %cst_20 : f32 to vector<32x512xf32>
    %38 = arith.mulf %37, %34 : vector<32x512xf32>
    %39 = arith.mulf %38, %34 : vector<32x512xf32>
    %40 = arith.mulf %39, %34 : vector<32x512xf32>
    %41 = arith.addf %34, %40 : vector<32x512xf32>
    %cst_21 = arith.constant 0.797884583 : f32
    %42 = vector.broadcast %cst_21 : f32 to vector<32x512xf32>
    %43 = arith.mulf %42, %41 : vector<32x512xf32>
    %44 = math.tanh %43 : vector<32x512xf32>
    %cst_22 = arith.constant 1.000000e+00 : f32
    %45 = vector.broadcast %cst_22 : f32 to vector<32x512xf32>
    %46 = arith.addf %45, %44 : vector<32x512xf32>
    %47 = arith.mulf %36, %46 : vector<32x512xf32>
    %c0_23 = arith.constant 0 : index
    %c0_24 = arith.constant 0 : index
    %c0_25 = arith.constant 0 : index
    %48 = vector.load %arg7[%c0_23, %c0_24, %c0_25] : memref<1x512x512xf32, #tpu.memory_space<vmem>>, vector<1x512x512xf32>
    %49 = vector.shape_cast %48 : vector<1x512x512xf32> to vector<512x512xf32>
    %cst_26 = arith.constant dense<0.000000e+00> : vector<32x512xf32>
    %50 = tpu.matmul %47, %49, %cst_26 {dimension_numbers = #tpu.dot_dimension_numbers<[1], [0], [0], [1], [0, 0, 1, 1], [], []>} : vector<32x512xf32>, vector<512x512xf32>, vector<32x512xf32> -> vector<32x512xf32>
    %c0_27 = arith.constant 0 : index
    %c0_28 = arith.constant 0 : index
    %c0_29 = arith.constant 0 : index
    %51 = vector.load %arg8[%c0_27, %c0_28, %c0_29] : memref<1x1x512xf32, #tpu.memory_space<vmem>>, vector<1x1x512xf32>
    %52 = vector.shape_cast %51 : vector<1x1x512xf32> to vector<1x512xf32>
    %53 = vector.broadcast %52 : vector<1x512xf32> to vector<32x512xf32>
    %54 = arith.addf %50, %53 : vector<32x512xf32>
    %55 = arith.addf %3, %54 : vector<32x512xf32>
    %c0_30 = arith.constant 0 : index
    %c0_31 = arith.constant 0 : index
    %56 = vector.load %arg10[%c0_30, %c0_31] : memref<32x512xf32, #tpu.memory_space<vmem>>, vector<32x512xf32>
    tpu.vector_store %arg10[%c0_30, %c0_31], %55 {strides = array<i32>} : memref<32x512xf32, #tpu.memory_space<vmem>>, vector<32x512xf32>,
    %c7_i32 = arith.constant 7 : i32
    %57 = arith.cmpi eq, %arg1, %c7_i32 : i32
    %58 = arith.extui %57 : i1 to i32
    %c0_i32_32 = arith.constant 0 : i32
    %59 = arith.cmpi ne, %58, %c0_i32_32 : i32
    scf.if %59 {
      %c0_33 = arith.constant 0 : index
      %c0_34 = arith.constant 0 : index
      %60 = vector.load %arg10[%c0_33, %c0_34] : memref<32x512xf32, #tpu.memory_space<vmem>>, vector<32x512xf32>
      %c0_35 = arith.constant 0 : index
      %c0_36 = arith.constant 0 : index
      %61 = vector.load %arg9[%c0_35, %c0_36] : memref<32x512xf32, #tpu.memory_space<vmem>>, vector<32x512xf32>
      tpu.vector_store %arg9[%c0_35, %c0_36], %60 {strides = array<i32>} : memref<32x512xf32, #tpu.memory_space<vmem>>, vector<32x512xf32>,
    } else {
    }
    return
  }
  func.func @transform_0(%arg0: i32, %arg1: i32) -> (i32, i32) {
    %c0_i32 = arith.constant 0 : i32
    %c0_i32_0 = arith.constant 0 : i32
    return %arg0, %c0_i32 : i32, i32
  }
  func.func @transform_1(%arg0: i32, %arg1: i32) -> (i32, i32, i32) {
    %c0_i32 = arith.constant 0 : i32
    %c0_i32_0 = arith.constant 0 : i32
    %c0_i32_1 = arith.constant 0 : i32
    return %arg1, %c0_i32, %c0_i32_0 : i32, i32, i32
  }
  func.func @transform_2(%arg0: i32, %arg1: i32) -> (i32, i32, i32) {
    %c0_i32 = arith.constant 0 : i32
    %c0_i32_0 = arith.constant 0 : i32
    %c0_i32_1 = arith.constant 0 : i32
    return %arg1, %c0_i32, %c0_i32_0 : i32, i32, i32
  }
  func.func @transform_3(%arg0: i32, %arg1: i32) -> (i32, i32, i32) {
    %c0_i32 = arith.constant 0 : i32
    %c0_i32_0 = arith.constant 0 : i32
    %c0_i32_1 = arith.constant 0 : i32
    return %arg1, %c0_i32, %c0_i32_0 : i32, i32, i32
  }
  func.func @transform_4(%arg0: i32, %arg1: i32) -> (i32, i32, i32) {
    %c0_i32 = arith.constant 0 : i32
    %c0_i32_0 = arith.constant 0 : i32
    %c0_i32_1 = arith.constant 0 : i32
    return %arg1, %c0_i32, %c0_i32_0 : i32, i32, i32
  }
  func.func @transform_5(%arg0: i32, %arg1: i32) -> (i32, i32, i32) {
    %c0_i32 = arith.constant 0 : i32
    %c0_i32_0 = arith.constant 0 : i32
    %c0_i32_1 = arith.constant 0 : i32
    return %arg1, %c0_i32, %c0_i32_0 : i32, i32, i32
  }
  func.func @transform_6(%arg0: i32, %arg1: i32) -> (i32, i32, i32) {
    %c0_i32 = arith.constant 0 : i32
    %c0_i32_0 = arith.constant 0 : i32
    %c0_i32_1 = arith.constant 0 : i32
    return %arg1, %c0_i32, %c0_i32_0 : i32, i32, i32
  }
  func.func @transform_7(%arg0: i32, %arg1: i32) -> (i32, i32) {
    %c0_i32 = arith.constant 0 : i32
    %c0_i32_0 = arith.constant 0 : i32
    return %arg0, %c0_i32 : i32, i32
  }
}

module attributes {stable_mosaic.version = 11 : i64} {
  func.func @_proj_decoder_kernel(%arg0: i32, %arg1: memref<32x512xf32, #tpu.memory_space<vmem>>, %arg2: memref<512x128xf32, #tpu.memory_space<vmem>>, %arg3: memref<1x128xf32, #tpu.memory_space<vmem>>, %arg4: memref<128x128xf32, #tpu.memory_space<vmem>>, %arg5: memref<1x128xf32, #tpu.memory_space<vmem>>, %arg6: memref<32x128xf32, #tpu.memory_space<vmem>>) attributes {dimension_semantics = [#tpu.dimension_semantics<parallel>], iteration_bounds = array<i64: 1>, scalar_prefetch = 0 : i64, scratch_operands = 0 : i64, tpu.core_type = #tpu.core_type<tc>, window_params = [{transform_indices = @transform_0, window_bounds = array<i64: 32, 512>}, {pipeline_mode = #tpu.pipeline_mode<synchronous>, transform_indices = @transform_1, window_bounds = array<i64: 512, 128>}, {pipeline_mode = #tpu.pipeline_mode<synchronous>, transform_indices = @transform_2, window_bounds = array<i64: 1, 128>}, {pipeline_mode = #tpu.pipeline_mode<synchronous>, transform_indices = @transform_3, window_bounds = array<i64: 128, 128>}, {pipeline_mode = #tpu.pipeline_mode<synchronous>, transform_indices = @transform_4, window_bounds = array<i64: 1, 128>}, {transform_indices = @transform_5, window_bounds = array<i64: 32, 128>}]} {
    %c0 = arith.constant 0 : index
    %c0_0 = arith.constant 0 : index
    %0 = vector.load %arg1[%c0, %c0_0] : memref<32x512xf32, #tpu.memory_space<vmem>>, vector<32x512xf32>
    %c0_1 = arith.constant 0 : index
    %c0_2 = arith.constant 0 : index
    %1 = vector.load %arg2[%c0_1, %c0_2] : memref<512x128xf32, #tpu.memory_space<vmem>>, vector<512x128xf32>
    %cst = arith.constant dense<0.000000e+00> : vector<32x128xf32>
    %2 = tpu.matmul %0, %1, %cst {dimension_numbers = #tpu.dot_dimension_numbers<[1], [0], [0], [1], [0, 0, 1, 1], [], []>} : vector<32x512xf32>, vector<512x128xf32>, vector<32x128xf32> -> vector<32x128xf32>
    %c0_3 = arith.constant 0 : index
    %c0_4 = arith.constant 0 : index
    %3 = vector.load %arg3[%c0_3, %c0_4] : memref<1x128xf32, #tpu.memory_space<vmem>>, vector<1x128xf32>
    %4 = vector.broadcast %3 : vector<1x128xf32> to vector<32x128xf32>
    %5 = arith.addf %2, %4 : vector<32x128xf32>
    %c0_5 = arith.constant 0 : index
    %c0_6 = arith.constant 0 : index
    %6 = vector.load %arg4[%c0_5, %c0_6] : memref<128x128xf32, #tpu.memory_space<vmem>>, vector<128x128xf32>
    %cst_7 = arith.constant dense<0.000000e+00> : vector<32x128xf32>
    %7 = tpu.matmul %5, %6, %cst_7 {dimension_numbers = #tpu.dot_dimension_numbers<[1], [0], [0], [1], [0, 0, 1, 1], [], []>} : vector<32x128xf32>, vector<128x128xf32>, vector<32x128xf32> -> vector<32x128xf32>
    %c0_8 = arith.constant 0 : index
    %c0_9 = arith.constant 0 : index
    %8 = vector.load %arg5[%c0_8, %c0_9] : memref<1x128xf32, #tpu.memory_space<vmem>>, vector<1x128xf32>
    %9 = vector.broadcast %8 : vector<1x128xf32> to vector<32x128xf32>
    %10 = arith.addf %7, %9 : vector<32x128xf32>
    %cst_10 = arith.constant dense<0xFF800000> : vector<32xf32>
    %11 = vector.multi_reduction <maximumf>, %10, %cst_10 [1] : vector<32x128xf32> to vector<32xf32>
    %12 = vector.shape_cast %11 : vector<32xf32> to vector<32x1xf32>
    %13 = vector.broadcast %12 : vector<32x1xf32> to vector<32x128xf32>
    %14 = arith.subf %10, %13 : vector<32x128xf32>
    %15 = math.exp %14 : vector<32x128xf32>
    %cst_11 = arith.constant dense<0.000000e+00> : vector<32xf32>
    %16 = vector.multi_reduction <add>, %15, %cst_11 [1] : vector<32x128xf32> to vector<32xf32>
    %17 = vector.shape_cast %16 : vector<32xf32> to vector<32x1xf32>
    %18 = math.log %17 : vector<32x1xf32>
    %19 = vector.broadcast %18 : vector<32x1xf32> to vector<32x128xf32>
    %20 = arith.subf %14, %19 : vector<32x128xf32>
    %c0_12 = arith.constant 0 : index
    %c0_13 = arith.constant 0 : index
    %21 = vector.load %arg6[%c0_12, %c0_13] : memref<32x128xf32, #tpu.memory_space<vmem>>, vector<32x128xf32>
    tpu.vector_store %arg6[%c0_12, %c0_13], %20 {strides = array<i32>} : memref<32x128xf32, #tpu.memory_space<vmem>>, vector<32x128xf32>,
    return
  }
  func.func @transform_0(%arg0: i32) -> (i32, i32) {
    %c0_i32 = arith.constant 0 : i32
    %c0_i32_0 = arith.constant 0 : i32
    return %arg0, %c0_i32 : i32, i32
  }
  func.func @transform_1(%arg0: i32) -> (i32, i32) {
    %c0_i32 = arith.constant 0 : i32
    %c0_i32_0 = arith.constant 0 : i32
    %c0_i32_1 = arith.constant 0 : i32
    return %c0_i32, %c0_i32_0 : i32, i32
  }
  func.func @transform_2(%arg0: i32) -> (i32, i32) {
    %c0_i32 = arith.constant 0 : i32
    %c0_i32_0 = arith.constant 0 : i32
    %c0_i32_1 = arith.constant 0 : i32
    return %c0_i32, %c0_i32_0 : i32, i32
  }
  func.func @transform_3(%arg0: i32) -> (i32, i32) {
    %c0_i32 = arith.constant 0 : i32
    %c0_i32_0 = arith.constant 0 : i32
    %c0_i32_1 = arith.constant 0 : i32
    return %c0_i32, %c0_i32_0 : i32, i32
  }
  func.func @transform_4(%arg0: i32) -> (i32, i32) {
    %c0_i32 = arith.constant 0 : i32
    %c0_i32_0 = arith.constant 0 : i32
    %c0_i32_1 = arith.constant 0 : i32
    return %c0_i32, %c0_i32_0 : i32, i32
  }
  func.func @transform_5(%arg0: i32) -> (i32, i32) {
    %c0_i32 = arith.constant 0 : i32
    %c0_i32_0 = arith.constant 0 : i32
    return %arg0, %c0_i32 : i32, i32
  }
}

</mosaic_0001>

<bundles_post_ra>
// kernel: hindi_asr_forward.5
= control target key start
LH: loop header
LB: loop body
LE: loop exit
PB: predicated region body
PF: predicated region fallthrough
CT: control target
= control target key end

     0   :  { %8 = vsyncpa [#allocation3], 0  ;;  %s542_s0 = inlined_call_operand.vmem [shape: f32[128,8], index: 0, kind: input, shape index: {}]   ;;  %s543_s1 = inlined_call_operand.hbm [shape: f32[8,128], index: 1, kind: input, shape index: {}]   ;;  %s544_s2 = inlined_call_operand.hbm [shape: f32[1,128], index: 2, kind: input, shape index: {}]   ;;  %s545_s3 = inlined_call_operand.vmem [shape: f32[128,128], index: 3, kind: output, shape index: {}]  }
   0x1   :  { %9 = vsyncpa [#allocation5], 0  ;;  %s402_s12 = smov [#allocation2]   ;;  %s403_s14 = smov [#allocation4]  }
   0x2   :  { %s18_s13 = sshll.u32 %s402_s12, 4  ;;  %s28_s15 = sshll.u32 %s403_s14, 4  ;;  %s19_s13 = int_to_ptr.vmem [resolvable:$true] %s18_s13  ;;  %s29_s15 = int_to_ptr.vmem [resolvable:$true] %s28_s15 }
   0x3   :  { %s366_s16 = scalar_lea.vmem %s19_s13, 128  ;;  %p371_p1 = scmp.lt.s32.totalorder %s19_s13, %s19_s13 }
   0x4   :  { %p367_p0 = scmp.ne.s32.totalorder %s19_s13, %s366_s16  ;;  %p372_p2 = scmp.lt.s32.totalorder %s366_s16, %s366_s16 }
   0x6   :  { %p373_p3 = por %p372_p2, %p371_p1 }
   0x8   :  { %p374_p4 = pnand %p373_p3, %p367_p0 }
   0xa   :  { %377 = shalt.err (!%p374_p4)
}
   0xb   :  { %21 = dma.hbm_to_vmem [thread:$0]  %s543_s1, 128, %s19_s13, [#allocation3]  }
   0xc   :  { %s386_s19 = scalar_lea.vmem %s29_s15, 16  ;;  %s390_s20 = scalar_lea.vmem %s29_s15, 32 }
   0xd   :  { %p387_p5 = scmp.ne.s32.totalorder %s29_s15, %s386_s19  ;;  %p391_p6 = scmp.lt.s32.totalorder %s29_s15, %s29_s15 }
   0xe   :  { %p392_p7 = scmp.lt.s32.totalorder %s390_s20, %s386_s19 }
  0x10   :  { %p393_p8 = por %p392_p7, %p391_p6 }
  0x12   :  { %p394_p9 = pnand %p393_p8, %p387_p5 }
  0x14   :  { %397 = shalt.err (!%p394_p9)
}
  0x15   :  { %31 = dma.hbm_to_vmem [thread:$0]  %s544_s2, 16, %s29_s15, [#allocation5]  }
  0x16   :  { %398 = dma.done.wait [#allocation3], 128  }
  0x17   :  { %399 = vsyncadd [#allocation3], 4294967168 }
  0x18   :  { %400 = dma.done.wait [#allocation5], 16  }
  0x19   :  { %401 = vsyncadd [#allocation5], 4294967280  ;;  %v54_v0 = vld [vmem:[#allocation2] sm:$0xff]  ;;  %vm62_vm0 = vcmask 64512   ;;  %v39_v3 = vld [vmem:[%s542_s0 + $0x8] sm:$0xff] }
  0x1a   :  { %v38_v1 = vld [vmem:[%s542_s0] sm:$0xff]  ;;  %328 = vmatprep.subr.mxu0 %v54_v0  ;;  %354 = vmatprep.subr.mxu1 %v54_v0  ;;  %v47_v4 = vld [vmem:[%s542_s0 + $0x48] sm:$0xff]  ;;  %v40_v5 = vld [vmem:[%s542_s0 + $0x10] sm:$0xff] }
  0x1b   :  { %v46_v2 = vld [vmem:[%s542_s0 + $0x40] sm:$0xff]  ;;  %329 = vmatpush3.msra.mxu0 %v54_v0  ;;  %355 = vmatpush3.msra.mxu1 %v54_v0  ;;  %v48_v6 = vld [vmem:[%s542_s0 + $0x50] sm:$0xff]  ;;  %v41_v7 = vld [vmem:[%s542_s0 + $0x18] sm:$0xff] }
  0x1c   :  { %330 = vmatprep.mubr.msk.f32.mxu0 %vm62_vm0, %v38_v1  ;;  %342 = vmatprep.mubr.msk.f32.mxu1 %vm62_vm0, %v46_v2  ;;  %v49_v8 = vld [vmem:[%s542_s0 + $0x58] sm:$0xff]  ;;  %v42_v9 = vld [vmem:[%s542_s0 + $0x20] sm:$0xff]  ;;  %v43_v11 = vld [vmem:[%s542_s0 + $0x28] sm:$0xff] }
  0x1d   :  { %331 = vmatmul.mubr.msk.f32.vlgmr.msra.gmra.mxu0 %vm62_vm0, %v39_v3  ;;  %343 = vmatmul.mubr.msk.f32.vlgmr.msra.gmra.mxu1 %vm62_vm0, %v47_v4  ;;  %v50_v10 = vld [vmem:[%s542_s0 + $0x60] sm:$0xff]  ;;  %v51_v12 = vld [vmem:[%s542_s0 + $0x68] sm:$0xff]  ;;  %v44_v13 = vld [vmem:[%s542_s0 + $0x30] sm:$0xff] }
  0x1e   :  { %333 = vmatprep.mubr.msk.f32.mxu0 %vm62_vm0, %v40_v5  ;;  %345 = vmatprep.mubr.msk.f32.mxu1 %vm62_vm0, %v48_v6  ;;  %v52_v14 = vld [vmem:[%s542_s0 + $0x70] sm:$0xff]  ;;  %v45_v15 = vld [vmem:[%s542_s0 + $0x38] sm:$0xff]  ;;  %v294_v17 = vld [vmem:[#allocation4] ss:$0 sm:$0xff] }
  0x1f   :  { %v53_v16 = vld [vmem:[%s542_s0 + $0x78] sm:$0xff] }
  0x21   :  { %334 = vmatmul.mubr.msk.f32.gmra.mxu0 %vm62_vm0, %v41_v7  ;;  %346 = vmatmul.mubr.msk.f32.gmra.mxu1 %vm62_vm0, %v49_v8 }
  0x22   :  { %336 = vmatprep.mubr.msk.f32.mxu0 %vm62_vm0, %v42_v9  ;;  %348 = vmatprep.mubr.msk.f32.mxu1 %vm62_vm0, %v50_v10 }
  0x25   :  { %337 = vmatmul.mubr.msk.f32.gmra.mxu0 %vm62_vm0, %v43_v11  ;;  %349 = vmatmul.mubr.msk.f32.gmra.mxu1 %vm62_vm0, %v51_v12 }
  0x26   :  { %339 = vmatprep.mubr.msk.f32.mxu0 %vm62_vm0, %v44_v13  ;;  %351 = vmatprep.mubr.msk.f32.mxu1 %vm62_vm0, %v52_v14 }
  0x29   :  { %340 = vmatmul.mubr.msk.f32.gmra.mxu0 %vm62_vm0, %v45_v15  ;;  %352 = vmatmul.mubr.msk.f32.gmra.mxu1 %vm62_vm0, %v53_v16 }
  0xdd   :  { %v332_v18 = vpop.f32.mrf.mxu0  ;;  %v344_v19 = vpop.f32.mrf.mxu1 }
  0xde   :  { %v183_v20 = vadd.f32 %v332_v18, %v294_v17  ;;  %v223_v21 = vadd.f32 %v344_v19, %v294_v17 }
  0xdf   :  { %v177_v22 = vpop.f32.mrf.mxu0  ;;  %v217_v23 = vpop.f32.mrf.mxu1 }
  0xe0   :  { %v257_v24 = vmax.f32 %v183_v20, 0.0  ;;  %v265_v25 = vmax.f32 %v223_v21, 0.0  ;;  %v178_v26 = vadd.f32 %v294_v17, %v177_v22  ;;  %v218_v27 = vadd.f32 %v294_v17, %v217_v23 }
  0xe1   :  { %v335_v28 = vpop.f32.mrf.mxu0  ;;  %v347_v29 = vpop.f32.mrf.mxu1 }
  0xe2   :  { %273 = vst [vmem:[%s545_s3 + $0x8] sm:$0xff] %v257_v24  ;;  %281 = vst [vmem:[%s545_s3 + $0x48] sm:$0xff] %v265_v25  ;;  %v256_v30 = vmax.f32 %v178_v26, 0.0  ;;  %v264_v31 = vmax.f32 %v218_v27, 0.0  ;;  %v193_v32 = vadd.f32 %v335_v28, %v294_v17  ;;  %v233_v33 = vadd.f32 %v347_v29, %v294_v17 }
  0xe3   :  { %v187_v34 = vpop.f32.mrf.mxu0  ;;  %v227_v35 = vpop.f32.mrf.mxu1 }
  0xe4   :  { %272 = vst [vmem:[%s545_s3] sm:$0xff] %v256_v30  ;;  %280 = vst [vmem:[%s545_s3 + $0x40] sm:$0xff] %v264_v31  ;;  %v259_v36 = vmax.f32 %v193_v32, 0.0  ;;  %v267_v37 = vmax.f32 %v233_v33, 0.0  ;;  %v188_v38 = vadd.f32 %v294_v17, %v187_v34  ;;  %v228_v39 = vadd.f32 %v294_v17, %v227_v35 }
  0xe5   :  { %v338_v40 = vpop.f32.mrf.mxu0  ;;  %v350_v41 = vpop.f32.mrf.mxu1 }
  0xe6   :  { %275 = vst [vmem:[%s545_s3 + $0x18] sm:$0xff] %v259_v36  ;;  %283 = vst [vmem:[%s545_s3 + $0x58] sm:$0xff] %v267_v37  ;;  %v258_v42 = vmax.f32 %v188_v38, 0.0  ;;  %v266_v43 = vmax.f32 %v228_v39, 0.0  ;;  %v203_v44 = vadd.f32 %v338_v40, %v294_v17  ;;  %v243_v45 = vadd.f32 %v350_v41, %v294_v17 }
  0xe7   :  { %v197_v46 = vpop.f32.mrf.mxu0  ;;  %v237_v47 = vpop.f32.mrf.mxu1 }
  0xe8   :  { %274 = vst [vmem:[%s545_s3 + $0x10] sm:$0xff] %v258_v42  ;;  %282 = vst [vmem:[%s545_s3 + $0x50] sm:$0xff] %v266_v43  ;;  %v261_v48 = vmax.f32 %v203_v44, 0.0  ;;  %v269_v49 = vmax.f32 %v243_v45, 0.0  ;;  %v198_v50 = vadd.f32 %v294_v17, %v197_v46  ;;  %v238_v51 = vadd.f32 %v294_v17, %v237_v47 }
  0xe9   :  { %v341_v52 = vpop.f32.mrf.mxu0  ;;  %v353_v53 = vpop.f32.mrf.mxu1 }
  0xea   :  { %277 = vst [vmem:[%s545_s3 + $0x28] sm:$0xff] %v261_v48  ;;  %285 = vst [vmem:[%s545_s3 + $0x68] sm:$0xff] %v269_v49  ;;  %v260_v54 = vmax.f32 %v198_v50, 0.0  ;;  %v268_v55 = vmax.f32 %v238_v51, 0.0  ;;  %v213_v56 = vadd.f32 %v341_v52, %v294_v17  ;;  %v253_v57 = vadd.f32 %v353_v53, %v294_v17 }
  0xeb   :  { %v207_v58 = vpop.f32.mrf.mxu0  ;;  %v247_v59 = vpop.f32.mrf.mxu1 }
  0xec   :  { %276 = vst [vmem:[%s545_s3 + $0x20] sm:$0xff] %v260_v54  ;;  %284 = vst [vmem:[%s545_s3 + $0x60] sm:$0xff] %v268_v55  ;;  %v263_v60 = vmax.f32 %v213_v56, 0.0  ;;  %v271_v61 = vmax.f32 %v253_v57, 0.0  ;;  %v208_v62 = vadd.f32 %v294_v17, %v207_v58  ;;  %v248_v63 = vadd.f32 %v294_v17, %v247_v59 }
  0xee   :  { %279 = vst [vmem:[%s545_s3 + $0x38] sm:$0xff] %v263_v60  ;;  %287 = vst [vmem:[%s545_s3 + $0x78] sm:$0xff] %v271_v61  ;;  %v262_v0 = vmax.f32 %v208_v62, 0.0  ;;  %v270_v1 = vmax.f32 %v248_v63, 0.0 }
  0xf0   :  { %278 = vst [vmem:[%s545_s3 + $0x30] sm:$0xff] %v262_v0  ;;  %286 = vst [vmem:[%s545_s3 + $0x70] sm:$0xff] %v270_v1 }
  0xf1   :  { %292 = vsyncpa [#allocation3], 1 }
  0xf2   :  { %293 = vsyncpa [#allocation5], 1 }

// kernel: hindi_asr_forward.6
= control target key start
LH: loop header
LB: loop body
LE: loop exit
PB: predicated region body
PF: predicated region fallthrough
CT: control target
= control target key end

     0   :  { %8 = vsyncpa [#allocation3], 0  ;;  %s933_s0 = inlined_call_operand.vmem [shape: f32[64,640], index: 0, kind: input, shape index: {}]   ;;  %s934_s1 = inlined_call_operand.hbm [shape: f32[640,256], index: 1, kind: input, shape index: {}]   ;;  %s935_s2 = inlined_call_operand.hbm [shape: f32[1,256], index: 2, kind: input, shape index: {}]   ;;  %s936_s3 = inlined_call_operand.vmem [shape: f32[64,256], index: 3, kind: output, shape index: {}]  }
   0x1   :  { %9 = vsyncpa [#allocation5], 0  ;;  %s710_s12 = smov [#allocation2]  }
   0x2   :  { %s17_s13 = sshll.u32 %s710_s12, 4  ;;  %s18_s13 = int_to_ptr.vmem [resolvable:$true] %s17_s13 }
   0x3   :  { %s674_s14 = scalar_lea.vmem %s18_s13, 20480  ;;  %p679_p1 = scmp.lt.s32.totalorder %s18_s13, %s18_s13 }
   0x4   :  { %p675_p0 = scmp.ne.s32.totalorder %s18_s13, %s674_s14  ;;  %p680_p2 = scmp.lt.s32.totalorder %s674_s14, %s674_s14 }
   0x6   :  { %p681_p3 = por %p680_p2, %p679_p1 }
   0x8   :  { %p682_p4 = pnand %p681_p3, %p675_p0 }
   0xa   :  { %685 = shalt.err (!%p682_p4)
}
   0xb   :  { %s711_s15 = smov 256   ;;  %s712_s16 = smov 16  }
   0xc   :  { %23 = dma.hbm_to_vmem [thread:$0]  %s934_s1, 20480, %s18_s13, [#allocation3], %s711_s15, %s711_s15, %s712_s16  }
   0xd   :  { %s713_s19 = smov [#allocation4]  }
   0xe   :  { %s30_s20 = sshll.u32 %s713_s19, 4  ;;  %s31_s20 = int_to_ptr.vmem [resolvable:$true] %s30_s20 }
   0xf   :  { %s694_s21 = scalar_lea.vmem %s31_s20, 32  ;;  %p699_p6 = scmp.lt.s32.totalorder %s31_s20, %s31_s20 }
  0x10   :  { %p695_p5 = scmp.ne.s32.totalorder %s31_s20, %s694_s21  ;;  %p700_p7 = scmp.lt.s32.totalorder %s694_s21, %s694_s21 }
  0x12   :  { %p701_p8 = por %p700_p7, %p699_p6 }
  0x14   :  { %p702_p9 = pnand %p701_p8, %p695_p5 }
  0x16   :  { %705 = shalt.err (!%p702_p9)
}
  0x17   :  { %33 = dma.hbm_to_vmem [thread:$0]  %s935_s2, 32, %s31_s20, [#allocation5]  }
  0x18   :  { %706 = dma.done.wait [#allocation3], 20480  }
  0x19   :  { %707 = vsyncadd [#allocation3], 4294946816 }
  0x1a   :  { %708 = dma.done.wait [#allocation5], 32  }
  0x1b   :  { %709 = vsyncadd [#allocation5], 4294967264  ;;  %v111_v0 = vld [vmem:[#allocation2 + $0xf8] sm:$0xff]  ;;  %v110_v2 = vld [vmem:[#allocation2 + $0xf0] sm:$0xff] }
  0x1c   :  { %v175_v1 = vld [vmem:[#allocation2 + $0x2f8] sm:$0xff]  ;;  %252 = vmatprep.subr.mxu0 %v111_v0  ;;  %v174_v3 = vld [vmem:[#allocation2 + $0x2f0] sm:$0xff]  ;;  %v109_v4 = vld [vmem:[#allocation2 + $0xe8] sm:$0xff] }
  0x1d   :  { %365 = vmatprep.subr.mxu1 %v175_v1  ;;  %v173_v5 = vld [vmem:[#allocation2 + $0x2e8] sm:$0xff]  ;;  %253 = vmatpush1.msra.mxu0 %v110_v2  ;;  %v108_v6 = vld [vmem:[#allocation2 + $0xe0] sm:$0xff]  ;;  %v107_v8 = vld [vmem:[#allocation2 + $0xd8] sm:$0xff] }
  0x1e   :  { %366 = vmatpush1.msra.mxu1 %v174_v3  ;;  %v172_v7 = vld [vmem:[#allocation2 + $0x2e0] sm:$0xff]  ;;  %254 = vmatprep.subr.mxu0 %v109_v4  ;;  %v171_v9 = vld [vmem:[#allocation2 + $0x2d8] sm:$0xff]  ;;  %v106_v10 = vld [vmem:[#allocation2 + $0xd0] sm:$0xff] }
  0x1f   :  { %367 = vmatprep.subr.mxu1 %v173_v5  ;;  %v170_v11 = vld [vmem:[#allocation2 + $0x2d0] sm:$0xff]  ;;  %255 = vmatpush1.msra.mxu0 %v108_v6  ;;  %v105_v12 = vld [vmem:[#allocation2 + $0xc8] sm:$0xff]  ;;  %v104_v14 = vld [vmem:[#allocation2 + $0xc0] sm:$0xff] }
  0x20   :  { %368 = vmatpush1.msra.mxu1 %v172_v7  ;;  %v169_v13 = vld [vmem:[#allocation2 + $0x2c8] sm:$0xff]  ;;  %256 = vmatprep.subr.mxu0 %v107_v8  ;;  %v168_v15 = vld [vmem:[#allocation2 + $0x2c0] sm:$0xff]  ;;  %v103_v16 = vld [vmem:[#allocation2 + $0xb8] sm:$0xff] }
  0x21   :  { %369 = vmatprep.subr.mxu1 %v171_v9  ;;  %257 = vmatpush1.msra.mxu0 %v106_v10  ;;  %v167_v17 = vld [vmem:[#allocation2 + $0x2b8] sm:$0xff]  ;;  %v102_v18 = vld [vmem:[#allocation2 + $0xb0] sm:$0xff]  ;;  %v101_v20 = vld [vmem:[#allocation2 + $0xa8] sm:$0xff] }
  0x22   :  { %370 = vmatpush1.msra.mxu1 %v170_v11  ;;  %258 = vmatprep.subr.mxu0 %v105_v12  ;;  %v166_v19 = vld [vmem:[#allocation2 + $0x2b0] sm:$0xff]  ;;  %v165_v21 = vld [vmem:[#allocation2 + $0x2a8] sm:$0xff]  ;;  %v100_v22 = vld [vmem:[#allocation2 + $0xa0] sm:$0xff] }
  0x23   :  { %371 = vmatprep.subr.mxu1 %v169_v13  ;;  %259 = vmatpush1.msra.mxu0 %v104_v14  ;;  %v164_v23 = vld [vmem:[#allocation2 + $0x2a0] sm:$0xff]  ;;  %v99_v24 = vld [vmem:[#allocation2 + $0x98] sm:$0xff]  ;;  %v98_v26 = vld [vmem:[#allocation2 + $0x90] sm:$0xff] }
  0x24   :  { %372 = vmatpush1.msra.mxu1 %v168_v15  ;;  %260 = vmatprep.subr.mxu0 %v103_v16  ;;  %v163_v25 = vld [vmem:[#allocation2 + $0x298] sm:$0xff]  ;;  %v162_v27 = vld [vmem:[#allocation2 + $0x290] sm:$0xff]  ;;  %v97_v28 = vld [vmem:[#allocation2 + $0x88] sm:$0xff] }
  0x25   :  { %373 = vmatprep.subr.mxu1 %v167_v17  ;;  %261 = vmatpush1.msra.mxu0 %v102_v18  ;;  %v161_v29 = vld [vmem:[#allocation2 + $0x288] sm:$0xff]  ;;  %v96_v30 = vld [vmem:[#allocation2 + $0x80] sm:$0xff]  ;;  %v95_v32 = vld [vmem:[#allocation2 + $0x78] sm:$0xff] }
  0x26   :  { %374 = vmatpush1.msra.mxu1 %v166_v19  ;;  %262 = vmatprep.subr.mxu0 %v101_v20  ;;  %v160_v31 = vld [vmem:[#allocation2 + $0x280] sm:$0xff]  ;;  %v159_v33 = vld [vmem:[#allocation2 + $0x278] sm:$0xff]  ;;  %v94_v34 = vld [vmem:[#allocation2 + $0x70] sm:$0xff] }
  0x27   :  { %375 = vmatprep.subr.mxu1 %v165_v21  ;;  %263 = vmatpush1.msra.mxu0 %v100_v22  ;;  %v158_v35 = vld [vmem:[#allocation2 + $0x270] sm:$0xff]  ;;  %v93_v36 = vld [vmem:[#allocation2 + $0x68] sm:$0xff]  ;;  %v92_v38 = vld [vmem:[#allocation2 + $0x60] sm:$0xff] }
  0x28   :  { %376 = vmatpush1.msra.mxu1 %v164_v23  ;;  %264 = vmatprep.subr.mxu0 %v99_v24  ;;  %v157_v37 = vld [vmem:[#allocation2 + $0x268] sm:$0xff]  ;;  %v156_v39 = vld [vmem:[#allocation2 + $0x260] sm:$0xff]  ;;  %v91_v40 = vld [vmem:[#allocation2 + $0x58] sm:$0xff] }
  0x29   :  { %377 = vmatprep.subr.mxu1 %v163_v25  ;;  %265 = vmatpush1.msra.mxu0 %v98_v26  ;;  %v155_v41 = vld [vmem:[#allocation2 + $0x258] sm:$0xff]  ;;  %v90_v42 = vld [vmem:[#allocation2 + $0x50] sm:$0xff]  ;;  %v89_v44 = vld [vmem:[#allocation2 + $0x48] sm:$0xff] }
  0x2a   :  { %378 = vmatpush1.msra.mxu1 %v162_v27  ;;  %266 = vmatprep.subr.mxu0 %v97_v28  ;;  %v154_v43 = vld [vmem:[#allocation2 + $0x250] sm:$0xff]  ;;  %v153_v45 = vld [vmem:[#allocation2 + $0x248] sm:$0xff]  ;;  %v88_v46 = vld [vmem:[#allocation2 + $0x40] sm:$0xff] }
  0x2b   :  { %379 = vmatprep.subr.mxu1 %v161_v29  ;;  %267 = vmatpush1.msra.mxu0 %v96_v30  ;;  %v152_v47 = vld [vmem:[#allocation2 + $0x240] sm:$0xff]  ;;  %v87_v48 = vld [vmem:[#allocation2 + $0x38] sm:$0xff]  ;;  %v86_v50 = vld [vmem:[#allocation2 + $0x30] sm:$0xff] }
  0x2c   :  { %380 = vmatpush1.msra.mxu1 %v160_v31  ;;  %268 = vmatprep.subr.mxu0 %v95_v32  ;;  %v151_v49 = vld [vmem:[#allocation2 + $0x238] sm:$0xff]  ;;  %v150_v51 = vld [vmem:[#allocation2 + $0x230] sm:$0xff]  ;;  %v85_v52 = vld [vmem:[#allocation2 + $0x28] sm:$0xff] }
  0x2d   :  { %381 = vmatprep.subr.mxu1 %v159_v33  ;;  %269 = vmatpush1.msra.mxu0 %v94_v34  ;;  %v149_v53 = vld [vmem:[#allocation2 + $0x228] sm:$0xff]  ;;  %v84_v54 = vld [vmem:[#allocation2 + $0x20] sm:$0xff]  ;;  %v83_v56 = vld [vmem:[#allocation2 + $0x18] sm:$0xff] }
  0x2e   :  { %382 = vmatpush1.msra.mxu1 %v158_v35  ;;  %270 = vmatprep.subr.mxu0 %v93_v36  ;;  %v148_v55 = vld [vmem:[#allocation2 + $0x220] sm:$0xff]  ;;  %v147_v57 = vld [vmem:[#allocation2 + $0x218] sm:$0xff]  ;;  %v82_v58 = vld [vmem:[#allocation2 + $0x10] sm:$0xff] }
  0x2f   :  { %383 = vmatprep.subr.mxu1 %v157_v37  ;;  %271 = vmatpush1.msra.mxu0 %v92_v38  ;;  %v146_v59 = vld [vmem:[#allocation2 + $0x210] sm:$0xff]  ;;  %v81_v60 = vld [vmem:[#allocation2 + $0x8] sm:$0xff]  ;;  %v80_v62 = vld [vmem:[#allocation2] sm:$0xff] }
  0x30   :  { %384 = vmatpush1.msra.mxu1 %v156_v39  ;;  %272 = vmatprep.subr.mxu0 %v91_v40  ;;  %v145_v61 = vld [vmem:[#allocation2 + $0x208] sm:$0xff]  ;;  %v144_v63 = vld [vmem:[#allocation2 + $0x200] sm:$0xff]  ;;  %v143_v0 = vld [vmem:[#allocation2 + $0x1f8] sm:$0xff] }
  0x31   :  { %385 = vmatprep.subr.mxu1 %v155_v41  ;;  %273 = vmatpush1.msra.mxu0 %v90_v42  ;;  %v207_v1 = vld [vmem:[#allocation2 + $0x3f8] sm:$0xff]  ;;  %v142_v2 = vld [vmem:[#allocation2 + $0x1f0] sm:$0xff]  ;;  %v141_v4 = vld [vmem:[#allocation2 + $0x1e8] sm:$0xff] }
  0x32   :  { %386 = vmatpush1.msra.mxu1 %v154_v43  ;;  %274 = vmatprep.subr.mxu0 %v89_v44  ;;  %v206_v3 = vld [vmem:[#allocation2 + $0x3f0] sm:$0xff]  ;;  %v205_v5 = vld [vmem:[#allocation2 + $0x3e8] sm:$0xff]  ;;  %v140_v6 = vld [vmem:[#allocation2 + $0x1e0] sm:$0xff] }
  0x33   :  { %387 = vmatprep.subr.mxu1 %v153_v45  ;;  %275 = vmatpush1.msra.mxu0 %v88_v46  ;;  %v204_v7 = vld [vmem:[#allocation2 + $0x3e0] sm:$0xff]  ;;  %v139_v8 = vld [vmem:[#allocation2 + $0x1d8] sm:$0xff]  ;;  %v138_v10 = vld [vmem:[#allocation2 + $0x1d0] sm:$0xff] }
  0x34   :  { %388 = vmatpush1.msra.mxu1 %v152_v47  ;;  %276 = vmatprep.subr.mxu0 %v87_v48  ;;  %v203_v9 = vld [vmem:[#allocation2 + $0x3d8] sm:$0xff]  ;;  %v202_v11 = vld [vmem:[#allocation2 + $0x3d0] sm:$0xff]  ;;  %v137_v12 = vld [vmem:[#allocation2 + $0x1c8] sm:$0xff] }
  0x35   :  { %389 = vmatprep.subr.mxu1 %v151_v49  ;;  %277 = vmatpush1.msra.mxu0 %v86_v50  ;;  %v201_v13 = vld [vmem:[#allocation2 + $0x3c8] sm:$0xff]  ;;  %v136_v14 = vld [vmem:[#allocation2 + $0x1c0] sm:$0xff]  ;;  %v135_v16 = vld [vmem:[#allocation2 + $0x1b8] sm:$0xff] }
  0x36   :  { %390 = vmatpush1.msra.mxu1 %v150_v51  ;;  %278 = vmatprep.subr.mxu0 %v85_v52  ;;  %v200_v15 = vld [vmem:[#allocation2 + $0x3c0] sm:$0xff]  ;;  %v199_v17 = vld [vmem:[#allocation2 + $0x3b8] sm:$0xff]  ;;  %v134_v18 = vld [vmem:[#allocation2 + $0x1b0] sm:$0xff] }
  0x37   :  { %391 = vmatprep.subr.mxu1 %v149_v53  ;;  %279 = vmatpush1.msra.mxu0 %v84_v54  ;;  %v198_v19 = vld [vmem:[#allocation2 + $0x3b0] sm:$0xff]  ;;  %v133_v20 = vld [vmem:[#allocation2 + $0x1a8] sm:$0xff]  ;;  %v132_v22 = vld [vmem:[#allocation2 + $0x1a0] sm:$0xff] }
  0x38   :  { %392 = vmatpush1.msra.mxu1 %v148_v55  ;;  %280 = vmatprep.subr.mxu0 %v83_v56  ;;  %v197_v21 = vld [vmem:[#allocation2 + $0x3a8] sm:$0xff]  ;;  %v196_v23 = vld [vmem:[#allocation2 + $0x3a0] sm:$0xff]  ;;  %v131_v24 = vld [vmem:[#allocation2 + $0x198] sm:$0xff] }
  0x39   :  { %393 = vmatprep.subr.mxu1 %v147_v57  ;;  %281 = vmatpush1.msra.mxu0 %v82_v58  ;;  %v195_v25 = vld [vmem:[#allocation2 + $0x398] sm:$0xff]  ;;  %v130_v26 = vld [vmem:[#allocation2 + $0x190] sm:$0xff]  ;;  %v129_v28 = vld [vmem:[#allocation2 + $0x188] sm:$0xff] }
  0x3a   :  { %394 = vmatpush1.msra.mxu1 %v146_v59  ;;  %282 = vmatprep.subr.mxu0 %v81_v60  ;;  %v194_v27 = vld [vmem:[#allocation2 + $0x390] sm:$0xff]  ;;  %v193_v29 = vld [vmem:[#allocation2 + $0x388] sm:$0xff]  ;;  %v128_v30 = vld [vmem:[#allocation2 + $0x180] sm:$0xff] }
  0x3b   :  { %395 = vmatprep.subr.mxu1 %v145_v61  ;;  %283 = vmatpush1.msra.mxu0 %v80_v62  ;;  %v192_v31 = vld [vmem:[#allocation2 + $0x380] sm:$0xff]  ;;  %v127_v32 = vld [vmem:[#allocation2 + $0x178] sm:$0xff]  ;;  %v126_v34 = vld [vmem:[#allocation2 + $0x170] sm:$0xff] }
  0x3c   :  { %396 = vmatpush1.msra.mxu1 %v144_v63  ;;  %284 = vmatprep.subr.mxu0 %v143_v0  ;;  %v191_v33 = vld [vmem:[#allocation2 + $0x378] sm:$0xff]  ;;  %v190_v35 = vld [vmem:[#allocation2 + $0x370] sm:$0xff]  ;;  %v125_v36 = vld [vmem:[#allocation2 + $0x168] sm:$0xff] }
  0x3d   :  { %397 = vmatprep.subr.mxu1 %v207_v1  ;;  %285 = vmatpush2.msra.mxu0 %v142_v2  ;;  %v189_v37 = vld [vmem:[#allocation2 + $0x368] sm:$0xff]  ;;  %v124_v38 = vld [vmem:[#allocation2 + $0x160] sm:$0xff]  ;;  %v123_v40 = vld [vmem:[#allocation2 + $0x158] sm:$0xff] }
  0x3e   :  { %398 = vmatpush2.msra.mxu1 %v206_v3  ;;  %286 = vmatprep.subr.mxu0 %v141_v4  ;;  %v188_v39 = vld [vmem:[#allocation2 + $0x360] sm:$0xff]  ;;  %v187_v41 = vld [vmem:[#allocation2 + $0x358] sm:$0xff]  ;;  %v122_v42 = vld [vmem:[#allocation2 + $0x150] sm:$0xff] }
  0x3f   :  { %399 = vmatprep.subr.mxu1 %v205_v5  ;;  %287 = vmatpush2.msra.mxu0 %v140_v6  ;;  %v186_v43 = vld [vmem:[#allocation2 + $0x350] sm:$0xff]  ;;  %v121_v44 = vld [vmem:[#allocation2 + $0x148] sm:$0xff]  ;;  %v120_v46 = vld [vmem:[#allocation2 + $0x140] sm:$0xff] }
  0x40   :  { %400 = vmatpush2.msra.mxu1 %v204_v7  ;;  %288 = vmatprep.subr.mxu0 %v139_v8  ;;  %v185_v45 = vld [vmem:[#allocation2 + $0x348] sm:$0xff]  ;;  %v184_v47 = vld [vmem:[#allocation2 + $0x340] sm:$0xff]  ;;  %v119_v48 = vld [vmem:[#allocation2 + $0x138] sm:$0xff] }
  0x41   :  { %401 = vmatprep.subr.mxu1 %v203_v9  ;;  %289 = vmatpush2.msra.mxu0 %v138_v10  ;;  %v183_v49 = vld [vmem:[#allocation2 + $0x338] sm:$0xff]  ;;  %v118_v50 = vld [vmem:[#allocation2 + $0x130] sm:$0xff]  ;;  %v117_v52 = vld [vmem:[#allocation2 + $0x128] sm:$0xff] }
  0x42   :  { %402 = vmatpush2.msra.mxu1 %v202_v11  ;;  %290 = vmatprep.subr.mxu0 %v137_v12  ;;  %v182_v51 = vld [vmem:[#allocation2 + $0x330] sm:$0xff]  ;;  %v181_v53 = vld [vmem:[#allocation2 + $0x328] sm:$0xff]  ;;  %v116_v54 = vld [vmem:[#allocation2 + $0x120] sm:$0xff] }
  0x43   :  { %403 = vmatprep.subr.mxu1 %v201_v13  ;;  %291 = vmatpush2.msra.mxu0 %v136_v14  ;;  %v180_v55 = vld [vmem:[#allocation2 + $0x320] sm:$0xff]  ;;  %v115_v56 = vld [vmem:[#allocation2 + $0x118] sm:$0xff]  ;;  %v114_v58 = vld [vmem:[#allocation2 + $0x110] sm:$0xff] }
  0x44   :  { %404 = vmatpush2.msra.mxu1 %v200_v15  ;;  %292 = vmatprep.subr.mxu0 %v135_v16  ;;  %v179_v57 = vld [vmem:[#allocation2 + $0x318] sm:$0xff]  ;;  %v178_v59 = vld [vmem:[#allocation2 + $0x310] sm:$0xff]  ;;  %v113_v60 = vld [vmem:[#allocation2 + $0x108] sm:$0xff] }
  0x45   :  { %405 = vmatprep.subr.mxu1 %v199_v17  ;;  %293 = vmatpush2.msra.mxu0 %v134_v18  ;;  %v177_v61 = vld [vmem:[#allocation2 + $0x308] sm:$0xff]  ;;  %v112_v62 = vld [vmem:[#allocation2 + $0x100] sm:$0xff]  ;;  %v43_v1 = vld [vmem:[%s933_s0 + $0x18] sm:$0xff] }
  0x46   :  { %406 = vmatpush2.msra.mxu1 %v198_v19  ;;  %294 = vmatprep.subr.mxu0 %v133_v20  ;;  %v41_v63 = vld [vmem:[%s933_s0 + $0x8] sm:$0xff]  ;;  %v176_v0 = vld [vmem:[#allocation2 + $0x300] sm:$0xff]  ;;  %v42_v3 = vld [vmem:[%s933_s0 + $0x10] sm:$0xff] }
  0x47   :  { %407 = vmatprep.subr.mxu1 %v197_v21  ;;  %295 = vmatpush2.msra.mxu0 %v132_v22  ;;  %v40_v2 = vld [vmem:[%s933_s0] sm:$0xff]  ;;  %v239_v4 = vld [vmem:[#allocation2 + $0x4f8] sm:$0xff]  ;;  %v238_v5 = vld [vmem:[#allocation2 + $0x4f0] sm:$0xff] }
  0x48   :  { %408 = vmatpush2.msra.mxu1 %v196_v23  ;;  %296 = vmatprep.subr.mxu0 %v131_v24  ;;  %v237_v6 = vld [vmem:[#allocation2 + $0x4e8] sm:$0xff]  ;;  %v46_v7 = vld [vmem:[%s933_s0 + $0x30] sm:$0xff]  ;;  %v48_v8 = vld [vmem:[%s933_s0 + $0x40] sm:$0xff] }
  0x49   :  { %409 = vmatprep.subr.mxu1 %v195_v25  ;;  %297 = vmatpush2.msra.mxu0 %v130_v26  ;;  %v236_v9 = vld [vmem:[#allocation2 + $0x4e0] sm:$0xff]  ;;  %v45_v10 = vld [vmem:[%s933_s0 + $0x28] sm:$0xff]  ;;  %v47_v11 = vld [vmem:[%s933_s0 + $0x38] sm:$0xff] }
  0x4a   :  { %410 = vmatpush2.msra.mxu1 %v194_v27  ;;  %298 = vmatprep.subr.mxu0 %v129_v28  ;;  %v235_v12 = vld [vmem:[#allocation2 + $0x4d8] sm:$0xff]  ;;  %v234_v13 = vld [vmem:[#allocation2 + $0x4d0] sm:$0xff]  ;;  %v233_v14 = vld [vmem:[#allocation2 + $0x4c8] sm:$0xff] }
  0x4b   :  { %411 = vmatprep.subr.mxu1 %v193_v29  ;;  %299 = vmatpush2.msra.mxu0 %v128_v30  ;;  %v51_v15 = vld [vmem:[%s933_s0 + $0x58] sm:$0xff]  ;;  %v53_v16 = vld [vmem:[%s933_s0 + $0x68] sm:$0xff]  ;;  %v232_v17 = vld [vmem:[#allocation2 + $0x4c0] sm:$0xff] }
  0x4c   :  { %412 = vmatpush2.msra.mxu1 %v192_v31  ;;  %300 = vmatprep.subr.mxu0 %v127_v32  ;;  %v50_v18 = vld [vmem:[%s933_s0 + $0x50] sm:$0xff]  ;;  %v52_v19 = vld [vmem:[%s933_s0 + $0x60] sm:$0xff]  ;;  %v231_v20 = vld [vmem:[#allocation2 + $0x4b8] sm:$0xff] }
  0x4d   :  { %413 = vmatprep.subr.mxu1 %v191_v33  ;;  %301 = vmatpush2.msra.mxu0 %v126_v34  ;;  %v230_v21 = vld [vmem:[#allocation2 + $0x4b0] sm:$0xff]  ;;  %v229_v22 = vld [vmem:[#allocation2 + $0x4a8] sm:$0xff]  ;;  %v56_v23 = vld [vmem:[%s933_s0 + $0x80] sm:$0xff] }
  0x4e   :  { %414 = vmatpush2.msra.mxu1 %v190_v35  ;;  %302 = vmatprep.subr.mxu0 %v125_v36  ;;  %v58_v24 = vld [vmem:[%s933_s0 + $0x90] sm:$0xff]  ;;  %v228_v25 = vld [vmem:[#allocation2 + $0x4a0] sm:$0xff]  ;;  %v55_v26 = vld [vmem:[%s933_s0 + $0x78] sm:$0xff] }
  0x4f   :  { %415 = vmatprep.subr.mxu1 %v189_v37  ;;  %303 = vmatpush2.msra.mxu0 %v124_v38  ;;  %v57_v27 = vld [vmem:[%s933_s0 + $0x88] sm:$0xff]  ;;  %v227_v28 = vld [vmem:[#allocation2 + $0x498] sm:$0xff]  ;;  %v226_v29 = vld [vmem:[#allocation2 + $0x490] sm:$0xff] }
  0x50   :  { %416 = vmatpush2.msra.mxu1 %v188_v39  ;;  %304 = vmatprep.subr.mxu0 %v123_v40  ;;  %v225_v30 = vld [vmem:[#allocation2 + $0x488] sm:$0xff]  ;;  %v63_v32 = vld [vmem:[%s933_s0 + $0xb8] sm:$0xff]  ;;  %v224_v33 = vld [vmem:[#allocation2 + $0x480] sm:$0xff] }
  0x51   :  { %417 = vmatprep.subr.mxu1 %v187_v41  ;;  %305 = vmatpush2.msra.mxu0 %v122_v42  ;;  %v61_v31 = vld [vmem:[%s933_s0 + $0xa8] sm:$0xff]  ;;  %v60_v34 = vld [vmem:[%s933_s0 + $0xa0] sm:$0xff]  ;;  %v62_v35 = vld [vmem:[%s933_s0 + $0xb0] sm:$0xff] }
  0x52   :  { %418 = vmatpush2.msra.mxu1 %v186_v43  ;;  %306 = vmatprep.subr.mxu0 %v121_v44  ;;  %v223_v36 = vld [vmem:[#allocation2 + $0x478] sm:$0xff]  ;;  %v222_v37 = vld [vmem:[#allocation2 + $0x470] sm:$0xff]  ;;  %v221_v38 = vld [vmem:[#allocation2 + $0x468] sm:$0xff] }
  0x53   :  { %419 = vmatprep.subr.mxu1 %v185_v45  ;;  %307 = vmatpush2.msra.mxu0 %v120_v46  ;;  %v66_v39 = vld [vmem:[%s933_s0 + $0xd0] sm:$0xff]  ;;  %v68_v40 = vld [vmem:[%s933_s0 + $0xe0] sm:$0xff]  ;;  %v65_v42 = vld [vmem:[%s933_s0 + $0xc8] sm:$0xff] }
  0x54   :  { %420 = vmatpush2.msra.mxu1 %v184_v47  ;;  %308 = vmatprep.subr.mxu0 %v119_v48  ;;  %v220_v41 = vld [vmem:[#allocation2 + $0x460] sm:$0xff]  ;;  %v67_v43 = vld [vmem:[%s933_s0 + $0xd8] sm:$0xff]  ;;  %v218_v45 = vld [vmem:[#allocation2 + $0x450] sm:$0xff] }
  0x55   :  { %421 = vmatprep.subr.mxu1 %v183_v49  ;;  %309 = vmatpush2.msra.mxu0 %v118_v50  ;;  %v219_v44 = vld [vmem:[#allocation2 + $0x458] sm:$0xff]  ;;  %v217_v46 = vld [vmem:[#allocation2 + $0x448] sm:$0xff]  ;;  %v216_v49 = vld [vmem:[#allocation2 + $0x440] sm:$0xff] }
  0x56   :  { %422 = vmatpush2.msra.mxu1 %v182_v51  ;;  %310 = vmatprep.subr.mxu0 %v117_v52  ;;  %v71_v47 = vld [vmem:[%s933_s0 + $0xf8] sm:$0xff]  ;;  %v73_v48 = vld [vmem:[%s933_s0 + $0x108] sm:$0xff]  ;;  %v70_v50 = vld [vmem:[%s933_s0 + $0xf0] sm:$0xff] }
  0x57   :  { %423 = vmatprep.subr.mxu1 %v181_v53  ;;  %311 = vmatpush2.msra.mxu0 %v116_v54  ;;  %v72_v51 = vld [vmem:[%s933_s0 + $0x100] sm:$0xff]  ;;  %v215_v52 = vld [vmem:[#allocation2 + $0x438] sm:$0xff]  ;;  %v214_v53 = vld [vmem:[#allocation2 + $0x430] sm:$0xff] }
  0x58   :  { %424 = vmatpush2.msra.mxu1 %v180_v55  ;;  %312 = vmatprep.subr.mxu0 %v115_v56  ;;  %v213_v54 = vld [vmem:[#allocation2 + $0x428] sm:$0xff]  ;;  %v76_v55 = vld [vmem:[%s933_s0 + $0x120] sm:$0xff]  ;;  %v78_v56 = vld [vmem:[%s933_s0 + $0x130] sm:$0xff] }
  0x59   :  { %425 = vmatprep.subr.mxu1 %v179_v57  ;;  %313 = vmatpush2.msra.mxu0 %v114_v58  ;;  %v212_v57 = vld [vmem:[#allocation2 + $0x420] sm:$0xff]  ;;  %v75_v58 = vld [vmem:[%s933_s0 + $0x118] sm:$0xff] }
  0x5a   :  { %426 = vmatpush2.msra.mxu1 %v178_v59  ;;  %314 = vmatprep.subr.mxu0 %v113_v60  ;;  %v77_v59 = vld [vmem:[%s933_s0 + $0x128] sm:$0xff]  ;;  %v211_v60 = vld [vmem:[#allocation2 + $0x418] sm:$0xff] }
  0x5b   :  { %427 = vmatprep.subr.mxu1 %v177_v61  ;;  %315 = vmatpush2.msra.mxu0 %v112_v62  ;;  %v210_v61 = vld [vmem:[#allocation2 + $0x410] sm:$0xff]  ;;  %v209_v62 = vld [vmem:[#allocation2 + $0x408] sm:$0xff] }
  0x5c   :  { %316 = vmatprep.mubr.f32.mxu0 %v41_v63  ;;  %428 = vmatpush2.msra.mxu1 %v176_v0  ;;  %v208_v63 = vld [vmem:[#allocation2 + $0x400] sm:$0xff] }
  0x5d   :  { %429 = vmatprep.mubr.f32.mxu1 %v43_v1  ;;  %317 = vmatmul.mubr.f32.vlgmr.msra.gmra.mxu0 %v40_v2  ;;  %v44_v0 = vld [vmem:[%s933_s0 + $0x20] sm:$0xff]  ;;  %v714_v2 = vmov 0.0  }
  0x5e   :  { %430 = vmatmul.mubr.f32.vlgmr.msra.gmra.mxu1 %v42_v3  ;;  %478 = vmatprep.subr.mxu0 %v239_v4  ;;  %v64_v1 = vld [vmem:[%s933_s0 + $0xc0] sm:$0xff]  ;;  %v49_v3 = vld [vmem:[%s933_s0 + $0x48] sm:$0xff] }
  0x5f   :  { %629 = vmatprep.subr.mxu1 %v239_v4  ;;  %479 = vmatpush1.msra.mxu0 %v238_v5  ;;  %v69_v4 = vld [vmem:[%s933_s0 + $0xe8] sm:$0xff] }
  0x60   :  { %645 = vmatpush1.msra.mxu1 %v238_v5  ;;  %480 = vmatprep.subr.mxu0 %v237_v6  ;;  %v54_v5 = vld [vmem:[%s933_s0 + $0x70] sm:$0xff] }
  0x61   :  { %630 = vmatprep.subr.mxu1 %v237_v6  ;;  %322 = vmatprep.mubr.f32.mxu0 %v46_v7  ;;  %v74_v6 = vld [vmem:[%s933_s0 + $0x110] sm:$0xff]  ;;  %v59_v7 = vld [vmem:[%s933_s0 + $0x98] sm:$0xff] }
  0x62   :  { %435 = vmatprep.mubr.f32.mxu1 %v48_v8  ;;  %481 = vmatpush1.msra.mxu0 %v236_v9  ;;  %v79_v8 = vld [vmem:[%s933_s0 + $0x138] sm:$0xff] }
  0x63   :  { %646 = vmatpush1.msra.mxu1 %v236_v9  ;;  %323 = vmatmul.mubr.f32.gmra.mxu0 %v45_v10 }
  0x64   :  { %436 = vmatmul.mubr.f32.gmra.mxu1 %v47_v11  ;;  %482 = vmatprep.subr.mxu0 %v235_v12 }
  0x65   :  { %631 = vmatprep.subr.mxu1 %v235_v12  ;;  %483 = vmatpush1.msra.mxu0 %v234_v13 }
  0x66   :  { %647 = vmatpush1.msra.mxu1 %v234_v13  ;;  %484 = vmatprep.subr.mxu0 %v233_v14 }
  0x67   :  { %632 = vmatprep.subr.mxu1 %v233_v14  ;;  %328 = vmatprep.mubr.f32.mxu0 %v51_v15 }
  0x68   :  { %441 = vmatprep.mubr.f32.mxu1 %v53_v16  ;;  %485 = vmatpush1.msra.mxu0 %v232_v17 }
  0x69   :  { %648 = vmatpush1.msra.mxu1 %v232_v17  ;;  %329 = vmatmul.mubr.f32.gmra.mxu0 %v50_v18 }
  0x6a   :  { %442 = vmatmul.mubr.f32.gmra.mxu1 %v52_v19  ;;  %486 = vmatprep.subr.mxu0 %v231_v20 }
  0x6b   :  { %633 = vmatprep.subr.mxu1 %v231_v20  ;;  %487 = vmatpush1.msra.mxu0 %v230_v21 }
  0x6c   :  { %649 = vmatpush1.msra.mxu1 %v230_v21  ;;  %488 = vmatprep.subr.mxu0 %v229_v22 }
  0x6d   :  { %634 = vmatprep.subr.mxu1 %v229_v22  ;;  %334 = vmatprep.mubr.f32.mxu0 %v56_v23 }
  0x6e   :  { %447 = vmatprep.mubr.f32.mxu1 %v58_v24  ;;  %489 = vmatpush1.msra.mxu0 %v228_v25 }
  0x6f   :  { %650 = vmatpush1.msra.mxu1 %v228_v25  ;;  %335 = vmatmul.mubr.f32.gmra.mxu0 %v55_v26 }
  0x70   :  { %448 = vmatmul.mubr.f32.gmra.mxu1 %v57_v27  ;;  %490 = vmatprep.subr.mxu0 %v227_v28 }
  0x71   :  { %635 = vmatprep.subr.mxu1 %v227_v28  ;;  %491 = vmatpush1.msra.mxu0 %v226_v29 }
  0x72   :  { %651 = vmatpush1.msra.mxu1 %v226_v29  ;;  %492 = vmatprep.subr.mxu0 %v225_v30  ;;  %v242_v29 = vlaneseq }
  0x73   :  { %636 = vmatprep.subr.mxu1 %v225_v30  ;;  %340 = vmatprep.mubr.f32.mxu0 %v61_v31 }
  0x74   :  { %453 = vmatprep.mubr.f32.mxu1 %v63_v32  ;;  %493 = vmatpush1.msra.mxu0 %v224_v33  ;;  %v243_v32 = vshrl.u32 %v242_v29, 7 }
  0x75   :  { %652 = vmatpush1.msra.mxu1 %v224_v33  ;;  %341 = vmatmul.mubr.f32.gmra.mxu0 %v60_v34 }
  0x76   :  { %454 = vmatmul.mubr.f32.gmra.mxu1 %v62_v35  ;;  %494 = vmatprep.subr.mxu0 %v223_v36  ;;  %v244_v35 = vsub.s32 0, %v243_v32 }
  0x77   :  { %637 = vmatprep.subr.mxu1 %v223_v36  ;;  %495 = vmatpush1.msra.mxu0 %v222_v37  ;;  %v240_v36 = vld [vmem:[#allocation4] sm:$0x3] }
  0x78   :  { %653 = vmatpush1.msra.mxu1 %v222_v37  ;;  %496 = vmatprep.subr.mxu0 %v221_v38 }
  0x79   :  { %638 = vmatprep.subr.mxu1 %v221_v38  ;;  %346 = vmatprep.mubr.f32.mxu0 %v66_v39  ;;  %v248_v39 = vsub.s32 1, %v243_v32 }
  0x7a   :  { %459 = vmatprep.mubr.f32.mxu1 %v68_v40  ;;  %497 = vmatpush1.msra.mxu0 %v220_v41 }
  0x7b   :  { %654 = vmatpush1.msra.mxu1 %v220_v41  ;;  %347 = vmatmul.mubr.f32.gmra.mxu0 %v65_v42  ;;  %v245_v42 = vrot.slane %v240_v36, %v244_v35 }
  0x7c   :  { %460 = vmatmul.mubr.f32.gmra.mxu1 %v67_v43  ;;  %498 = vmatprep.subr.mxu0 %v219_v44  ;;  %v249_v43 = vrot.slane %v240_v36, %v248_v39 }
  0x7d   :  { %639 = vmatprep.subr.mxu1 %v219_v44  ;;  %499 = vmatpush1.msra.mxu0 %v218_v45 }
  0x7e   :  { %655 = vmatpush1.msra.mxu1 %v218_v45  ;;  %500 = vmatprep.subr.mxu0 %v217_v46 }
  0x7f   :  { %640 = vmatprep.subr.mxu1 %v217_v46  ;;  %352 = vmatprep.mubr.f32.mxu0 %v71_v47 }
  0x80   :  { %465 = vmatprep.mubr.f32.mxu1 %v73_v48  ;;  %501 = vmatpush1.msra.mxu0 %v216_v49 }
  0x81   :  { %656 = vmatpush1.msra.mxu1 %v216_v49  ;;  %353 = vmatmul.mubr.f32.gmra.mxu0 %v70_v50 }
  0x82   :  { %466 = vmatmul.mubr.f32.gmra.mxu1 %v72_v51  ;;  %502 = vmatprep.subr.mxu0 %v215_v52 }
  0x83   :  { %641 = vmatprep.subr.mxu1 %v215_v52  ;;  %503 = vmatpush1.msra.mxu0 %v214_v53 }
  0x84   :  { %657 = vmatpush1.msra.mxu1 %v214_v53  ;;  %504 = vmatprep.subr.mxu0 %v213_v54 }
  0x85   :  { %642 = vmatprep.subr.mxu1 %v213_v54  ;;  %358 = vmatprep.mubr.f32.mxu0 %v76_v55 }
  0x86   :  { %471 = vmatprep.mubr.f32.mxu1 %v78_v56  ;;  %505 = vmatpush1.msra.mxu0 %v212_v57 }
  0x87   :  { %658 = vmatpush1.msra.mxu1 %v212_v57  ;;  %359 = vmatmul.mubr.f32.gmra.mxu0 %v75_v58 }
  0x88   :  { %472 = vmatmul.mubr.f32.gmra.mxu1 %v77_v59  ;;  %506 = vmatprep.subr.mxu0 %v211_v60 }
  0x89   :  { %643 = vmatprep.subr.mxu1 %v211_v60  ;;  %507 = vmatpush1.msra.mxu0 %v210_v61 }
  0x8a   :  { %659 = vmatpush1.msra.mxu1 %v210_v61  ;;  %508 = vmatprep.subr.mxu0 %v209_v62 }
  0x8b   :  { %644 = vmatprep.subr.mxu1 %v209_v62  ;;  %509 = vmatpush1.msra.mxu0 %v208_v63 }
  0x8c   :  { %660 = vmatpush1.msra.mxu1 %v208_v63  ;;  %542 = vmatprep.mubr.f32.mxu0 %v714_v2 }
  0x8d   :  { %566 = vmatprep.mubr.f32.mxu1 %v714_v2  ;;  %543 = vmatmul.mubr.f32.vlgmr.msra.gmra.mxu0 %v44_v0 }
  0x8e   :  { %567 = vmatmul.mubr.f32.vlgmr.msra.gmra.mxu1 %v64_v1  ;;  %548 = vmatprep.mubr.f32.mxu0 %v714_v2 }
  0x8f   :  { %572 = vmatprep.mubr.f32.mxu1 %v714_v2 }
  0x91   :  { %549 = vmatmul.mubr.f32.gmra.mxu0 %v49_v3 }
  0x92   :  { %573 = vmatmul.mubr.f32.gmra.mxu1 %v69_v4  ;;  %554 = vmatprep.mubr.f32.mxu0 %v714_v2 }
  0x93   :  { %578 = vmatprep.mubr.f32.mxu1 %v714_v2 }
  0x95   :  { %555 = vmatmul.mubr.f32.gmra.mxu0 %v54_v5 }
  0x96   :  { %579 = vmatmul.mubr.f32.gmra.mxu1 %v74_v6  ;;  %560 = vmatprep.mubr.f32.mxu0 %v714_v2 }
  0x97   :  { %584 = vmatprep.mubr.f32.mxu1 %v714_v2 }
  0x99   :  { %561 = vmatmul.mubr.f32.gmra.mxu0 %v59_v7 }
  0x9a   :  { %585 = vmatmul.mubr.f32.gmra.mxu1 %v79_v8 }
 0x11d   :  { %v318_v9 = vpop.f32.mrf.mxu0 }
 0x11e   :  { %v431_v10 = vpop.f32.mrf.mxu1  ;;  %v319_v46 = vadd.f32 %v318_v9, %v245_v42 }
 0x11f   :  { %v320_v11 = vpop.f32.mrf.mxu0 }
 0x120   :  { %v433_v12 = vpop.f32.mrf.mxu1  ;;  %v321_v50 = vadd.f32 %v320_v11, %v249_v43  ;;  %v432_v54 = vadd.f32 %v431_v10, %v319_v46 }
 0x122   :  { %v434_v60 = vadd.f32 %v433_v12, %v321_v50 }
 0x123   :  { %v324_v13 = vpop.f32.mrf.mxu0 }
 0x124   :  { %v437_v14 = vpop.f32.mrf.mxu1  ;;  %v325_v52 = vadd.f32 %v324_v13, %v245_v42 }
 0x125   :  { %v326_v15 = vpop.f32.mrf.mxu0 }
 0x126   :  { %v439_v16 = vpop.f32.mrf.mxu1  ;;  %v327_v56 = vadd.f32 %v326_v15, %v249_v43  ;;  %v438_v0 = vadd.f32 %v437_v14, %v325_v52 }
 0x128   :  { %v440_v10 = vadd.f32 %v439_v16, %v327_v56 }
 0x129   :  { %v330_v17 = vpop.f32.mrf.mxu0 }
 0x12a   :  { %v861_v18 = vpop.f32.mrf.mxu1  ;;  %v331_v1 = vadd.f32 %v330_v17, %v245_v42 }
 0x12b   :  { %v332_v19 = vpop.f32.mrf.mxu0 }
 0x12c   :  { %v863_v20 = vpop.f32.mrf.mxu1  ;;  %v333_v11 = vadd.f32 %v332_v19, %v249_v43 }
 0x12f   :  { %v865_v21 = vpop.f32.mrf.mxu0 }
 0x130   :  { %v867_v22 = vpop.f32.mrf.mxu1  ;;  %v337_v16 = vadd.f32 %v865_v21, %v245_v42 }
 0x131   :  { %v869_v23 = vpop.f32.mrf.mxu0 }
 0x132   :  { %v871_v24 = vpop.f32.mrf.mxu1  ;;  %v339_v21 = vadd.f32 %v869_v23, %v249_v43 }
 0x134   :  { %v452_v52 = vadd.f32 %v871_v24, %v339_v21 }
 0x135   :  { %v342_v25 = vpop.f32.mrf.mxu0 }
 0x136   :  { %v455_v26 = vpop.f32.mrf.mxu1  ;;  %v343_v47 = vadd.f32 %v342_v25, %v245_v42 }
 0x137   :  { %v344_v27 = vpop.f32.mrf.mxu0 }
 0x138   :  { %v457_v28 = vpop.f32.mrf.mxu1  ;;  %v345_v51 = vadd.f32 %v344_v27, %v249_v43  ;;  %v456_v55 = vadd.f32 %v455_v26, %v343_v47 }
 0x13a   :  { %v458_v61 = vadd.f32 %v457_v28, %v345_v51  ;;  %v444_v28 = vadd.f32 %v861_v18, %v331_v1  ;;  %v446_v18 = vadd.f32 %v863_v20, %v333_v11  ;;  %v450_v20 = vadd.f32 %v867_v22, %v337_v16 }
 0x13b   :  { %v348_v30 = vpop.f32.mrf.mxu0 }
 0x13c   :  { %v461_v31 = vpop.f32.mrf.mxu1  ;;  %v349_v53 = vadd.f32 %v348_v30, %v245_v42 }
 0x13d   :  { %v350_v33 = vpop.f32.mrf.mxu0 }
 0x13e   :  { %v463_v34 = vpop.f32.mrf.mxu1  ;;  %v351_v57 = vadd.f32 %v350_v33, %v249_v43  ;;  %v462_v2 = vadd.f32 %v461_v31, %v349_v53 }
 0x140   :  { %v464_v13 = vadd.f32 %v463_v34, %v351_v57 }
 0x141   :  { %v354_v37 = vpop.f32.mrf.mxu0 }
 0x142   :  { %v467_v38 = vpop.f32.mrf.mxu1  ;;  %v355_v3 = vadd.f32 %v354_v37, %v245_v42 }
 0x143   :  { %v356_v40 = vpop.f32.mrf.mxu0 }
 0x144   :  { %v469_v41 = vpop.f32.mrf.mxu1  ;;  %v357_v15 = vadd.f32 %v356_v40, %v249_v43  ;;  %v468_v19 = vadd.f32 %v467_v38, %v355_v3 }
 0x146   :  { %v470_v36 = vadd.f32 %v469_v41, %v357_v15 }
 0x147   :  { %v360_v44 = vpop.f32.mrf.mxu0 }
 0x148   :  { %v873_v45 = vpop.f32.mrf.mxu1  ;;  %v361_v29 = vadd.f32 %v360_v44, %v245_v42 }
 0x149   :  { %v362_v48 = vpop.f32.mrf.mxu0 }
 0x14a   :  { %v875_v49 = vpop.f32.mrf.mxu1  ;;  %v363_v37 = vadd.f32 %v362_v48, %v249_v43  ;;  %v474_v23 = vadd.f32 %v873_v45, %v361_v29 }
 0x14c   :  { %v476_v22 = vadd.f32 %v875_v49, %v363_v37 }
 0x14d   :  { %v544_v58 = vpop.f32.mrf.mxu0 }
 0x14e   :  { %v568_v59 = vpop.f32.mrf.mxu1  ;;  %v545_v62 = vadd.f32 %v544_v58, %v432_v54 }
 0x14f   :  { %v569_v63 = vadd.f32 %v568_v59, %v456_v55  ;;  %v546_v4 = vpop.f32.mrf.mxu0 }
 0x150   :  { %v570_v5 = vpop.f32.mrf.mxu1  ;;  %v591_v6 = vmax.f32 %v545_v62, 0.0  ;;  %v547_v8 = vadd.f32 %v546_v4, %v434_v60 }
 0x151   :  { %v599_v7 = vmax.f32 %v569_v63, 0.0  ;;  %v571_v9 = vadd.f32 %v570_v5, %v458_v61  ;;  %v550_v25 = vpop.f32.mrf.mxu0 }
 0x152   :  { %v574_v26 = vpop.f32.mrf.mxu1  ;;  %607 = vst [vmem:[%s936_s3] sm:$0xff] %v591_v6  ;;  %v592_v12 = vmax.f32 %v547_v8, 0.0  ;;  %v551_v17 = vadd.f32 %v550_v25, %v438_v0 }
 0x153   :  { %615 = vst [vmem:[%s936_s3 + $0x40] sm:$0xff] %v599_v7  ;;  %v600_v14 = vmax.f32 %v571_v9, 0.0  ;;  %v575_v27 = vadd.f32 %v574_v26, %v462_v2  ;;  %v552_v30 = vpop.f32.mrf.mxu0 }
 0x154   :  { %v576_v31 = vpop.f32.mrf.mxu1  ;;  %608 = vst [vmem:[%s936_s3 + $0x8] sm:$0xff] %v592_v12  ;;  %v593_v32 = vmax.f32 %v551_v17, 0.0  ;;  %v553_v34 = vadd.f32 %v552_v30, %v440_v10 }
 0x155   :  { %616 = vst [vmem:[%s936_s3 + $0x48] sm:$0xff] %v600_v14  ;;  %v601_v33 = vmax.f32 %v575_v27, 0.0  ;;  %v577_v35 = vadd.f32 %v576_v31, %v464_v13  ;;  %v556_v38 = vpop.f32.mrf.mxu0 }
 0x156   :  { %v580_v39 = vpop.f32.mrf.mxu1  ;;  %609 = vst [vmem:[%s936_s3 + $0x10] sm:$0xff] %v593_v32  ;;  %v594_v40 = vmax.f32 %v553_v34, 0.0  ;;  %v557_v44 = vadd.f32 %v556_v38, %v444_v28 }
 0x157   :  { %617 = vst [vmem:[%s936_s3 + $0x50] sm:$0xff] %v601_v33  ;;  %v602_v42 = vmax.f32 %v577_v35, 0.0  ;;  %v581_v46 = vadd.f32 %v580_v39, %v468_v19  ;;  %v558_v41 = vpop.f32.mrf.mxu0 }
 0x158   :  { %v582_v43 = vpop.f32.mrf.mxu1  ;;  %610 = vst [vmem:[%s936_s3 + $0x18] sm:$0xff] %v594_v40  ;;  %v595_v47 = vmax.f32 %v557_v44, 0.0  ;;  %v559_v50 = vadd.f32 %v558_v41, %v446_v18 }
 0x159   :  { %618 = vst [vmem:[%s936_s3 + $0x58] sm:$0xff] %v602_v42  ;;  %v603_v48 = vmax.f32 %v581_v46, 0.0  ;;  %v583_v51 = vadd.f32 %v582_v43, %v470_v36  ;;  %v562_v53 = vpop.f32.mrf.mxu0 }
 0x15a   :  { %v586_v45 = vpop.f32.mrf.mxu1  ;;  %611 = vst [vmem:[%s936_s3 + $0x20] sm:$0xff] %v595_v47  ;;  %v596_v54 = vmax.f32 %v559_v50, 0.0  ;;  %v563_v56 = vadd.f32 %v562_v53, %v450_v20 }
 0x15b   :  { %619 = vst [vmem:[%s936_s3 + $0x60] sm:$0xff] %v603_v48  ;;  %v604_v55 = vmax.f32 %v583_v51, 0.0  ;;  %v587_v57 = vadd.f32 %v586_v45, %v474_v23  ;;  %v564_v58 = vpop.f32.mrf.mxu0 }
 0x15c   :  { %v588_v59 = vpop.f32.mrf.mxu1  ;;  %612 = vst [vmem:[%s936_s3 + $0x28] sm:$0xff] %v596_v54  ;;  %v597_v24 = vmax.f32 %v563_v56, 0.0  ;;  %v565_v60 = vadd.f32 %v564_v58, %v452_v52 }
 0x15d   :  { %620 = vst [vmem:[%s936_s3 + $0x68] sm:$0xff] %v604_v55  ;;  %v605_v49 = vmax.f32 %v587_v57, 0.0  ;;  %v589_v61 = vadd.f32 %v588_v59, %v476_v22 }
 0x15e   :  { %613 = vst [vmem:[%s936_s3 + $0x30] sm:$0xff] %v597_v24  ;;  %v598_v62 = vmax.f32 %v565_v60, 0.0 }
 0x15f   :  { %621 = vst [vmem:[%s936_s3 + $0x70] sm:$0xff] %v605_v49  ;;  %v606_v63 = vmax.f32 %v589_v61, 0.0 }
 0x160   :  { %614 = vst [vmem:[%s936_s3 + $0x38] sm:$0xff] %v598_v62 }
 0x161   :  { %622 = vst [vmem:[%s936_s3 + $0x78] sm:$0xff] %v606_v63 }
 0x162   :  { %627 = vsyncpa [#allocation3], 1 }
 0x163   :  { %628 = vsyncpa [#allocation5], 1 }

// kernel: hindi_asr_forward.9
= control target key start
LH: loop header
LB: loop body
LE: loop exit
PB: predicated region body
PF: predicated region fallthrough
CT: control target
= control target key end

     0   :  { %s997_s0 = inlined_call_operand.vmem [shape: f32[32,512], index: 0, kind: input, shape index: {}]   ;;  %s998_s1 = inlined_call_operand.vmem [shape: f32[512,128], index: 1, kind: input, shape index: {}]   ;;  %s999_s2 = inlined_call_operand.vmem [shape: f32[1,128], index: 2, kind: input, shape index: {}]   ;;  %s1000_s3 = inlined_call_operand.vmem [shape: f32[128,128], index: 3, kind: input, shape index: {}]   ;;  %s1001_s4 = inlined_call_operand.vmem [shape: f32[1,128], index: 4, kind: input, shape index: {}]   ;;  %s1002_s5 = inlined_call_operand.hbm [shape: f32[32,128], index: 5, kind: output, shape index: {}]  }
   0x1   :  { %v68_v0 = vld [vmem:[%s998_s1 + $0xf8] sm:$0xff]  ;;  %v67_v4 = vld [vmem:[%s998_s1 + $0xf0] sm:$0xff]  ;;  %v66_v8 = vld [vmem:[%s998_s1 + $0xe8] sm:$0xff] }
   0x2   :  { %v100_v1 = vld [vmem:[%s998_s1 + $0x1f8] sm:$0xff]  ;;  %448 = vmatprep.subr.mxu0 %v68_v0  ;;  %v99_v5 = vld [vmem:[%s998_s1 + $0x1f0] sm:$0xff]  ;;  %v98_v9 = vld [vmem:[%s998_s1 + $0x1e8] sm:$0xff] }
   0x3   :  { %v52_v2 = vld [vmem:[%s998_s1 + $0x78] sm:$0xff]  ;;  %492 = vmatprep.subr.mxu1 %v100_v1  ;;  %v51_v6 = vld [vmem:[%s998_s1 + $0x70] sm:$0xff]  ;;  %v50_v10 = vld [vmem:[%s998_s1 + $0x68] sm:$0xff] }
   0x4   :  { %v84_v3 = vld [vmem:[%s998_s1 + $0x178] sm:$0xff]  ;;  %449 = vmatpush3.msra.mxu0 %v52_v2  ;;  %v83_v7 = vld [vmem:[%s998_s1 + $0x170] sm:$0xff]  ;;  %v82_v11 = vld [vmem:[%s998_s1 + $0x168] sm:$0xff] }
   0x5   :  { %493 = vmatpush3.msra.mxu1 %v84_v3  ;;  %450 = vmatprep.subr.mxu0 %v67_v4  ;;  %v65_v12 = vld [vmem:[%s998_s1 + $0xe0] sm:$0xff]  ;;  %v64_v16 = vld [vmem:[%s998_s1 + $0xd8] sm:$0xff]  ;;  %v63_v20 = vld [vmem:[%s998_s1 + $0xd0] sm:$0xff] }
   0x6   :  { %494 = vmatprep.subr.mxu1 %v99_v5  ;;  %451 = vmatpush3.msra.mxu0 %v51_v6  ;;  %v97_v13 = vld [vmem:[%s998_s1 + $0x1e0] sm:$0xff]  ;;  %v96_v17 = vld [vmem:[%s998_s1 + $0x1d8] sm:$0xff]  ;;  %v95_v21 = vld [vmem:[%s998_s1 + $0x1d0] sm:$0xff] }
   0x7   :  { %495 = vmatpush3.msra.mxu1 %v83_v7  ;;  %452 = vmatprep.subr.mxu0 %v66_v8  ;;  %v49_v14 = vld [vmem:[%s998_s1 + $0x60] sm:$0xff]  ;;  %v48_v18 = vld [vmem:[%s998_s1 + $0x58] sm:$0xff]  ;;  %v47_v22 = vld [vmem:[%s998_s1 + $0x50] sm:$0xff] }
   0x8   :  { %496 = vmatprep.subr.mxu1 %v98_v9  ;;  %v81_v15 = vld [vmem:[%s998_s1 + $0x160] sm:$0xff]  ;;  %453 = vmatpush3.msra.mxu0 %v50_v10  ;;  %v80_v19 = vld [vmem:[%s998_s1 + $0x158] sm:$0xff]  ;;  %v79_v23 = vld [vmem:[%s998_s1 + $0x150] sm:$0xff] }
   0x9   :  { %497 = vmatpush3.msra.mxu1 %v82_v11  ;;  %454 = vmatprep.subr.mxu0 %v65_v12  ;;  %v62_v24 = vld [vmem:[%s998_s1 + $0xc8] sm:$0xff]  ;;  %v61_v28 = vld [vmem:[%s998_s1 + $0xc0] sm:$0xff]  ;;  %v60_v32 = vld [vmem:[%s998_s1 + $0xb8] sm:$0xff] }
   0xa   :  { %498 = vmatprep.subr.mxu1 %v97_v13  ;;  %455 = vmatpush3.msra.mxu0 %v49_v14  ;;  %v94_v25 = vld [vmem:[%s998_s1 + $0x1c8] sm:$0xff]  ;;  %v93_v29 = vld [vmem:[%s998_s1 + $0x1c0] sm:$0xff]  ;;  %v92_v33 = vld [vmem:[%s998_s1 + $0x1b8] sm:$0xff] }
   0xb   :  { %499 = vmatpush3.msra.mxu1 %v81_v15  ;;  %456 = vmatprep.subr.mxu0 %v64_v16  ;;  %v46_v26 = vld [vmem:[%s998_s1 + $0x48] sm:$0xff]  ;;  %v45_v30 = vld [vmem:[%s998_s1 + $0x40] sm:$0xff]  ;;  %v44_v34 = vld [vmem:[%s998_s1 + $0x38] sm:$0xff] }
   0xc   :  { %500 = vmatprep.subr.mxu1 %v96_v17  ;;  %457 = vmatpush3.msra.mxu0 %v48_v18  ;;  %v78_v27 = vld [vmem:[%s998_s1 + $0x148] sm:$0xff]  ;;  %v77_v31 = vld [vmem:[%s998_s1 + $0x140] sm:$0xff]  ;;  %v76_v35 = vld [vmem:[%s998_s1 + $0x138] sm:$0xff] }
   0xd   :  { %501 = vmatpush3.msra.mxu1 %v80_v19  ;;  %458 = vmatprep.subr.mxu0 %v63_v20  ;;  %v59_v36 = vld [vmem:[%s998_s1 + $0xb0] sm:$0xff]  ;;  %v58_v40 = vld [vmem:[%s998_s1 + $0xa8] sm:$0xff]  ;;  %v57_v44 = vld [vmem:[%s998_s1 + $0xa0] sm:$0xff] }
   0xe   :  { %502 = vmatprep.subr.mxu1 %v95_v21  ;;  %459 = vmatpush3.msra.mxu0 %v47_v22  ;;  %v91_v37 = vld [vmem:[%s998_s1 + $0x1b0] sm:$0xff]  ;;  %v90_v41 = vld [vmem:[%s998_s1 + $0x1a8] sm:$0xff]  ;;  %v89_v45 = vld [vmem:[%s998_s1 + $0x1a0] sm:$0xff] }
   0xf   :  { %503 = vmatpush3.msra.mxu1 %v79_v23  ;;  %460 = vmatprep.subr.mxu0 %v62_v24  ;;  %v43_v38 = vld [vmem:[%s998_s1 + $0x30] sm:$0xff]  ;;  %v42_v42 = vld [vmem:[%s998_s1 + $0x28] sm:$0xff]  ;;  %v41_v46 = vld [vmem:[%s998_s1 + $0x20] sm:$0xff] }
  0x10   :  { %504 = vmatprep.subr.mxu1 %v94_v25  ;;  %461 = vmatpush3.msra.mxu0 %v46_v26  ;;  %v75_v39 = vld [vmem:[%s998_s1 + $0x130] sm:$0xff]  ;;  %v74_v43 = vld [vmem:[%s998_s1 + $0x128] sm:$0xff]  ;;  %v73_v47 = vld [vmem:[%s998_s1 + $0x120] sm:$0xff] }
  0x11   :  { %505 = vmatpush3.msra.mxu1 %v78_v27  ;;  %462 = vmatprep.subr.mxu0 %v61_v28  ;;  %v56_v48 = vld [vmem:[%s998_s1 + $0x98] sm:$0xff]  ;;  %v55_v52 = vld [vmem:[%s998_s1 + $0x90] sm:$0xff]  ;;  %v54_v56 = vld [vmem:[%s998_s1 + $0x88] sm:$0xff] }
  0x12   :  { %506 = vmatprep.subr.mxu1 %v93_v29  ;;  %463 = vmatpush3.msra.mxu0 %v45_v30  ;;  %v88_v49 = vld [vmem:[%s998_s1 + $0x198] sm:$0xff]  ;;  %v87_v53 = vld [vmem:[%s998_s1 + $0x190] sm:$0xff]  ;;  %v86_v57 = vld [vmem:[%s998_s1 + $0x188] sm:$0xff] }
  0x13   :  { %507 = vmatpush3.msra.mxu1 %v77_v31  ;;  %464 = vmatprep.subr.mxu0 %v60_v32  ;;  %v40_v50 = vld [vmem:[%s998_s1 + $0x18] sm:$0xff]  ;;  %v39_v54 = vld [vmem:[%s998_s1 + $0x10] sm:$0xff]  ;;  %v38_v58 = vld [vmem:[%s998_s1 + $0x8] sm:$0xff] }
  0x14   :  { %508 = vmatprep.subr.mxu1 %v92_v33  ;;  %465 = vmatpush3.msra.mxu0 %v44_v34  ;;  %v72_v51 = vld [vmem:[%s998_s1 + $0x118] sm:$0xff]  ;;  %v71_v55 = vld [vmem:[%s998_s1 + $0x110] sm:$0xff]  ;;  %v70_v59 = vld [vmem:[%s998_s1 + $0x108] sm:$0xff] }
  0x15   :  { %509 = vmatpush3.msra.mxu1 %v76_v35  ;;  %466 = vmatprep.subr.mxu0 %v59_v36  ;;  %v53_v60 = vld [vmem:[%s998_s1 + $0x80] sm:$0xff]  ;;  %v22_v63 = vld [vmem:[%s997_s0 + $0x8] sm:$0xff]  ;;  %v24_v1 = vld [vmem:[%s997_s0 + $0x18] sm:$0xff] }
  0x16   :  { %510 = vmatprep.subr.mxu1 %v91_v37  ;;  %467 = vmatpush3.msra.mxu0 %v43_v38  ;;  %v85_v61 = vld [vmem:[%s998_s1 + $0x180] sm:$0xff] }
  0x17   :  { %511 = vmatpush3.msra.mxu1 %v75_v39  ;;  %468 = vmatprep.subr.mxu0 %v58_v40  ;;  %v37_v62 = vld [vmem:[%s998_s1] sm:$0xff] }
  0x18   :  { %512 = vmatprep.subr.mxu1 %v90_v41  ;;  %469 = vmatpush3.msra.mxu0 %v42_v42  ;;  %v69_v0 = vld [vmem:[%s998_s1 + $0x100] sm:$0xff] }
  0x19   :  { %513 = vmatpush3.msra.mxu1 %v74_v43  ;;  %470 = vmatprep.subr.mxu0 %v57_v44 }
  0x1a   :  { %514 = vmatprep.subr.mxu1 %v89_v45  ;;  %471 = vmatpush3.msra.mxu0 %v41_v46 }
  0x1b   :  { %515 = vmatpush3.msra.mxu1 %v73_v47  ;;  %472 = vmatprep.subr.mxu0 %v56_v48 }
  0x1c   :  { %516 = vmatprep.subr.mxu1 %v88_v49  ;;  %473 = vmatpush3.msra.mxu0 %v40_v50 }
  0x1d   :  { %517 = vmatpush3.msra.mxu1 %v72_v51  ;;  %474 = vmatprep.subr.mxu0 %v55_v52 }
  0x1e   :  { %518 = vmatprep.subr.mxu1 %v87_v53  ;;  %475 = vmatpush3.msra.mxu0 %v39_v54 }
  0x1f   :  { %519 = vmatpush3.msra.mxu1 %v71_v55  ;;  %476 = vmatprep.subr.mxu0 %v54_v56 }
  0x20   :  { %520 = vmatprep.subr.mxu1 %v86_v57  ;;  %477 = vmatpush3.msra.mxu0 %v38_v58 }
  0x21   :  { %521 = vmatpush3.msra.mxu1 %v70_v59 }
  0x22   :  { %10 = vsyncpa [#allocation3], 0  ;;  %478 = vmatprep.subr.mxu0 %v53_v60  ;;  %522 = vmatprep.subr.mxu1 %v85_v61  ;;  %v21_v2 = vld [vmem:[%s997_s0] sm:$0xff]  ;;  %v23_v3 = vld [vmem:[%s997_s0 + $0x10] sm:$0xff] }
  0x23   :  { %479 = vmatpush3.msra.mxu0 %v37_v62  ;;  %172 = vmatprep.mubr.f32.mxu0 %v22_v63  ;;  %v26_v4 = vld [vmem:[%s997_s0 + $0x28] sm:$0xff]  ;;  %v28_v5 = vld [vmem:[%s997_s0 + $0x38] sm:$0xff]  ;;  %v25_v7 = vld [vmem:[%s997_s0 + $0x20] sm:$0xff] }
  0x24   :  { %523 = vmatpush3.msra.mxu1 %v69_v0  ;;  %257 = vmatprep.mubr.f32.mxu1 %v24_v1  ;;  %v293_v6 = vld [vmem:[%s1000_s3 + $0x78] sm:$0xff]  ;;  %v27_v8 = vld [vmem:[%s997_s0 + $0x30] sm:$0xff]  ;;  %v30_v9 = vld [vmem:[%s997_s0 + $0x48] sm:$0xff] }
  0x25   :  { %173 = vmatmul.mubr.f32.vlgmr.msra.gmra.mxu0 %v21_v2  ;;  %258 = vmatmul.mubr.f32.vlgmr.msra.gmra.mxu1 %v23_v3  ;;  %v32_v10 = vld [vmem:[%s997_s0 + $0x58] sm:$0xff]  ;;  %v292_v11 = vld [vmem:[%s1000_s3 + $0x70] sm:$0xff]  ;;  %v29_v12 = vld [vmem:[%s997_s0 + $0x40] sm:$0xff] }
  0x26   :  { %177 = vmatprep.mubr.f32.mxu0 %v26_v4  ;;  %262 = vmatprep.mubr.f32.mxu1 %v28_v5  ;;  %v31_v13 = vld [vmem:[%s997_s0 + $0x50] sm:$0xff]  ;;  %v34_v14 = vld [vmem:[%s997_s0 + $0x68] sm:$0xff]  ;;  %v36_v15 = vld [vmem:[%s997_s0 + $0x78] sm:$0xff] }
  0x27   :  { %556 = vmatprep.subr.mxu0 %v293_v6  ;;  %594 = vmatprep.subr.mxu1 %v293_v6  ;;  %v291_v16 = vld [vmem:[%s1000_s3 + $0x68] sm:$0xff]  ;;  %v33_v17 = vld [vmem:[%s997_s0 + $0x60] sm:$0xff]  ;;  %v35_v18 = vld [vmem:[%s997_s0 + $0x70] sm:$0xff] }
  0x28   :  { %557 = vmatpush3.msra.mxu0 %v293_v6  ;;  %610 = vmatpush3.msra.mxu1 %v293_v6  ;;  %v290_v19 = vld [vmem:[%s1000_s3 + $0x60] sm:$0xff]  ;;  %v289_v20 = vld [vmem:[%s1000_s3 + $0x58] sm:$0xff]  ;;  %v288_v21 = vld [vmem:[%s1000_s3 + $0x50] sm:$0xff] }
  0x29   :  { %178 = vmatmul.mubr.f32.gmra.mxu0 %v25_v7  ;;  %263 = vmatmul.mubr.f32.gmra.mxu1 %v27_v8  ;;  %v287_v22 = vld [vmem:[%s1000_s3 + $0x48] sm:$0xff]  ;;  %v286_v23 = vld [vmem:[%s1000_s3 + $0x40] sm:$0xff]  ;;  %v285_v24 = vld [vmem:[%s1000_s3 + $0x38] sm:$0xff] }
  0x2a   :  { %182 = vmatprep.mubr.f32.mxu0 %v30_v9  ;;  %267 = vmatprep.mubr.f32.mxu1 %v32_v10  ;;  %v284_v25 = vld [vmem:[%s1000_s3 + $0x30] sm:$0xff]  ;;  %v283_v26 = vld [vmem:[%s1000_s3 + $0x28] sm:$0xff]  ;;  %v282_v27 = vld [vmem:[%s1000_s3 + $0x20] sm:$0xff] }
  0x2b   :  { %558 = vmatprep.subr.mxu0 %v292_v11  ;;  %595 = vmatprep.subr.mxu1 %v292_v11  ;;  %v281_v28 = vld [vmem:[%s1000_s3 + $0x18] sm:$0xff]  ;;  %v280_v29 = vld [vmem:[%s1000_s3 + $0x10] sm:$0xff]  ;;  %v279_v30 = vld [vmem:[%s1000_s3 + $0x8] sm:$0xff] }
  0x2c   :  { %559 = vmatpush3.msra.mxu0 %v292_v11  ;;  %611 = vmatpush3.msra.mxu1 %v292_v11  ;;  %v278_v31 = vld [vmem:[%s1000_s3] sm:$0xff] }
  0x2d   :  { %183 = vmatmul.mubr.f32.gmra.mxu0 %v29_v12  ;;  %268 = vmatmul.mubr.f32.gmra.mxu1 %v31_v13  ;;  %v446_v34 = vld [vmem:[%s999_s2] ss:$0 sm:$0xff] }
  0x2e   :  { %187 = vmatprep.mubr.f32.mxu0 %v34_v14  ;;  %272 = vmatprep.mubr.f32.mxu1 %v36_v15  ;;  %v447_v2 = vld [vmem:[%s1001_s4] ss:$0 sm:$0xff]  ;;  %s667_s4 = smov [#allocation2]  }
  0x2f   :  { %560 = vmatprep.subr.mxu0 %v291_v16  ;;  %596 = vmatprep.subr.mxu1 %v291_v16  ;;  %s435_s8 = sshll.u32 %s667_s4, 4  ;;  %s436_s8 = int_to_ptr.vmem [resolvable:$true] %s435_s8 }
  0x30   :  { %561 = vmatpush3.msra.mxu0 %v291_v16  ;;  %612 = vmatpush3.msra.mxu1 %v291_v16  ;;  %s645_s9 = scalar_lea.vmem %s436_s8, 512  ;;  %p650_p1 = scmp.lt.s32.totalorder %s436_s8, %s436_s8 }
  0x31   :  { %188 = vmatmul.mubr.f32.gmra.mxu0 %v33_v17  ;;  %273 = vmatmul.mubr.f32.gmra.mxu1 %v35_v18  ;;  %p646_p0 = scmp.ne.s32.totalorder %s436_s8, %s645_s9  ;;  %p651_p2 = scmp.lt.s32.totalorder %s645_s9, %s645_s9 }
  0x32   :  { %562 = vmatprep.subr.mxu0 %v290_v19  ;;  %597 = vmatprep.subr.mxu1 %v290_v19 }
  0x33   :  { %563 = vmatpush3.msra.mxu0 %v290_v19  ;;  %613 = vmatpush3.msra.mxu1 %v290_v19  ;;  %p652_p3 = por %p651_p2, %p650_p1 }
  0x34   :  { %564 = vmatprep.subr.mxu0 %v289_v20  ;;  %598 = vmatprep.subr.mxu1 %v289_v20 }
  0x35   :  { %565 = vmatpush3.msra.mxu0 %v289_v20  ;;  %614 = vmatpush3.msra.mxu1 %v289_v20  ;;  %p653_p4 = pnand %p652_p3, %p646_p0 }
  0x36   :  { %566 = vmatprep.subr.mxu0 %v288_v21  ;;  %599 = vmatprep.subr.mxu1 %v288_v21 }
  0x37   :  { %567 = vmatpush3.msra.mxu0 %v288_v21  ;;  %615 = vmatpush3.msra.mxu1 %v288_v21 }
  0x38   :  { %568 = vmatprep.subr.mxu0 %v287_v22  ;;  %600 = vmatprep.subr.mxu1 %v287_v22 }
  0x39   :  { %569 = vmatpush3.msra.mxu0 %v287_v22  ;;  %616 = vmatpush3.msra.mxu1 %v287_v22 }
  0x3a   :  { %570 = vmatprep.subr.mxu0 %v286_v23  ;;  %601 = vmatprep.subr.mxu1 %v286_v23 }
  0x3b   :  { %571 = vmatpush3.msra.mxu0 %v286_v23  ;;  %617 = vmatpush3.msra.mxu1 %v286_v23 }
  0x3c   :  { %572 = vmatprep.subr.mxu0 %v285_v24  ;;  %602 = vmatprep.subr.mxu1 %v285_v24 }
  0x3d   :  { %573 = vmatpush3.msra.mxu0 %v285_v24  ;;  %618 = vmatpush3.msra.mxu1 %v285_v24 }
  0x3e   :  { %574 = vmatprep.subr.mxu0 %v284_v25  ;;  %603 = vmatprep.subr.mxu1 %v284_v25 }
  0x3f   :  { %575 = vmatpush3.msra.mxu0 %v284_v25  ;;  %619 = vmatpush3.msra.mxu1 %v284_v25 }
  0x40   :  { %576 = vmatprep.subr.mxu0 %v283_v26  ;;  %604 = vmatprep.subr.mxu1 %v283_v26 }
  0x41   :  { %577 = vmatpush3.msra.mxu0 %v283_v26  ;;  %620 = vmatpush3.msra.mxu1 %v283_v26 }
  0x42   :  { %578 = vmatprep.subr.mxu0 %v282_v27  ;;  %605 = vmatprep.subr.mxu1 %v282_v27 }
  0x43   :  { %579 = vmatpush3.msra.mxu0 %v282_v27  ;;  %621 = vmatpush3.msra.mxu1 %v282_v27 }
  0x44   :  { %580 = vmatprep.subr.mxu0 %v281_v28  ;;  %606 = vmatprep.subr.mxu1 %v281_v28 }
  0x45   :  { %581 = vmatpush3.msra.mxu0 %v281_v28  ;;  %622 = vmatpush3.msra.mxu1 %v281_v28 }
  0x46   :  { %582 = vmatprep.subr.mxu0 %v280_v29  ;;  %607 = vmatprep.subr.mxu1 %v280_v29 }
  0x47   :  { %583 = vmatpush3.msra.mxu0 %v280_v29  ;;  %623 = vmatpush3.msra.mxu1 %v280_v29 }
  0x48   :  { %584 = vmatprep.subr.mxu0 %v279_v30  ;;  %608 = vmatprep.subr.mxu1 %v279_v30 }
  0x49   :  { %585 = vmatpush3.msra.mxu0 %v279_v30  ;;  %624 = vmatpush3.msra.mxu1 %v279_v30 }
  0x4a   :  { %586 = vmatprep.subr.mxu0 %v278_v31  ;;  %609 = vmatprep.subr.mxu1 %v278_v31 }
  0x4b   :  { %587 = vmatpush3.msra.mxu0 %v278_v31  ;;  %625 = vmatpush3.msra.mxu1 %v278_v31 }
  0xe5   :  { %v480_v32 = vpop.f32.mrf.mxu0  ;;  %v524_v33 = vpop.f32.mrf.mxu1 }
  0xe7   :  { %v481_v35 = vpop.f32.mrf.mxu0  ;;  %v525_v36 = vpop.f32.mrf.mxu1 }
  0xe8   :  { %v482_v37 = vadd.f32 %v481_v35, %v480_v32  ;;  %v526_v41 = vadd.f32 %v525_v36, %v524_v33 }
  0xe9   :  { %v483_v38 = vpop.f32.mrf.mxu0  ;;  %v527_v39 = vpop.f32.mrf.mxu1 }
  0xea   :  { %v175_v40 = vadd.f32 %v482_v37, %v446_v34 }
  0xeb   :  { %v484_v42 = vpop.f32.mrf.mxu0  ;;  %v528_v43 = vpop.f32.mrf.mxu1 }
  0xec   :  { %v260_v44 = vadd.f32 %v526_v41, %v175_v40  ;;  %v485_v45 = vadd.f32 %v484_v42, %v483_v38  ;;  %v529_v49 = vadd.f32 %v528_v43, %v527_v39 }
  0xed   :  { %v486_v46 = vpop.f32.mrf.mxu0  ;;  %v530_v47 = vpop.f32.mrf.mxu1 }
  0xee   :  { %v180_v48 = vadd.f32 %v485_v45, %v446_v34  ;;  %588 = vmatprep.mubr.f32.mxu0 %v260_v44 }
  0xef   :  { %v487_v50 = vpop.f32.mrf.mxu0  ;;  %v531_v51 = vpop.f32.mrf.mxu1 }
  0xf0   :  { %v265_v52 = vadd.f32 %v529_v49, %v180_v48  ;;  %v488_v53 = vadd.f32 %v487_v50, %v486_v46  ;;  %v532_v57 = vadd.f32 %v531_v51, %v530_v47 }
  0xf1   :  { %v489_v54 = vpop.f32.mrf.mxu0  ;;  %v533_v55 = vpop.f32.mrf.mxu1 }
  0xf2   :  { %v185_v56 = vadd.f32 %v488_v53, %v446_v34  ;;  %589 = vmatmul.mubr.f32.vlgmr.msra.gmra.mxu0 %v265_v52 }
  0xf3   :  { %v490_v58 = vpop.f32.mrf.mxu0  ;;  %v534_v59 = vpop.f32.mrf.mxu1 }
  0xf4   :  { %v270_v60 = vadd.f32 %v532_v57, %v185_v56  ;;  %v491_v61 = vadd.f32 %v490_v58, %v489_v54  ;;  %v535_v63 = vadd.f32 %v534_v59, %v533_v55 }
  0xf6   :  { %v190_v62 = vadd.f32 %v491_v61, %v446_v34  ;;  %591 = vmatprep.mubr.f32.mxu1 %v270_v60 }
  0xf8   :  { %v275_v0 = vadd.f32 %v535_v63, %v190_v62 }
  0xfa   :  { %592 = vmatmul.mubr.f32.vlgmr.msra.gmra.mxu1 %v275_v0 }
 0x1b2   :  { %v590_v1 = vpop.f32.mrf.mxu0 }
 0x1b3   :  { %v373_v5 = vadd.f32 %v590_v1, %v447_v2 }
 0x1b4   :  { %v367_v3 = vpop.f32.mrf.mxu0 }
 0x1b5   :  { %v368_v4 = vadd.f32 %v447_v2, %v367_v3 }
 0x1b7   :  { %386 = vmax.xlane.f32.xlu0 %v368_v4 }
 0x1ba   :  { %v593_v6 = vpop.f32.mrf.mxu1 }
 0x1bb   :  { %388 = vmax.xlane.f32.xlu0 %v373_v5  ;;  %v383_v9 = vadd.f32 %v593_v6, %v447_v2 }
 0x1bc   :  { %v377_v7 = vpop.f32.mrf.mxu1 }
 0x1bd   :  { %v378_v8 = vadd.f32 %v447_v2, %v377_v7 }
 0x1bf   :  { %390 = vmax.xlane.f32.xlu1 %v378_v8 }
 0x1c3   :  { %392 = vmax.xlane.f32.xlu1 %v383_v9 }
 0x240   :  { %v387_v10 = vpop.xlane.xlu0 %386 }
 0x241   :  { %v394_v11 = vsub.f32 %v368_v4, %v387_v10 }
 0x243   :  { %v398_v12 = vmul.f32 1.442695, %v394_v11 }
 0x244   :  { %v389_v13 = vpop.xlane.xlu0 %388 }
 0x245   :  { %629 = vpow2.f32 %v398_v12  ;;  %v395_v14 = vsub.f32 %v373_v5, %v389_v13 }
 0x247   :  { %v400_v15 = vmul.f32 1.442695, %v395_v14 }
 0x248   :  { %v391_v16 = vpop.xlane.xlu1 %390 }
 0x249   :  { %631 = vpow2.f32 %v400_v15  ;;  %v396_v17 = vsub.f32 %v378_v8, %v391_v16 }
 0x24b   :  { %v402_v18 = vmul.f32 1.442695, %v396_v17 }
 0x24c   :  { %v393_v19 = vpop.xlane.xlu1 %392 }
 0x24d   :  { %633 = vpow2.f32 %v402_v18  ;;  %v397_v20 = vsub.f32 %v383_v9, %v393_v19 }
 0x24f   :  { %v404_v21 = vmul.f32 1.442695, %v397_v20 }
 0x251   :  { %635 = vpow2.f32 %v404_v21 }
 0x252   :  { %v630_v22 = vpop.eup %629 }
 0x253   :  { %406 = vadd.xlane.f32.xlu0 %v630_v22 }
 0x256   :  { %v632_v23 = vpop.eup %631 }
 0x257   :  { %408 = vadd.xlane.f32.xlu1 %v632_v23 }
 0x25a   :  { %v634_v24 = vpop.eup %633 }
 0x25b   :  { %410 = vadd.xlane.f32.xlu0 %v634_v24 }
 0x25e   :  { %v636_v25 = vpop.eup %635 }
 0x25f   :  { %412 = vadd.xlane.f32.xlu1 %v636_v25 }
 0x2dc   :  { %v407_v26 = vpop.xlane.xlu0 %406 }
 0x2dd   :  { %637 = vlog2.f32 %v407_v26 }
 0x2e0   :  { %v409_v27 = vpop.xlane.xlu1 %408 }
 0x2e1   :  { %639 = vlog2.f32 %v409_v27 }
 0x2e4   :  { %v411_v28 = vpop.xlane.xlu0 %410 }
 0x2e5   :  { %641 = vlog2.f32 %v411_v28 }
 0x2e8   :  { %v413_v29 = vpop.xlane.xlu1 %412 }
 0x2e9   :  { %643 = vlog2.f32 %v413_v29 }
 0x2ea   :  { %v638_v30 = vpop.eup %637 }
 0x2eb   :  { %v415_v31 = vmul.f32 0.6931472, %v638_v30 }
 0x2ed   :  { %v422_v32 = vsub.f32 %v394_v11, %v415_v31 }
 0x2ee   :  { %v640_v33 = vpop.eup %639 }
 0x2ef   :  { %426 = vst [vmem:[#allocation2] sm:$0xff] %v422_v32  ;;  %v417_v34 = vmul.f32 0.6931472, %v640_v33 }
 0x2f1   :  { %v423_v35 = vsub.f32 %v395_v14, %v417_v34 }
 0x2f2   :  { %v642_v36 = vpop.eup %641 }
 0x2f3   :  { %427 = vst [vmem:[#allocation2 + $0x8] sm:$0xff] %v423_v35  ;;  %v419_v37 = vmul.f32 0.6931472, %v642_v36 }
 0x2f5   :  { %v424_v38 = vsub.f32 %v396_v17, %v419_v37 }
 0x2f6   :  { %v644_v39 = vpop.eup %643 }
 0x2f7   :  { %428 = vst [vmem:[#allocation2 + $0x10] sm:$0xff] %v424_v38  ;;  %v421_v40 = vmul.f32 0.6931472, %v644_v39 }
 0x2f9   :  { %v425_v41 = vsub.f32 %v397_v20, %v421_v40 }
 0x2fb   :  { %429 = vst [vmem:[#allocation2 + $0x18] sm:$0xff] %v425_v41 }
 0x2fc   :  { %656 = shalt.err (!%p653_p4)
}
 0x2fd   :  { %s668_s10 = smov 128   ;;  %s669_s11 = smov 8  }
 0x2fe   :  { %441 = dma.vmem_to_hbm [thread:$0]  %s436_s8, 512, %s1002_s5, [#allocation3], %s668_s10, %s668_s10, %s669_s11  }
 0x2ff   :  { %665 = dma.done.wait [#allocation3], 512  }
 0x300   :  { %666 = vsyncadd [#allocation3], 4294966784 }
 0x301   :  { %445 = vsyncpa [#allocation3], 1 }

// kernel: hindi_asr_forward.7
= control target key start
LH: loop header
LB: loop body
LE: loop exit
PB: predicated region body
PF: predicated region fallthrough
CT: control target
= control target key end

     0   :  { %8 = vsyncpa [#allocation3], 0  ;;  %s1722_s12 = smov [#allocation2]   ;;  %s2066_s0 = inlined_call_operand.vmem [shape: f32[32,1280], index: 0, kind: input, shape index: {}]   ;;  %s2067_s1 = inlined_call_operand.hbm [shape: f32[1280,512], index: 1, kind: input, shape index: {}]   ;;  %s2068_s2 = inlined_call_operand.vmem [shape: f32[1,512], index: 2, kind: input, shape index: {}]   ;;  %s2069_s3 = inlined_call_operand.vmem [shape: f32[32,512], index: 3, kind: output, shape index: {}]  }
   0x1   :  { %s16_s13 = sshll.u32 %s1722_s12, 4  ;;  %s17_s13 = int_to_ptr.vmem [resolvable:$true] %s16_s13 }
   0x2   :  { %s1708_s14 = scalar_lea.vmem %s17_s13, 81920  ;;  %p1713_p1 = scmp.lt.s32.totalorder %s17_s13, %s17_s13 }
   0x3   :  { %p1709_p0 = scmp.ne.s32.totalorder %s17_s13, %s1708_s14  ;;  %p1714_p2 = scmp.lt.s32.totalorder %s1708_s14, %s1708_s14 }
   0x5   :  { %p1715_p3 = por %p1714_p2, %p1713_p1 }
   0x7   :  { %p1716_p4 = pnand %p1715_p3, %p1709_p0 }
   0x9   :  { %1719 = shalt.err (!%p1716_p4)
}
   0xa   :  { %s1723_s15 = smov 512   ;;  %s1724_s16 = smov 32  }
   0xb   :  { %22 = dma.hbm_to_vmem [thread:$0]  %s2067_s1, 81920, %s17_s13, [#allocation3], %s1723_s15, %s1723_s15, %s1724_s16  }
   0xc   :  { %1720 = dma.done.wait [#allocation3], 81920  }
   0xd   :  { %1721 = vsyncadd [#allocation3], 4294885376  ;;  %v129_v0 = vld [vmem:[#allocation2 + $0x1e8] sm:$0xff]  ;;  %v128_v2 = vld [vmem:[#allocation2 + $0x1e0] sm:$0xff] }
   0xe   :  { %v257_v1 = vld [vmem:[#allocation2 + $0x5e8] sm:$0xff]  ;;  %730 = vmatprep.subr.mxu0 %v129_v0  ;;  %v256_v3 = vld [vmem:[#allocation2 + $0x5e0] sm:$0xff] }
   0xf   :  { %819 = vmatprep.subr.mxu1 %v257_v1  ;;  %v125_v4 = vld [vmem:[#allocation2 + $0x1c8] sm:$0xff]  ;;  %731 = vmatpush1.msra.mxu0 %v128_v2  ;;  %v124_v6 = vld [vmem:[#allocation2 + $0x1c0] sm:$0xff] }
  0x10   :  { %v253_v5 = vld [vmem:[#allocation2 + $0x5c8] sm:$0xff]  ;;  %820 = vmatpush1.msra.mxu1 %v256_v3  ;;  %v252_v7 = vld [vmem:[#allocation2 + $0x5c0] sm:$0xff]  ;;  %732 = vmatprep.subr.mxu0 %v125_v4 }
  0x11   :  { %v121_v8 = vld [vmem:[#allocation2 + $0x1a8] sm:$0xff]  ;;  %821 = vmatprep.subr.mxu1 %v253_v5  ;;  %v120_v10 = vld [vmem:[#allocation2 + $0x1a0] sm:$0xff]  ;;  %733 = vmatpush1.msra.mxu0 %v124_v6 }
  0x12   :  { %v249_v9 = vld [vmem:[#allocation2 + $0x5a8] sm:$0xff]  ;;  %v248_v11 = vld [vmem:[#allocation2 + $0x5a0] sm:$0xff]  ;;  %822 = vmatpush1.msra.mxu1 %v252_v7  ;;  %734 = vmatprep.subr.mxu0 %v121_v8 }
  0x13   :  { %v117_v12 = vld [vmem:[#allocation2 + $0x188] sm:$0xff]  ;;  %823 = vmatprep.subr.mxu1 %v249_v9  ;;  %v116_v14 = vld [vmem:[#allocation2 + $0x180] sm:$0xff]  ;;  %735 = vmatpush1.msra.mxu0 %v120_v10 }
  0x14   :  { %v245_v13 = vld [vmem:[#allocation2 + $0x588] sm:$0xff]  ;;  %v244_v15 = vld [vmem:[#allocation2 + $0x580] sm:$0xff]  ;;  %824 = vmatpush1.msra.mxu1 %v248_v11  ;;  %736 = vmatprep.subr.mxu0 %v117_v12 }
  0x15   :  { %v113_v16 = vld [vmem:[#allocation2 + $0x168] sm:$0xff]  ;;  %825 = vmatprep.subr.mxu1 %v245_v13  ;;  %v112_v18 = vld [vmem:[#allocation2 + $0x160] sm:$0xff]  ;;  %737 = vmatpush1.msra.mxu0 %v116_v14 }
  0x16   :  { %v241_v17 = vld [vmem:[#allocation2 + $0x568] sm:$0xff]  ;;  %v240_v19 = vld [vmem:[#allocation2 + $0x560] sm:$0xff]  ;;  %826 = vmatpush1.msra.mxu1 %v244_v15  ;;  %738 = vmatprep.subr.mxu0 %v113_v16 }
  0x17   :  { %v109_v20 = vld [vmem:[#allocation2 + $0x148] sm:$0xff]  ;;  %827 = vmatprep.subr.mxu1 %v241_v17  ;;  %v108_v22 = vld [vmem:[#allocation2 + $0x140] sm:$0xff]  ;;  %739 = vmatpush1.msra.mxu0 %v112_v18 }
  0x18   :  { %v237_v21 = vld [vmem:[#allocation2 + $0x548] sm:$0xff]  ;;  %v236_v23 = vld [vmem:[#allocation2 + $0x540] sm:$0xff]  ;;  %828 = vmatpush1.msra.mxu1 %v240_v19  ;;  %740 = vmatprep.subr.mxu0 %v109_v20 }
  0x19   :  { %v105_v24 = vld [vmem:[#allocation2 + $0x128] sm:$0xff]  ;;  %829 = vmatprep.subr.mxu1 %v237_v21  ;;  %v104_v26 = vld [vmem:[#allocation2 + $0x120] sm:$0xff]  ;;  %741 = vmatpush1.msra.mxu0 %v108_v22 }
  0x1a   :  { %v233_v25 = vld [vmem:[#allocation2 + $0x528] sm:$0xff]  ;;  %v232_v27 = vld [vmem:[#allocation2 + $0x520] sm:$0xff]  ;;  %830 = vmatpush1.msra.mxu1 %v236_v23  ;;  %742 = vmatprep.subr.mxu0 %v105_v24 }
  0x1b   :  { %v101_v28 = vld [vmem:[#allocation2 + $0x108] sm:$0xff]  ;;  %831 = vmatprep.subr.mxu1 %v233_v25  ;;  %v100_v30 = vld [vmem:[#allocation2 + $0x100] sm:$0xff]  ;;  %743 = vmatpush1.msra.mxu0 %v104_v26 }
  0x1c   :  { %v229_v29 = vld [vmem:[#allocation2 + $0x508] sm:$0xff]  ;;  %v228_v31 = vld [vmem:[#allocation2 + $0x500] sm:$0xff]  ;;  %832 = vmatpush1.msra.mxu1 %v232_v27  ;;  %744 = vmatprep.subr.mxu0 %v101_v28 }
  0x1d   :  { %v97_v32 = vld [vmem:[#allocation2 + $0xe8] sm:$0xff]  ;;  %833 = vmatprep.subr.mxu1 %v229_v29  ;;  %v96_v34 = vld [vmem:[#allocation2 + $0xe0] sm:$0xff]  ;;  %745 = vmatpush1.msra.mxu0 %v100_v30 }
  0x1e   :  { %v225_v33 = vld [vmem:[#allocation2 + $0x4e8] sm:$0xff]  ;;  %v224_v35 = vld [vmem:[#allocation2 + $0x4e0] sm:$0xff]  ;;  %834 = vmatpush1.msra.mxu1 %v228_v31  ;;  %746 = vmatprep.subr.mxu0 %v97_v32 }
  0x1f   :  { %v93_v36 = vld [vmem:[#allocation2 + $0xc8] sm:$0xff]  ;;  %835 = vmatprep.subr.mxu1 %v225_v33  ;;  %v92_v38 = vld [vmem:[#allocation2 + $0xc0] sm:$0xff]  ;;  %747 = vmatpush1.msra.mxu0 %v96_v34 }
  0x20   :  { %v221_v37 = vld [vmem:[#allocation2 + $0x4c8] sm:$0xff]  ;;  %v220_v39 = vld [vmem:[#allocation2 + $0x4c0] sm:$0xff]  ;;  %836 = vmatpush1.msra.mxu1 %v224_v35  ;;  %748 = vmatprep.subr.mxu0 %v93_v36 }
  0x21   :  { %v89_v40 = vld [vmem:[#allocation2 + $0xa8] sm:$0xff]  ;;  %837 = vmatprep.subr.mxu1 %v221_v37  ;;  %v88_v42 = vld [vmem:[#allocation2 + $0xa0] sm:$0xff]  ;;  %749 = vmatpush1.msra.mxu0 %v92_v38 }
  0x22   :  { %v217_v41 = vld [vmem:[#allocation2 + $0x4a8] sm:$0xff]  ;;  %v216_v43 = vld [vmem:[#allocation2 + $0x4a0] sm:$0xff]  ;;  %838 = vmatpush1.msra.mxu1 %v220_v39  ;;  %750 = vmatprep.subr.mxu0 %v89_v40 }
  0x23   :  { %v85_v44 = vld [vmem:[#allocation2 + $0x88] sm:$0xff]  ;;  %839 = vmatprep.subr.mxu1 %v217_v41  ;;  %v84_v46 = vld [vmem:[#allocation2 + $0x80] sm:$0xff]  ;;  %751 = vmatpush1.msra.mxu0 %v88_v42 }
  0x24   :  { %v213_v45 = vld [vmem:[#allocation2 + $0x488] sm:$0xff]  ;;  %v212_v47 = vld [vmem:[#allocation2 + $0x480] sm:$0xff]  ;;  %840 = vmatpush1.msra.mxu1 %v216_v43  ;;  %752 = vmatprep.subr.mxu0 %v85_v44 }
  0x25   :  { %v81_v48 = vld [vmem:[#allocation2 + $0x68] sm:$0xff]  ;;  %841 = vmatprep.subr.mxu1 %v213_v45  ;;  %v80_v50 = vld [vmem:[#allocation2 + $0x60] sm:$0xff]  ;;  %753 = vmatpush1.msra.mxu0 %v84_v46 }
  0x26   :  { %v209_v49 = vld [vmem:[#allocation2 + $0x468] sm:$0xff]  ;;  %v208_v51 = vld [vmem:[#allocation2 + $0x460] sm:$0xff]  ;;  %842 = vmatpush1.msra.mxu1 %v212_v47  ;;  %754 = vmatprep.subr.mxu0 %v81_v48 }
  0x27   :  { %v77_v52 = vld [vmem:[#allocation2 + $0x48] sm:$0xff]  ;;  %843 = vmatprep.subr.mxu1 %v209_v49  ;;  %v76_v54 = vld [vmem:[#allocation2 + $0x40] sm:$0xff]  ;;  %755 = vmatpush1.msra.mxu0 %v80_v50 }
  0x28   :  { %v205_v53 = vld [vmem:[#allocation2 + $0x448] sm:$0xff]  ;;  %v204_v55 = vld [vmem:[#allocation2 + $0x440] sm:$0xff]  ;;  %844 = vmatpush1.msra.mxu1 %v208_v51  ;;  %756 = vmatprep.subr.mxu0 %v77_v52 }
  0x29   :  { %v73_v56 = vld [vmem:[#allocation2 + $0x28] sm:$0xff]  ;;  %845 = vmatprep.subr.mxu1 %v205_v53  ;;  %v72_v58 = vld [vmem:[#allocation2 + $0x20] sm:$0xff]  ;;  %757 = vmatpush1.msra.mxu0 %v76_v54 }
  0x2a   :  { %v201_v57 = vld [vmem:[#allocation2 + $0x428] sm:$0xff]  ;;  %v200_v59 = vld [vmem:[#allocation2 + $0x420] sm:$0xff]  ;;  %846 = vmatpush1.msra.mxu1 %v204_v55  ;;  %758 = vmatprep.subr.mxu0 %v73_v56 }
  0x2b   :  { %v69_v60 = vld [vmem:[#allocation2 + $0x8] sm:$0xff]  ;;  %847 = vmatprep.subr.mxu1 %v201_v57  ;;  %v68_v62 = vld [vmem:[#allocation2] sm:$0xff]  ;;  %759 = vmatpush1.msra.mxu0 %v72_v58 }
  0x2c   :  { %v197_v61 = vld [vmem:[#allocation2 + $0x408] sm:$0xff]  ;;  %v196_v63 = vld [vmem:[#allocation2 + $0x400] sm:$0xff]  ;;  %848 = vmatpush1.msra.mxu1 %v200_v59  ;;  %760 = vmatprep.subr.mxu0 %v69_v60 }
  0x2d   :  { %v193_v0 = vld [vmem:[#allocation2 + $0x3e8] sm:$0xff]  ;;  %849 = vmatprep.subr.mxu1 %v197_v61  ;;  %v192_v2 = vld [vmem:[#allocation2 + $0x3e0] sm:$0xff]  ;;  %761 = vmatpush1.msra.mxu0 %v68_v62 }
  0x2e   :  { %v321_v1 = vld [vmem:[#allocation2 + $0x7e8] sm:$0xff]  ;;  %v320_v3 = vld [vmem:[#allocation2 + $0x7e0] sm:$0xff]  ;;  %850 = vmatpush1.msra.mxu1 %v196_v63  ;;  %762 = vmatprep.subr.mxu0 %v193_v0 }
  0x2f   :  { %v189_v4 = vld [vmem:[#allocation2 + $0x3c8] sm:$0xff]  ;;  %851 = vmatprep.subr.mxu1 %v321_v1  ;;  %v188_v6 = vld [vmem:[#allocation2 + $0x3c0] sm:$0xff]  ;;  %763 = vmatpush2.msra.mxu0 %v192_v2  ;;  %v31_v2 = vld [vmem:[%s2066_s0 + $0x18] sm:$0xff] }
  0x30   :  { %v317_v5 = vld [vmem:[#allocation2 + $0x7c8] sm:$0xff]  ;;  %v316_v7 = vld [vmem:[#allocation2 + $0x7c0] sm:$0xff]  ;;  %852 = vmatpush2.msra.mxu1 %v320_v3  ;;  %764 = vmatprep.subr.mxu0 %v189_v4 }
  0x31   :  { %v185_v8 = vld [vmem:[#allocation2 + $0x3a8] sm:$0xff]  ;;  %853 = vmatprep.subr.mxu1 %v317_v5  ;;  %v184_v10 = vld [vmem:[#allocation2 + $0x3a0] sm:$0xff]  ;;  %765 = vmatpush2.msra.mxu0 %v188_v6  ;;  %v30_v5 = vld [vmem:[%s2066_s0 + $0x10] sm:$0xff] }
  0x32   :  { %v313_v9 = vld [vmem:[#allocation2 + $0x7a8] sm:$0xff]  ;;  %v312_v11 = vld [vmem:[#allocation2 + $0x7a0] sm:$0xff]  ;;  %854 = vmatpush2.msra.mxu1 %v316_v7  ;;  %766 = vmatprep.subr.mxu0 %v185_v8 }
  0x33   :  { %v181_v12 = vld [vmem:[#allocation2 + $0x388] sm:$0xff]  ;;  %855 = vmatprep.subr.mxu1 %v313_v9  ;;  %v180_v14 = vld [vmem:[#allocation2 + $0x380] sm:$0xff]  ;;  %767 = vmatpush2.msra.mxu0 %v184_v10 }
  0x34   :  { %v309_v13 = vld [vmem:[#allocation2 + $0x788] sm:$0xff]  ;;  %v308_v15 = vld [vmem:[#allocation2 + $0x780] sm:$0xff]  ;;  %856 = vmatpush2.msra.mxu1 %v312_v11  ;;  %768 = vmatprep.subr.mxu0 %v181_v12 }
  0x35   :  { %v177_v16 = vld [vmem:[#allocation2 + $0x368] sm:$0xff]  ;;  %857 = vmatprep.subr.mxu1 %v309_v13  ;;  %v176_v18 = vld [vmem:[#allocation2 + $0x360] sm:$0xff]  ;;  %769 = vmatpush2.msra.mxu0 %v180_v14 }
  0x36   :  { %v305_v17 = vld [vmem:[#allocation2 + $0x768] sm:$0xff]  ;;  %v304_v19 = vld [vmem:[#allocation2 + $0x760] sm:$0xff]  ;;  %858 = vmatpush2.msra.mxu1 %v308_v15  ;;  %770 = vmatprep.subr.mxu0 %v177_v16 }
  0x37   :  { %v173_v20 = vld [vmem:[#allocation2 + $0x348] sm:$0xff]  ;;  %859 = vmatprep.subr.mxu1 %v305_v17  ;;  %v172_v22 = vld [vmem:[#allocation2 + $0x340] sm:$0xff]  ;;  %771 = vmatpush2.msra.mxu0 %v176_v18 }
  0x38   :  { %v301_v21 = vld [vmem:[#allocation2 + $0x748] sm:$0xff]  ;;  %v300_v23 = vld [vmem:[#allocation2 + $0x740] sm:$0xff]  ;;  %860 = vmatpush2.msra.mxu1 %v304_v19  ;;  %772 = vmatprep.subr.mxu0 %v173_v20 }
  0x39   :  { %v169_v24 = vld [vmem:[#allocation2 + $0x328] sm:$0xff]  ;;  %861 = vmatprep.subr.mxu1 %v301_v21  ;;  %v168_v26 = vld [vmem:[#allocation2 + $0x320] sm:$0xff]  ;;  %773 = vmatpush2.msra.mxu0 %v172_v22 }
  0x3a   :  { %v297_v25 = vld [vmem:[#allocation2 + $0x728] sm:$0xff]  ;;  %v296_v27 = vld [vmem:[#allocation2 + $0x720] sm:$0xff]  ;;  %862 = vmatpush2.msra.mxu1 %v300_v23  ;;  %774 = vmatprep.subr.mxu0 %v169_v24 }
  0x3b   :  { %v165_v28 = vld [vmem:[#allocation2 + $0x308] sm:$0xff]  ;;  %863 = vmatprep.subr.mxu1 %v297_v25  ;;  %v164_v30 = vld [vmem:[#allocation2 + $0x300] sm:$0xff]  ;;  %775 = vmatpush2.msra.mxu0 %v168_v26 }
  0x3c   :  { %v293_v29 = vld [vmem:[#allocation2 + $0x708] sm:$0xff]  ;;  %v292_v31 = vld [vmem:[#allocation2 + $0x700] sm:$0xff]  ;;  %864 = vmatpush2.msra.mxu1 %v296_v27  ;;  %776 = vmatprep.subr.mxu0 %v165_v28 }
  0x3d   :  { %v161_v32 = vld [vmem:[#allocation2 + $0x2e8] sm:$0xff]  ;;  %865 = vmatprep.subr.mxu1 %v293_v29  ;;  %v160_v34 = vld [vmem:[#allocation2 + $0x2e0] sm:$0xff]  ;;  %777 = vmatpush2.msra.mxu0 %v164_v30 }
  0x3e   :  { %v289_v33 = vld [vmem:[#allocation2 + $0x6e8] sm:$0xff]  ;;  %v288_v35 = vld [vmem:[#allocation2 + $0x6e0] sm:$0xff]  ;;  %866 = vmatpush2.msra.mxu1 %v292_v31  ;;  %778 = vmatprep.subr.mxu0 %v161_v32 }
  0x3f   :  { %v157_v36 = vld [vmem:[#allocation2 + $0x2c8] sm:$0xff]  ;;  %867 = vmatprep.subr.mxu1 %v289_v33  ;;  %v156_v38 = vld [vmem:[#allocation2 + $0x2c0] sm:$0xff]  ;;  %779 = vmatpush2.msra.mxu0 %v160_v34 }
  0x40   :  { %v285_v37 = vld [vmem:[#allocation2 + $0x6c8] sm:$0xff]  ;;  %v284_v39 = vld [vmem:[#allocation2 + $0x6c0] sm:$0xff]  ;;  %868 = vmatpush2.msra.mxu1 %v288_v35  ;;  %780 = vmatprep.subr.mxu0 %v157_v36 }
  0x41   :  { %v153_v40 = vld [vmem:[#allocation2 + $0x2a8] sm:$0xff]  ;;  %869 = vmatprep.subr.mxu1 %v285_v37  ;;  %v152_v42 = vld [vmem:[#allocation2 + $0x2a0] sm:$0xff]  ;;  %781 = vmatpush2.msra.mxu0 %v156_v38 }
  0x42   :  { %v281_v41 = vld [vmem:[#allocation2 + $0x6a8] sm:$0xff]  ;;  %v280_v43 = vld [vmem:[#allocation2 + $0x6a0] sm:$0xff]  ;;  %870 = vmatpush2.msra.mxu1 %v284_v39  ;;  %782 = vmatprep.subr.mxu0 %v153_v40 }
  0x43   :  { %v149_v44 = vld [vmem:[#allocation2 + $0x288] sm:$0xff]  ;;  %871 = vmatprep.subr.mxu1 %v281_v41  ;;  %v148_v46 = vld [vmem:[#allocation2 + $0x280] sm:$0xff]  ;;  %783 = vmatpush2.msra.mxu0 %v152_v42 }
  0x44   :  { %v277_v45 = vld [vmem:[#allocation2 + $0x688] sm:$0xff]  ;;  %v276_v47 = vld [vmem:[#allocation2 + $0x680] sm:$0xff]  ;;  %872 = vmatpush2.msra.mxu1 %v280_v43  ;;  %784 = vmatprep.subr.mxu0 %v149_v44 }
  0x45   :  { %v145_v48 = vld [vmem:[#allocation2 + $0x268] sm:$0xff]  ;;  %873 = vmatprep.subr.mxu1 %v277_v45  ;;  %v144_v50 = vld [vmem:[#allocation2 + $0x260] sm:$0xff]  ;;  %785 = vmatpush2.msra.mxu0 %v148_v46 }
  0x46   :  { %v273_v49 = vld [vmem:[#allocation2 + $0x668] sm:$0xff]  ;;  %v272_v51 = vld [vmem:[#allocation2 + $0x660] sm:$0xff]  ;;  %874 = vmatpush2.msra.mxu1 %v276_v47  ;;  %786 = vmatprep.subr.mxu0 %v145_v48 }
  0x47   :  { %v141_v52 = vld [vmem:[#allocation2 + $0x248] sm:$0xff]  ;;  %875 = vmatprep.subr.mxu1 %v273_v49  ;;  %v140_v54 = vld [vmem:[#allocation2 + $0x240] sm:$0xff]  ;;  %787 = vmatpush2.msra.mxu0 %v144_v50 }
  0x48   :  { %v269_v53 = vld [vmem:[#allocation2 + $0x648] sm:$0xff]  ;;  %v268_v55 = vld [vmem:[#allocation2 + $0x640] sm:$0xff]  ;;  %876 = vmatpush2.msra.mxu1 %v272_v51  ;;  %788 = vmatprep.subr.mxu0 %v141_v52 }
  0x49   :  { %v137_v56 = vld [vmem:[#allocation2 + $0x228] sm:$0xff]  ;;  %877 = vmatprep.subr.mxu1 %v269_v53  ;;  %v136_v58 = vld [vmem:[#allocation2 + $0x220] sm:$0xff]  ;;  %789 = vmatpush2.msra.mxu0 %v140_v54 }
  0x4a   :  { %v265_v57 = vld [vmem:[#allocation2 + $0x628] sm:$0xff]  ;;  %v264_v59 = vld [vmem:[#allocation2 + $0x620] sm:$0xff]  ;;  %878 = vmatpush2.msra.mxu1 %v268_v55  ;;  %790 = vmatprep.subr.mxu0 %v137_v56 }
  0x4b   :  { %v133_v60 = vld [vmem:[#allocation2 + $0x208] sm:$0xff]  ;;  %879 = vmatprep.subr.mxu1 %v265_v57  ;;  %v132_v62 = vld [vmem:[#allocation2 + $0x200] sm:$0xff]  ;;  %791 = vmatpush2.msra.mxu0 %v136_v58 }
  0x4c   :  { %v261_v61 = vld [vmem:[#allocation2 + $0x608] sm:$0xff]  ;;  %880 = vmatpush2.msra.mxu1 %v264_v59  ;;  %v260_v0 = vld [vmem:[#allocation2 + $0x600] sm:$0xff]  ;;  %792 = vmatprep.subr.mxu0 %v133_v60 }
  0x4d   :  { %v29_v63 = vld [vmem:[%s2066_s0 + $0x8] sm:$0xff]  ;;  %v28_v1 = vld [vmem:[%s2066_s0] sm:$0xff]  ;;  %881 = vmatprep.subr.mxu1 %v261_v61  ;;  %793 = vmatpush2.msra.mxu0 %v132_v62 }
  0x4e   :  { %v385_v3 = vld [vmem:[#allocation2 + $0x9e8] sm:$0xff]  ;;  %794 = vmatprep.mubr.f32.mxu0 %v29_v63  ;;  %882 = vmatpush2.msra.mxu1 %v260_v0  ;;  %v384_v6 = vld [vmem:[#allocation2 + $0x9e0] sm:$0xff] }
  0x4f   :  { %v513_v4 = vld [vmem:[#allocation2 + $0xde8] sm:$0xff]  ;;  %795 = vmatmul.mubr.f32.vlgmr.msra.gmra.mxu0 %v28_v1  ;;  %v512_v7 = vld [vmem:[#allocation2 + $0xde0] sm:$0xff]  ;;  %883 = vmatprep.mubr.f32.mxu1 %v31_v2 }
  0x50   :  { %908 = vmatprep.subr.mxu0 %v385_v3  ;;  %v381_v8 = vld [vmem:[#allocation2 + $0x9c8] sm:$0xff]  ;;  %997 = vmatprep.subr.mxu1 %v513_v4  ;;  %v380_v10 = vld [vmem:[#allocation2 + $0x9c0] sm:$0xff] }
  0x51   :  { %v509_v9 = vld [vmem:[#allocation2 + $0xdc8] sm:$0xff]  ;;  %884 = vmatmul.mubr.f32.vlgmr.msra.gmra.mxu1 %v30_v5  ;;  %v508_v11 = vld [vmem:[#allocation2 + $0xdc0] sm:$0xff]  ;;  %909 = vmatpush1.msra.mxu0 %v384_v6 }
  0x52   :  { %998 = vmatpush1.msra.mxu1 %v512_v7  ;;  %v377_v12 = vld [vmem:[#allocation2 + $0x9a8] sm:$0xff]  ;;  %910 = vmatprep.subr.mxu0 %v381_v8  ;;  %v376_v14 = vld [vmem:[#allocation2 + $0x9a0] sm:$0xff] }
  0x53   :  { %v505_v13 = vld [vmem:[#allocation2 + $0xda8] sm:$0xff]  ;;  %999 = vmatprep.subr.mxu1 %v509_v9  ;;  %v504_v15 = vld [vmem:[#allocation2 + $0xda0] sm:$0xff]  ;;  %911 = vmatpush1.msra.mxu0 %v380_v10 }
  0x54   :  { %1000 = vmatpush1.msra.mxu1 %v508_v11  ;;  %v373_v16 = vld [vmem:[#allocation2 + $0x988] sm:$0xff]  ;;  %912 = vmatprep.subr.mxu0 %v377_v12  ;;  %v372_v18 = vld [vmem:[#allocation2 + $0x980] sm:$0xff] }
  0x55   :  { %v501_v17 = vld [vmem:[#allocation2 + $0xd88] sm:$0xff]  ;;  %1001 = vmatprep.subr.mxu1 %v505_v13  ;;  %v500_v19 = vld [vmem:[#allocation2 + $0xd80] sm:$0xff]  ;;  %913 = vmatpush1.msra.mxu0 %v376_v14 }
  0x56   :  { %1002 = vmatpush1.msra.mxu1 %v504_v15  ;;  %v369_v20 = vld [vmem:[#allocation2 + $0x968] sm:$0xff]  ;;  %914 = vmatprep.subr.mxu0 %v373_v16  ;;  %v368_v22 = vld [vmem:[#allocation2 + $0x960] sm:$0xff] }
  0x57   :  { %v497_v21 = vld [vmem:[#allocation2 + $0xd68] sm:$0xff]  ;;  %1003 = vmatprep.subr.mxu1 %v501_v17  ;;  %v496_v23 = vld [vmem:[#allocation2 + $0xd60] sm:$0xff]  ;;  %915 = vmatpush1.msra.mxu0 %v372_v18 }
  0x58   :  { %1004 = vmatpush1.msra.mxu1 %v500_v19  ;;  %v365_v24 = vld [vmem:[#allocation2 + $0x948] sm:$0xff]  ;;  %916 = vmatprep.subr.mxu0 %v369_v20  ;;  %v364_v26 = vld [vmem:[#allocation2 + $0x940] sm:$0xff] }
  0x59   :  { %v493_v25 = vld [vmem:[#allocation2 + $0xd48] sm:$0xff]  ;;  %1005 = vmatprep.subr.mxu1 %v497_v21  ;;  %v492_v27 = vld [vmem:[#allocation2 + $0xd40] sm:$0xff]  ;;  %917 = vmatpush1.msra.mxu0 %v368_v22 }
  0x5a   :  { %1006 = vmatpush1.msra.mxu1 %v496_v23  ;;  %v361_v28 = vld [vmem:[#allocation2 + $0x928] sm:$0xff]  ;;  %918 = vmatprep.subr.mxu0 %v365_v24  ;;  %v360_v30 = vld [vmem:[#allocation2 + $0x920] sm:$0xff] }
  0x5b   :  { %v489_v29 = vld [vmem:[#allocation2 + $0xd28] sm:$0xff]  ;;  %1007 = vmatprep.subr.mxu1 %v493_v25  ;;  %v488_v31 = vld [vmem:[#allocation2 + $0xd20] sm:$0xff]  ;;  %919 = vmatpush1.msra.mxu0 %v364_v26 }
  0x5c   :  { %1008 = vmatpush1.msra.mxu1 %v492_v27  ;;  %v357_v32 = vld [vmem:[#allocation2 + $0x908] sm:$0xff]  ;;  %920 = vmatprep.subr.mxu0 %v361_v28  ;;  %v356_v34 = vld [vmem:[#allocation2 + $0x900] sm:$0xff] }
  0x5d   :  { %v485_v33 = vld [vmem:[#allocation2 + $0xd08] sm:$0xff]  ;;  %1009 = vmatprep.subr.mxu1 %v489_v29  ;;  %v484_v35 = vld [vmem:[#allocation2 + $0xd00] sm:$0xff]  ;;  %921 = vmatpush1.msra.mxu0 %v360_v30 }
  0x5e   :  { %1010 = vmatpush1.msra.mxu1 %v488_v31  ;;  %v353_v36 = vld [vmem:[#allocation2 + $0x8e8] sm:$0xff]  ;;  %922 = vmatprep.subr.mxu0 %v357_v32  ;;  %v352_v38 = vld [vmem:[#allocation2 + $0x8e0] sm:$0xff] }
  0x5f   :  { %v481_v37 = vld [vmem:[#allocation2 + $0xce8] sm:$0xff]  ;;  %1011 = vmatprep.subr.mxu1 %v485_v33  ;;  %v480_v39 = vld [vmem:[#allocation2 + $0xce0] sm:$0xff]  ;;  %923 = vmatpush1.msra.mxu0 %v356_v34 }
  0x60   :  { %1012 = vmatpush1.msra.mxu1 %v484_v35  ;;  %v349_v40 = vld [vmem:[#allocation2 + $0x8c8] sm:$0xff]  ;;  %924 = vmatprep.subr.mxu0 %v353_v36  ;;  %v348_v42 = vld [vmem:[#allocation2 + $0x8c0] sm:$0xff] }
  0x61   :  { %v477_v41 = vld [vmem:[#allocation2 + $0xcc8] sm:$0xff]  ;;  %1013 = vmatprep.subr.mxu1 %v481_v37  ;;  %v476_v43 = vld [vmem:[#allocation2 + $0xcc0] sm:$0xff]  ;;  %925 = vmatpush1.msra.mxu0 %v352_v38 }
  0x62   :  { %1014 = vmatpush1.msra.mxu1 %v480_v39  ;;  %v345_v44 = vld [vmem:[#allocation2 + $0x8a8] sm:$0xff]  ;;  %926 = vmatprep.subr.mxu0 %v349_v40  ;;  %v344_v46 = vld [vmem:[#allocation2 + $0x8a0] sm:$0xff]  ;;  %v39_v40 = vld [vmem:[%s2066_s0 + $0x58] sm:$0xff] }
  0x63   :  { %v473_v45 = vld [vmem:[#allocation2 + $0xca8] sm:$0xff]  ;;  %1015 = vmatprep.subr.mxu1 %v477_v41  ;;  %v472_v47 = vld [vmem:[#allocation2 + $0xca0] sm:$0xff]  ;;  %927 = vmatpush1.msra.mxu0 %v348_v42 }
  0x64   :  { %1016 = vmatpush1.msra.mxu1 %v476_v43  ;;  %v341_v48 = vld [vmem:[#allocation2 + $0x888] sm:$0xff]  ;;  %928 = vmatprep.subr.mxu0 %v345_v44  ;;  %v340_v50 = vld [vmem:[#allocation2 + $0x880] sm:$0xff]  ;;  %v38_v43 = vld [vmem:[%s2066_s0 + $0x50] sm:$0xff] }
  0x65   :  { %v469_v49 = vld [vmem:[#allocation2 + $0xc88] sm:$0xff]  ;;  %1017 = vmatprep.subr.mxu1 %v473_v45  ;;  %v468_v51 = vld [vmem:[#allocation2 + $0xc80] sm:$0xff]  ;;  %929 = vmatpush1.msra.mxu0 %v344_v46 }
  0x66   :  { %1018 = vmatpush1.msra.mxu1 %v472_v47  ;;  %v337_v52 = vld [vmem:[#allocation2 + $0x868] sm:$0xff]  ;;  %930 = vmatprep.subr.mxu0 %v341_v48  ;;  %v336_v54 = vld [vmem:[#allocation2 + $0x860] sm:$0xff] }
  0x67   :  { %v465_v53 = vld [vmem:[#allocation2 + $0xc68] sm:$0xff]  ;;  %1019 = vmatprep.subr.mxu1 %v469_v49  ;;  %v464_v55 = vld [vmem:[#allocation2 + $0xc60] sm:$0xff]  ;;  %931 = vmatpush1.msra.mxu0 %v340_v50 }
  0x68   :  { %1020 = vmatpush1.msra.mxu1 %v468_v51  ;;  %v333_v56 = vld [vmem:[#allocation2 + $0x848] sm:$0xff]  ;;  %932 = vmatprep.subr.mxu0 %v337_v52  ;;  %v332_v58 = vld [vmem:[#allocation2 + $0x840] sm:$0xff] }
  0x69   :  { %v461_v57 = vld [vmem:[#allocation2 + $0xc48] sm:$0xff]  ;;  %1021 = vmatprep.subr.mxu1 %v465_v53  ;;  %v460_v59 = vld [vmem:[#allocation2 + $0xc40] sm:$0xff]  ;;  %933 = vmatpush1.msra.mxu0 %v336_v54 }
  0x6a   :  { %1022 = vmatpush1.msra.mxu1 %v464_v55  ;;  %v329_v60 = vld [vmem:[#allocation2 + $0x828] sm:$0xff]  ;;  %934 = vmatprep.subr.mxu0 %v333_v56  ;;  %v328_v62 = vld [vmem:[#allocation2 + $0x820] sm:$0xff] }
  0x6b   :  { %v457_v61 = vld [vmem:[#allocation2 + $0xc28] sm:$0xff]  ;;  %1023 = vmatprep.subr.mxu1 %v461_v57  ;;  %v456_v63 = vld [vmem:[#allocation2 + $0xc20] sm:$0xff]  ;;  %935 = vmatpush1.msra.mxu0 %v332_v58  ;;  %v51_v58 = vld [vmem:[%s2066_s0 + $0xb8] sm:$0xff] }
  0x6c   :  { %1024 = vmatpush1.msra.mxu1 %v460_v59  ;;  %v325_v0 = vld [vmem:[#allocation2 + $0x808] sm:$0xff]  ;;  %936 = vmatprep.subr.mxu0 %v329_v60  ;;  %v324_v2 = vld [vmem:[#allocation2 + $0x800] sm:$0xff] }
  0x6d   :  { %v453_v1 = vld [vmem:[#allocation2 + $0xc08] sm:$0xff]  ;;  %1025 = vmatprep.subr.mxu1 %v457_v61  ;;  %v452_v3 = vld [vmem:[#allocation2 + $0xc00] sm:$0xff]  ;;  %937 = vmatpush1.msra.mxu0 %v328_v62  ;;  %v50_v61 = vld [vmem:[%s2066_s0 + $0xb0] sm:$0xff] }
  0x6e   :  { %1026 = vmatpush1.msra.mxu1 %v456_v63  ;;  %v449_v4 = vld [vmem:[#allocation2 + $0xbe8] sm:$0xff]  ;;  %938 = vmatprep.subr.mxu0 %v325_v0  ;;  %v448_v6 = vld [vmem:[#allocation2 + $0xbe0] sm:$0xff]  ;;  %v59_v0 = vld [vmem:[%s2066_s0 + $0xf8] sm:$0xff] }
  0x6f   :  { %v577_v5 = vld [vmem:[#allocation2 + $0xfe8] sm:$0xff]  ;;  %1027 = vmatprep.subr.mxu1 %v453_v1  ;;  %v576_v7 = vld [vmem:[#allocation2 + $0xfe0] sm:$0xff]  ;;  %939 = vmatpush1.msra.mxu0 %v324_v2 }
  0x70   :  { %1028 = vmatpush1.msra.mxu1 %v452_v3  ;;  %v445_v8 = vld [vmem:[#allocation2 + $0xbc8] sm:$0xff]  ;;  %940 = vmatprep.subr.mxu0 %v449_v4  ;;  %v444_v10 = vld [vmem:[#allocation2 + $0xbc0] sm:$0xff]  ;;  %v58_v3 = vld [vmem:[%s2066_s0 + $0xf0] sm:$0xff] }
  0x71   :  { %v573_v9 = vld [vmem:[#allocation2 + $0xfc8] sm:$0xff]  ;;  %1029 = vmatprep.subr.mxu1 %v577_v5  ;;  %v572_v11 = vld [vmem:[#allocation2 + $0xfc0] sm:$0xff]  ;;  %941 = vmatpush2.msra.mxu0 %v448_v6 }
  0x72   :  { %1030 = vmatpush2.msra.mxu1 %v576_v7  ;;  %v441_v12 = vld [vmem:[#allocation2 + $0xba8] sm:$0xff]  ;;  %942 = vmatprep.subr.mxu0 %v445_v8  ;;  %v440_v14 = vld [vmem:[#allocation2 + $0xba0] sm:$0xff] }
  0x73   :  { %v569_v13 = vld [vmem:[#allocation2 + $0xfa8] sm:$0xff]  ;;  %1031 = vmatprep.subr.mxu1 %v573_v9  ;;  %v568_v15 = vld [vmem:[#allocation2 + $0xfa0] sm:$0xff]  ;;  %943 = vmatpush2.msra.mxu0 %v444_v10 }
  0x74   :  { %1032 = vmatpush2.msra.mxu1 %v572_v11  ;;  %v437_v16 = vld [vmem:[#allocation2 + $0xb88] sm:$0xff]  ;;  %944 = vmatprep.subr.mxu0 %v441_v12  ;;  %v436_v18 = vld [vmem:[#allocation2 + $0xb80] sm:$0xff] }
  0x75   :  { %v565_v17 = vld [vmem:[#allocation2 + $0xf88] sm:$0xff]  ;;  %1033 = vmatprep.subr.mxu1 %v569_v13  ;;  %v564_v19 = vld [vmem:[#allocation2 + $0xf80] sm:$0xff]  ;;  %945 = vmatpush2.msra.mxu0 %v440_v14 }
  0x76   :  { %1034 = vmatpush2.msra.mxu1 %v568_v15  ;;  %v433_v20 = vld [vmem:[#allocation2 + $0xb68] sm:$0xff]  ;;  %946 = vmatprep.subr.mxu0 %v437_v16  ;;  %v432_v22 = vld [vmem:[#allocation2 + $0xb60] sm:$0xff] }
  0x77   :  { %v561_v21 = vld [vmem:[#allocation2 + $0xf68] sm:$0xff]  ;;  %1035 = vmatprep.subr.mxu1 %v565_v17  ;;  %v560_v23 = vld [vmem:[#allocation2 + $0xf60] sm:$0xff]  ;;  %947 = vmatpush2.msra.mxu0 %v436_v18  ;;  %v35_v18 = vld [vmem:[%s2066_s0 + $0x38] sm:$0xff] }
  0x78   :  { %1036 = vmatpush2.msra.mxu1 %v564_v19  ;;  %v429_v24 = vld [vmem:[#allocation2 + $0xb48] sm:$0xff]  ;;  %948 = vmatprep.subr.mxu0 %v433_v20  ;;  %v428_v26 = vld [vmem:[#allocation2 + $0xb40] sm:$0xff]  ;;  %v131_v20 = vld [vmem:[#allocation2 + $0x1f8] sm:$0xff] }
  0x79   :  { %v557_v25 = vld [vmem:[#allocation2 + $0xf48] sm:$0xff]  ;;  %1037 = vmatprep.subr.mxu1 %v561_v21  ;;  %v556_v27 = vld [vmem:[#allocation2 + $0xf40] sm:$0xff]  ;;  %949 = vmatpush2.msra.mxu0 %v432_v22  ;;  %v34_v21 = vld [vmem:[%s2066_s0 + $0x30] sm:$0xff] }
  0x7a   :  { %1038 = vmatpush2.msra.mxu1 %v560_v23  ;;  %v425_v28 = vld [vmem:[#allocation2 + $0xb28] sm:$0xff]  ;;  %950 = vmatprep.subr.mxu0 %v429_v24  ;;  %v424_v30 = vld [vmem:[#allocation2 + $0xb20] sm:$0xff]  ;;  %v130_v23 = vld [vmem:[#allocation2 + $0x1f0] sm:$0xff] }
  0x7b   :  { %v553_v29 = vld [vmem:[#allocation2 + $0xf28] sm:$0xff]  ;;  %1039 = vmatprep.subr.mxu1 %v557_v25  ;;  %v552_v31 = vld [vmem:[#allocation2 + $0xf20] sm:$0xff]  ;;  %951 = vmatpush2.msra.mxu0 %v428_v26  ;;  %v127_v25 = vld [vmem:[#allocation2 + $0x1d8] sm:$0xff] }
  0x7c   :  { %1040 = vmatpush2.msra.mxu1 %v556_v27  ;;  %v421_v32 = vld [vmem:[#allocation2 + $0xb08] sm:$0xff]  ;;  %952 = vmatprep.subr.mxu0 %v425_v28  ;;  %v420_v34 = vld [vmem:[#allocation2 + $0xb00] sm:$0xff]  ;;  %v43_v26 = vld [vmem:[%s2066_s0 + $0x78] sm:$0xff] }
  0x7d   :  { %v549_v33 = vld [vmem:[#allocation2 + $0xf08] sm:$0xff]  ;;  %1041 = vmatprep.subr.mxu1 %v553_v29  ;;  %v548_v35 = vld [vmem:[#allocation2 + $0xf00] sm:$0xff]  ;;  %953 = vmatpush2.msra.mxu0 %v424_v30  ;;  %v126_v28 = vld [vmem:[#allocation2 + $0x1d0] sm:$0xff] }
  0x7e   :  { %1042 = vmatpush2.msra.mxu1 %v552_v31  ;;  %v417_v36 = vld [vmem:[#allocation2 + $0xae8] sm:$0xff]  ;;  %954 = vmatprep.subr.mxu0 %v421_v32  ;;  %v416_v38 = vld [vmem:[#allocation2 + $0xae0] sm:$0xff]  ;;  %v42_v29 = vld [vmem:[%s2066_s0 + $0x70] sm:$0xff] }
  0x7f   :  { %v545_v37 = vld [vmem:[#allocation2 + $0xee8] sm:$0xff]  ;;  %1043 = vmatprep.subr.mxu1 %v549_v33  ;;  %v544_v39 = vld [vmem:[#allocation2 + $0xee0] sm:$0xff]  ;;  %955 = vmatpush2.msra.mxu0 %v420_v34  ;;  %v123_v31 = vld [vmem:[#allocation2 + $0x1b8] sm:$0xff] }
  0x80   :  { %1044 = vmatpush2.msra.mxu1 %v548_v35  ;;  %v413_v41 = vld [vmem:[#allocation2 + $0xac8] sm:$0xff]  ;;  %956 = vmatprep.subr.mxu0 %v417_v36  ;;  %v412_v44 = vld [vmem:[#allocation2 + $0xac0] sm:$0xff]  ;;  %v122_v34 = vld [vmem:[#allocation2 + $0x1b0] sm:$0xff] }
  0x81   :  { %1045 = vmatprep.subr.mxu1 %v545_v37  ;;  %v541_v42 = vld [vmem:[#allocation2 + $0xec8] sm:$0xff]  ;;  %957 = vmatpush2.msra.mxu0 %v416_v38  ;;  %v540_v45 = vld [vmem:[#allocation2 + $0xec0] sm:$0xff]  ;;  %v119_v37 = vld [vmem:[#allocation2 + $0x198] sm:$0xff] }
  0x82   :  { %1046 = vmatpush2.msra.mxu1 %v544_v39  ;;  %800 = vmatprep.mubr.f32.mxu0 %v39_v40  ;;  %v41_v46 = vld [vmem:[%s2066_s0 + $0x68] sm:$0xff]  ;;  %v40_v49 = vld [vmem:[%s2066_s0 + $0x60] sm:$0xff]  ;;  %v118_v40 = vld [vmem:[#allocation2 + $0x190] sm:$0xff] }
  0x83   :  { %958 = vmatprep.subr.mxu0 %v413_v41  ;;  %v409_v47 = vld [vmem:[#allocation2 + $0xaa8] sm:$0xff]  ;;  %1047 = vmatprep.subr.mxu1 %v541_v42  ;;  %v408_v50 = vld [vmem:[#allocation2 + $0xaa0] sm:$0xff] }
  0x84   :  { %801 = vmatmul.mubr.f32.gmra.mxu0 %v38_v43  ;;  %v537_v48 = vld [vmem:[#allocation2 + $0xea8] sm:$0xff]  ;;  %1048 = vmatpush2.msra.mxu1 %v540_v45  ;;  %v536_v51 = vld [vmem:[#allocation2 + $0xea0] sm:$0xff]  ;;  %v115_v43 = vld [vmem:[#allocation2 + $0x178] sm:$0xff] }
  0x85   :  { %959 = vmatpush2.msra.mxu0 %v412_v44  ;;  %889 = vmatprep.mubr.f32.mxu1 %v41_v46  ;;  %v49_v52 = vld [vmem:[%s2066_s0 + $0xa8] sm:$0xff]  ;;  %v48_v55 = vld [vmem:[%s2066_s0 + $0xa0] sm:$0xff]  ;;  %v55_v44 = vld [vmem:[%s2066_s0 + $0xd8] sm:$0xff] }
  0x86   :  { %960 = vmatprep.subr.mxu0 %v409_v47  ;;  %v405_v53 = vld [vmem:[#allocation2 + $0xa88] sm:$0xff]  ;;  %1049 = vmatprep.subr.mxu1 %v537_v48  ;;  %v404_v56 = vld [vmem:[#allocation2 + $0xa80] sm:$0xff]  ;;  %v114_v46 = vld [vmem:[#allocation2 + $0x170] sm:$0xff] }
  0x87   :  { %890 = vmatmul.mubr.f32.gmra.mxu1 %v40_v49  ;;  %v533_v54 = vld [vmem:[#allocation2 + $0xe88] sm:$0xff]  ;;  %961 = vmatpush2.msra.mxu0 %v408_v50  ;;  %v532_v57 = vld [vmem:[#allocation2 + $0xe80] sm:$0xff]  ;;  %v54_v48 = vld [vmem:[%s2066_s0 + $0xd0] sm:$0xff] }
  0x88   :  { %1050 = vmatpush2.msra.mxu1 %v536_v51  ;;  %806 = vmatprep.mubr.f32.mxu0 %v49_v52  ;;  %v401_v59 = vld [vmem:[#allocation2 + $0xa68] sm:$0xff]  ;;  %v400_v62 = vld [vmem:[#allocation2 + $0xa60] sm:$0xff]  ;;  %v111_v49 = vld [vmem:[#allocation2 + $0x158] sm:$0xff] }
  0x89   :  { %962 = vmatprep.subr.mxu0 %v405_v53  ;;  %1051 = vmatprep.subr.mxu1 %v533_v54  ;;  %v529_v60 = vld [vmem:[#allocation2 + $0xe68] sm:$0xff]  ;;  %v528_v63 = vld [vmem:[#allocation2 + $0xe60] sm:$0xff]  ;;  %v63_v50 = vld [vmem:[%s2066_s0 + $0x118] sm:$0xff] }
  0x8a   :  { %807 = vmatmul.mubr.f32.gmra.mxu0 %v48_v55  ;;  %1052 = vmatpush2.msra.mxu1 %v532_v57  ;;  %v397_v1 = vld [vmem:[#allocation2 + $0xa48] sm:$0xff]  ;;  %v396_v4 = vld [vmem:[#allocation2 + $0xa40] sm:$0xff]  ;;  %v110_v52 = vld [vmem:[#allocation2 + $0x150] sm:$0xff] }
  0x8b   :  { %963 = vmatpush2.msra.mxu0 %v404_v56  ;;  %895 = vmatprep.mubr.f32.mxu1 %v51_v58  ;;  %v525_v2 = vld [vmem:[#allocation2 + $0xe48] sm:$0xff]  ;;  %v524_v5 = vld [vmem:[#allocation2 + $0xe40] sm:$0xff]  ;;  %v62_v53 = vld [vmem:[%s2066_s0 + $0x110] sm:$0xff] }
  0x8c   :  { %964 = vmatprep.subr.mxu0 %v401_v59  ;;  %1053 = vmatprep.subr.mxu1 %v529_v60  ;;  %v61_v6 = vld [vmem:[%s2066_s0 + $0x108] sm:$0xff]  ;;  %v60_v9 = vld [vmem:[%s2066_s0 + $0x100] sm:$0xff]  ;;  %v107_v55 = vld [vmem:[#allocation2 + $0x138] sm:$0xff] }
  0x8d   :  { %896 = vmatmul.mubr.f32.gmra.mxu1 %v50_v61  ;;  %965 = vmatpush2.msra.mxu0 %v400_v62  ;;  %v393_v7 = vld [vmem:[#allocation2 + $0xa28] sm:$0xff]  ;;  %v392_v10 = vld [vmem:[#allocation2 + $0xa20] sm:$0xff]  ;;  %v106_v58 = vld [vmem:[#allocation2 + $0x130] sm:$0xff] }
  0x8e   :  { %1054 = vmatpush2.msra.mxu1 %v528_v63  ;;  %812 = vmatprep.mubr.f32.mxu0 %v59_v0  ;;  %v521_v8 = vld [vmem:[#allocation2 + $0xe28] sm:$0xff]  ;;  %v520_v11 = vld [vmem:[#allocation2 + $0xe20] sm:$0xff]  ;;  %v103_v61 = vld [vmem:[#allocation2 + $0x118] sm:$0xff] }
  0x8f   :  { %966 = vmatprep.subr.mxu0 %v397_v1  ;;  %1055 = vmatprep.subr.mxu1 %v525_v2  ;;  %v389_v12 = vld [vmem:[#allocation2 + $0xa08] sm:$0xff]  ;;  %v388_v14 = vld [vmem:[#allocation2 + $0xa00] sm:$0xff]  ;;  %v102_v63 = vld [vmem:[#allocation2 + $0x110] sm:$0xff] }
  0x90   :  { %813 = vmatmul.mubr.f32.gmra.mxu0 %v58_v3  ;;  %1056 = vmatpush2.msra.mxu1 %v524_v5  ;;  %v517_v13 = vld [vmem:[#allocation2 + $0xe08] sm:$0xff]  ;;  %v516_v16 = vld [vmem:[#allocation2 + $0xe00] sm:$0xff]  ;;  %v99_v1 = vld [vmem:[#allocation2 + $0xf8] sm:$0xff] }
  0x91   :  { %967 = vmatpush2.msra.mxu0 %v396_v4  ;;  %901 = vmatprep.mubr.f32.mxu1 %v61_v6  ;;  %v33_v15 = vld [vmem:[%s2066_s0 + $0x28] sm:$0xff]  ;;  %v32_v17 = vld [vmem:[%s2066_s0 + $0x20] sm:$0xff]  ;;  %v98_v3 = vld [vmem:[#allocation2 + $0xf0] sm:$0xff] }
  0x92   :  { %968 = vmatprep.subr.mxu0 %v393_v7  ;;  %1057 = vmatprep.subr.mxu1 %v521_v8  ;;  %v641_v19 = vld [vmem:[#allocation2 + $0x11e8] sm:$0xff]  ;;  %v640_v22 = vld [vmem:[#allocation2 + $0x11e0] sm:$0xff]  ;;  %v95_v5 = vld [vmem:[#allocation2 + $0xd8] sm:$0xff] }
  0x93   :  { %902 = vmatmul.mubr.f32.gmra.mxu1 %v60_v9  ;;  %969 = vmatpush2.msra.mxu0 %v392_v10  ;;  %v637_v24 = vld [vmem:[#allocation2 + $0x11c8] sm:$0xff]  ;;  %v636_v27 = vld [vmem:[#allocation2 + $0x11c0] sm:$0xff]  ;;  %v94_v7 = vld [vmem:[#allocation2 + $0xd0] sm:$0xff] }
  0x94   :  { %1058 = vmatpush2.msra.mxu1 %v520_v11  ;;  %970 = vmatprep.subr.mxu0 %v389_v12  ;;  %v633_v30 = vld [vmem:[#allocation2 + $0x11a8] sm:$0xff]  ;;  %v632_v33 = vld [vmem:[#allocation2 + $0x11a0] sm:$0xff]  ;;  %v91_v9 = vld [vmem:[#allocation2 + $0xb8] sm:$0xff] }
  0x95   :  { %1059 = vmatprep.subr.mxu1 %v517_v13  ;;  %971 = vmatpush2.msra.mxu0 %v388_v14  ;;  %v45_v32 = vld [vmem:[%s2066_s0 + $0x88] sm:$0xff]  ;;  %v44_v36 = vld [vmem:[%s2066_s0 + $0x80] sm:$0xff]  ;;  %v90_v11 = vld [vmem:[#allocation2 + $0xb0] sm:$0xff] }
  0x96   :  { %972 = vmatprep.mubr.f32.mxu0 %v33_v15  ;;  %1060 = vmatpush2.msra.mxu1 %v516_v16  ;;  %v629_v35 = vld [vmem:[#allocation2 + $0x1188] sm:$0xff]  ;;  %v628_v39 = vld [vmem:[#allocation2 + $0x1180] sm:$0xff]  ;;  %v87_v13 = vld [vmem:[#allocation2 + $0x98] sm:$0xff] }
  0x97   :  { %973 = vmatmul.mubr.f32.vlgmr.msra.gmra.mxu0 %v32_v17  ;;  %1061 = vmatprep.mubr.f32.mxu1 %v35_v18  ;;  %v53_v38 = vld [vmem:[%s2066_s0 + $0xc8] sm:$0xff]  ;;  %v52_v41 = vld [vmem:[%s2066_s0 + $0xc0] sm:$0xff]  ;;  %v86_v15 = vld [vmem:[#allocation2 + $0x90] sm:$0xff] }
  0x98   :  { %1086 = vmatprep.subr.mxu0 %v641_v19  ;;  %1175 = vmatprep.subr.mxu1 %v131_v20  ;;  %v625_v42 = vld [vmem:[#allocation2 + $0x1168] sm:$0xff]  ;;  %v624_v45 = vld [vmem:[#allocation2 + $0x1160] sm:$0xff]  ;;  %v83_v17 = vld [vmem:[#allocation2 + $0x78] sm:$0xff] }
  0x99   :  { %1062 = vmatmul.mubr.f32.vlgmr.msra.gmra.mxu1 %v34_v21  ;;  %1087 = vmatpush1.msra.mxu0 %v640_v22  ;;  %v621_v47 = vld [vmem:[#allocation2 + $0x1148] sm:$0xff]  ;;  %v620_v51 = vld [vmem:[#allocation2 + $0x1140] sm:$0xff]  ;;  %v82_v19 = vld [vmem:[#allocation2 + $0x70] sm:$0xff] }
  0x9a   :  { %1176 = vmatpush1.msra.mxu1 %v130_v23  ;;  %1088 = vmatprep.subr.mxu0 %v637_v24  ;;  %v617_v54 = vld [vmem:[#allocation2 + $0x1128] sm:$0xff]  ;;  %v616_v57 = vld [vmem:[#allocation2 + $0x1120] sm:$0xff]  ;;  %v79_v21 = vld [vmem:[#allocation2 + $0x58] sm:$0xff] }
  0x9b   :  { %1177 = vmatprep.subr.mxu1 %v127_v25  ;;  %978 = vmatprep.mubr.f32.mxu0 %v43_v26  ;;  %v65_v56 = vld [vmem:[%s2066_s0 + $0x128] sm:$0xff]  ;;  %v64_v60 = vld [vmem:[%s2066_s0 + $0x120] sm:$0xff]  ;;  %v78_v23 = vld [vmem:[#allocation2 + $0x50] sm:$0xff] }
  0x9c   :  { %1089 = vmatpush1.msra.mxu0 %v636_v27  ;;  %1178 = vmatpush1.msra.mxu1 %v126_v28  ;;  %v613_v59 = vld [vmem:[#allocation2 + $0x1108] sm:$0xff]  ;;  %v612_v62 = vld [vmem:[#allocation2 + $0x1100] sm:$0xff]  ;;  %v75_v25 = vld [vmem:[#allocation2 + $0x38] sm:$0xff] }
  0x9d   :  { %979 = vmatmul.mubr.f32.gmra.mxu0 %v42_v29  ;;  %1090 = vmatprep.subr.mxu0 %v633_v30  ;;  %v609_v0 = vld [vmem:[#allocation2 + $0x10e8] sm:$0xff]  ;;  %v608_v2 = vld [vmem:[#allocation2 + $0x10e0] sm:$0xff]  ;;  %v74_v27 = vld [vmem:[#allocation2 + $0x30] sm:$0xff] }
  0x9e   :  { %1179 = vmatprep.subr.mxu1 %v123_v31  ;;  %1067 = vmatprep.mubr.f32.mxu1 %v45_v32  ;;  %v605_v4 = vld [vmem:[#allocation2 + $0x10c8] sm:$0xff]  ;;  %v604_v6 = vld [vmem:[#allocation2 + $0x10c0] sm:$0xff]  ;;  %v71_v29 = vld [vmem:[#allocation2 + $0x18] sm:$0xff] }
  0x9f   :  { %1091 = vmatpush1.msra.mxu0 %v632_v33  ;;  %1180 = vmatpush1.msra.mxu1 %v122_v34  ;;  %v601_v8 = vld [vmem:[#allocation2 + $0x10a8] sm:$0xff]  ;;  %v600_v10 = vld [vmem:[#allocation2 + $0x10a0] sm:$0xff]  ;;  %v70_v31 = vld [vmem:[#allocation2 + $0x10] sm:$0xff] }
  0xa0   :  { %1092 = vmatprep.subr.mxu0 %v629_v35  ;;  %1068 = vmatmul.mubr.f32.gmra.mxu1 %v44_v36  ;;  %v597_v12 = vld [vmem:[#allocation2 + $0x1088] sm:$0xff]  ;;  %v596_v14 = vld [vmem:[#allocation2 + $0x1080] sm:$0xff]  ;;  %v195_v33 = vld [vmem:[#allocation2 + $0x3f8] sm:$0xff] }
  0xa1   :  { %1181 = vmatprep.subr.mxu1 %v119_v37  ;;  %984 = vmatprep.mubr.f32.mxu0 %v53_v38  ;;  %v593_v16 = vld [vmem:[#allocation2 + $0x1068] sm:$0xff]  ;;  %v592_v18 = vld [vmem:[#allocation2 + $0x1060] sm:$0xff]  ;;  %v194_v35 = vld [vmem:[#allocation2 + $0x3f0] sm:$0xff] }
  0xa2   :  { %1093 = vmatpush1.msra.mxu0 %v628_v39  ;;  %1182 = vmatpush1.msra.mxu1 %v118_v40  ;;  %v589_v20 = vld [vmem:[#allocation2 + $0x1048] sm:$0xff]  ;;  %v588_v22 = vld [vmem:[#allocation2 + $0x1040] sm:$0xff]  ;;  %v191_v37 = vld [vmem:[#allocation2 + $0x3d8] sm:$0xff] }
  0xa3   :  { %985 = vmatmul.mubr.f32.gmra.mxu0 %v52_v41  ;;  %1094 = vmatprep.subr.mxu0 %v625_v42  ;;  %v585_v24 = vld [vmem:[#allocation2 + $0x1028] sm:$0xff]  ;;  %v584_v26 = vld [vmem:[#allocation2 + $0x1020] sm:$0xff]  ;;  %v190_v39 = vld [vmem:[#allocation2 + $0x3d0] sm:$0xff] }
  0xa4   :  { %1183 = vmatprep.subr.mxu1 %v115_v43  ;;  %1073 = vmatprep.mubr.f32.mxu1 %v55_v44  ;;  %v581_v28 = vld [vmem:[#allocation2 + $0x1008] sm:$0xff]  ;;  %v580_v30 = vld [vmem:[#allocation2 + $0x1000] sm:$0xff]  ;;  %v187_v41 = vld [vmem:[#allocation2 + $0x3b8] sm:$0xff] }
  0xa5   :  { %1095 = vmatpush1.msra.mxu0 %v624_v45  ;;  %1184 = vmatpush1.msra.mxu1 %v114_v46  ;;  %v705_v32 = vld [vmem:[#allocation2 + $0x13e8] sm:$0xff]  ;;  %v704_v34 = vld [vmem:[#allocation2 + $0x13e0] sm:$0xff]  ;;  %v186_v43 = vld [vmem:[#allocation2 + $0x3b0] sm:$0xff] }
  0xa6   :  { %1096 = vmatprep.subr.mxu0 %v621_v47  ;;  %1074 = vmatmul.mubr.f32.gmra.mxu1 %v54_v48  ;;  %v701_v36 = vld [vmem:[#allocation2 + $0x13c8] sm:$0xff]  ;;  %v700_v38 = vld [vmem:[#allocation2 + $0x13c0] sm:$0xff]  ;;  %v183_v45 = vld [vmem:[#allocation2 + $0x398] sm:$0xff] }
  0xa7   :  { %1185 = vmatprep.subr.mxu1 %v111_v49  ;;  %990 = vmatprep.mubr.f32.mxu0 %v63_v50  ;;  %v697_v40 = vld [vmem:[#allocation2 + $0x13a8] sm:$0xff]  ;;  %v696_v42 = vld [vmem:[#allocation2 + $0x13a0] sm:$0xff]  ;;  %v182_v47 = vld [vmem:[#allocation2 + $0x390] sm:$0xff] }
  0xa8   :  { %1097 = vmatpush1.msra.mxu0 %v620_v51  ;;  %1186 = vmatpush1.msra.mxu1 %v110_v52  ;;  %v693_v44 = vld [vmem:[#allocation2 + $0x1388] sm:$0xff]  ;;  %v692_v46 = vld [vmem:[#allocation2 + $0x1380] sm:$0xff]  ;;  %v179_v49 = vld [vmem:[#allocation2 + $0x378] sm:$0xff] }
  0xa9   :  { %991 = vmatmul.mubr.f32.gmra.mxu0 %v62_v53  ;;  %1098 = vmatprep.subr.mxu0 %v617_v54  ;;  %v689_v48 = vld [vmem:[#allocation2 + $0x1368] sm:$0xff]  ;;  %v688_v50 = vld [vmem:[#allocation2 + $0x1360] sm:$0xff]  ;;  %v178_v51 = vld [vmem:[#allocation2 + $0x370] sm:$0xff] }
  0xaa   :  { %1187 = vmatprep.subr.mxu1 %v107_v55  ;;  %1079 = vmatprep.mubr.f32.mxu1 %v65_v56  ;;  %v685_v52 = vld [vmem:[#allocation2 + $0x1348] sm:$0xff]  ;;  %v175_v53 = vld [vmem:[#allocation2 + $0x358] sm:$0xff]  ;;  %v684_v54 = vld [vmem:[#allocation2 + $0x1340] sm:$0xff] }
  0xab   :  { %1099 = vmatpush1.msra.mxu0 %v616_v57  ;;  %1188 = vmatpush1.msra.mxu1 %v106_v58  ;;  %v174_v55 = vld [vmem:[#allocation2 + $0x350] sm:$0xff]  ;;  %v681_v56 = vld [vmem:[#allocation2 + $0x1328] sm:$0xff]  ;;  %v171_v57 = vld [vmem:[#allocation2 + $0x338] sm:$0xff] }
  0xac   :  { %1100 = vmatprep.subr.mxu0 %v613_v59  ;;  %1080 = vmatmul.mubr.f32.gmra.mxu1 %v64_v60  ;;  %v680_v58 = vld [vmem:[#allocation2 + $0x1320] sm:$0xff]  ;;  %v170_v59 = vld [vmem:[#allocation2 + $0x330] sm:$0xff]  ;;  %v677_v60 = vld [vmem:[#allocation2 + $0x1308] sm:$0xff] }
  0xad   :  { %1189 = vmatprep.subr.mxu1 %v103_v61  ;;  %1101 = vmatpush1.msra.mxu0 %v612_v62  ;;  %v167_v61 = vld [vmem:[#allocation2 + $0x318] sm:$0xff]  ;;  %v676_v62 = vld [vmem:[#allocation2 + $0x1300] sm:$0xff] }
  0xae   :  { %1190 = vmatpush1.msra.mxu1 %v102_v63  ;;  %1102 = vmatprep.subr.mxu0 %v609_v0  ;;  %v166_v63 = vld [vmem:[#allocation2 + $0x310] sm:$0xff]  ;;  %v673_v0 = vld [vmem:[#allocation2 + $0x12e8] sm:$0xff] }
  0xaf   :  { %1191 = vmatprep.subr.mxu1 %v99_v1  ;;  %1103 = vmatpush1.msra.mxu0 %v608_v2  ;;  %v163_v1 = vld [vmem:[#allocation2 + $0x2f8] sm:$0xff]  ;;  %v672_v2 = vld [vmem:[#allocation2 + $0x12e0] sm:$0xff] }
  0xb0   :  { %1192 = vmatpush1.msra.mxu1 %v98_v3  ;;  %1104 = vmatprep.subr.mxu0 %v605_v4  ;;  %v162_v3 = vld [vmem:[#allocation2 + $0x2f0] sm:$0xff]  ;;  %v669_v4 = vld [vmem:[#allocation2 + $0x12c8] sm:$0xff] }
  0xb1   :  { %1193 = vmatprep.subr.mxu1 %v95_v5  ;;  %1105 = vmatpush1.msra.mxu0 %v604_v6  ;;  %v159_v5 = vld [vmem:[#allocation2 + $0x2d8] sm:$0xff]  ;;  %v668_v6 = vld [vmem:[#allocation2 + $0x12c0] sm:$0xff] }
  0xb2   :  { %1194 = vmatpush1.msra.mxu1 %v94_v7  ;;  %1106 = vmatprep.subr.mxu0 %v601_v8  ;;  %v158_v7 = vld [vmem:[#allocation2 + $0x2d0] sm:$0xff]  ;;  %v665_v8 = vld [vmem:[#allocation2 + $0x12a8] sm:$0xff] }
  0xb3   :  { %1195 = vmatprep.subr.mxu1 %v91_v9  ;;  %1107 = vmatpush1.msra.mxu0 %v600_v10  ;;  %v155_v9 = vld [vmem:[#allocation2 + $0x2b8] sm:$0xff]  ;;  %v664_v10 = vld [vmem:[#allocation2 + $0x12a0] sm:$0xff] }
  0xb4   :  { %1196 = vmatpush1.msra.mxu1 %v90_v11  ;;  %1108 = vmatprep.subr.mxu0 %v597_v12  ;;  %v154_v11 = vld [vmem:[#allocation2 + $0x2b0] sm:$0xff]  ;;  %v661_v12 = vld [vmem:[#allocation2 + $0x1288] sm:$0xff] }
  0xb5   :  { %1197 = vmatprep.subr.mxu1 %v87_v13  ;;  %1109 = vmatpush1.msra.mxu0 %v596_v14  ;;  %v151_v13 = vld [vmem:[#allocation2 + $0x298] sm:$0xff]  ;;  %v660_v14 = vld [vmem:[#allocation2 + $0x1280] sm:$0xff] }
  0xb6   :  { %1198 = vmatpush1.msra.mxu1 %v86_v15  ;;  %1110 = vmatprep.subr.mxu0 %v593_v16  ;;  %v150_v15 = vld [vmem:[#allocation2 + $0x290] sm:$0xff]  ;;  %v657_v16 = vld [vmem:[#allocation2 + $0x1268] sm:$0xff] }
  0xb7   :  { %1199 = vmatprep.subr.mxu1 %v83_v17  ;;  %1111 = vmatpush1.msra.mxu0 %v592_v18  ;;  %v147_v17 = vld [vmem:[#allocation2 + $0x278] sm:$0xff]  ;;  %v656_v18 = vld [vmem:[#allocation2 + $0x1260] sm:$0xff] }
  0xb8   :  { %1200 = vmatpush1.msra.mxu1 %v82_v19  ;;  %1112 = vmatprep.subr.mxu0 %v589_v20  ;;  %v146_v19 = vld [vmem:[#allocation2 + $0x270] sm:$0xff]  ;;  %v653_v20 = vld [vmem:[#allocation2 + $0x1248] sm:$0xff] }
  0xb9   :  { %1201 = vmatprep.subr.mxu1 %v79_v21  ;;  %1113 = vmatpush1.msra.mxu0 %v588_v22  ;;  %v143_v21 = vld [vmem:[#allocation2 + $0x258] sm:$0xff]  ;;  %v652_v22 = vld [vmem:[#allocation2 + $0x1240] sm:$0xff] }
  0xba   :  { %1202 = vmatpush1.msra.mxu1 %v78_v23  ;;  %1114 = vmatprep.subr.mxu0 %v585_v24  ;;  %v142_v23 = vld [vmem:[#allocation2 + $0x250] sm:$0xff]  ;;  %v649_v24 = vld [vmem:[#allocation2 + $0x1228] sm:$0xff] }
  0xbb   :  { %1203 = vmatprep.subr.mxu1 %v75_v25  ;;  %1115 = vmatpush1.msra.mxu0 %v584_v26  ;;  %v139_v25 = vld [vmem:[#allocation2 + $0x238] sm:$0xff]  ;;  %v648_v26 = vld [vmem:[#allocation2 + $0x1220] sm:$0xff] }
  0xbc   :  { %1204 = vmatpush1.msra.mxu1 %v74_v27  ;;  %1116 = vmatprep.subr.mxu0 %v581_v28  ;;  %v138_v27 = vld [vmem:[#allocation2 + $0x230] sm:$0xff]  ;;  %v645_v28 = vld [vmem:[#allocation2 + $0x1208] sm:$0xff] }
  0xbd   :  { %1205 = vmatprep.subr.mxu1 %v71_v29  ;;  %1117 = vmatpush1.msra.mxu0 %v580_v30  ;;  %v135_v29 = vld [vmem:[#allocation2 + $0x218] sm:$0xff]  ;;  %v644_v30 = vld [vmem:[#allocation2 + $0x1200] sm:$0xff] }
  0xbe   :  { %1206 = vmatpush1.msra.mxu1 %v70_v31  ;;  %1118 = vmatprep.subr.mxu0 %v705_v32  ;;  %v37_v31 = vld [vmem:[%s2066_s0 + $0x48] sm:$0xff]  ;;  %v134_v32 = vld [vmem:[#allocation2 + $0x210] sm:$0xff] }
  0xbf   :  { %1207 = vmatprep.subr.mxu1 %v195_v33  ;;  %1119 = vmatpush2.msra.mxu0 %v704_v34  ;;  %v36_v33 = vld [vmem:[%s2066_s0 + $0x40] sm:$0xff]  ;;  %v259_v34 = vld [vmem:[#allocation2 + $0x5f8] sm:$0xff] }
  0xc0   :  { %1208 = vmatpush2.msra.mxu1 %v194_v35  ;;  %1120 = vmatprep.subr.mxu0 %v701_v36  ;;  %v387_v35 = vld [vmem:[#allocation2 + $0x9f8] sm:$0xff]  ;;  %v258_v36 = vld [vmem:[#allocation2 + $0x5f0] sm:$0xff] }
  0xc1   :  { %1209 = vmatprep.subr.mxu1 %v191_v37  ;;  %1121 = vmatpush2.msra.mxu0 %v700_v38  ;;  %v386_v37 = vld [vmem:[#allocation2 + $0x9f0] sm:$0xff]  ;;  %v1660_v38 = vld [vmem:[%s2066_s0 + $0x8] sm:$0xff] }
  0xc2   :  { %1210 = vmatpush2.msra.mxu1 %v190_v39  ;;  %1122 = vmatprep.subr.mxu0 %v697_v40  ;;  %v255_v39 = vld [vmem:[#allocation2 + $0x5d8] sm:$0xff] }
  0xc3   :  { %1211 = vmatprep.subr.mxu1 %v187_v41  ;;  %1123 = vmatpush2.msra.mxu0 %v696_v42  ;;  %v383_v40 = vld [vmem:[#allocation2 + $0x9d8] sm:$0xff]  ;;  %v1661_v41 = vld [vmem:[%s2066_s0] sm:$0xff] }
  0xc4   :  { %1212 = vmatpush2.msra.mxu1 %v186_v43  ;;  %1124 = vmatprep.subr.mxu0 %v693_v44  ;;  %v47_v42 = vld [vmem:[%s2066_s0 + $0x98] sm:$0xff]  ;;  %v254_v43 = vld [vmem:[#allocation2 + $0x5d0] sm:$0xff] }
  0xc5   :  { %1213 = vmatprep.subr.mxu1 %v183_v45  ;;  %1125 = vmatpush2.msra.mxu0 %v692_v46  ;;  %v382_v44 = vld [vmem:[#allocation2 + $0x9d0] sm:$0xff]  ;;  %v251_v46 = vld [vmem:[#allocation2 + $0x5b8] sm:$0xff] }
  0xc6   :  { %1214 = vmatpush2.msra.mxu1 %v182_v47  ;;  %1126 = vmatprep.subr.mxu0 %v689_v48  ;;  %v46_v45 = vld [vmem:[%s2066_s0 + $0x90] sm:$0xff]  ;;  %v379_v47 = vld [vmem:[#allocation2 + $0x9b8] sm:$0xff] }
  0xc7   :  { %1215 = vmatprep.subr.mxu1 %v179_v49  ;;  %1127 = vmatpush2.msra.mxu0 %v688_v50  ;;  %v250_v48 = vld [vmem:[#allocation2 + $0x5b0] sm:$0xff]  ;;  %v247_v50 = vld [vmem:[#allocation2 + $0x598] sm:$0xff] }
  0xc8   :  { %1216 = vmatpush2.msra.mxu1 %v178_v51  ;;  %1128 = vmatprep.subr.mxu0 %v685_v52  ;;  %v378_v49 = vld [vmem:[#allocation2 + $0x9b0] sm:$0xff]  ;;  %v375_v51 = vld [vmem:[#allocation2 + $0x998] sm:$0xff]  ;;  %v57_v52 = vld [vmem:[%s2066_s0 + $0xe8] sm:$0xff] }
  0xc9   :  { %1217 = vmatprep.subr.mxu1 %v175_v53  ;;  %1129 = vmatpush2.msra.mxu0 %v684_v54  ;;  %v246_v53 = vld [vmem:[#allocation2 + $0x590] sm:$0xff] }
  0xca   :  { %1218 = vmatpush2.msra.mxu1 %v174_v55  ;;  %1130 = vmatprep.subr.mxu0 %v681_v56  ;;  %v374_v54 = vld [vmem:[#allocation2 + $0x990] sm:$0xff]  ;;  %v56_v55 = vld [vmem:[%s2066_s0 + $0xe0] sm:$0xff]  ;;  %v243_v56 = vld [vmem:[#allocation2 + $0x578] sm:$0xff] }
  0xcb   :  { %1219 = vmatprep.subr.mxu1 %v171_v57  ;;  %1131 = vmatpush2.msra.mxu0 %v680_v58  ;;  %v371_v57 = vld [vmem:[#allocation2 + $0x978] sm:$0xff]  ;;  %v242_v58 = vld [vmem:[#allocation2 + $0x570] sm:$0xff] }
  0xcc   :  { %1220 = vmatpush2.msra.mxu1 %v170_v59  ;;  %1132 = vmatprep.subr.mxu0 %v677_v60  ;;  %v370_v59 = vld [vmem:[#allocation2 + $0x970] sm:$0xff]  ;;  %v239_v60 = vld [vmem:[#allocation2 + $0x558] sm:$0xff] }
  0xcd   :  { %1221 = vmatprep.subr.mxu1 %v167_v61  ;;  %1133 = vmatpush2.msra.mxu0 %v676_v62  ;;  %v367_v61 = vld [vmem:[#allocation2 + $0x958] sm:$0xff] }
  0xce   :  { %1222 = vmatpush2.msra.mxu1 %v166_v63  ;;  %1134 = vmatprep.subr.mxu0 %v673_v0  ;;  %v67_v62 = vld [vmem:[%s2066_s0 + $0x138] sm:$0xff]  ;;  %v238_v63 = vld [vmem:[#allocation2 + $0x550] sm:$0xff] }
  0xcf   :  { %1223 = vmatprep.subr.mxu1 %v163_v1  ;;  %1135 = vmatpush2.msra.mxu0 %v672_v2  ;;  %v366_v0 = vld [vmem:[#allocation2 + $0x950] sm:$0xff]  ;;  %v235_v2 = vld [vmem:[#allocation2 + $0x538] sm:$0xff] }
  0xd0   :  { %1224 = vmatpush2.msra.mxu1 %v162_v3  ;;  %1136 = vmatprep.subr.mxu0 %v669_v4  ;;  %v66_v1 = vld [vmem:[%s2066_s0 + $0x130] sm:$0xff]  ;;  %v363_v3 = vld [vmem:[#allocation2 + $0x938] sm:$0xff] }
  0xd1   :  { %1225 = vmatprep.subr.mxu1 %v159_v5  ;;  %1137 = vmatpush2.msra.mxu0 %v668_v6  ;;  %v234_v4 = vld [vmem:[#allocation2 + $0x530] sm:$0xff]  ;;  %v231_v6 = vld [vmem:[#allocation2 + $0x518] sm:$0xff] }
  0xd2   :  { %1226 = vmatpush2.msra.mxu1 %v158_v7  ;;  %1138 = vmatprep.subr.mxu0 %v665_v8  ;;  %v362_v5 = vld [vmem:[#allocation2 + $0x930] sm:$0xff]  ;;  %v359_v7 = vld [vmem:[#allocation2 + $0x918] sm:$0xff] }
  0xd3   :  { %1227 = vmatprep.subr.mxu1 %v155_v9  ;;  %1139 = vmatpush2.msra.mxu0 %v664_v10  ;;  %v230_v8 = vld [vmem:[#allocation2 + $0x510] sm:$0xff]  ;;  %v227_v10 = vld [vmem:[#allocation2 + $0x4f8] sm:$0xff] }
  0xd4   :  { %1228 = vmatpush2.msra.mxu1 %v154_v11  ;;  %1140 = vmatprep.subr.mxu0 %v661_v12  ;;  %v358_v9 = vld [vmem:[#allocation2 + $0x910] sm:$0xff]  ;;  %v355_v11 = vld [vmem:[#allocation2 + $0x8f8] sm:$0xff] }
  0xd5   :  { %1229 = vmatprep.subr.mxu1 %v151_v13  ;;  %1141 = vmatpush2.msra.mxu0 %v660_v14  ;;  %v226_v12 = vld [vmem:[#allocation2 + $0x4f0] sm:$0xff]  ;;  %v223_v14 = vld [vmem:[#allocation2 + $0x4d8] sm:$0xff] }
  0xd6   :  { %1230 = vmatpush2.msra.mxu1 %v150_v15  ;;  %1142 = vmatprep.subr.mxu0 %v657_v16  ;;  %v354_v13 = vld [vmem:[#allocation2 + $0x8f0] sm:$0xff]  ;;  %v351_v15 = vld [vmem:[#allocation2 + $0x8d8] sm:$0xff] }
  0xd7   :  { %1231 = vmatprep.subr.mxu1 %v147_v17  ;;  %1143 = vmatpush2.msra.mxu0 %v656_v18  ;;  %v222_v16 = vld [vmem:[#allocation2 + $0x4d0] sm:$0xff]  ;;  %v219_v18 = vld [vmem:[#allocation2 + $0x4b8] sm:$0xff] }
  0xd8   :  { %1232 = vmatpush2.msra.mxu1 %v146_v19  ;;  %1144 = vmatprep.subr.mxu0 %v653_v20  ;;  %v350_v17 = vld [vmem:[#allocation2 + $0x8d0] sm:$0xff]  ;;  %v347_v19 = vld [vmem:[#allocation2 + $0x8b8] sm:$0xff] }
  0xd9   :  { %1233 = vmatprep.subr.mxu1 %v143_v21  ;;  %1145 = vmatpush2.msra.mxu0 %v652_v22  ;;  %v218_v20 = vld [vmem:[#allocation2 + $0x4b0] sm:$0xff]  ;;  %v215_v22 = vld [vmem:[#allocation2 + $0x498] sm:$0xff] }
  0xda   :  { %1234 = vmatpush2.msra.mxu1 %v142_v23  ;;  %1146 = vmatprep.subr.mxu0 %v649_v24  ;;  %v346_v21 = vld [vmem:[#allocation2 + $0x8b0] sm:$0xff]  ;;  %v343_v23 = vld [vmem:[#allocation2 + $0x898] sm:$0xff] }
  0xdb   :  { %1235 = vmatprep.subr.mxu1 %v139_v25  ;;  %1147 = vmatpush2.msra.mxu0 %v648_v26  ;;  %v214_v24 = vld [vmem:[#allocation2 + $0x490] sm:$0xff]  ;;  %v211_v26 = vld [vmem:[#allocation2 + $0x478] sm:$0xff] }
  0xdc   :  { %1236 = vmatpush2.msra.mxu1 %v138_v27  ;;  %1148 = vmatprep.subr.mxu0 %v645_v28  ;;  %v342_v25 = vld [vmem:[#allocation2 + $0x890] sm:$0xff]  ;;  %v339_v27 = vld [vmem:[#allocation2 + $0x878] sm:$0xff] }
  0xdd   :  { %1237 = vmatprep.subr.mxu1 %v135_v29  ;;  %1149 = vmatpush2.msra.mxu0 %v644_v30  ;;  %v210_v28 = vld [vmem:[#allocation2 + $0x470] sm:$0xff]  ;;  %v207_v30 = vld [vmem:[#allocation2 + $0x458] sm:$0xff] }
  0xde   :  { %1150 = vmatprep.mubr.f32.mxu0 %v37_v31  ;;  %1238 = vmatpush2.msra.mxu1 %v134_v32  ;;  %v338_v29 = vld [vmem:[#allocation2 + $0x870] sm:$0xff]  ;;  %v335_v31 = vld [vmem:[#allocation2 + $0x858] sm:$0xff] }
  0xdf   :  { %1151 = vmatmul.mubr.f32.vlgmr.msra.gmra.mxu0 %v36_v33  ;;  %1239 = vmatprep.mubr.f32.mxu1 %v1660_v38  ;;  %v206_v32 = vld [vmem:[#allocation2 + $0x450] sm:$0xff]  ;;  %v199_v38 = vld [vmem:[#allocation2 + $0x418] sm:$0xff] }
  0xe0   :  { %1264 = vmatprep.subr.mxu0 %v259_v34  ;;  %1353 = vmatprep.subr.mxu1 %v387_v35  ;;  %v334_v33 = vld [vmem:[#allocation2 + $0x850] sm:$0xff]  ;;  %v203_v34 = vld [vmem:[#allocation2 + $0x438] sm:$0xff] }
  0xe1   :  { %1240 = vmatmul.mubr.f32.vlgmr.msra.gmra.mxu1 %v1661_v41  ;;  %1265 = vmatpush1.msra.mxu0 %v258_v36  ;;  %v331_v35 = vld [vmem:[#allocation2 + $0x838] sm:$0xff]  ;;  %v202_v36 = vld [vmem:[#allocation2 + $0x430] sm:$0xff] }
  0xe2   :  { %1354 = vmatpush1.msra.mxu1 %v386_v37  ;;  %1266 = vmatprep.subr.mxu0 %v255_v39  ;;  %v330_v37 = vld [vmem:[#allocation2 + $0x830] sm:$0xff]  ;;  %v327_v39 = vld [vmem:[#allocation2 + $0x818] sm:$0xff] }
  0xe3   :  { %1355 = vmatprep.subr.mxu1 %v383_v40  ;;  %1156 = vmatprep.mubr.f32.mxu0 %v47_v42  ;;  %v198_v40 = vld [vmem:[#allocation2 + $0x410] sm:$0xff]  ;;  %v323_v42 = vld [vmem:[#allocation2 + $0x7f8] sm:$0xff] }
  0xe4   :  { %1267 = vmatpush1.msra.mxu0 %v254_v43  ;;  %1356 = vmatpush1.msra.mxu1 %v382_v44  ;;  %v326_v41 = vld [vmem:[#allocation2 + $0x810] sm:$0xff]  ;;  %v451_v43 = vld [vmem:[#allocation2 + $0xbf8] sm:$0xff] }
  0xe5   :  { %1157 = vmatmul.mubr.f32.gmra.mxu0 %v46_v45  ;;  %1268 = vmatprep.subr.mxu0 %v251_v46  ;;  %v322_v44 = vld [vmem:[#allocation2 + $0x7f0] sm:$0xff]  ;;  %v319_v46 = vld [vmem:[#allocation2 + $0x7d8] sm:$0xff] }
  0xe6   :  { %1357 = vmatprep.subr.mxu1 %v379_v47  ;;  %1269 = vmatpush1.msra.mxu0 %v250_v48  ;;  %v450_v45 = vld [vmem:[#allocation2 + $0xbf0] sm:$0xff]  ;;  %v447_v47 = vld [vmem:[#allocation2 + $0xbd8] sm:$0xff] }
  0xe7   :  { %1358 = vmatpush1.msra.mxu1 %v378_v49  ;;  %1270 = vmatprep.subr.mxu0 %v247_v50  ;;  %v318_v48 = vld [vmem:[#allocation2 + $0x7d0] sm:$0xff]  ;;  %v315_v50 = vld [vmem:[#allocation2 + $0x7b8] sm:$0xff] }
  0xe8   :  { %1359 = vmatprep.subr.mxu1 %v375_v51  ;;  %1162 = vmatprep.mubr.f32.mxu0 %v57_v52  ;;  %v446_v49 = vld [vmem:[#allocation2 + $0xbd0] sm:$0xff]  ;;  %v443_v51 = vld [vmem:[#allocation2 + $0xbb8] sm:$0xff] }
  0xe9   :  { %1271 = vmatpush1.msra.mxu0 %v246_v53  ;;  %1360 = vmatpush1.msra.mxu1 %v374_v54  ;;  %v314_v52 = vld [vmem:[#allocation2 + $0x7b0] sm:$0xff]  ;;  %v311_v54 = vld [vmem:[#allocation2 + $0x798] sm:$0xff] }
  0xea   :  { %1163 = vmatmul.mubr.f32.gmra.mxu0 %v56_v55  ;;  %1272 = vmatprep.subr.mxu0 %v243_v56  ;;  %v442_v53 = vld [vmem:[#allocation2 + $0xbb0] sm:$0xff]  ;;  %v439_v55 = vld [vmem:[#allocation2 + $0xb98] sm:$0xff] }
  0xeb   :  { %1361 = vmatprep.subr.mxu1 %v371_v57  ;;  %1273 = vmatpush1.msra.mxu0 %v242_v58  ;;  %v310_v56 = vld [vmem:[#allocation2 + $0x790] sm:$0xff]  ;;  %v307_v58 = vld [vmem:[#allocation2 + $0x778] sm:$0xff] }
  0xec   :  { %1362 = vmatpush1.msra.mxu1 %v370_v59  ;;  %1274 = vmatprep.subr.mxu0 %v239_v60  ;;  %v438_v57 = vld [vmem:[#allocation2 + $0xb90] sm:$0xff]  ;;  %v435_v59 = vld [vmem:[#allocation2 + $0xb78] sm:$0xff] }
  0xed   :  { %1363 = vmatprep.subr.mxu1 %v367_v61  ;;  %1168 = vmatprep.mubr.f32.mxu0 %v67_v62  ;;  %v306_v60 = vld [vmem:[#allocation2 + $0x770] sm:$0xff]  ;;  %v303_v62 = vld [vmem:[#allocation2 + $0x758] sm:$0xff] }
  0xee   :  { %1275 = vmatpush1.msra.mxu0 %v238_v63  ;;  %1364 = vmatpush1.msra.mxu1 %v366_v0  ;;  %v434_v61 = vld [vmem:[#allocation2 + $0xb70] sm:$0xff]  ;;  %v431_v63 = vld [vmem:[#allocation2 + $0xb58] sm:$0xff] }
  0xef   :  { %1169 = vmatmul.mubr.f32.gmra.mxu0 %v66_v1  ;;  %1276 = vmatprep.subr.mxu0 %v235_v2  ;;  %v302_v0 = vld [vmem:[#allocation2 + $0x750] sm:$0xff]  ;;  %v299_v2 = vld [vmem:[#allocation2 + $0x738] sm:$0xff] }
  0xf0   :  { %1365 = vmatprep.subr.mxu1 %v363_v3  ;;  %1277 = vmatpush1.msra.mxu0 %v234_v4  ;;  %v430_v1 = vld [vmem:[#allocation2 + $0xb50] sm:$0xff]  ;;  %v427_v3 = vld [vmem:[#allocation2 + $0xb38] sm:$0xff] }
  0xf1   :  { %1366 = vmatpush1.msra.mxu1 %v362_v5  ;;  %1278 = vmatprep.subr.mxu0 %v231_v6  ;;  %v298_v4 = vld [vmem:[#allocation2 + $0x730] sm:$0xff]  ;;  %v295_v6 = vld [vmem:[#allocation2 + $0x718] sm:$0xff] }
  0xf2   :  { %1367 = vmatprep.subr.mxu1 %v359_v7  ;;  %1279 = vmatpush1.msra.mxu0 %v230_v8  ;;  %v426_v5 = vld [vmem:[#allocation2 + $0xb30] sm:$0xff]  ;;  %v423_v7 = vld [vmem:[#allocation2 + $0xb18] sm:$0xff] }
  0xf3   :  { %1368 = vmatpush1.msra.mxu1 %v358_v9  ;;  %1280 = vmatprep.subr.mxu0 %v227_v10  ;;  %v294_v8 = vld [vmem:[#allocation2 + $0x710] sm:$0xff]  ;;  %v291_v10 = vld [vmem:[#allocation2 + $0x6f8] sm:$0xff] }
  0xf4   :  { %1369 = vmatprep.subr.mxu1 %v355_v11  ;;  %1281 = vmatpush1.msra.mxu0 %v226_v12  ;;  %v422_v9 = vld [vmem:[#allocation2 + $0xb10] sm:$0xff]  ;;  %v419_v11 = vld [vmem:[#allocation2 + $0xaf8] sm:$0xff] }
  0xf5   :  { %1370 = vmatpush1.msra.mxu1 %v354_v13  ;;  %1282 = vmatprep.subr.mxu0 %v223_v14  ;;  %v290_v12 = vld [vmem:[#allocation2 + $0x6f0] sm:$0xff]  ;;  %v287_v14 = vld [vmem:[#allocation2 + $0x6d8] sm:$0xff] }
  0xf6   :  { %1371 = vmatprep.subr.mxu1 %v351_v15  ;;  %1283 = vmatpush1.msra.mxu0 %v222_v16  ;;  %v418_v13 = vld [vmem:[#allocation2 + $0xaf0] sm:$0xff]  ;;  %v415_v15 = vld [vmem:[#allocation2 + $0xad8] sm:$0xff] }
  0xf7   :  { %1372 = vmatpush1.msra.mxu1 %v350_v17  ;;  %1284 = vmatprep.subr.mxu0 %v219_v18  ;;  %v286_v16 = vld [vmem:[#allocation2 + $0x6d0] sm:$0xff]  ;;  %v283_v18 = vld [vmem:[#allocation2 + $0x6b8] sm:$0xff] }
  0xf8   :  { %1373 = vmatprep.subr.mxu1 %v347_v19  ;;  %1285 = vmatpush1.msra.mxu0 %v218_v20  ;;  %v414_v17 = vld [vmem:[#allocation2 + $0xad0] sm:$0xff]  ;;  %v411_v19 = vld [vmem:[#allocation2 + $0xab8] sm:$0xff] }
  0xf9   :  { %1374 = vmatpush1.msra.mxu1 %v346_v21  ;;  %1286 = vmatprep.subr.mxu0 %v215_v22  ;;  %v282_v20 = vld [vmem:[#allocation2 + $0x6b0] sm:$0xff]  ;;  %v1662_v22 = vld [vmem:[%s2066_s0 + $0x58] sm:$0xff] }
  0xfa   :  { %1375 = vmatprep.subr.mxu1 %v343_v23  ;;  %1287 = vmatpush1.msra.mxu0 %v214_v24  ;;  %v410_v21 = vld [vmem:[#allocation2 + $0xab0] sm:$0xff]  ;;  %v279_v23 = vld [vmem:[#allocation2 + $0x698] sm:$0xff] }
  0xfb   :  { %1376 = vmatpush1.msra.mxu1 %v342_v25  ;;  %1288 = vmatprep.subr.mxu0 %v211_v26  ;;  %v407_v24 = vld [vmem:[#allocation2 + $0xa98] sm:$0xff]  ;;  %v1663_v25 = vld [vmem:[%s2066_s0 + $0x50] sm:$0xff] }
  0xfc   :  { %1377 = vmatprep.subr.mxu1 %v339_v27  ;;  %1289 = vmatpush1.msra.mxu0 %v210_v28  ;;  %v278_v26 = vld [vmem:[#allocation2 + $0x690] sm:$0xff]  ;;  %v275_v28 = vld [vmem:[#allocation2 + $0x678] sm:$0xff] }
  0xfd   :  { %1378 = vmatpush1.msra.mxu1 %v338_v29  ;;  %1290 = vmatprep.subr.mxu0 %v207_v30  ;;  %v406_v27 = vld [vmem:[#allocation2 + $0xa90] sm:$0xff]  ;;  %v403_v29 = vld [vmem:[#allocation2 + $0xa78] sm:$0xff] }
  0xfe   :  { %1379 = vmatprep.subr.mxu1 %v335_v31  ;;  %1291 = vmatpush1.msra.mxu0 %v206_v32  ;;  %v274_v30 = vld [vmem:[#allocation2 + $0x670] sm:$0xff]  ;;  %v1664_v32 = vld [vmem:[%s2066_s0 + $0xa8] sm:$0xff] }
  0xff   :  { %1380 = vmatpush1.msra.mxu1 %v334_v33  ;;  %1292 = vmatprep.subr.mxu0 %v203_v34  ;;  %v402_v31 = vld [vmem:[#allocation2 + $0xa70] sm:$0xff]  ;;  %v271_v33 = vld [vmem:[#allocation2 + $0x658] sm:$0xff] }
 0x100   :  { %1381 = vmatprep.subr.mxu1 %v331_v35  ;;  %1293 = vmatpush1.msra.mxu0 %v202_v36  ;;  %v399_v34 = vld [vmem:[#allocation2 + $0xa58] sm:$0xff]  ;;  %v1665_v35 = vld [vmem:[%s2066_s0 + $0xa0] sm:$0xff]  ;;  %v270_v36 = vld [vmem:[#allocation2 + $0x650] sm:$0xff] }
 0x101   :  { %1382 = vmatpush1.msra.mxu1 %v330_v37  ;;  %1294 = vmatprep.subr.mxu0 %v199_v38  ;;  %v398_v37 = vld [vmem:[#allocation2 + $0xa50] sm:$0xff]  ;;  %v267_v38 = vld [vmem:[#allocation2 + $0x638] sm:$0xff] }
 0x102   :  { %1383 = vmatprep.subr.mxu1 %v327_v39  ;;  %1295 = vmatpush1.msra.mxu0 %v198_v40  ;;  %v395_v39 = vld [vmem:[#allocation2 + $0xa38] sm:$0xff]  ;;  %v266_v40 = vld [vmem:[#allocation2 + $0x630] sm:$0xff] }
 0x103   :  { %1384 = vmatpush1.msra.mxu1 %v326_v41  ;;  %1296 = vmatprep.subr.mxu0 %v323_v42  ;;  %v394_v41 = vld [vmem:[#allocation2 + $0xa30] sm:$0xff]  ;;  %v1666_v42 = vld [vmem:[%s2066_s0 + $0xf8] sm:$0xff] }
 0x104   :  { %1385 = vmatprep.subr.mxu1 %v451_v43  ;;  %1297 = vmatpush2.msra.mxu0 %v322_v44  ;;  %v263_v43 = vld [vmem:[#allocation2 + $0x618] sm:$0xff] }
 0x105   :  { %1386 = vmatpush2.msra.mxu1 %v450_v45  ;;  %1298 = vmatprep.subr.mxu0 %v319_v46  ;;  %v391_v44 = vld [vmem:[#allocation2 + $0xa18] sm:$0xff]  ;;  %v1667_v45 = vld [vmem:[%s2066_s0 + $0xf0] sm:$0xff] }
 0x106   :  { %1387 = vmatprep.subr.mxu1 %v447_v47  ;;  %1299 = vmatpush2.msra.mxu0 %v318_v48  ;;  %v262_v46 = vld [vmem:[#allocation2 + $0x610] sm:$0xff]  ;;  %v515_v48 = vld [vmem:[#allocation2 + $0xdf8] sm:$0xff] }
 0x107   :  { %1388 = vmatpush2.msra.mxu1 %v446_v49  ;;  %1300 = vmatprep.subr.mxu0 %v315_v50  ;;  %v390_v47 = vld [vmem:[#allocation2 + $0xa10] sm:$0xff]  ;;  %v1668_v49 = vld [vmem:[%s2066_s0 + $0x18] sm:$0xff] }
 0x108   :  { %1389 = vmatprep.subr.mxu1 %v443_v51  ;;  %1301 = vmatpush2.msra.mxu0 %v314_v52  ;;  %v643_v50 = vld [vmem:[#allocation2 + $0x11f8] sm:$0xff]  ;;  %v1669_v51 = vld [vmem:[%s2066_s0 + $0x10] sm:$0xff] }
 0x109   :  { %1390 = vmatpush2.msra.mxu1 %v442_v53  ;;  %1302 = vmatprep.subr.mxu0 %v311_v54  ;;  %v514_v52 = vld [vmem:[#allocation2 + $0xdf0] sm:$0xff]  ;;  %v1670_v54 = vld [vmem:[%s2066_s0 + $0x28] sm:$0xff] }
 0x10a   :  { %1391 = vmatprep.subr.mxu1 %v439_v55  ;;  %1303 = vmatpush2.msra.mxu0 %v310_v56  ;;  %v642_v53 = vld [vmem:[#allocation2 + $0x11f0] sm:$0xff]  ;;  %v511_v55 = vld [vmem:[#allocation2 + $0xdd8] sm:$0xff] }
 0x10b   :  { %1392 = vmatpush2.msra.mxu1 %v438_v57  ;;  %1304 = vmatprep.subr.mxu0 %v307_v58  ;;  %v639_v56 = vld [vmem:[#allocation2 + $0x11d8] sm:$0xff]  ;;  %v1671_v57 = vld [vmem:[%s2066_s0 + $0x20] sm:$0xff]  ;;  %v510_v58 = vld [vmem:[#allocation2 + $0xdd0] sm:$0xff] }
 0x10c   :  { %1393 = vmatprep.subr.mxu1 %v435_v59  ;;  %1305 = vmatpush2.msra.mxu0 %v306_v60  ;;  %v638_v59 = vld [vmem:[#allocation2 + $0x11d0] sm:$0xff]  ;;  %v507_v60 = vld [vmem:[#allocation2 + $0xdb8] sm:$0xff] }
 0x10d   :  { %1394 = vmatpush2.msra.mxu1 %v434_v61  ;;  %1306 = vmatprep.subr.mxu0 %v303_v62  ;;  %v635_v61 = vld [vmem:[#allocation2 + $0x11b8] sm:$0xff]  ;;  %v1672_v62 = vld [vmem:[%s2066_s0 + $0x68] sm:$0xff] }
 0x10e   :  { %1395 = vmatprep.subr.mxu1 %v431_v63  ;;  %1307 = vmatpush2.msra.mxu0 %v302_v0  ;;  %v506_v63 = vld [vmem:[#allocation2 + $0xdb0] sm:$0xff]  ;;  %v1673_v0 = vld [vmem:[%s2066_s0 + $0x60] sm:$0xff] }
 0x10f   :  { %1396 = vmatpush2.msra.mxu1 %v430_v1  ;;  %1308 = vmatprep.subr.mxu0 %v299_v2  ;;  %v634_v1 = vld [vmem:[#allocation2 + $0x11b0] sm:$0xff]  ;;  %v503_v2 = vld [vmem:[#allocation2 + $0xd98] sm:$0xff] }
 0x110   :  { %1397 = vmatprep.subr.mxu1 %v427_v3  ;;  %1309 = vmatpush2.msra.mxu0 %v298_v4  ;;  %v631_v3 = vld [vmem:[#allocation2 + $0x1198] sm:$0xff] }
 0x111   :  { %1398 = vmatpush2.msra.mxu1 %v426_v5  ;;  %1310 = vmatprep.subr.mxu0 %v295_v6  ;;  %v1674_v4 = vld [vmem:[%s2066_s0 + $0x78] sm:$0xff]  ;;  %v502_v5 = vld [vmem:[#allocation2 + $0xd90] sm:$0xff] }
 0x112   :  { %1399 = vmatprep.subr.mxu1 %v423_v7  ;;  %1311 = vmatpush2.msra.mxu0 %v294_v8  ;;  %v630_v6 = vld [vmem:[#allocation2 + $0x1190] sm:$0xff]  ;;  %v499_v8 = vld [vmem:[#allocation2 + $0xd78] sm:$0xff] }
 0x113   :  { %1400 = vmatpush2.msra.mxu1 %v422_v9  ;;  %1312 = vmatprep.subr.mxu0 %v291_v10  ;;  %v1675_v7 = vld [vmem:[%s2066_s0 + $0x70] sm:$0xff]  ;;  %v627_v9 = vld [vmem:[#allocation2 + $0x1178] sm:$0xff] }
 0x114   :  { %1401 = vmatprep.subr.mxu1 %v419_v11  ;;  %1313 = vmatpush2.msra.mxu0 %v290_v12  ;;  %v1676_v10 = vld [vmem:[%s2066_s0 + $0xb8] sm:$0xff]  ;;  %v498_v11 = vld [vmem:[#allocation2 + $0xd70] sm:$0xff] }
 0x115   :  { %1402 = vmatpush2.msra.mxu1 %v418_v13  ;;  %1314 = vmatprep.subr.mxu0 %v287_v14  ;;  %v1677_v12 = vld [vmem:[%s2066_s0 + $0xb0] sm:$0xff]  ;;  %v495_v14 = vld [vmem:[#allocation2 + $0xd58] sm:$0xff] }
 0x116   :  { %1403 = vmatprep.subr.mxu1 %v415_v15  ;;  %1315 = vmatpush2.msra.mxu0 %v286_v16  ;;  %v626_v13 = vld [vmem:[#allocation2 + $0x1170] sm:$0xff]  ;;  %v623_v15 = vld [vmem:[#allocation2 + $0x1158] sm:$0xff]  ;;  %v1678_v16 = vld [vmem:[%s2066_s0 + $0xc8] sm:$0xff] }
 0x117   :  { %1404 = vmatpush2.msra.mxu1 %v414_v17  ;;  %1245 = vmatprep.mubr.f32.mxu1 %v1662_v22  ;;  %v494_v17 = vld [vmem:[#allocation2 + $0xd50] sm:$0xff]  ;;  %v1680_v22 = vld [vmem:[%s2066_s0 + $0x108] sm:$0xff] }
 0x118   :  { %1316 = vmatprep.subr.mxu0 %v283_v18  ;;  %1405 = vmatprep.subr.mxu1 %v411_v19  ;;  %v622_v18 = vld [vmem:[#allocation2 + $0x1150] sm:$0xff]  ;;  %v1679_v19 = vld [vmem:[%s2066_s0 + $0xc0] sm:$0xff] }
 0x119   :  { %1246 = vmatmul.mubr.f32.gmra.mxu1 %v1663_v25  ;;  %1317 = vmatpush2.msra.mxu0 %v282_v20  ;;  %v491_v20 = vld [vmem:[#allocation2 + $0xd38] sm:$0xff]  ;;  %v618_v25 = vld [vmem:[#allocation2 + $0x1130] sm:$0xff] }
 0x11a   :  { %1406 = vmatpush2.msra.mxu1 %v410_v21  ;;  %1318 = vmatprep.subr.mxu0 %v279_v23  ;;  %v619_v21 = vld [vmem:[#allocation2 + $0x1138] sm:$0xff]  ;;  %v490_v23 = vld [vmem:[#allocation2 + $0xd30] sm:$0xff] }
 0x11b   :  { %1407 = vmatprep.subr.mxu1 %v407_v24  ;;  %1319 = vmatpush2.msra.mxu0 %v278_v26  ;;  %v1681_v24 = vld [vmem:[%s2066_s0 + $0x100] sm:$0xff]  ;;  %v487_v26 = vld [vmem:[#allocation2 + $0xd18] sm:$0xff] }
 0x11c   :  { %1408 = vmatpush2.msra.mxu1 %v406_v27  ;;  %1251 = vmatprep.mubr.f32.mxu1 %v1664_v32  ;;  %v615_v27 = vld [vmem:[#allocation2 + $0x1118] sm:$0xff] }
 0x11d   :  { %1320 = vmatprep.subr.mxu0 %v275_v28  ;;  %1409 = vmatprep.subr.mxu1 %v403_v29  ;;  %v1682_v28 = vld [vmem:[%s2066_s0 + $0x118] sm:$0xff]  ;;  %v486_v29 = vld [vmem:[#allocation2 + $0xd10] sm:$0xff] }
 0x11e   :  { %1252 = vmatmul.mubr.f32.gmra.mxu1 %v1665_v35  ;;  %1321 = vmatpush2.msra.mxu0 %v274_v30  ;;  %v614_v30 = vld [vmem:[#allocation2 + $0x1110] sm:$0xff]  ;;  %v611_v32 = vld [vmem:[#allocation2 + $0x10f8] sm:$0xff] }
 0x11f   :  { %1410 = vmatpush2.msra.mxu1 %v402_v31  ;;  %1322 = vmatprep.subr.mxu0 %v271_v33  ;;  %v483_v31 = vld [vmem:[#allocation2 + $0xcf8] sm:$0xff]  ;;  %v1683_v33 = vld [vmem:[%s2066_s0 + $0x110] sm:$0xff] }
 0x120   :  { %1411 = vmatprep.subr.mxu1 %v399_v34  ;;  %1323 = vmatpush2.msra.mxu0 %v270_v36  ;;  %v482_v34 = vld [vmem:[#allocation2 + $0xcf0] sm:$0xff]  ;;  %v479_v36 = vld [vmem:[#allocation2 + $0xcd8] sm:$0xff] }
 0x121   :  { %1412 = vmatpush2.msra.mxu1 %v398_v37  ;;  %1257 = vmatprep.mubr.f32.mxu1 %v1666_v42  ;;  %v610_v35 = vld [vmem:[#allocation2 + $0x10f0] sm:$0xff]  ;;  %v607_v37 = vld [vmem:[#allocation2 + $0x10d8] sm:$0xff] }
 0x122   :  { %1324 = vmatprep.subr.mxu0 %v267_v38  ;;  %1413 = vmatprep.subr.mxu1 %v395_v39  ;;  %v478_v38 = vld [vmem:[#allocation2 + $0xcd0] sm:$0xff] }
 0x123   :  { %1258 = vmatmul.mubr.f32.gmra.mxu1 %v1667_v45  ;;  %1325 = vmatpush2.msra.mxu0 %v266_v40  ;;  %v606_v39 = vld [vmem:[#allocation2 + $0x10d0] sm:$0xff]  ;;  %v475_v40 = vld [vmem:[#allocation2 + $0xcb8] sm:$0xff] }
 0x124   :  { %1414 = vmatpush2.msra.mxu1 %v394_v41  ;;  %1326 = vmatprep.subr.mxu0 %v263_v43  ;;  %v603_v41 = vld [vmem:[#allocation2 + $0x10b8] sm:$0xff]  ;;  %v474_v42 = vld [vmem:[#allocation2 + $0xcb0] sm:$0xff] }
 0x125   :  { %1415 = vmatprep.subr.mxu1 %v391_v44  ;;  %1327 = vmatpush2.msra.mxu0 %v262_v46  ;;  %v602_v43 = vld [vmem:[#allocation2 + $0x10b0] sm:$0xff]  ;;  %v471_v44 = vld [vmem:[#allocation2 + $0xc98] sm:$0xff] }
 0x126   :  { %1328 = vmatprep.mubr.f32.mxu0 %v1668_v49  ;;  %1416 = vmatpush2.msra.mxu1 %v390_v47  ;;  %v599_v45 = vld [vmem:[#allocation2 + $0x1098] sm:$0xff]  ;;  %v470_v46 = vld [vmem:[#allocation2 + $0xc90] sm:$0xff] }
 0x127   :  { %1329 = vmatmul.mubr.f32.vlgmr.msra.gmra.mxu0 %v1669_v51  ;;  %1417 = vmatprep.mubr.f32.mxu1 %v1670_v54  ;;  %v598_v47 = vld [vmem:[#allocation2 + $0x1090] sm:$0xff]  ;;  %v595_v49 = vld [vmem:[#allocation2 + $0x1078] sm:$0xff] }
 0x128   :  { %1442 = vmatprep.subr.mxu0 %v515_v48  ;;  %1531 = vmatprep.subr.mxu1 %v643_v50  ;;  %v467_v48 = vld [vmem:[#allocation2 + $0xc78] sm:$0xff]  ;;  %v466_v50 = vld [vmem:[#allocation2 + $0xc70] sm:$0xff] }
 0x129   :  { %1418 = vmatmul.mubr.f32.vlgmr.msra.gmra.mxu1 %v1671_v57  ;;  %1443 = vmatpush1.msra.mxu0 %v514_v52  ;;  %v594_v51 = vld [vmem:[#allocation2 + $0x1070] sm:$0xff]  ;;  %v463_v52 = vld [vmem:[#allocation2 + $0xc58] sm:$0xff] }
 0x12a   :  { %1532 = vmatpush1.msra.mxu1 %v642_v53  ;;  %1444 = vmatprep.subr.mxu0 %v511_v55  ;;  %v591_v53 = vld [vmem:[#allocation2 + $0x1058] sm:$0xff]  ;;  %v462_v54 = vld [vmem:[#allocation2 + $0xc50] sm:$0xff] }
 0x12b   :  { %1533 = vmatprep.subr.mxu1 %v639_v56  ;;  %1334 = vmatprep.mubr.f32.mxu0 %v1672_v62  ;;  %v590_v55 = vld [vmem:[#allocation2 + $0x1050] sm:$0xff]  ;;  %v459_v56 = vld [vmem:[#allocation2 + $0xc38] sm:$0xff] }
 0x12c   :  { %1445 = vmatpush1.msra.mxu0 %v510_v58  ;;  %1534 = vmatpush1.msra.mxu1 %v638_v59  ;;  %v587_v57 = vld [vmem:[#allocation2 + $0x1038] sm:$0xff]  ;;  %v458_v58 = vld [vmem:[#allocation2 + $0xc30] sm:$0xff] }
 0x12d   :  { %1335 = vmatmul.mubr.f32.gmra.mxu0 %v1673_v0  ;;  %1446 = vmatprep.subr.mxu0 %v507_v60  ;;  %v586_v59 = vld [vmem:[#allocation2 + $0x1030] sm:$0xff]  ;;  %v455_v60 = vld [vmem:[#allocation2 + $0xc18] sm:$0xff] }
 0x12e   :  { %1535 = vmatprep.subr.mxu1 %v635_v61  ;;  %1423 = vmatprep.mubr.f32.mxu1 %v1674_v4  ;;  %v583_v61 = vld [vmem:[#allocation2 + $0x1018] sm:$0xff]  ;;  %v454_v62 = vld [vmem:[#allocation2 + $0xc10] sm:$0xff] }
 0x12f   :  { %1447 = vmatpush1.msra.mxu0 %v506_v63  ;;  %1536 = vmatpush1.msra.mxu1 %v634_v1  ;;  %v582_v63 = vld [vmem:[#allocation2 + $0x1010] sm:$0xff]  ;;  %v579_v0 = vld [vmem:[#allocation2 + $0xff8] sm:$0xff] }
 0x130   :  { %1448 = vmatprep.subr.mxu0 %v503_v2  ;;  %1424 = vmatmul.mubr.f32.gmra.mxu1 %v1675_v7  ;;  %v707_v1 = vld [vmem:[#allocation2 + $0x13f8] sm:$0xff]  ;;  %v578_v2 = vld [vmem:[#allocation2 + $0xff0] sm:$0xff] }
 0x131   :  { %1537 = vmatprep.subr.mxu1 %v631_v3  ;;  %1340 = vmatprep.mubr.f32.mxu0 %v1676_v10  ;;  %v706_v3 = vld [vmem:[#allocation2 + $0x13f0] sm:$0xff]  ;;  %v575_v4 = vld [vmem:[#allocation2 + $0xfd8] sm:$0xff] }
 0x132   :  { %1449 = vmatpush1.msra.mxu0 %v502_v5  ;;  %1538 = vmatpush1.msra.mxu1 %v630_v6  ;;  %v703_v5 = vld [vmem:[#allocation2 + $0x13d8] sm:$0xff]  ;;  %v574_v6 = vld [vmem:[#allocation2 + $0xfd0] sm:$0xff] }
 0x133   :  { %1341 = vmatmul.mubr.f32.gmra.mxu0 %v1677_v12  ;;  %1450 = vmatprep.subr.mxu0 %v499_v8  ;;  %v702_v7 = vld [vmem:[#allocation2 + $0x13d0] sm:$0xff]  ;;  %v571_v8 = vld [vmem:[#allocation2 + $0xfb8] sm:$0xff] }
 0x134   :  { %1539 = vmatprep.subr.mxu1 %v627_v9  ;;  %1429 = vmatprep.mubr.f32.mxu1 %v1678_v16  ;;  %v699_v9 = vld [vmem:[#allocation2 + $0x13b8] sm:$0xff]  ;;  %v570_v10 = vld [vmem:[#allocation2 + $0xfb0] sm:$0xff] }
 0x135   :  { %1451 = vmatpush1.msra.mxu0 %v498_v11  ;;  %1540 = vmatpush1.msra.mxu1 %v626_v13  ;;  %v698_v11 = vld [vmem:[#allocation2 + $0x13b0] sm:$0xff]  ;;  %v567_v12 = vld [vmem:[#allocation2 + $0xf98] sm:$0xff] }
 0x136   :  { %1452 = vmatprep.subr.mxu0 %v495_v14  ;;  %1430 = vmatmul.mubr.f32.gmra.mxu1 %v1679_v19  ;;  %v695_v13 = vld [vmem:[#allocation2 + $0x1398] sm:$0xff]  ;;  %v566_v14 = vld [vmem:[#allocation2 + $0xf90] sm:$0xff] }
 0x137   :  { %1541 = vmatprep.subr.mxu1 %v623_v15  ;;  %1346 = vmatprep.mubr.f32.mxu0 %v1680_v22  ;;  %v694_v15 = vld [vmem:[#allocation2 + $0x1390] sm:$0xff]  ;;  %v563_v16 = vld [vmem:[#allocation2 + $0xf78] sm:$0xff] }
 0x138   :  { %1453 = vmatpush1.msra.mxu0 %v494_v17  ;;  %1542 = vmatpush1.msra.mxu1 %v622_v18  ;;  %v691_v17 = vld [vmem:[#allocation2 + $0x1378] sm:$0xff]  ;;  %v562_v18 = vld [vmem:[#allocation2 + $0xf70] sm:$0xff] }
 0x139   :  { %1347 = vmatmul.mubr.f32.gmra.mxu0 %v1681_v24  ;;  %1454 = vmatprep.subr.mxu0 %v491_v20  ;;  %v690_v19 = vld [vmem:[#allocation2 + $0x1370] sm:$0xff]  ;;  %v559_v20 = vld [vmem:[#allocation2 + $0xf58] sm:$0xff] }
 0x13a   :  { %1543 = vmatprep.subr.mxu1 %v619_v21  ;;  %1435 = vmatprep.mubr.f32.mxu1 %v1682_v28  ;;  %v687_v21 = vld [vmem:[#allocation2 + $0x1358] sm:$0xff]  ;;  %v558_v22 = vld [vmem:[#allocation2 + $0xf50] sm:$0xff] }
 0x13b   :  { %1455 = vmatpush1.msra.mxu0 %v490_v23  ;;  %1544 = vmatpush1.msra.mxu1 %v618_v25  ;;  %v686_v23 = vld [vmem:[#allocation2 + $0x1350] sm:$0xff]  ;;  %v555_v24 = vld [vmem:[#allocation2 + $0xf38] sm:$0xff] }
 0x13c   :  { %1456 = vmatprep.subr.mxu0 %v487_v26  ;;  %1436 = vmatmul.mubr.f32.gmra.mxu1 %v1683_v33  ;;  %v683_v25 = vld [vmem:[#allocation2 + $0x1338] sm:$0xff]  ;;  %v554_v26 = vld [vmem:[#allocation2 + $0xf30] sm:$0xff] }
 0x13d   :  { %1545 = vmatprep.subr.mxu1 %v615_v27  ;;  %1457 = vmatpush1.msra.mxu0 %v486_v29  ;;  %v682_v27 = vld [vmem:[#allocation2 + $0x1330] sm:$0xff]  ;;  %v551_v28 = vld [vmem:[#allocation2 + $0xf18] sm:$0xff] }
 0x13e   :  { %1546 = vmatpush1.msra.mxu1 %v614_v30  ;;  %1458 = vmatprep.subr.mxu0 %v483_v31  ;;  %v679_v29 = vld [vmem:[#allocation2 + $0x1318] sm:$0xff]  ;;  %v550_v30 = vld [vmem:[#allocation2 + $0xf10] sm:$0xff] }
 0x13f   :  { %1547 = vmatprep.subr.mxu1 %v611_v32  ;;  %1459 = vmatpush1.msra.mxu0 %v482_v34  ;;  %v678_v31 = vld [vmem:[#allocation2 + $0x1310] sm:$0xff]  ;;  %v547_v32 = vld [vmem:[#allocation2 + $0xef8] sm:$0xff] }
 0x140   :  { %1548 = vmatpush1.msra.mxu1 %v610_v35  ;;  %1460 = vmatprep.subr.mxu0 %v479_v36  ;;  %v675_v33 = vld [vmem:[#allocation2 + $0x12f8] sm:$0xff]  ;;  %v546_v34 = vld [vmem:[#allocation2 + $0xef0] sm:$0xff] }
 0x141   :  { %1549 = vmatprep.subr.mxu1 %v607_v37  ;;  %1461 = vmatpush1.msra.mxu0 %v478_v38  ;;  %v674_v35 = vld [vmem:[#allocation2 + $0x12f0] sm:$0xff]  ;;  %v543_v36 = vld [vmem:[#allocation2 + $0xed8] sm:$0xff] }
 0x142   :  { %1550 = vmatpush1.msra.mxu1 %v606_v39  ;;  %1462 = vmatprep.subr.mxu0 %v475_v40  ;;  %v671_v37 = vld [vmem:[#allocation2 + $0x12d8] sm:$0xff]  ;;  %v542_v38 = vld [vmem:[#allocation2 + $0xed0] sm:$0xff] }
 0x143   :  { %1551 = vmatprep.subr.mxu1 %v603_v41  ;;  %1463 = vmatpush1.msra.mxu0 %v474_v42  ;;  %v670_v39 = vld [vmem:[#allocation2 + $0x12d0] sm:$0xff]  ;;  %v539_v40 = vld [vmem:[#allocation2 + $0xeb8] sm:$0xff] }
 0x144   :  { %1552 = vmatpush1.msra.mxu1 %v602_v43  ;;  %1464 = vmatprep.subr.mxu0 %v471_v44  ;;  %v667_v41 = vld [vmem:[#allocation2 + $0x12b8] sm:$0xff]  ;;  %v538_v42 = vld [vmem:[#allocation2 + $0xeb0] sm:$0xff] }
 0x145   :  { %1553 = vmatprep.subr.mxu1 %v599_v45  ;;  %1465 = vmatpush1.msra.mxu0 %v470_v46  ;;  %v666_v43 = vld [vmem:[#allocation2 + $0x12b0] sm:$0xff]  ;;  %v535_v44 = vld [vmem:[#allocation2 + $0xe98] sm:$0xff]  ;;  %v1940_v46 = vpop.f32.mrf.mxu0 }
 0x146   :  { %1554 = vmatpush1.msra.mxu1 %v598_v47  ;;  %1466 = vmatprep.subr.mxu0 %v467_v48  ;;  %v663_v45 = vld [vmem:[#allocation2 + $0x1298] sm:$0xff]  ;;  %v534_v47 = vld [vmem:[#allocation2 + $0xe90] sm:$0xff] }
 0x147   :  { %1555 = vmatprep.subr.mxu1 %v595_v49  ;;  %1467 = vmatpush1.msra.mxu0 %v466_v50  ;;  %v662_v48 = vld [vmem:[#allocation2 + $0x1290] sm:$0xff]  ;;  %v531_v49 = vld [vmem:[#allocation2 + $0xe78] sm:$0xff] }
 0x148   :  { %1556 = vmatpush1.msra.mxu1 %v594_v51  ;;  %1468 = vmatprep.subr.mxu0 %v463_v52  ;;  %v659_v50 = vld [vmem:[#allocation2 + $0x1278] sm:$0xff]  ;;  %v530_v51 = vld [vmem:[#allocation2 + $0xe70] sm:$0xff] }
 0x149   :  { %1557 = vmatprep.subr.mxu1 %v591_v53  ;;  %1469 = vmatpush1.msra.mxu0 %v462_v54  ;;  %v658_v52 = vld [vmem:[#allocation2 + $0x1270] sm:$0xff]  ;;  %v527_v53 = vld [vmem:[#allocation2 + $0xe58] sm:$0xff] }
 0x14a   :  { %1558 = vmatpush1.msra.mxu1 %v590_v55  ;;  %1470 = vmatprep.subr.mxu0 %v459_v56  ;;  %v655_v54 = vld [vmem:[#allocation2 + $0x1258] sm:$0xff]  ;;  %v1942_v55 = vpop.f32.mrf.mxu0  ;;  %v526_v56 = vld [vmem:[#allocation2 + $0xe50] sm:$0xff] }
 0x14b   :  { %1559 = vmatprep.subr.mxu1 %v587_v57  ;;  %1471 = vmatpush1.msra.mxu0 %v458_v58  ;;  %v654_v57 = vld [vmem:[#allocation2 + $0x1250] sm:$0xff]  ;;  %v523_v58 = vld [vmem:[#allocation2 + $0xe38] sm:$0xff] }
 0x14c   :  { %1560 = vmatpush1.msra.mxu1 %v586_v59  ;;  %1472 = vmatprep.subr.mxu0 %v455_v60  ;;  %v651_v59 = vld [vmem:[#allocation2 + $0x1238] sm:$0xff]  ;;  %v1944_v60 = vpop.f32.mrf.mxu0 }
 0x14d   :  { %1561 = vmatprep.subr.mxu1 %v583_v61  ;;  %1473 = vmatpush1.msra.mxu0 %v454_v62  ;;  %v522_v61 = vld [vmem:[#allocation2 + $0xe30] sm:$0xff] }
 0x14e   :  { %1562 = vmatpush1.msra.mxu1 %v582_v63  ;;  %1474 = vmatprep.subr.mxu0 %v579_v0  ;;  %v650_v62 = vld [vmem:[#allocation2 + $0x1230] sm:$0xff]  ;;  %v519_v63 = vld [vmem:[#allocation2 + $0xe18] sm:$0xff] }
 0x14f   :  { %1563 = vmatprep.subr.mxu1 %v707_v1  ;;  %1475 = vmatpush2.msra.mxu0 %v578_v2  ;;  %v647_v0 = vld [vmem:[#allocation2 + $0x1218] sm:$0xff]  ;;  %v518_v1 = vld [vmem:[#allocation2 + $0xe10] sm:$0xff] }
 0x150   :  { %1564 = vmatpush2.msra.mxu1 %v706_v3  ;;  %1476 = vmatprep.subr.mxu0 %v575_v4  ;;  %v646_v2 = vld [vmem:[#allocation2 + $0x1210] sm:$0xff]  ;;  %v1946_v3 = vpop.f32.mrf.mxu0  ;;  %v1684_v4 = vld [vmem:[%s2066_s0 + $0x38] sm:$0xff] }
 0x151   :  { %1565 = vmatprep.subr.mxu1 %v703_v5  ;;  %1477 = vmatpush2.msra.mxu0 %v574_v6  ;;  %v1685_v5 = vld [vmem:[%s2066_s0 + $0x48] sm:$0xff]  ;;  %v1686_v6 = vld [vmem:[%s2066_s0 + $0x30] sm:$0xff] }
 0x152   :  { %1566 = vmatpush2.msra.mxu1 %v702_v7  ;;  %1478 = vmatprep.subr.mxu0 %v571_v8  ;;  %v1687_v7 = vld [vmem:[%s2066_s0 + $0x40] sm:$0xff]  ;;  %v1960_v8 = vpop.f32.mrf.mxu0 }
 0x153   :  { %1567 = vmatprep.subr.mxu1 %v699_v9  ;;  %1479 = vmatpush2.msra.mxu0 %v570_v10  ;;  %v1688_v9 = vld [vmem:[%s2066_s0 + $0x88] sm:$0xff]  ;;  %v1689_v10 = vld [vmem:[%s2066_s0 + $0x98] sm:$0xff] }
 0x154   :  { %1568 = vmatpush2.msra.mxu1 %v698_v11  ;;  %1480 = vmatprep.subr.mxu0 %v567_v12  ;;  %v885_v11 = vpop.f32.mrf.mxu1  ;;  %v1690_v12 = vld [vmem:[%s2066_s0 + $0x80] sm:$0xff] }
 0x155   :  { %1569 = vmatprep.subr.mxu1 %v695_v13  ;;  %1481 = vmatpush2.msra.mxu0 %v566_v14  ;;  %v1691_v13 = vld [vmem:[%s2066_s0 + $0x90] sm:$0xff]  ;;  %v810_v14 = vpop.f32.mrf.mxu0 }
 0x156   :  { %1570 = vmatpush2.msra.mxu1 %v694_v15  ;;  %1482 = vmatprep.subr.mxu0 %v563_v16  ;;  %v1692_v15 = vld [vmem:[%s2066_s0 + $0xd8] sm:$0xff]  ;;  %v1693_v16 = vld [vmem:[%s2066_s0 + $0xe8] sm:$0xff] }
 0x157   :  { %1571 = vmatprep.subr.mxu1 %v691_v17  ;;  %1483 = vmatpush2.msra.mxu0 %v562_v18  ;;  %v887_v17 = vpop.f32.mrf.mxu1  ;;  %v1694_v18 = vld [vmem:[%s2066_s0 + $0xd0] sm:$0xff] }
 0x158   :  { %1572 = vmatpush2.msra.mxu1 %v690_v19  ;;  %1484 = vmatprep.subr.mxu0 %v559_v20  ;;  %v1695_v19 = vld [vmem:[%s2066_s0 + $0xe0] sm:$0xff] }
 0x159   :  { %1573 = vmatprep.subr.mxu1 %v687_v21  ;;  %1485 = vmatpush2.msra.mxu0 %v558_v22  ;;  %v891_v20 = vpop.f32.mrf.mxu1  ;;  %v814_v21 = vpop.f32.mrf.mxu0  ;;  %v1696_v22 = vld [vmem:[%s2066_s0 + $0x128] sm:$0xff] }
 0x15a   :  { %1574 = vmatpush2.msra.mxu1 %v686_v23  ;;  %1486 = vmatprep.subr.mxu0 %v555_v24  ;;  %v1697_v23 = vld [vmem:[%s2066_s0 + $0x138] sm:$0xff]  ;;  %v1698_v24 = vld [vmem:[%s2066_s0 + $0x120] sm:$0xff] }
 0x15b   :  { %1575 = vmatprep.subr.mxu1 %v683_v25  ;;  %1487 = vmatpush2.msra.mxu0 %v554_v26  ;;  %v1699_v25 = vld [vmem:[%s2066_s0 + $0x130] sm:$0xff]  ;;  %v893_v26 = vpop.f32.mrf.mxu1 }
 0x15c   :  { %1576 = vmatpush2.msra.mxu1 %v682_v27  ;;  %1488 = vmatprep.subr.mxu0 %v551_v28  ;;  %v816_v27 = vpop.f32.mrf.mxu0 }
 0x15d   :  { %1577 = vmatprep.subr.mxu1 %v679_v29  ;;  %1489 = vmatpush2.msra.mxu0 %v550_v30  ;;  %v897_v28 = vpop.f32.mrf.mxu1  ;;  %v710_v30 = vlaneseq }
 0x15e   :  { %1578 = vmatpush2.msra.mxu1 %v678_v31  ;;  %1490 = vmatprep.subr.mxu0 %v547_v32  ;;  %v974_v29 = vpop.f32.mrf.mxu0 }
 0x15f   :  { %1579 = vmatprep.subr.mxu1 %v675_v33  ;;  %1491 = vmatpush2.msra.mxu0 %v546_v34  ;;  %v899_v31 = vpop.f32.mrf.mxu1  ;;  %v1998_v33 = vshrl.u32 %v710_v30, 7 }
 0x160   :  { %1580 = vmatpush2.msra.mxu1 %v674_v35  ;;  %1492 = vmatprep.subr.mxu0 %v543_v36  ;;  %v976_v32 = vpop.f32.mrf.mxu0 }
 0x161   :  { %1581 = vmatprep.subr.mxu1 %v671_v37  ;;  %1493 = vmatpush2.msra.mxu0 %v542_v38  ;;  %v903_v34 = vpop.f32.mrf.mxu1  ;;  %v712_v36 = vsub.s32 0, %v1998_v33  ;;  %v2004_v37 = vld [vmem:[%s2068_s2] sm:$0xf] }
 0x162   :  { %1582 = vmatpush2.msra.mxu1 %v670_v39  ;;  %1494 = vmatprep.subr.mxu0 %v539_v40  ;;  %v980_v35 = vpop.f32.mrf.mxu0  ;;  %v716_v40 = vsub.s32 1, %v1998_v33 }
 0x163   :  { %1583 = vmatprep.subr.mxu1 %v667_v41  ;;  %1495 = vmatpush2.msra.mxu0 %v538_v42  ;;  %v905_v38 = vpop.f32.mrf.mxu1  ;;  %v713_v41 = vrot.slane %v2004_v37, %v712_v36 }
 0x164   :  { %1584 = vmatpush2.msra.mxu1 %v666_v43  ;;  %1496 = vmatprep.subr.mxu0 %v535_v44  ;;  %v982_v39 = vpop.f32.mrf.mxu0  ;;  %v717_v44 = vrot.slane %v2004_v37, %v716_v40 }
 0x165   :  { %1585 = vmatprep.subr.mxu1 %v663_v45  ;;  %1497 = vmatpush2.msra.mxu0 %v534_v47  ;;  %v1063_v42 = vpop.f32.mrf.mxu1  ;;  %v797_v45 = vadd.f32 %v1940_v46, %v713_v41  ;;  %v809_v46 = vadd.f32 %v1960_v8, %v713_v41 }
 0x166   :  { %1586 = vmatpush2.msra.mxu1 %v662_v48  ;;  %1498 = vmatprep.subr.mxu0 %v531_v49  ;;  %v986_v43 = vpop.f32.mrf.mxu0  ;;  %v799_v49 = vadd.f32 %v1942_v55, %v717_v44 }
 0x167   :  { %1587 = vmatprep.subr.mxu1 %v659_v50  ;;  %1499 = vmatpush2.msra.mxu0 %v530_v51  ;;  %v1065_v47 = vpop.f32.mrf.mxu1  ;;  %v886_v50 = vadd.f32 %v885_v11, %v797_v45  ;;  %v898_v11 = vadd.f32 %v897_v28, %v809_v46 }
 0x168   :  { %1588 = vmatpush2.msra.mxu1 %v658_v52  ;;  %1500 = vmatprep.subr.mxu0 %v527_v53  ;;  %v988_v48 = vpop.f32.mrf.mxu0  ;;  %v888_v53 = vadd.f32 %v887_v17, %v799_v49 }
 0x169   :  { %1589 = vmatprep.subr.mxu1 %v655_v54  ;;  %1501 = vmatpush2.msra.mxu0 %v526_v56  ;;  %v1069_v51 = vpop.f32.mrf.mxu1  ;;  %v803_v54 = vadd.f32 %v1944_v60, %v713_v41  ;;  %v975_v56 = vadd.f32 %v974_v29, %v886_v50 }
 0x16a   :  { %1590 = vmatpush2.msra.mxu1 %v654_v57  ;;  %1502 = vmatprep.subr.mxu0 %v523_v58  ;;  %v992_v52 = vpop.f32.mrf.mxu0  ;;  %v805_v57 = vadd.f32 %v1946_v3, %v717_v44  ;;  %v977_v58 = vadd.f32 %v976_v32, %v888_v53  ;;  %v815_v3 = vadd.f32 %v814_v21, %v713_v41 }
 0x16b   :  { %1591 = vmatprep.subr.mxu1 %v651_v59  ;;  %1503 = vmatpush2.msra.mxu0 %v522_v61  ;;  %v1071_v59 = vpop.f32.mrf.mxu1 }
 0x16c   :  { %1592 = vmatpush2.msra.mxu1 %v650_v62  ;;  %1504 = vmatprep.subr.mxu0 %v519_v63  ;;  %v994_v61 = vpop.f32.mrf.mxu0  ;;  %v892_v62 = vadd.f32 %v891_v20, %v803_v54  ;;  %v1064_v63 = vadd.f32 %v1063_v42, %v975_v56  ;;  %v904_v21 = vadd.f32 %v903_v34, %v815_v3 }
 0x16d   :  { %1593 = vmatprep.subr.mxu1 %v647_v0  ;;  %1505 = vmatpush2.msra.mxu0 %v518_v1  ;;  %v894_v1 = vadd.f32 %v893_v26, %v805_v57 }
 0x16e   :  { %1506 = vmatprep.mubr.f32.mxu0 %v1684_v4  ;;  %1594 = vmatpush2.msra.mxu1 %v646_v2  ;;  %v1066_v2 = vadd.f32 %v1065_v47, %v977_v58  ;;  %v981_v55 = vadd.f32 %v980_v35, %v892_v62  ;;  %v993_v29 = vadd.f32 %v992_v52, %v904_v21 }
 0x16f   :  { %1595 = vmatprep.mubr.f32.mxu1 %v1685_v5  ;;  %1507 = vmatmul.mubr.f32.vlgmr.msra.gmra.mxu0 %v1686_v6  ;;  %v811_v5 = vadd.f32 %v810_v14, %v717_v44  ;;  %v1075_v6 = vpop.f32.mrf.mxu1 }
 0x170   :  { %1596 = vmatmul.mubr.f32.vlgmr.msra.gmra.mxu1 %v1687_v7  ;;  %1512 = vmatprep.mubr.f32.mxu0 %v1688_v9  ;;  %v983_v9 = vadd.f32 %v982_v39, %v894_v1 }
 0x171   :  { %1601 = vmatprep.mubr.f32.mxu1 %v1689_v10  ;;  %v900_v8 = vadd.f32 %v899_v31, %v811_v5 }
 0x173   :  { %1513 = vmatmul.mubr.f32.gmra.mxu0 %v1690_v12  ;;  %v1070_v12 = vadd.f32 %v1069_v51, %v981_v55  ;;  %v989_v20 = vadd.f32 %v988_v48, %v900_v8  ;;  %v720_v55 = vsub.s32 2, %v1998_v33 }
 0x174   :  { %1602 = vmatmul.mubr.f32.gmra.mxu1 %v1691_v13  ;;  %1518 = vmatprep.mubr.f32.mxu0 %v1692_v15  ;;  %v987_v15 = vadd.f32 %v986_v43, %v898_v11 }
 0x175   :  { %1607 = vmatprep.mubr.f32.mxu1 %v1693_v16  ;;  %v1077_v16 = vpop.f32.mrf.mxu1 }
 0x176   :  { %v1078_v31 = vadd.f32 %v1077_v16, %v989_v20 }
 0x177   :  { %1519 = vmatmul.mubr.f32.gmra.mxu0 %v1694_v18  ;;  %v817_v18 = vadd.f32 %v816_v27, %v717_v44  ;;  %v1081_v26 = vpop.f32.mrf.mxu1 }
 0x178   :  { %1608 = vmatmul.mubr.f32.gmra.mxu1 %v1695_v19  ;;  %1524 = vmatprep.mubr.f32.mxu0 %v1696_v22  ;;  %v1072_v19 = vadd.f32 %v1071_v59, %v983_v9  ;;  %v1082_v41 = vadd.f32 %v1081_v26, %v993_v29 }
 0x179   :  { %1613 = vmatprep.mubr.f32.mxu1 %v1697_v23  ;;  %v906_v28 = vadd.f32 %v905_v38, %v817_v18  ;;  %v1083_v36 = vpop.f32.mrf.mxu1 }
 0x17b   :  { %1525 = vmatmul.mubr.f32.gmra.mxu0 %v1698_v24  ;;  %v995_v35 = vadd.f32 %v994_v61, %v906_v28 }
 0x17c   :  { %1614 = vmatmul.mubr.f32.gmra.mxu1 %v1699_v25  ;;  %v1076_v25 = vadd.f32 %v1075_v6, %v987_v15  ;;  %v724_v6 = vsub.s32 3, %v1998_v33 }
 0x17d   :  { %v1084_v43 = vadd.f32 %v1083_v36, %v995_v35 }
 0x19f   :  { %v1152_v0 = vpop.f32.mrf.mxu0 }
 0x1a0   :  { %v1153_v4 = vadd.f32 %v1152_v0, %v1064_v63 }
 0x1a1   :  { %v1154_v7 = vpop.f32.mrf.mxu0  ;;  %v1241_v50 = vpop.f32.mrf.mxu1 }
 0x1a2   :  { %v1620_v60 = vmax.f32 %v1153_v4, 0.0  ;;  %v1155_v10 = vadd.f32 %v1154_v7, %v1066_v2  ;;  %v721_v7 = vrot.slane %v2004_v37, %v720_v55 }
 0x1a3   :  { %v1243_v51 = vpop.f32.mrf.mxu1 }
 0x1a4   :  { %1636 = vst [vmem:[%s2069_s3] sm:$0xff] %v1620_v60  ;;  %v1621_v13 = vmax.f32 %v1155_v10, 0.0  ;;  %v725_v10 = vrot.slane %v2004_v37, %v724_v6  ;;  %v1242_v11 = vadd.f32 %v1241_v50, %v721_v7 }
 0x1a5   :  { %v1158_v17 = vpop.f32.mrf.mxu0 }
 0x1a6   :  { %1637 = vst [vmem:[%s2069_s3 + $0x8] sm:$0xff] %v1621_v13  ;;  %v1159_v14 = vadd.f32 %v1158_v17, %v1070_v12  ;;  %v1244_v13 = vadd.f32 %v1243_v51, %v725_v10 }
 0x1a7   :  { %v1160_v22 = vpop.f32.mrf.mxu0 }
 0x1a8   :  { %v1624_v23 = vmax.f32 %v1159_v14, 0.0  ;;  %v1161_v24 = vadd.f32 %v1160_v22, %v1072_v19 }
 0x1aa   :  { %1640 = vst [vmem:[%s2069_s3 + $0x20] sm:$0xff] %v1624_v23  ;;  %v1625_v27 = vmax.f32 %v1161_v24, 0.0  ;;  %v1164_v30 = vpop.f32.mrf.mxu0 }
 0x1ab   :  { %v1165_v32 = vadd.f32 %v1164_v30, %v1076_v25 }
 0x1ac   :  { %1641 = vst [vmem:[%s2069_s3 + $0x28] sm:$0xff] %v1625_v27  ;;  %v1166_v34 = vpop.f32.mrf.mxu0 }
 0x1ad   :  { %v1628_v39 = vmax.f32 %v1165_v32, 0.0  ;;  %v1167_v40 = vadd.f32 %v1166_v34, %v1078_v31 }
 0x1af   :  { %1644 = vst [vmem:[%s2069_s3 + $0x40] sm:$0xff] %v1628_v39  ;;  %v1629_v38 = vmax.f32 %v1167_v40, 0.0  ;;  %v1170_v42 = vpop.f32.mrf.mxu0 }
 0x1b0   :  { %v1171_v44 = vadd.f32 %v1170_v42, %v1082_v41 }
 0x1b1   :  { %1645 = vst [vmem:[%s2069_s3 + $0x48] sm:$0xff] %v1629_v38  ;;  %v1172_v45 = vpop.f32.mrf.mxu0 }
 0x1b2   :  { %v1632_v47 = vmax.f32 %v1171_v44, 0.0  ;;  %v1173_v48 = vadd.f32 %v1172_v45, %v1084_v43 }
 0x1b4   :  { %1648 = vst [vmem:[%s2069_s3 + $0x60] sm:$0xff] %v1632_v47  ;;  %v1633_v49 = vmax.f32 %v1173_v48, 0.0 }
 0x1b6   :  { %1649 = vst [vmem:[%s2069_s3 + $0x68] sm:$0xff] %v1633_v49 }
 0x1d9   :  { %v1247_v52 = vpop.f32.mrf.mxu1 }
 0x1da   :  { %v1248_v15 = vadd.f32 %v1247_v52, %v721_v7 }
 0x1db   :  { %v1249_v53 = vpop.f32.mrf.mxu1 }
 0x1dc   :  { %v1250_v19 = vadd.f32 %v1249_v53, %v725_v10 }
 0x1de   :  { %v1253_v54 = vpop.f32.mrf.mxu1 }
 0x1df   :  { %v1254_v22 = vadd.f32 %v1253_v54, %v721_v7 }
 0x1e0   :  { %v1255_v56 = vpop.f32.mrf.mxu1 }
 0x1e1   :  { %v1256_v26 = vadd.f32 %v1255_v56, %v725_v10 }
 0x1e3   :  { %v1259_v57 = vpop.f32.mrf.mxu1 }
 0x1e4   :  { %v1260_v32 = vadd.f32 %v1259_v57, %v721_v7 }
 0x1e5   :  { %v1261_v58 = vpop.f32.mrf.mxu1 }
 0x1e6   :  { %v1262_v42 = vadd.f32 %v1261_v58, %v725_v10 }
 0x1e7   :  { %v1330_v59 = vpop.f32.mrf.mxu0 }
 0x1e8   :  { %v1331_v8 = vadd.f32 %v1330_v59, %v1242_v11 }
 0x1e9   :  { %v1419_v61 = vpop.f32.mrf.mxu1  ;;  %v1332_v62 = vpop.f32.mrf.mxu0 }
 0x1ea   :  { %v1333_v16 = vadd.f32 %v1332_v62, %v1244_v13  ;;  %v1420_v14 = vadd.f32 %v1419_v61, %v1331_v8 }
 0x1eb   :  { %v1421_v63 = vpop.f32.mrf.mxu1 }
 0x1ec   :  { %v1422_v23 = vadd.f32 %v1421_v63, %v1333_v16 }
 0x1ed   :  { %v1336_v46 = vpop.f32.mrf.mxu0 }
 0x1ee   :  { %v1337_v20 = vadd.f32 %v1336_v46, %v1248_v15 }
 0x1ef   :  { %v1338_v1 = vpop.f32.mrf.mxu0 }
 0x1f0   :  { %v1425_v0 = vpop.f32.mrf.mxu1  ;;  %v1339_v24 = vadd.f32 %v1338_v1, %v1250_v19 }
 0x1f1   :  { %v1426_v27 = vadd.f32 %v1425_v0, %v1337_v20 }
 0x1f2   :  { %v1427_v2 = vpop.f32.mrf.mxu1 }
 0x1f3   :  { %v1342_v4 = vpop.f32.mrf.mxu0  ;;  %v1428_v39 = vadd.f32 %v1427_v2, %v1339_v24 }
 0x1f4   :  { %v1343_v37 = vadd.f32 %v1342_v4, %v1254_v22 }
 0x1f5   :  { %v1344_v9 = vpop.f32.mrf.mxu0 }
 0x1f6   :  { %v1431_v5 = vpop.f32.mrf.mxu1  ;;  %v1345_v35 = vadd.f32 %v1344_v9, %v1256_v26 }
 0x1f7   :  { %v1432_v43 = vadd.f32 %v1431_v5, %v1343_v37 }
 0x1f8   :  { %v1433_v60 = vpop.f32.mrf.mxu1 }
 0x1f9   :  { %v1348_v3 = vpop.f32.mrf.mxu0  ;;  %v1434_v51 = vadd.f32 %v1433_v60, %v1345_v35 }
 0x1fa   :  { %v1349_v47 = vadd.f32 %v1348_v3, %v1260_v32 }
 0x1fb   :  { %v1350_v17 = vpop.f32.mrf.mxu0 }
 0x1fc   :  { %v1437_v12 = vpop.f32.mrf.mxu1  ;;  %v1351_v54 = vadd.f32 %v1350_v17, %v1262_v42 }
 0x1fd   :  { %v1438_v62 = vadd.f32 %v1437_v12, %v1349_v47 }
 0x1fe   :  { %v1439_v18 = vpop.f32.mrf.mxu1 }
 0x1ff   :  { %v1440_v55 = vadd.f32 %v1439_v18, %v1351_v54 }
 0x22f   :  { %v1508_v33 = vpop.f32.mrf.mxu0 }
 0x230   :  { %v1597_v21 = vpop.f32.mrf.mxu1  ;;  %v1509_v25 = vadd.f32 %v1508_v33, %v1420_v14 }
 0x231   :  { %v1510_v28 = vpop.f32.mrf.mxu0 }
 0x232   :  { %v1599_v29 = vpop.f32.mrf.mxu1  ;;  %v1598_v30 = vadd.f32 %v1597_v21, %v1509_v25  ;;  %v1511_v31 = vadd.f32 %v1510_v28, %v1422_v23 }
 0x233   :  { %v1514_v34 = vpop.f32.mrf.mxu0 }
 0x234   :  { %v1603_v36 = vpop.f32.mrf.mxu1  ;;  %v1622_v40 = vmax.f32 %v1598_v30, 0.0  ;;  %v1600_v41 = vadd.f32 %v1599_v29, %v1511_v31  ;;  %v1515_v38 = vadd.f32 %v1514_v34, %v1426_v27 }
 0x235   :  { %v1516_v44 = vpop.f32.mrf.mxu0 }
 0x236   :  { %v1605_v45 = vpop.f32.mrf.mxu1  ;;  %1638 = vst [vmem:[%s2069_s3 + $0x10] sm:$0xff] %v1622_v40  ;;  %v1623_v48 = vmax.f32 %v1600_v41, 0.0  ;;  %v1604_v49 = vadd.f32 %v1603_v36, %v1515_v38  ;;  %v1517_v50 = vadd.f32 %v1516_v44, %v1428_v39 }
 0x237   :  { %v1520_v52 = vpop.f32.mrf.mxu0 }
 0x238   :  { %v1609_v53 = vpop.f32.mrf.mxu1  ;;  %1639 = vst [vmem:[%s2069_s3 + $0x18] sm:$0xff] %v1623_v48  ;;  %v1626_v56 = vmax.f32 %v1604_v49, 0.0  ;;  %v1606_v57 = vadd.f32 %v1605_v45, %v1517_v50  ;;  %v1521_v58 = vadd.f32 %v1520_v52, %v1432_v43 }
 0x239   :  { %v1522_v59 = vpop.f32.mrf.mxu0 }
 0x23a   :  { %v1611_v61 = vpop.f32.mrf.mxu1  ;;  %1642 = vst [vmem:[%s2069_s3 + $0x30] sm:$0xff] %v1626_v56  ;;  %v1627_v63 = vmax.f32 %v1606_v57, 0.0  ;;  %v1610_v46 = vadd.f32 %v1609_v53, %v1521_v58  ;;  %v1523_v0 = vadd.f32 %v1522_v59, %v1434_v51 }
 0x23b   :  { %v1526_v1 = vpop.f32.mrf.mxu0 }
 0x23c   :  { %v1615_v2 = vpop.f32.mrf.mxu1  ;;  %1643 = vst [vmem:[%s2069_s3 + $0x38] sm:$0xff] %v1627_v63  ;;  %v1630_v4 = vmax.f32 %v1610_v46, 0.0  ;;  %v1612_v5 = vadd.f32 %v1611_v61, %v1523_v0  ;;  %v1527_v6 = vadd.f32 %v1526_v1, %v1438_v62 }
 0x23d   :  { %v1528_v7 = vpop.f32.mrf.mxu0 }
 0x23e   :  { %1646 = vst [vmem:[%s2069_s3 + $0x50] sm:$0xff] %v1630_v4  ;;  %v1631_v9 = vmax.f32 %v1612_v5, 0.0  ;;  %v1616_v60 = vadd.f32 %v1615_v2, %v1527_v6  ;;  %v1529_v10 = vadd.f32 %v1528_v7, %v1440_v55  ;;  %v1617_v11 = vpop.f32.mrf.mxu1 }
 0x240   :  { %1647 = vst [vmem:[%s2069_s3 + $0x58] sm:$0xff] %v1631_v9  ;;  %v1634_v3 = vmax.f32 %v1616_v60, 0.0  ;;  %v1618_v12 = vadd.f32 %v1617_v11, %v1529_v10 }
 0x242   :  { %1650 = vst [vmem:[%s2069_s3 + $0x70] sm:$0xff] %v1634_v3  ;;  %v1635_v13 = vmax.f32 %v1618_v12, 0.0 }
 0x244   :  { %1651 = vst [vmem:[%s2069_s3 + $0x78] sm:$0xff] %v1635_v13 }
 0x245   :  { %1656 = vsyncpa [#allocation3], 1 }

// kernel: hindi_asr_forward.8
= control target key start
LH: loop header
LB: loop body
LE: loop exit
PB: predicated region body
PF: predicated region fallthrough
CT: control target
= control target key end

     0   :  { %s3771_s0 = inlined_call_operand.vmem [shape: f32[32,512], index: 0, kind: input, shape index: {}]   ;;  %s3772_s1 = inlined_call_operand.vmem [shape: f32[8,1,512], index: 1, kind: input, shape index: {}]   ;;  %s3773_s2 = inlined_call_operand.vmem [shape: f32[8,1,512], index: 2, kind: input, shape index: {}]   ;;  %s3774_s3 = inlined_call_operand.vmem [shape: f32[8,512,512], index: 3, kind: input, shape index: {}]   ;;  %s3775_s4 = inlined_call_operand.vmem [shape: f32[8,1,512], index: 4, kind: input, shape index: {}]   ;;  %s3776_s5 = inlined_call_operand.hbm [shape: f32[8,512,512], index: 5, kind: input, shape index: {}]   ;;  %s3777_s6 = inlined_call_operand.vmem [shape: f32[8,1,512], index: 6, kind: input, shape index: {}]   ;;  %s3778_s7 = inlined_call_operand.vmem [shape: f32[32,512], index: 7, kind: output, shape index: {}]  }
   0x1   :  { %3780 = sst [smem:[#allocation7_spill]] %s3776_s5 }
   0x2   :  { %12 = vsyncpa [#allocation4], 0 }
   0x3   :  { %14 = vsyncpa [#allocation4 + $0x1], 0  ;;  %s2549_s24 = smov 0   ;;  %s2551_s25 = smov 0  }
   0x4   :  { %s2553_s26 = smov 0   ;;  %s2555_s27 = smov 0  }
   0x5   :  { %s2557_s28 = smov 0   ;;  %s2559_s29 = smov 0  }
   0x6 LB: > { %s2290_s30 = sadd.s32 4294967295, %s2504_s29   ;;  %s29_s8 = sadd.s32 1, %s2500_s28  ;;  %s2504_s29 = sphi %s2559_s29, %s20_s29   ;;  %s2500_s28 = sphi %s2557_s28, %s3791_s28   ;;  %s2496_s27 = sphi %s2555_s27, %s3790_s27   ;;  %s2492_s26 = sphi %s2553_s26, %s3789_s26   ;;  %s2488_s25 = sphi %s2551_s25, %s3788_s25   ;;  %s2484_s24 = sphi %s2549_s24, %s3787_s24  }
   0x7   : > { %p30_p0 = scmp.ge.s32.totalorder %s29_s8, 8  ;;  %s169_s9 = sadd.s32 1, %s2492_s26 }
   0x8   : > { %p176_p1 = scmp.ne.s32.totalorder %s2492_s26, %s2488_s25  ;;  %p177_p2 = scmp.eq.s32.totalorder %s2504_s29, 0 }
   0x9   : > { %s3793_s8 = smov (%p30_p0, %s29_s8), 0  ;;  %p182_p4 = scmp.ne.s32.totalorder %s2488_s25, %s2484_s24 }
   0xa   : > { %3781 = sst [smem:[#allocation6_spill]] %s3793_s8  ;;  %p2585_p3 = por %p177_p2, %p176_p1 }
   0xb   : > { %s166_s11 = ssub.s32 %s2500_s28, %s3793_s8  ;;  %p183_p5 = scmp.eq.s32.totalorder %s2290_s30, 0 }
   0xc   : > { %p167_p6 = scmp.eq.s32.totalorder %s166_s11, 0  ;;  %p2319_p8 = scmp.lt.s32.totalorder %s2504_s29, 8 }
   0xd   : > { %p2592_p7 = por %p183_p5, %p182_p4  ;;  %s297_s14 = sand.u32 1, %s2492_s26  }
   0xe   : > { %s2598_s13 = scalar_select %p167_p6, %s2492_s26, %s169_s9  }
   0xf   : > { %s2311_s15 = sshll.u32 %s2500_s28, 15  ;;  %s2294_s16 = sshll.u32 %s297_s14, 11 }
  0x10   : > { %s3784_s5 = sld [smem:[#allocation7_spill]]  ;;  %s301_s20 = scalar_lea.vmem [#allocation3], %s2294_s16 }
  0x11   : > { %s308_s21 = sshll.u32 %s301_s20, 4  ;;  %p2607_p9 = pnand %p2319_p8, %p2585_p3  ;;  %s309_s21 = int_to_ptr.vmem [resolvable:$true] %s308_s21 }
  0x12   : > { %s298_s23 = scalar_lea.sflag [#allocation4], %s297_s14  ;;  %s2439_s24 = scalar_lea.vmem %s309_s21, 32768 }
  0x13   : > { %p2428_p10 = pneg %p2607_p9  ;;  %p2440_p11 = scmp.ne.s32.totalorder %s309_s21, %s2439_s24 }
  0x14   : > { %s2506_s30 = smov [#allocation3]  }
  0x15   : > { %p2442_p12 = pnand %p2440_p11, %p2428_p10  ;;  %s2444_s9 = sshll.u32 %s2506_s30, 4  ;;  %s2445_s9 = int_to_ptr.vmem [resolvable:$false] %s2444_s9 }
  0x16   : > { %s307_s19 = scalar_lea.hbm %s3784_s5, %s2311_s15  ;;  %s2446_s11 = scalar_lea.vmem %s2445_s9, 65536 }
  0x17   : > { %p2443_p13 = pneg %p2442_p12  ;;  %p2447_p0 = scmp.lt.s32.totalorder %s309_s21, %s2445_s9 }
  0x18   : > { %p2448_p1 = scmp.lt.s32.totalorder %s2446_s11, %s2439_s24 }
  0x1a   : > { %p2449_p2 = por %p2448_p1, %p2447_p0 }
  0x1c   : > { %p2450_p3 = pnand %p2449_p2, %p2443_p13 }
  0x1e   : > { %2453 = shalt.err (!%p2450_p3)
}
  0x1f   : > { %s2507_s10 = smov 512   ;;  %s2508_s14 = smov 32  }
  0x20   : > { %2318 = dma.hbm_to_vmem [thread:$0]  (!%p2607_p9), %s307_s19, 32768, %s309_s21, %s298_s23, %s2507_s10, %s2507_s10, %s2508_s14  }
  0x21   : > { %p2297_p4 = scmp.ge.s32.totalorder %s2504_s29, 1  ;;  %p323_p5 = scmp.lt.s32.totalorder %s2504_s29, 9 }
  0x23   : > { %p324_p6 = pnand %p2297_p4, %p323_p5 }
  0x24   : > { %s329_s15 = sand.u32 (!%p324_p6), 1, %s2488_s25  }
  0x25   : > { %327 = sbr.rel (%p324_p6) target bundleno = 966 (0x3c6), region = 48  ;;  %s2298_s16 = sshll.u32 (!%p324_p6), %s329_s15, 11 }
  0x26   : > { %s330_s17 = scalar_lea.sflag (!%p324_p6), [#allocation4], %s329_s15  ;;  %s2618_s18 = scalar_lea.vmem (!%p324_p6), [#allocation3], %s2298_s16 }
  0x2a   : > { %2479 = dma.done.wait (%p2592_p7), %s330_s17, 32768  }
  0x2b   : > { %2481 = vsyncadd (%p2592_p7), %s330_s17, 4294934528  ;;  %p399_p8 = scmp.lt.s32.totalorder %s2496_s27, 7  ;;  %p2305_p7 = scmp.ne.s32.totalorder %s2496_s27, 0 }
  0x2d   : > { %s400_s19 = scalar_select %p399_p8, %s2496_s27, 7 }
  0x2e   : > { %430 = sbr.rel (%p2305_p7) target bundleno = 60 (0x3c), region = 56 }
  0x2f   : > { %s2626_s20 = sshll.u32 %s400_s19, 2  ;;  %s2312_s21 = sshll.u32 %s400_s19, 11 }
  0x30   : > { %s402_s24 = scalar_lea.vmem %s3772_s1, %s2626_s20  ;;  %s406_s12 = scalar_lea.vmem %s3773_s2, %s2626_s20 }
  0x31   : > { %s2639_s14 = scalar_lea.vmem %s3774_s3, %s2312_s21  ;;  %s415_s17 = scalar_lea.vmem %s3775_s4, %s2626_s20 }
  0x32   : > { %s419_s19 = scalar_lea.vmem %s3777_s6, %s2626_s20 }
  0x33   : > { %v431_v0 = vld [vmem:[%s3771_s0] sm:$0xff]  ;;  %v432_v1 = vld [vmem:[%s3771_s0 + $0x8] sm:$0xff]  ;;  %v433_v2 = vld [vmem:[%s3771_s0 + $0x10] sm:$0xff] }
  0x34   : > { %447 = vst [vmem:[#allocation2 + $0x30] sm:$0xff] %v431_v0  ;;  %448 = vst [vmem:[#allocation2] sm:$0xff] %v432_v1  ;;  %v434_v3 = vld [vmem:[%s3771_s0 + $0x18] sm:$0xff]  ;;  %v435_v4 = vld [vmem:[%s3771_s0 + $0x20] sm:$0xff] }
  0x35   : > { %449 = vst [vmem:[#allocation2 + $0x58] sm:$0xff] %v433_v2  ;;  %v436_v5 = vld [vmem:[%s3771_s0 + $0x28] sm:$0xff]  ;;  %450 = vst [vmem:[#allocation2 + $0x18] sm:$0xff] %v434_v3  ;;  %v437_v6 = vld [vmem:[%s3771_s0 + $0x30] sm:$0xff] }
  0x36   : > { %451 = vst [vmem:[#allocation2 + $0x50] sm:$0xff] %v435_v4  ;;  %452 = vst [vmem:[#allocation2 + $0x68] sm:$0xff] %v436_v5  ;;  %v438_v7 = vld [vmem:[%s3771_s0 + $0x38] sm:$0xff]  ;;  %v439_v8 = vld [vmem:[%s3771_s0 + $0x40] sm:$0xff] }
  0x37   : > { %453 = vst [vmem:[#allocation2 + $0x8] sm:$0xff] %v437_v6  ;;  %454 = vst [vmem:[#allocation2 + $0x48] sm:$0xff] %v438_v7  ;;  %v440_v9 = vld [vmem:[%s3771_s0 + $0x48] sm:$0xff]  ;;  %v441_v10 = vld [vmem:[%s3771_s0 + $0x50] sm:$0xff] }
  0x38   : > { %455 = vst [vmem:[#allocation2 + $0x40] sm:$0xff] %v439_v8  ;;  %v442_v11 = vld [vmem:[%s3771_s0 + $0x58] sm:$0xff]  ;;  %456 = vst [vmem:[#allocation2 + $0x20] sm:$0xff] %v440_v9  ;;  %v443_v12 = vld [vmem:[%s3771_s0 + $0x60] sm:$0xff] }
  0x39   : > { %457 = vst [vmem:[#allocation2 + $0x10] sm:$0xff] %v441_v10  ;;  %458 = vst [vmem:[#allocation2 + $0x38] sm:$0xff] %v442_v11  ;;  %v444_v13 = vld [vmem:[%s3771_s0 + $0x68] sm:$0xff]  ;;  %v445_v14 = vld [vmem:[%s3771_s0 + $0x70] sm:$0xff] }
  0x3a   : > { %459 = vst [vmem:[#allocation2 + $0x60] sm:$0xff] %v443_v12  ;;  %460 = vst [vmem:[#allocation2 + $0x70] sm:$0xff] %v444_v13  ;;  %v446_v15 = vld [vmem:[%s3771_s0 + $0x78] sm:$0xff] }
  0x3b   : > { %461 = vst [vmem:[#allocation2 + $0x78] sm:$0xff] %v445_v14  ;;  %462 = vst [vmem:[#allocation2 + $0x28] sm:$0xff] %v446_v15 }
  0x3c PF: > { %v2698_v16 = vld [vmem:[#allocation2 + $0x30] sm:$0xff]  ;;  %v2700_v17 = vld [vmem:[#allocation2] sm:$0xff]  ;;  %v2702_v18 = vld [vmem:[#allocation2 + $0x58] sm:$0xff]  ;;  %p2306_p9 = scmp.ne.s32.totalorder %s2496_s27, 7 }
  0x3d   : > { %v479_v19 = vadd.f32 %v2700_v17, %v2698_v16  ;;  %v2710_v22 = vld [vmem:[#allocation2 + $0x18] sm:$0xff]  ;;  %v2716_v25 = vld [vmem:[#allocation2 + $0x50] sm:$0xff]  ;;  %v2721_v28 = vld [vmem:[#allocation2 + $0x68] sm:$0xff] }
  0x3e   : > { %v2723_v29 = vld [vmem:[#allocation2 + $0x8] sm:$0xff]  ;;  %v484_v31 = vadd.f32 %v2721_v28, %v2716_v25  ;;  %v720_v46 = vld [vmem:[%s2639_s14 + $0x1e0] sm:$0xff] }
  0x3f   : > { %v2706_v20 = vld [vmem:[#allocation2 + $0x40] sm:$0xff]  ;;  %v480_v26 = vadd.f32 %v479_v19, %v2702_v18  ;;  %v2735_v36 = vld [vmem:[#allocation2 + $0x48] sm:$0xff] }
  0x40   : > { %v2708_v21 = vld [vmem:[#allocation2 + $0x20] sm:$0xff]  ;;  %v2712_v23 = vld [vmem:[#allocation2 + $0x10] sm:$0xff]  ;;  %v2719_v27 = vld [vmem:[#allocation2 + $0x38] sm:$0xff]  ;;  %v485_v39 = vadd.f32 %v484_v31, %v2723_v29 }
  0x41   : > { %v489_v24 = vadd.f32 %v2708_v21, %v2706_v20  ;;  %v2728_v32 = vld [vmem:[#allocation2 + $0x60] sm:$0xff]  ;;  %v2730_v33 = vld [vmem:[#allocation2 + $0x70] sm:$0xff]  ;;  %v481_v35 = vadd.f32 %v480_v26, %v2710_v22  ;;  %v721_v44 = vld [vmem:[%s2639_s14 + $0x1e8] sm:$0xff] }
  0x42   : > { %v2732_v34 = vld [vmem:[#allocation2 + $0x78] sm:$0xff]  ;;  %v494_v37 = vadd.f32 %v2730_v33, %v2728_v32  ;;  %v2741_v40 = vld [vmem:[#allocation2 + $0x28] sm:$0xff]  ;;  %v486_v42 = vadd.f32 %v485_v39, %v2735_v36  ;;  %938 = vmatprep.subr.mxu0 %v721_v44  ;;  %v848_v47 = vld [vmem:[%s2639_s14 + $0x5e0] sm:$0xff] }
  0x43   : > { %v490_v30 = vadd.f32 %v489_v24, %v2712_v23  ;;  %482 = vadd.xlane.f32.xlu0 %v481_v35  ;;  %v849_v45 = vld [vmem:[%s2639_s14 + $0x5e8] sm:$0xff]  ;;  %939 = vmatpush1.msra.mxu0 %v720_v46  ;;  %v716_v50 = vld [vmem:[%s2639_s14 + $0x1c0] sm:$0xff] }
  0x44   : > { %v495_v41 = vadd.f32 %v494_v37, %v2732_v34  ;;  %1027 = vmatprep.subr.mxu1 %v849_v45  ;;  %v717_v48 = vld [vmem:[%s2639_s14 + $0x1c8] sm:$0xff]  ;;  %v844_v51 = vld [vmem:[%s2639_s14 + $0x5c0] sm:$0xff] }
  0x45   : > { %v491_v38 = vadd.f32 %v490_v30, %v2719_v27  ;;  %v845_v49 = vld [vmem:[%s2639_s14 + $0x5c8] sm:$0xff]  ;;  %1028 = vmatpush1.msra.mxu1 %v848_v47  ;;  %940 = vmatprep.subr.mxu0 %v717_v48  ;;  %v712_v54 = vld [vmem:[%s2639_s14 + $0x1a0] sm:$0xff] }
  0x46   : > { %v496_v43 = vadd.f32 %v495_v41, %v2741_v40  ;;  %v713_v52 = vld [vmem:[%s2639_s14 + $0x1a8] sm:$0xff]  ;;  %1029 = vmatprep.subr.mxu1 %v845_v49  ;;  %v840_v55 = vld [vmem:[%s2639_s14 + $0x5a0] sm:$0xff]  ;;  %941 = vmatpush1.msra.mxu0 %v716_v50 }
  0x47   : > { %492 = vadd.xlane.f32.xlu1 %v491_v38  ;;  %487 = vadd.xlane.f32.xlu0 %v486_v42  ;;  %v841_v53 = vld [vmem:[%s2639_s14 + $0x5a8] sm:$0xff]  ;;  %v708_v58 = vld [vmem:[%s2639_s14 + $0x180] sm:$0xff] }
  0x48   : > { %1030 = vmatpush1.msra.mxu1 %v844_v51  ;;  %v709_v56 = vld [vmem:[%s2639_s14 + $0x188] sm:$0xff]  ;;  %942 = vmatprep.subr.mxu0 %v713_v52  ;;  %v836_v59 = vld [vmem:[%s2639_s14 + $0x580] sm:$0xff] }
  0x49   : > { %v837_v57 = vld [vmem:[%s2639_s14 + $0x588] sm:$0xff]  ;;  %1031 = vmatprep.subr.mxu1 %v841_v53  ;;  %943 = vmatpush1.msra.mxu0 %v712_v54  ;;  %v704_v62 = vld [vmem:[%s2639_s14 + $0x160] sm:$0xff] }
  0x4a   : > { %1032 = vmatpush1.msra.mxu1 %v840_v55  ;;  %v705_v60 = vld [vmem:[%s2639_s14 + $0x168] sm:$0xff]  ;;  %944 = vmatprep.subr.mxu0 %v709_v56  ;;  %v832_v63 = vld [vmem:[%s2639_s14 + $0x560] sm:$0xff] }
  0x4b   : > { %497 = vadd.xlane.f32.xlu1 %v496_v43  ;;  %v833_v61 = vld [vmem:[%s2639_s14 + $0x568] sm:$0xff]  ;;  %1033 = vmatprep.subr.mxu1 %v837_v57  ;;  %v700_v2 = vld [vmem:[%s2639_s14 + $0x140] sm:$0xff] }
  0x4c   : > { %945 = vmatpush1.msra.mxu0 %v708_v58  ;;  %1034 = vmatpush1.msra.mxu1 %v836_v59  ;;  %v701_v0 = vld [vmem:[%s2639_s14 + $0x148] sm:$0xff]  ;;  %v828_v3 = vld [vmem:[%s2639_s14 + $0x540] sm:$0xff] }
  0x4d   : > { %v829_v1 = vld [vmem:[%s2639_s14 + $0x548] sm:$0xff]  ;;  %946 = vmatprep.subr.mxu0 %v705_v60  ;;  %1035 = vmatprep.subr.mxu1 %v833_v61  ;;  %v696_v6 = vld [vmem:[%s2639_s14 + $0x120] sm:$0xff] }
  0x4e   : > { %947 = vmatpush1.msra.mxu0 %v704_v62  ;;  %1036 = vmatpush1.msra.mxu1 %v832_v63  ;;  %v697_v4 = vld [vmem:[%s2639_s14 + $0x128] sm:$0xff]  ;;  %v824_v7 = vld [vmem:[%s2639_s14 + $0x520] sm:$0xff] }
  0x4f   : > { %v825_v5 = vld [vmem:[%s2639_s14 + $0x528] sm:$0xff]  ;;  %948 = vmatprep.subr.mxu0 %v701_v0  ;;  %1037 = vmatprep.subr.mxu1 %v829_v1  ;;  %v692_v10 = vld [vmem:[%s2639_s14 + $0x100] sm:$0xff] }
  0x50   : > { %949 = vmatpush1.msra.mxu0 %v700_v2  ;;  %1038 = vmatpush1.msra.mxu1 %v828_v3  ;;  %v693_v8 = vld [vmem:[%s2639_s14 + $0x108] sm:$0xff]  ;;  %v820_v11 = vld [vmem:[%s2639_s14 + $0x500] sm:$0xff] }
  0x51   : > { %v821_v9 = vld [vmem:[%s2639_s14 + $0x508] sm:$0xff]  ;;  %950 = vmatprep.subr.mxu0 %v697_v4  ;;  %1039 = vmatprep.subr.mxu1 %v825_v5  ;;  %v688_v14 = vld [vmem:[%s2639_s14 + $0xe0] sm:$0xff] }
  0x52   : > { %951 = vmatpush1.msra.mxu0 %v696_v6  ;;  %1040 = vmatpush1.msra.mxu1 %v824_v7  ;;  %v689_v12 = vld [vmem:[%s2639_s14 + $0xe8] sm:$0xff]  ;;  %v816_v15 = vld [vmem:[%s2639_s14 + $0x4e0] sm:$0xff] }
  0x53   : > { %v817_v13 = vld [vmem:[%s2639_s14 + $0x4e8] sm:$0xff]  ;;  %952 = vmatprep.subr.mxu0 %v693_v8  ;;  %1041 = vmatprep.subr.mxu1 %v821_v9  ;;  %v684_v26 = vld [vmem:[%s2639_s14 + $0xc0] sm:$0xff] }
  0x54   : > { %953 = vmatpush1.msra.mxu0 %v692_v10  ;;  %1042 = vmatpush1.msra.mxu1 %v820_v11  ;;  %v685_v19 = vld [vmem:[%s2639_s14 + $0xc8] sm:$0xff]  ;;  %v812_v30 = vld [vmem:[%s2639_s14 + $0x4c0] sm:$0xff] }
  0x55   : > { %v813_v24 = vld [vmem:[%s2639_s14 + $0x4c8] sm:$0xff]  ;;  %954 = vmatprep.subr.mxu0 %v689_v12  ;;  %1043 = vmatprep.subr.mxu1 %v817_v13  ;;  %v680_v37 = vld [vmem:[%s2639_s14 + $0xa0] sm:$0xff] }
  0x56   : > { %955 = vmatpush1.msra.mxu0 %v688_v14  ;;  %1044 = vmatpush1.msra.mxu1 %v816_v15  ;;  %v681_v31 = vld [vmem:[%s2639_s14 + $0xa8] sm:$0xff]  ;;  %v808_v38 = vld [vmem:[%s2639_s14 + $0x4a0] sm:$0xff] }
  0x57   : > { %v809_v35 = vld [vmem:[%s2639_s14 + $0x4a8] sm:$0xff]  ;;  %956 = vmatprep.subr.mxu0 %v685_v19  ;;  %1045 = vmatprep.subr.mxu1 %v813_v24  ;;  %v676_v42 = vld [vmem:[%s2639_s14 + $0x80] sm:$0xff] }
  0x58   : > { %957 = vmatpush1.msra.mxu0 %v684_v26  ;;  %1046 = vmatpush1.msra.mxu1 %v812_v30  ;;  %v677_v39 = vld [vmem:[%s2639_s14 + $0x88] sm:$0xff]  ;;  %v804_v43 = vld [vmem:[%s2639_s14 + $0x480] sm:$0xff] }
  0x59   : > { %v805_v41 = vld [vmem:[%s2639_s14 + $0x488] sm:$0xff]  ;;  %958 = vmatprep.subr.mxu0 %v681_v31  ;;  %1047 = vmatprep.subr.mxu1 %v809_v35  ;;  %v672_v46 = vld [vmem:[%s2639_s14 + $0x60] sm:$0xff] }
  0x5a   : > { %959 = vmatpush1.msra.mxu0 %v680_v37  ;;  %1048 = vmatpush1.msra.mxu1 %v808_v38  ;;  %v673_v44 = vld [vmem:[%s2639_s14 + $0x68] sm:$0xff]  ;;  %v800_v47 = vld [vmem:[%s2639_s14 + $0x460] sm:$0xff] }
  0x5b   : > { %v801_v45 = vld [vmem:[%s2639_s14 + $0x468] sm:$0xff]  ;;  %960 = vmatprep.subr.mxu0 %v677_v39  ;;  %1049 = vmatprep.subr.mxu1 %v805_v41  ;;  %v668_v50 = vld [vmem:[%s2639_s14 + $0x40] sm:$0xff] }
  0x5c   : > { %961 = vmatpush1.msra.mxu0 %v676_v42  ;;  %1050 = vmatpush1.msra.mxu1 %v804_v43  ;;  %v669_v48 = vld [vmem:[%s2639_s14 + $0x48] sm:$0xff]  ;;  %v796_v51 = vld [vmem:[%s2639_s14 + $0x440] sm:$0xff] }
  0x5d   : > { %v797_v49 = vld [vmem:[%s2639_s14 + $0x448] sm:$0xff]  ;;  %962 = vmatprep.subr.mxu0 %v673_v44  ;;  %1051 = vmatprep.subr.mxu1 %v801_v45  ;;  %v664_v54 = vld [vmem:[%s2639_s14 + $0x20] sm:$0xff] }
  0x5e   : > { %963 = vmatpush1.msra.mxu0 %v672_v46  ;;  %1052 = vmatpush1.msra.mxu1 %v800_v47  ;;  %v665_v52 = vld [vmem:[%s2639_s14 + $0x28] sm:$0xff]  ;;  %v792_v55 = vld [vmem:[%s2639_s14 + $0x420] sm:$0xff] }
  0x5f   : > { %v793_v53 = vld [vmem:[%s2639_s14 + $0x428] sm:$0xff]  ;;  %964 = vmatprep.subr.mxu0 %v669_v48  ;;  %1053 = vmatprep.subr.mxu1 %v797_v49  ;;  %v660_v58 = vld [vmem:[%s2639_s14] sm:$0xff] }
  0x60   : > { %965 = vmatpush1.msra.mxu0 %v668_v50  ;;  %1054 = vmatpush1.msra.mxu1 %v796_v51  ;;  %v661_v56 = vld [vmem:[%s2639_s14 + $0x8] sm:$0xff]  ;;  %v788_v59 = vld [vmem:[%s2639_s14 + $0x400] sm:$0xff] }
  0x61   : > { %v789_v57 = vld [vmem:[%s2639_s14 + $0x408] sm:$0xff]  ;;  %966 = vmatprep.subr.mxu0 %v665_v52  ;;  %1055 = vmatprep.subr.mxu1 %v793_v53  ;;  %v784_v62 = vld [vmem:[%s2639_s14 + $0x3e0] sm:$0xff] }
  0x62   : > { %967 = vmatpush1.msra.mxu0 %v664_v54  ;;  %1056 = vmatpush1.msra.mxu1 %v792_v55  ;;  %v785_v60 = vld [vmem:[%s2639_s14 + $0x3e8] sm:$0xff]  ;;  %v912_v63 = vld [vmem:[%s2639_s14 + $0x7e0] sm:$0xff] }
  0x63   : > { %v913_v61 = vld [vmem:[%s2639_s14 + $0x7e8] sm:$0xff]  ;;  %968 = vmatprep.subr.mxu0 %v661_v56  ;;  %1057 = vmatprep.subr.mxu1 %v789_v57  ;;  %v780_v2 = vld [vmem:[%s2639_s14 + $0x3c0] sm:$0xff] }
  0x64   : > { %969 = vmatpush1.msra.mxu0 %v660_v58  ;;  %1058 = vmatpush1.msra.mxu1 %v788_v59  ;;  %v781_v0 = vld [vmem:[%s2639_s14 + $0x3c8] sm:$0xff]  ;;  %v908_v3 = vld [vmem:[%s2639_s14 + $0x7c0] sm:$0xff] }
  0x65   : > { %v909_v1 = vld [vmem:[%s2639_s14 + $0x7c8] sm:$0xff]  ;;  %970 = vmatprep.subr.mxu0 %v785_v60  ;;  %1059 = vmatprep.subr.mxu1 %v913_v61  ;;  %v776_v6 = vld [vmem:[%s2639_s14 + $0x3a0] sm:$0xff] }
  0x66   : > { %971 = vmatpush2.msra.mxu0 %v784_v62  ;;  %1060 = vmatpush2.msra.mxu1 %v912_v63  ;;  %v777_v4 = vld [vmem:[%s2639_s14 + $0x3a8] sm:$0xff]  ;;  %v904_v7 = vld [vmem:[%s2639_s14 + $0x7a0] sm:$0xff] }
  0x67   : > { %v905_v5 = vld [vmem:[%s2639_s14 + $0x7a8] sm:$0xff]  ;;  %972 = vmatprep.subr.mxu0 %v781_v0  ;;  %1061 = vmatprep.subr.mxu1 %v909_v1  ;;  %v772_v10 = vld [vmem:[%s2639_s14 + $0x380] sm:$0xff] }
  0x68   : > { %973 = vmatpush2.msra.mxu0 %v780_v2  ;;  %1062 = vmatpush2.msra.mxu1 %v908_v3  ;;  %v773_v8 = vld [vmem:[%s2639_s14 + $0x388] sm:$0xff]  ;;  %v900_v11 = vld [vmem:[%s2639_s14 + $0x780] sm:$0xff] }
  0x69   : > { %v901_v9 = vld [vmem:[%s2639_s14 + $0x788] sm:$0xff]  ;;  %974 = vmatprep.subr.mxu0 %v777_v4  ;;  %1063 = vmatprep.subr.mxu1 %v905_v5  ;;  %v768_v2 = vld [vmem:[%s2639_s14 + $0x360] sm:$0xff] }
  0x6a   : > { %975 = vmatpush2.msra.mxu0 %v776_v6  ;;  %1064 = vmatpush2.msra.mxu1 %v904_v7  ;;  %v769_v0 = vld [vmem:[%s2639_s14 + $0x368] sm:$0xff]  ;;  %v896_v3 = vld [vmem:[%s2639_s14 + $0x760] sm:$0xff] }
  0x6b   : > { %976 = vmatprep.subr.mxu0 %v773_v8  ;;  %1065 = vmatprep.subr.mxu1 %v901_v9  ;;  %v897_v1 = vld [vmem:[%s2639_s14 + $0x768] sm:$0xff]  ;;  %v764_v6 = vld [vmem:[%s2639_s14 + $0x340] sm:$0xff] }
  0x6c   : > { %977 = vmatpush2.msra.mxu0 %v772_v10  ;;  %1066 = vmatpush2.msra.mxu1 %v900_v11  ;;  %v765_v4 = vld [vmem:[%s2639_s14 + $0x348] sm:$0xff]  ;;  %v892_v7 = vld [vmem:[%s2639_s14 + $0x740] sm:$0xff] }
  0x6d   : > { %978 = vmatprep.subr.mxu0 %v769_v0  ;;  %1067 = vmatprep.subr.mxu1 %v897_v1  ;;  %v893_v5 = vld [vmem:[%s2639_s14 + $0x748] sm:$0xff]  ;;  %v760_v10 = vld [vmem:[%s2639_s14 + $0x320] sm:$0xff]  ;;  %v723_v0 = vld [vmem:[%s2639_s14 + $0x1f8] sm:$0xff] }
  0x6e   : > { %979 = vmatpush2.msra.mxu0 %v768_v2  ;;  %1068 = vmatpush2.msra.mxu1 %v896_v3  ;;  %v761_v8 = vld [vmem:[%s2639_s14 + $0x328] sm:$0xff]  ;;  %v888_v11 = vld [vmem:[%s2639_s14 + $0x720] sm:$0xff]  ;;  %v851_v1 = vld [vmem:[%s2639_s14 + $0x5f8] sm:$0xff] }
  0x6f   : > { %980 = vmatprep.subr.mxu0 %v765_v4  ;;  %1069 = vmatprep.subr.mxu1 %v893_v5  ;;  %v889_v9 = vld [vmem:[%s2639_s14 + $0x728] sm:$0xff] }
  0x70   : > { %981 = vmatpush2.msra.mxu0 %v764_v6  ;;  %1070 = vmatpush2.msra.mxu1 %v892_v7 }
  0x71   : > { %982 = vmatprep.subr.mxu0 %v761_v8  ;;  %1071 = vmatprep.subr.mxu1 %v889_v9  ;;  %v586_v8 = vlaneseq }
  0x72   : > { %983 = vmatpush2.msra.mxu0 %v760_v10  ;;  %1072 = vmatpush2.msra.mxu1 %v888_v11 }
  0xcc   : > { %v483_v12 = vpop.xlane.xlu0 %482 }
  0xcd   : > { %v500_v13 = vmul.f32 0.001953125, %v483_v12  ;;  %v757_v12 = vld [vmem:[%s2639_s14 + $0x308] sm:$0xff] }
  0xce   : > { %984 = vmatprep.subr.mxu0 %v757_v12 }
  0xcf   : > { %v2827_v19 = vsub.f32 %v2698_v16, %v500_v13  ;;  %v2830_v24 = vsub.f32 %v2700_v17, %v500_v13  ;;  %v2833_v26 = vsub.f32 %v2702_v18, %v500_v13  ;;  %v2836_v30 = vsub.f32 %v2710_v22, %v500_v13  ;;  %v885_v13 = vld [vmem:[%s2639_s14 + $0x708] sm:$0xff] }
  0xd0   : > { %v493_v14 = vpop.xlane.xlu1 %492  ;;  %v488_v37 = vpop.xlane.xlu0 %487  ;;  %1073 = vmatprep.subr.mxu1 %v885_v13  ;;  %v587_v13 = vshrl.u32 %v586_v8, 7  ;;  %v715_v8 = vld [vmem:[%s2639_s14 + $0x1b8] sm:$0xff] }
  0xd1   : > { %v502_v15 = vmul.f32 0.001953125, %v493_v14  ;;  %v501_v17 = vmul.f32 0.001953125, %v488_v37  ;;  %v520_v18 = vmul.f32 %v2827_v19, %v2827_v19  ;;  %v521_v22 = vmul.f32 %v2830_v24, %v2830_v24  ;;  %v756_v14 = vld [vmem:[%s2639_s14 + $0x300] sm:$0xff]  ;;  %v753_v37 = vld [vmem:[%s2639_s14 + $0x2e8] sm:$0xff] }
  0xd2   : > { %v523_v41 = vmul.f32 %v2836_v30, %v2836_v30  ;;  %985 = vmatpush2.msra.mxu0 %v756_v14 }
  0xd3   : > { %v2839_v31 = vsub.f32 %v2706_v20, %v502_v15  ;;  %v2842_v35 = vsub.f32 %v2708_v21, %v502_v15  ;;  %v2845_v38 = vsub.f32 %v2712_v23, %v502_v15  ;;  %v2848_v16 = vsub.f32 %v2719_v27, %v502_v15  ;;  %v884_v15 = vld [vmem:[%s2639_s14 + $0x700] sm:$0xff]  ;;  %986 = vmatprep.subr.mxu0 %v753_v37 }
  0xd4   : > { %v498_v39 = vpop.xlane.xlu1 %497  ;;  %v522_v20 = vmul.f32 %v2833_v26, %v2833_v26  ;;  %v2863_v42 = vsub.f32 %v2716_v25, %v501_v17  ;;  %v2866_v43 = vsub.f32 %v2721_v28, %v501_v17  ;;  %v536_v44 = vadd.f32 %v521_v22, %v520_v18  ;;  %1074 = vmatpush2.msra.mxu1 %v884_v15  ;;  %v880_v18 = vld [vmem:[%s2639_s14 + $0x6e0] sm:$0xff]  ;;  %v749_v22 = vld [vmem:[%s2639_s14 + $0x2c8] sm:$0xff] }
  0xd5   : > { %v503_v21 = vmul.f32 0.001953125, %v498_v39  ;;  %v528_v23 = vmul.f32 %v2839_v31, %v2839_v31  ;;  %v529_v27 = vmul.f32 %v2842_v35, %v2842_v35  ;;  %v530_v45 = vmul.f32 %v2845_v38, %v2845_v38  ;;  %v752_v39 = vld [vmem:[%s2639_s14 + $0x2e0] sm:$0xff] }
  0xd6   : > { %v531_v48 = vmul.f32 %v2848_v16, %v2848_v16  ;;  %v537_v50 = vadd.f32 %v536_v44, %v522_v20  ;;  %v2879_v25 = vsub.f32 %v2723_v29, %v501_v17  ;;  %v2882_v28 = vsub.f32 %v2735_v36, %v501_v17  ;;  %v881_v17 = vld [vmem:[%s2639_s14 + $0x6e8] sm:$0xff]  ;;  %987 = vmatpush2.msra.mxu0 %v752_v39  ;;  %v744_v44 = vld [vmem:[%s2639_s14 + $0x2a0] sm:$0xff] }
  0xd7   : > { %v2871_v46 = vsub.f32 %v2728_v32, %v503_v21  ;;  %v2874_v47 = vsub.f32 %v2730_v33, %v503_v21  ;;  %v546_v49 = vadd.f32 %v529_v27, %v528_v23  ;;  %v524_v51 = vmul.f32 %v2863_v42, %v2863_v42  ;;  %1075 = vmatprep.subr.mxu1 %v881_v17  ;;  %v877_v20 = vld [vmem:[%s2639_s14 + $0x6c8] sm:$0xff] }
  0xd8   : > { %v525_v32 = vmul.f32 %v2866_v43, %v2866_v43  ;;  %v2889_v33 = vsub.f32 %v2732_v34, %v503_v21  ;;  %v2892_v53 = vsub.f32 %v2741_v40, %v503_v21  ;;  %v538_v54 = vadd.f32 %v537_v50, %v523_v41  ;;  %1076 = vmatpush2.msra.mxu1 %v880_v18  ;;  %v748_v21 = vld [vmem:[%s2639_s14 + $0x2c0] sm:$0xff]  ;;  %v745_v23 = vld [vmem:[%s2639_s14 + $0x2a8] sm:$0xff] }
  0xd9   : > { %v547_v52 = vadd.f32 %v546_v49, %v530_v45  ;;  %v526_v29 = vmul.f32 %v2879_v25, %v2879_v25  ;;  %v532_v36 = vmul.f32 %v2871_v46, %v2871_v46  ;;  %v527_v55 = vmul.f32 %v2882_v28, %v2882_v28  ;;  %988 = vmatprep.subr.mxu0 %v749_v22  ;;  %v876_v41 = vld [vmem:[%s2639_s14 + $0x6c0] sm:$0xff]  ;;  %v873_v27 = vld [vmem:[%s2639_s14 + $0x6a8] sm:$0xff] }
  0xda   : > { %v541_v56 = vadd.f32 %v525_v32, %v524_v51  ;;  %v533_v34 = vmul.f32 %v2874_v47, %v2874_v47  ;;  %v534_v40 = vmul.f32 %v2889_v33, %v2889_v33  ;;  %539 = vadd.xlane.f32.xlu0 %v538_v54  ;;  %v535_v59 = vmul.f32 %v2892_v53, %v2892_v53  ;;  %v872_v45 = vld [vmem:[%s2639_s14 + $0x6a0] sm:$0xff]  ;;  %v869_v49 = vld [vmem:[%s2639_s14 + $0x688] sm:$0xff] }
  0xdb   : > { %v548_v57 = vadd.f32 %v547_v52, %v531_v48  ;;  %1077 = vmatprep.subr.mxu1 %v877_v20  ;;  %989 = vmatpush2.msra.mxu0 %v748_v21  ;;  %v741_v48 = vld [vmem:[%s2639_s14 + $0x288] sm:$0xff]  ;;  %v740_v50 = vld [vmem:[%s2639_s14 + $0x280] sm:$0xff]  ;;  %v2956_v37 = vsub.s32 1, %v587_v13  ;;  %v2958_v17 = vsub.s32 3, %v587_v13  ;;  %v2960_v39 = vsub.s32 0, %v587_v13 }
  0xdc   : > { %v542_v58 = vadd.f32 %v541_v56, %v526_v29  ;;  %v551_v60 = vadd.f32 %v533_v34, %v532_v36  ;;  %1078 = vmatpush2.msra.mxu1 %v876_v41  ;;  %990 = vmatprep.subr.mxu0 %v745_v23  ;;  %v868_v51 = vld [vmem:[%s2639_s14 + $0x680] sm:$0xff]  ;;  %v737_v52 = vld [vmem:[%s2639_s14 + $0x268] sm:$0xff]  ;;  %v2962_v18 = vsub.s32 2, %v587_v13  ;;  %v842_v13 = vld [vmem:[%s2639_s14 + $0x5b0] sm:$0xff] }
  0xdd   : > { %1079 = vmatprep.subr.mxu1 %v873_v27  ;;  %991 = vmatpush2.msra.mxu0 %v744_v44  ;;  %v865_v32 = vld [vmem:[%s2639_s14 + $0x668] sm:$0xff]  ;;  %v736_v54 = vld [vmem:[%s2639_s14 + $0x260] sm:$0xff] }
  0xde   : > { %v543_v61 = vadd.f32 %v542_v58, %v527_v55  ;;  %v552_v62 = vadd.f32 %v551_v60, %v534_v40  ;;  %549 = vadd.xlane.f32.xlu0 %v548_v57  ;;  %1080 = vmatpush2.msra.mxu1 %v872_v45  ;;  %v864_v29 = vld [vmem:[%s2639_s14 + $0x660] sm:$0xff]  ;;  %v733_v36 = vld [vmem:[%s2639_s14 + $0x248] sm:$0xff] }
  0xdf   : > { %992 = vmatprep.subr.mxu0 %v741_v48  ;;  %1081 = vmatprep.subr.mxu1 %v869_v49  ;;  %v861_v55 = vld [vmem:[%s2639_s14 + $0x648] sm:$0xff]  ;;  %v732_v56 = vld [vmem:[%s2639_s14 + $0x240] sm:$0xff] }
  0xe0   : > { %544 = vadd.xlane.f32.xlu1 %v543_v61  ;;  %v553_v63 = vadd.f32 %v552_v62, %v535_v59  ;;  %993 = vmatpush2.msra.mxu0 %v740_v50  ;;  %v860_v34 = vld [vmem:[%s2639_s14 + $0x640] sm:$0xff]  ;;  %v729_v40 = vld [vmem:[%s2639_s14 + $0x228] sm:$0xff] }
  0xe1   : > { %1082 = vmatpush2.msra.mxu1 %v868_v51  ;;  %994 = vmatprep.subr.mxu0 %v737_v52  ;;  %v857_v57 = vld [vmem:[%s2639_s14 + $0x628] sm:$0xff]  ;;  %v728_v58 = vld [vmem:[%s2639_s14 + $0x220] sm:$0xff] }
  0xe2   : > { %1083 = vmatprep.subr.mxu1 %v865_v32  ;;  %995 = vmatpush2.msra.mxu0 %v736_v54  ;;  %v856_v59 = vld [vmem:[%s2639_s14 + $0x620] sm:$0xff]  ;;  %v725_v60 = vld [vmem:[%s2639_s14 + $0x208] sm:$0xff] }
  0xe3   : > { %1084 = vmatpush2.msra.mxu1 %v864_v29  ;;  %996 = vmatprep.subr.mxu0 %v733_v36  ;;  %v853_v61 = vld [vmem:[%s2639_s14 + $0x608] sm:$0xff]  ;;  %v724_v62 = vld [vmem:[%s2639_s14 + $0x200] sm:$0xff] }
  0xe4   : > { %554 = vadd.xlane.f32.xlu1 %v553_v63  ;;  %1085 = vmatprep.subr.mxu1 %v861_v55  ;;  %v852_v63 = vld [vmem:[%s2639_s14 + $0x600] sm:$0xff] }
  0xe5   : > { %997 = vmatpush2.msra.mxu0 %v732_v56  ;;  %1086 = vmatpush2.msra.mxu1 %v860_v34  ;;  %v584_v22 = vld [vmem:[%s402_s24] sm:$0xf] }
  0xe6   : > { %998 = vmatprep.subr.mxu0 %v729_v40  ;;  %1087 = vmatprep.subr.mxu1 %v857_v57  ;;  %v622_v20 = vld [vmem:[%s406_s12] sm:$0xf]  ;;  %v2975_v21 = vrot.slane %v584_v22, %v2956_v37  ;;  %v2978_v41 = vrot.slane %v584_v22, %v2958_v17  ;;  %v2981_v23 = vrot.slane %v584_v22, %v2960_v39  ;;  %v722_v57 = vld [vmem:[%s2639_s14 + $0x1f0] sm:$0xff] }
  0xe7   : > { %999 = vmatpush2.msra.mxu0 %v728_v58  ;;  %1088 = vmatpush2.msra.mxu1 %v856_v59  ;;  %v2984_v27 = vrot.slane %v584_v22, %v2962_v18  ;;  %v2987_v45 = vrot.slane %v622_v20, %v2956_v37  ;;  %v2990_v48 = vrot.slane %v622_v20, %v2958_v17  ;;  %v850_v58 = vld [vmem:[%s2639_s14 + $0x5f0] sm:$0xff] }
  0xe8   : > { %1000 = vmatprep.subr.mxu0 %v725_v60  ;;  %1089 = vmatprep.subr.mxu1 %v853_v61  ;;  %v2993_v49 = vrot.slane %v622_v20, %v2960_v39  ;;  %v2996_v50 = vrot.slane %v622_v20, %v2962_v18 }
  0xe9   : > { %1001 = vmatpush2.msra.mxu0 %v724_v62  ;;  %1090 = vmatpush2.msra.mxu1 %v852_v63  ;;  %v719_v63 = vld [vmem:[%s2639_s14 + $0x1d8] sm:$0xff] }
  0xea   : > { %1116 = vmatprep.subr.mxu0 %v723_v0  ;;  %1205 = vmatprep.subr.mxu1 %v851_v1  ;;  %v847_v0 = vld [vmem:[%s2639_s14 + $0x5d8] sm:$0xff] }
 0x163   : > { %v540_v2 = vpop.xlane.xlu0 %539 }
 0x164   : > { %v556_v3 = vmul.f32 0.001953125, %v540_v2 }
 0x166   : > { %v560_v4 = vadd.f32 1e-05, %v556_v3 }
 0x167   : > { %v550_v5 = vpop.xlane.xlu0 %549 }
 0x168   : > { %2370 = vrsqrt.f32 %v560_v4  ;;  %v558_v7 = vmul.f32 0.001953125, %v550_v5 }
 0x169   : > { %v545_v6 = vpop.xlane.xlu1 %544 }
 0x16a   : > { %v557_v9 = vmul.f32 0.001953125, %v545_v6  ;;  %v562_v10 = vadd.f32 1e-05, %v558_v7 }
 0x16c   : > { %v561_v11 = vadd.f32 1e-05, %v557_v9  ;;  %2372 = vrsqrt.f32 %v562_v10  ;;  %v843_v9 = vld [vmem:[%s2639_s14 + $0x5b8] sm:$0xff] }
 0x16d   : > { %v555_v12 = vpop.xlane.xlu1 %554 }
 0x16e   : > { %2374 = vrsqrt.f32 %v561_v11  ;;  %v559_v14 = vmul.f32 0.001953125, %v555_v12  ;;  %v714_v12 = vld [vmem:[%s2639_s14 + $0x1b0] sm:$0xff] }
 0x170   : > { %v563_v15 = vadd.f32 1e-05, %v559_v14 }
 0x172   : > { %2376 = vrsqrt.f32 %v563_v15 }
 0x175   : > { %v2371_v44 = vpop.eup %2370 }
 0x176   : > { %v569_v51 = vmul.f32 %v2371_v44, %v2830_v24  ;;  %v571_v52 = vmul.f32 %v2371_v44, %v2836_v30  ;;  %v568_v32 = vmul.f32 %v2371_v44, %v2827_v19  ;;  %v570_v54 = vmul.f32 %v2371_v44, %v2833_v26 }
 0x178   : > { %v607_v29 = vmul.f32 %v2975_v21, %v569_v51  ;;  %v609_v36 = vmul.f32 %v2978_v41, %v571_v52  ;;  %v606_v55 = vmul.f32 %v2981_v23, %v568_v32  ;;  %v608_v56 = vmul.f32 %v2984_v27, %v570_v54  ;;  %v839_v51 = vld [vmem:[%s2639_s14 + $0x598] sm:$0xff]  ;;  %v710_v32 = vld [vmem:[%s2639_s14 + $0x190] sm:$0xff] }
 0x179   : > { %v2373_v34 = vpop.eup %2372  ;;  %v838_v54 = vld [vmem:[%s2639_s14 + $0x590] sm:$0xff] }
 0x17a   : > { %v3007_v24 = vadd.f32 %v2987_v45, %v607_v29  ;;  %v3010_v30 = vadd.f32 %v2990_v48, %v609_v36  ;;  %v3013_v19 = vadd.f32 %v2993_v49, %v606_v55  ;;  %v3016_v26 = vadd.f32 %v2996_v50, %v608_v56  ;;  %v707_v29 = vld [vmem:[%s2639_s14 + $0x178] sm:$0xff] }
 0x17b   : > { %v2375_v40 = vpop.eup %2374  ;;  %v577_v1 = vmul.f32 %v2373_v34, %v2842_v35  ;;  %v579_v2 = vmul.f32 %v2373_v34, %v2848_v16  ;;  %v576_v3 = vmul.f32 %v2373_v34, %v2839_v31  ;;  %v578_v14 = vmul.f32 %v2373_v34, %v2845_v38  ;;  %v711_v38 = vld [vmem:[%s2639_s14 + $0x198] sm:$0xff] }
 0x17c   : > { %v573_v59 = vmul.f32 %v2375_v40, %v2866_v43  ;;  %v575_v60 = vmul.f32 %v2375_v40, %v2882_v28  ;;  %v572_v61 = vmul.f32 %v2375_v40, %v2863_v42  ;;  %v574_v62 = vmul.f32 %v2375_v40, %v2879_v25  ;;  %1002 = vmatprep.mubr.f32.mxu0 %v3007_v24  ;;  %v718_v42 = vld [vmem:[%s2639_s14 + $0x1d0] sm:$0xff]  ;;  %v835_v36 = vld [vmem:[%s2639_s14 + $0x578] sm:$0xff] }
 0x17d   : > { %1091 = vmatprep.mubr.f32.mxu1 %v3010_v30  ;;  %1003 = vmatmul.mubr.f32.vlgmr.msra.gmra.mxu0 %v3013_v19  ;;  %v846_v43 = vld [vmem:[%s2639_s14 + $0x5d0] sm:$0xff]  ;;  %v615_v35 = vmul.f32 %v2975_v21, %v577_v1  ;;  %v617_v16 = vmul.f32 %v2978_v41, %v579_v2  ;;  %v616_v52 = vmul.f32 %v2984_v27, %v578_v14  ;;  %v695_v2 = vld [vmem:[%s2639_s14 + $0x118] sm:$0xff] }
 0x17e   : > { %1092 = vmatmul.mubr.f32.vlgmr.msra.gmra.mxu1 %v3016_v26  ;;  %v611_v25 = vmul.f32 %v2975_v21, %v573_v59  ;;  %v613_v28 = vmul.f32 %v2978_v41, %v575_v60  ;;  %v610_v4 = vmul.f32 %v2981_v23, %v572_v61  ;;  %1117 = vmatpush1.msra.mxu0 %v722_v57  ;;  %v706_v57 = vld [vmem:[%s2639_s14 + $0x170] sm:$0xff]  ;;  %v703_v59 = vld [vmem:[%s2639_s14 + $0x158] sm:$0xff] }
 0x17f   : > { %v2377_v5 = vpop.eup %2376  ;;  %1206 = vmatpush1.msra.mxu1 %v850_v58  ;;  %v612_v31 = vmul.f32 %v2984_v27, %v574_v62  ;;  %1118 = vmatprep.subr.mxu0 %v719_v63  ;;  %v3062_v22 = vadd.f32 %v2987_v45, %v615_v35  ;;  %v3068_v44 = vadd.f32 %v2990_v48, %v617_v16  ;;  %v831_v60 = vld [vmem:[%s2639_s14 + $0x558] sm:$0xff]  ;;  %v702_v62 = vld [vmem:[%s2639_s14 + $0x150] sm:$0xff] }
 0x180   : > { %1207 = vmatprep.subr.mxu1 %v847_v0  ;;  %v3042_v6 = vadd.f32 %v2987_v45, %v611_v25  ;;  %v3045_v7 = vadd.f32 %v2990_v48, %v613_v28  ;;  %v3050_v10 = vadd.f32 %v2993_v49, %v610_v4  ;;  %1119 = vmatpush1.msra.mxu0 %v718_v42  ;;  %v827_v63 = vld [vmem:[%s2639_s14 + $0x538] sm:$0xff]  ;;  %v698_v0 = vld [vmem:[%s2639_s14 + $0x130] sm:$0xff] }
 0x181   : > { %1208 = vmatpush1.msra.mxu1 %v846_v43  ;;  %v3053_v11 = vadd.f32 %v2996_v50, %v612_v31  ;;  %v581_v15 = vmul.f32 %v2377_v5, %v2874_v47  ;;  %1120 = vmatprep.subr.mxu0 %v715_v8  ;;  %v583_v20 = vmul.f32 %v2377_v5, %v2892_v53  ;;  %v826_v1 = vld [vmem:[%s2639_s14 + $0x530] sm:$0xff]  ;;  %v691_v42 = vld [vmem:[%s2639_s14 + $0xf8] sm:$0xff] }
 0x182   : > { %1008 = vmatprep.mubr.f32.mxu0 %v3042_v6  ;;  %1097 = vmatprep.mubr.f32.mxu1 %v3045_v7  ;;  %v614_v47 = vmul.f32 %v2981_v23, %v576_v3  ;;  %v580_v53 = vmul.f32 %v2377_v5, %v2871_v46  ;;  %v582_v34 = vmul.f32 %v2377_v5, %v2889_v33  ;;  %v823_v3 = vld [vmem:[%s2639_s14 + $0x518] sm:$0xff]  ;;  %v690_v25 = vld [vmem:[%s2639_s14 + $0xf0] sm:$0xff] }
 0x183   : > { %1209 = vmatprep.subr.mxu1 %v843_v9  ;;  %1009 = vmatmul.mubr.f32.gmra.mxu0 %v3050_v10  ;;  %v619_v55 = vmul.f32 %v2975_v21, %v581_v15  ;;  %v621_v56 = vmul.f32 %v2978_v41, %v583_v20  ;;  %v3088_v40 = vadd.f32 %v2996_v50, %v616_v52  ;;  %v834_v21 = vld [vmem:[%s2639_s14 + $0x570] sm:$0xff]  ;;  %v819_v43 = vld [vmem:[%s2639_s14 + $0x4f8] sm:$0xff] }
 0x184   : > { %1098 = vmatmul.mubr.f32.gmra.mxu1 %v3053_v11  ;;  %1121 = vmatpush1.msra.mxu0 %v714_v12  ;;  %v3085_v46 = vadd.f32 %v2993_v49, %v614_v47  ;;  %v618_v33 = vmul.f32 %v2981_v23, %v580_v53  ;;  %v620_v61 = vmul.f32 %v2984_v27, %v582_v34  ;;  %v830_v23 = vld [vmem:[%s2639_s14 + $0x550] sm:$0xff]  ;;  %v687_v4 = vld [vmem:[%s2639_s14 + $0xd8] sm:$0xff] }
 0x185   : > { %1210 = vmatpush1.msra.mxu1 %v842_v13  ;;  %1014 = vmatprep.mubr.f32.mxu0 %v3062_v22  ;;  %v3096_v41 = vadd.f32 %v2987_v45, %v619_v55  ;;  %v3099_v58 = vadd.f32 %v2990_v48, %v621_v56  ;;  %v699_v45 = vld [vmem:[%s2639_s14 + $0x138] sm:$0xff]  ;;  %v818_v28 = vld [vmem:[%s2639_s14 + $0x4f0] sm:$0xff] }
 0x186   : > { %1103 = vmatprep.mubr.f32.mxu1 %v3068_v44  ;;  %1122 = vmatprep.subr.mxu0 %v711_v38  ;;  %v3111_v27 = vadd.f32 %v2993_v49, %v618_v33  ;;  %v3114_v48 = vadd.f32 %v2996_v50, %v620_v61  ;;  %v694_v49 = vld [vmem:[%s2639_s14 + $0x110] sm:$0xff]  ;;  %v815_v5 = vld [vmem:[%s2639_s14 + $0x4d8] sm:$0xff] }
 0x187   : > { %1211 = vmatprep.subr.mxu1 %v839_v51  ;;  %1123 = vmatpush1.msra.mxu0 %v710_v32  ;;  %v822_v50 = vld [vmem:[%s2639_s14 + $0x510] sm:$0xff]  ;;  %v683_v35 = vld [vmem:[%s2639_s14 + $0xb8] sm:$0xff] }
 0x188   : > { %1212 = vmatpush1.msra.mxu1 %v838_v54  ;;  %1124 = vmatprep.subr.mxu0 %v707_v29  ;;  %v814_v31 = vld [vmem:[%s2639_s14 + $0x4d0] sm:$0xff]  ;;  %v679_v9 = vld [vmem:[%s2639_s14 + $0x98] sm:$0xff] }
 0x189   : > { %1213 = vmatprep.subr.mxu1 %v835_v36  ;;  %1015 = vmatmul.mubr.f32.gmra.mxu0 %v3085_v46  ;;  %v682_v16 = vld [vmem:[%s2639_s14 + $0xb0] sm:$0xff]  ;;  %v807_v12 = vld [vmem:[%s2639_s14 + $0x498] sm:$0xff] }
 0x18a   : > { %1104 = vmatmul.mubr.f32.gmra.mxu1 %v3088_v40  ;;  %1125 = vmatpush1.msra.mxu0 %v706_v57  ;;  %v810_v8 = vld [vmem:[%s2639_s14 + $0x4b0] sm:$0xff]  ;;  %v675_v15 = vld [vmem:[%s2639_s14 + $0x78] sm:$0xff] }
 0x18b   : > { %1214 = vmatpush1.msra.mxu1 %v834_v21  ;;  %1020 = vmatprep.mubr.f32.mxu0 %v3096_v41  ;;  %v678_v13 = vld [vmem:[%s2639_s14 + $0x90] sm:$0xff]  ;;  %v803_v20 = vld [vmem:[%s2639_s14 + $0x478] sm:$0xff] }
 0x18c   : > { %1109 = vmatprep.mubr.f32.mxu1 %v3099_v58  ;;  %1126 = vmatprep.subr.mxu0 %v703_v59  ;;  %v806_v14 = vld [vmem:[%s2639_s14 + $0x490] sm:$0xff]  ;;  %v671_v47 = vld [vmem:[%s2639_s14 + $0x58] sm:$0xff] }
 0x18d   : > { %1215 = vmatprep.subr.mxu1 %v831_v60  ;;  %1127 = vmatpush1.msra.mxu0 %v702_v62  ;;  %v674_v38 = vld [vmem:[%s2639_s14 + $0x70] sm:$0xff]  ;;  %v799_v52 = vld [vmem:[%s2639_s14 + $0x458] sm:$0xff] }
 0x18e   : > { %1216 = vmatpush1.msra.mxu1 %v830_v23  ;;  %1128 = vmatprep.subr.mxu0 %v699_v45  ;;  %v802_v51 = vld [vmem:[%s2639_s14 + $0x470] sm:$0xff]  ;;  %v667_v53 = vld [vmem:[%s2639_s14 + $0x38] sm:$0xff] }
 0x18f   : > { %1217 = vmatprep.subr.mxu1 %v827_v63  ;;  %1021 = vmatmul.mubr.f32.gmra.mxu0 %v3111_v27  ;;  %v670_v32 = vld [vmem:[%s2639_s14 + $0x50] sm:$0xff]  ;;  %v795_v29 = vld [vmem:[%s2639_s14 + $0x438] sm:$0xff] }
 0x190   : > { %1110 = vmatmul.mubr.f32.gmra.mxu1 %v3114_v48  ;;  %1129 = vmatpush1.msra.mxu0 %v698_v0  ;;  %v798_v54 = vld [vmem:[%s2639_s14 + $0x450] sm:$0xff]  ;;  %v663_v56 = vld [vmem:[%s2639_s14 + $0x18] sm:$0xff] }
 0x191   : > { %1218 = vmatpush1.msra.mxu1 %v826_v1  ;;  %1130 = vmatprep.subr.mxu0 %v695_v2  ;;  %v666_v36 = vld [vmem:[%s2639_s14 + $0x30] sm:$0xff]  ;;  %v791_v34 = vld [vmem:[%s2639_s14 + $0x418] sm:$0xff] }
 0x192   : > { %1180 = vmatprep.mubr.f32.mxu0 %v3007_v24  ;;  %1219 = vmatprep.subr.mxu1 %v823_v3  ;;  %v686_v24 = vld [vmem:[%s2639_s14 + $0xd0] sm:$0xff]  ;;  %v787_v33 = vld [vmem:[%s2639_s14 + $0x3f8] sm:$0xff] }
 0x193   : > { %1269 = vmatprep.mubr.f32.mxu1 %v3010_v30  ;;  %1131 = vmatpush1.msra.mxu0 %v694_v49  ;;  %v811_v30 = vld [vmem:[%s2639_s14 + $0x4b8] sm:$0xff]  ;;  %v794_v55 = vld [vmem:[%s2639_s14 + $0x430] sm:$0xff] }
 0x194   : > { %1220 = vmatpush1.msra.mxu1 %v822_v50  ;;  %1132 = vmatprep.subr.mxu0 %v691_v42  ;;  %v662_v57 = vld [vmem:[%s2639_s14 + $0x10] sm:$0xff]  ;;  %v915_v59 = vld [vmem:[%s2639_s14 + $0x7f8] sm:$0xff] }
 0x195   : > { %1221 = vmatprep.subr.mxu1 %v819_v43  ;;  %1133 = vmatpush1.msra.mxu0 %v690_v25  ;;  %v790_v21 = vld [vmem:[%s2639_s14 + $0x410] sm:$0xff]  ;;  %v783_v62 = vld [vmem:[%s2639_s14 + $0x3d8] sm:$0xff] }
 0x196   : > { %1222 = vmatpush1.msra.mxu1 %v818_v28  ;;  %1134 = vmatprep.subr.mxu0 %v687_v4  ;;  %v786_v60 = vld [vmem:[%s2639_s14 + $0x3f0] sm:$0xff]  ;;  %v911_v23 = vld [vmem:[%s2639_s14 + $0x7d8] sm:$0xff] }
 0x197   : > { %1223 = vmatprep.subr.mxu1 %v815_v5  ;;  %1135 = vmatpush1.msra.mxu0 %v686_v24  ;;  %v914_v61 = vld [vmem:[%s2639_s14 + $0x7f0] sm:$0xff]  ;;  %v779_v0 = vld [vmem:[%s2639_s14 + $0x3b8] sm:$0xff] }
 0x198   : > { %1224 = vmatpush1.msra.mxu1 %v814_v31  ;;  %1136 = vmatprep.subr.mxu0 %v683_v35  ;;  %v782_v45 = vld [vmem:[%s2639_s14 + $0x3d0] sm:$0xff]  ;;  %v907_v1 = vld [vmem:[%s2639_s14 + $0x7b8] sm:$0xff] }
 0x199   : > { %1225 = vmatprep.subr.mxu1 %v811_v30  ;;  %1137 = vmatpush1.msra.mxu0 %v682_v16  ;;  %v910_v63 = vld [vmem:[%s2639_s14 + $0x7d0] sm:$0xff]  ;;  %v775_v49 = vld [vmem:[%s2639_s14 + $0x398] sm:$0xff] }
 0x19a   : > { %1226 = vmatpush1.msra.mxu1 %v810_v8  ;;  %1138 = vmatprep.subr.mxu0 %v679_v9  ;;  %v778_v2 = vld [vmem:[%s2639_s14 + $0x3b0] sm:$0xff]  ;;  %v903_v50 = vld [vmem:[%s2639_s14 + $0x798] sm:$0xff] }
 0x19b   : > { %1227 = vmatprep.subr.mxu1 %v807_v12  ;;  %1139 = vmatpush1.msra.mxu0 %v678_v13  ;;  %v906_v3 = vld [vmem:[%s2639_s14 + $0x7b0] sm:$0xff]  ;;  %v771_v25 = vld [vmem:[%s2639_s14 + $0x378] sm:$0xff] }
 0x19c   : > { %1228 = vmatpush1.msra.mxu1 %v806_v14  ;;  %1140 = vmatprep.subr.mxu0 %v675_v15  ;;  %v774_v42 = vld [vmem:[%s2639_s14 + $0x390] sm:$0xff]  ;;  %v899_v28 = vld [vmem:[%s2639_s14 + $0x778] sm:$0xff] }
 0x19d   : > { %1229 = vmatprep.subr.mxu1 %v803_v20  ;;  %1141 = vmatpush1.msra.mxu0 %v674_v38  ;;  %v902_v43 = vld [vmem:[%s2639_s14 + $0x790] sm:$0xff]  ;;  %v767_v24 = vld [vmem:[%s2639_s14 + $0x358] sm:$0xff] }
 0x19e   : > { %1230 = vmatpush1.msra.mxu1 %v802_v51  ;;  %1142 = vmatprep.subr.mxu0 %v671_v47  ;;  %v770_v4 = vld [vmem:[%s2639_s14 + $0x370] sm:$0xff]  ;;  %v895_v31 = vld [vmem:[%s2639_s14 + $0x758] sm:$0xff] }
 0x19f   : > { %1231 = vmatprep.subr.mxu1 %v799_v52  ;;  %1143 = vmatpush1.msra.mxu0 %v670_v32  ;;  %v898_v5 = vld [vmem:[%s2639_s14 + $0x770] sm:$0xff]  ;;  %v763_v16 = vld [vmem:[%s2639_s14 + $0x338] sm:$0xff] }
 0x1a0   : > { %1232 = vmatpush1.msra.mxu1 %v798_v54  ;;  %1144 = vmatprep.subr.mxu0 %v667_v53  ;;  %v766_v35 = vld [vmem:[%s2639_s14 + $0x350] sm:$0xff]  ;;  %v891_v8 = vld [vmem:[%s2639_s14 + $0x738] sm:$0xff] }
 0x1a1   : > { %1233 = vmatprep.subr.mxu1 %v795_v29  ;;  %1145 = vmatpush1.msra.mxu0 %v666_v36  ;;  %v894_v30 = vld [vmem:[%s2639_s14 + $0x750] sm:$0xff]  ;;  %v759_v13 = vld [vmem:[%s2639_s14 + $0x318] sm:$0xff] }
 0x1a2   : > { %1234 = vmatpush1.msra.mxu1 %v794_v55  ;;  %1146 = vmatprep.subr.mxu0 %v663_v56  ;;  %v762_v9 = vld [vmem:[%s2639_s14 + $0x330] sm:$0xff]  ;;  %v887_v14 = vld [vmem:[%s2639_s14 + $0x718] sm:$0xff] }
 0x1a3   : > { %1235 = vmatprep.subr.mxu1 %v791_v34  ;;  %1147 = vmatpush1.msra.mxu0 %v662_v57  ;;  %v890_v12 = vld [vmem:[%s2639_s14 + $0x730] sm:$0xff]  ;;  %v755_v38 = vld [vmem:[%s2639_s14 + $0x2f8] sm:$0xff] }
 0x1a4   : > { %1236 = vmatpush1.msra.mxu1 %v790_v21  ;;  %1148 = vmatprep.subr.mxu0 %v787_v33  ;;  %v758_v15 = vld [vmem:[%s2639_s14 + $0x310] sm:$0xff]  ;;  %v883_v51 = vld [vmem:[%s2639_s14 + $0x6f8] sm:$0xff] }
 0x1a5   : > { %1237 = vmatprep.subr.mxu1 %v915_v59  ;;  %1149 = vmatpush2.msra.mxu0 %v786_v60  ;;  %v886_v20 = vld [vmem:[%s2639_s14 + $0x710] sm:$0xff]  ;;  %v751_v32 = vld [vmem:[%s2639_s14 + $0x2d8] sm:$0xff] }
 0x1a6   : > { %1238 = vmatpush2.msra.mxu1 %v914_v61  ;;  %1150 = vmatprep.subr.mxu0 %v783_v62  ;;  %v754_v47 = vld [vmem:[%s2639_s14 + $0x2f0] sm:$0xff]  ;;  %v879_v54 = vld [vmem:[%s2639_s14 + $0x6d8] sm:$0xff] }
 0x1a7   : > { %1239 = vmatprep.subr.mxu1 %v911_v23  ;;  %1151 = vmatpush2.msra.mxu0 %v782_v45  ;;  %v882_v52 = vld [vmem:[%s2639_s14 + $0x6f0] sm:$0xff]  ;;  %v747_v36 = vld [vmem:[%s2639_s14 + $0x2b8] sm:$0xff] }
 0x1a8   : > { %1240 = vmatpush2.msra.mxu1 %v910_v63  ;;  %1152 = vmatprep.subr.mxu0 %v779_v0  ;;  %v750_v53 = vld [vmem:[%s2639_s14 + $0x2d0] sm:$0xff]  ;;  %v875_v55 = vld [vmem:[%s2639_s14 + $0x6b8] sm:$0xff] }
 0x1a9   : > { %1241 = vmatprep.subr.mxu1 %v907_v1  ;;  %1153 = vmatpush2.msra.mxu0 %v778_v2  ;;  %v878_v29 = vld [vmem:[%s2639_s14 + $0x6d0] sm:$0xff]  ;;  %v743_v57 = vld [vmem:[%s2639_s14 + $0x298] sm:$0xff] }
 0x1aa   : > { %1242 = vmatpush2.msra.mxu1 %v906_v3  ;;  %1154 = vmatprep.subr.mxu0 %v775_v49  ;;  %v746_v56 = vld [vmem:[%s2639_s14 + $0x2b0] sm:$0xff]  ;;  %v871_v21 = vld [vmem:[%s2639_s14 + $0x698] sm:$0xff] }
 0x1ab   : > { %1243 = vmatprep.subr.mxu1 %v903_v50  ;;  %1155 = vmatpush2.msra.mxu0 %v774_v42  ;;  %v874_v34 = vld [vmem:[%s2639_s14 + $0x6b0] sm:$0xff]  ;;  %v739_v60 = vld [vmem:[%s2639_s14 + $0x278] sm:$0xff] }
 0x1ac   : > { %1244 = vmatpush2.msra.mxu1 %v902_v43  ;;  %1156 = vmatprep.subr.mxu0 %v771_v25  ;;  %v742_v33 = vld [vmem:[%s2639_s14 + $0x290] sm:$0xff]  ;;  %v867_v61 = vld [vmem:[%s2639_s14 + $0x678] sm:$0xff] }
 0x1ad   : > { %1245 = vmatprep.subr.mxu1 %v899_v28  ;;  %1157 = vmatpush2.msra.mxu0 %v770_v4  ;;  %v870_v59 = vld [vmem:[%s2639_s14 + $0x690] sm:$0xff]  ;;  %v735_v45 = vld [vmem:[%s2639_s14 + $0x258] sm:$0xff]  ;;  %v1499_v4 = vld [vmem:[%s2618_s18 + $0x1e8] sm:$0xff] }
 0x1ae   : > { %1246 = vmatpush2.msra.mxu1 %v898_v5  ;;  %1158 = vmatprep.subr.mxu0 %v767_v24  ;;  %v738_v62 = vld [vmem:[%s2639_s14 + $0x270] sm:$0xff]  ;;  %v863_v63 = vld [vmem:[%s2639_s14 + $0x658] sm:$0xff]  ;;  %v1498_v5 = vld [vmem:[%s2618_s18 + $0x1e0] sm:$0xff] }
 0x1af   : > { %1247 = vmatprep.subr.mxu1 %v895_v31  ;;  %1159 = vmatpush2.msra.mxu0 %v766_v35  ;;  %v866_v23 = vld [vmem:[%s2639_s14 + $0x670] sm:$0xff]  ;;  %v731_v2 = vld [vmem:[%s2639_s14 + $0x238] sm:$0xff]  ;;  %v1495_v24 = vld [vmem:[%s2618_s18 + $0x1c8] sm:$0xff] }
 0x1b0   : > { %1248 = vmatpush2.msra.mxu1 %v894_v30  ;;  %1160 = vmatprep.subr.mxu0 %v763_v16  ;;  %v734_v0 = vld [vmem:[%s2639_s14 + $0x250] sm:$0xff]  ;;  %v859_v3 = vld [vmem:[%s2639_s14 + $0x638] sm:$0xff]  ;;  %v1494_v31 = vld [vmem:[%s2618_s18 + $0x1c0] sm:$0xff] }
 0x1b1   : > { %1249 = vmatprep.subr.mxu1 %v891_v8  ;;  %1161 = vmatpush2.msra.mxu0 %v762_v9  ;;  %v862_v1 = vld [vmem:[%s2639_s14 + $0x650] sm:$0xff]  ;;  %v727_v42 = vld [vmem:[%s2639_s14 + $0x218] sm:$0xff]  ;;  %v1463_v35 = vld [vmem:[%s2618_s18 + $0xc8] sm:$0xff] }
 0x1b2   : > { %1250 = vmatpush2.msra.mxu1 %v890_v12  ;;  %1162 = vmatprep.subr.mxu0 %v759_v13  ;;  %v730_v49 = vld [vmem:[%s2639_s14 + $0x230] sm:$0xff]  ;;  %v855_v43 = vld [vmem:[%s2639_s14 + $0x618] sm:$0xff]  ;;  %v1462_v30 = vld [vmem:[%s2618_s18 + $0xc0] sm:$0xff] }
 0x1b3   : > { %1251 = vmatprep.subr.mxu1 %v887_v14  ;;  %1163 = vmatpush2.msra.mxu0 %v758_v15  ;;  %v858_v50 = vld [vmem:[%s2639_s14 + $0x630] sm:$0xff]  ;;  %v1459_v16 = vld [vmem:[%s2618_s18 + $0xa8] sm:$0xff]  ;;  %v1458_v8 = vld [vmem:[%s2618_s18 + $0xa0] sm:$0xff] }
 0x1b4   : > { %1252 = vmatpush2.msra.mxu1 %v886_v20  ;;  %1164 = vmatprep.subr.mxu0 %v755_v38  ;;  %v726_v25 = vld [vmem:[%s2639_s14 + $0x210] sm:$0xff]  ;;  %v1627_v9 = vld [vmem:[%s2618_s18 + $0x5e8] sm:$0xff]  ;;  %v1454_v13 = vld [vmem:[%s2618_s18 + $0x80] sm:$0xff] }
 0x1b5   : > { %1253 = vmatprep.subr.mxu1 %v883_v51  ;;  %1165 = vmatpush2.msra.mxu0 %v754_v47  ;;  %v854_v28 = vld [vmem:[%s2639_s14 + $0x610] sm:$0xff]  ;;  %v1455_v12 = vld [vmem:[%s2618_s18 + $0x88] sm:$0xff]  ;;  %v1450_v15 = vld [vmem:[%s2618_s18 + $0x60] sm:$0xff] }
 0x1b6   : > { %1254 = vmatpush2.msra.mxu1 %v882_v52  ;;  %1166 = vmatprep.subr.mxu0 %v751_v32  ;;  %v1451_v14 = vld [vmem:[%s2618_s18 + $0x68] sm:$0xff]  ;;  %v1626_v20 = vld [vmem:[%s2618_s18 + $0x5e0] sm:$0xff] }
 0x1b7   : > { %1255 = vmatprep.subr.mxu1 %v879_v54  ;;  %1167 = vmatpush2.msra.mxu0 %v750_v53  ;;  %v1447_v38 = vld [vmem:[%s2618_s18 + $0x48] sm:$0xff]  ;;  %v1446_v47 = vld [vmem:[%s2618_s18 + $0x40] sm:$0xff] }
 0x1b8   : > { %1256 = vmatpush2.msra.mxu1 %v878_v29  ;;  %1168 = vmatprep.subr.mxu0 %v747_v36  ;;  %v1623_v51 = vld [vmem:[%s2618_s18 + $0x5c8] sm:$0xff]  ;;  %v1622_v52 = vld [vmem:[%s2618_s18 + $0x5c0] sm:$0xff] }
 0x1b9   : > { %1257 = vmatprep.subr.mxu1 %v875_v55  ;;  %1169 = vmatpush2.msra.mxu0 %v746_v56  ;;  %v1443_v32 = vld [vmem:[%s2618_s18 + $0x28] sm:$0xff]  ;;  %v1442_v53 = vld [vmem:[%s2618_s18 + $0x20] sm:$0xff] }
 0x1ba   : > { %1258 = vmatpush2.msra.mxu1 %v874_v34  ;;  %1170 = vmatprep.subr.mxu0 %v743_v57  ;;  %v1619_v54 = vld [vmem:[%s2618_s18 + $0x5a8] sm:$0xff]  ;;  %v1618_v36 = vld [vmem:[%s2618_s18 + $0x5a0] sm:$0xff] }
 0x1bb   : > { %1259 = vmatprep.subr.mxu1 %v871_v21  ;;  %1171 = vmatpush2.msra.mxu0 %v742_v33  ;;  %v1439_v29 = vld [vmem:[%s2618_s18 + $0x8] sm:$0xff]  ;;  %v1438_v55 = vld [vmem:[%s2618_s18] sm:$0xff] }
 0x1bc   : > { %1260 = vmatpush2.msra.mxu1 %v870_v59  ;;  %1172 = vmatprep.subr.mxu0 %v739_v60  ;;  %v1615_v56 = vld [vmem:[%s2618_s18 + $0x588] sm:$0xff]  ;;  %v1614_v57 = vld [vmem:[%s2618_s18 + $0x580] sm:$0xff] }
 0x1bd   : > { %1261 = vmatprep.subr.mxu1 %v867_v61  ;;  %1173 = vmatpush2.msra.mxu0 %v738_v62  ;;  %v1563_v34 = vld [vmem:[%s2618_s18 + $0x3e8] sm:$0xff]  ;;  %v1562_v21 = vld [vmem:[%s2618_s18 + $0x3e0] sm:$0xff] }
 0x1be   : > { %1262 = vmatpush2.msra.mxu1 %v866_v23  ;;  %1174 = vmatprep.subr.mxu0 %v735_v45  ;;  %v1611_v33 = vld [vmem:[%s2618_s18 + $0x568] sm:$0xff]  ;;  %v1558_v60 = vld [vmem:[%s2618_s18 + $0x3c0] sm:$0xff] }
 0x1bf   : > { %1263 = vmatprep.subr.mxu1 %v863_v63  ;;  %1175 = vmatpush2.msra.mxu0 %v734_v0  ;;  %v1559_v59 = vld [vmem:[%s2618_s18 + $0x3c8] sm:$0xff]  ;;  %v1610_v62 = vld [vmem:[%s2618_s18 + $0x560] sm:$0xff] }
 0x1c0   : > { %1264 = vmatpush2.msra.mxu1 %v862_v1  ;;  %1176 = vmatprep.subr.mxu0 %v731_v2  ;;  %v1555_v61 = vld [vmem:[%s2618_s18 + $0x3a8] sm:$0xff]  ;;  %v1554_v23 = vld [vmem:[%s2618_s18 + $0x3a0] sm:$0xff] }
 0x1c1   : > { %1265 = vmatprep.subr.mxu1 %v859_v3  ;;  %1177 = vmatpush2.msra.mxu0 %v730_v49  ;;  %v1607_v45 = vld [vmem:[%s2618_s18 + $0x548] sm:$0xff]  ;;  %v1606_v63 = vld [vmem:[%s2618_s18 + $0x540] sm:$0xff] }
 0x1c2   : > { %1266 = vmatpush2.msra.mxu1 %v858_v50  ;;  %1178 = vmatprep.subr.mxu0 %v727_v42  ;;  %v1551_v0 = vld [vmem:[%s2618_s18 + $0x388] sm:$0xff]  ;;  %v1550_v2 = vld [vmem:[%s2618_s18 + $0x380] sm:$0xff] }
 0x1c3   : > { %1267 = vmatprep.subr.mxu1 %v855_v43  ;;  %1179 = vmatpush2.msra.mxu0 %v726_v25  ;;  %v1603_v1 = vld [vmem:[%s2618_s18 + $0x528] sm:$0xff]  ;;  %v1546_v49 = vld [vmem:[%s2618_s18 + $0x360] sm:$0xff] }
 0x1c4   : > { %1268 = vmatpush2.msra.mxu1 %v854_v28  ;;  %1181 = vmatmul.mubr.f32.vlgmr.msra.gmra.mxu0 %v3013_v19  ;;  %v1491_v19 = vld [vmem:[%s2618_s18 + $0x1a8] sm:$0xff]  ;;  %v1602_v42 = vld [vmem:[%s2618_s18 + $0x520] sm:$0xff] }
 0x1c5   : > { %1270 = vmatmul.mubr.f32.vlgmr.msra.gmra.mxu1 %v3016_v26  ;;  %1186 = vmatprep.mubr.f32.mxu0 %v3042_v6  ;;  %v1490_v26 = vld [vmem:[%s2618_s18 + $0x1a0] sm:$0xff]  ;;  %v1487_v6 = vld [vmem:[%s2618_s18 + $0x188] sm:$0xff] }
 0x1c6   : > { %1275 = vmatprep.mubr.f32.mxu1 %v3045_v7  ;;  %1716 = vmatprep.subr.mxu0 %v1499_v4  ;;  %v1486_v7 = vld [vmem:[%s2618_s18 + $0x180] sm:$0xff]  ;;  %v1547_v3 = vld [vmem:[%s2618_s18 + $0x368] sm:$0xff] }
 0x1c7   : > { %1717 = vmatpush1.msra.mxu0 %v1498_v5  ;;  %1805 = vmatprep.subr.mxu1 %v1627_v9  ;;  %v1543_v50 = vld [vmem:[%s2618_s18 + $0x348] sm:$0xff]  ;;  %v1542_v43 = vld [vmem:[%s2618_s18 + $0x340] sm:$0xff] }
 0x1c8   : > { %1187 = vmatmul.mubr.f32.gmra.mxu0 %v3050_v10  ;;  %1718 = vmatprep.subr.mxu0 %v1495_v24  ;;  %v1483_v10 = vld [vmem:[%s2618_s18 + $0x168] sm:$0xff]  ;;  %v1598_v28 = vld [vmem:[%s2618_s18 + $0x500] sm:$0xff] }
 0x1c9   : > { %1276 = vmatmul.mubr.f32.gmra.mxu1 %v3053_v11  ;;  %1192 = vmatprep.mubr.f32.mxu0 %v3062_v22  ;;  %v1482_v11 = vld [vmem:[%s2618_s18 + $0x160] sm:$0xff]  ;;  %v1479_v22 = vld [vmem:[%s2618_s18 + $0x148] sm:$0xff] }
 0x1ca   : > { %1281 = vmatprep.mubr.f32.mxu1 %v3068_v44  ;;  %1719 = vmatpush1.msra.mxu0 %v1494_v31  ;;  %v1478_v44 = vld [vmem:[%s2618_s18 + $0x140] sm:$0xff]  ;;  %v1599_v25 = vld [vmem:[%s2618_s18 + $0x508] sm:$0xff] }
 0x1cb   : > { %1720 = vmatprep.subr.mxu0 %v1491_v19  ;;  %1806 = vmatpush1.msra.mxu1 %v1626_v20  ;;  %v1539_v4 = vld [vmem:[%s2618_s18 + $0x328] sm:$0xff]  ;;  %v1538_v24 = vld [vmem:[%s2618_s18 + $0x320] sm:$0xff] }
 0x1cc   : > { %1193 = vmatmul.mubr.f32.gmra.mxu0 %v3085_v46  ;;  %v1475_v46 = vld [vmem:[%s2618_s18 + $0x128] sm:$0xff]  ;;  %1807 = vmatprep.subr.mxu1 %v1623_v51  ;;  %v1594_v31 = vld [vmem:[%s2618_s18 + $0x4e0] sm:$0xff] }
 0x1cd   : > { %1282 = vmatmul.mubr.f32.gmra.mxu1 %v3088_v40  ;;  %1198 = vmatprep.mubr.f32.mxu0 %v3096_v41  ;;  %v1474_v40 = vld [vmem:[%s2618_s18 + $0x120] sm:$0xff]  ;;  %v1471_v41 = vld [vmem:[%s2618_s18 + $0x108] sm:$0xff] }
 0x1ce   : > { %1287 = vmatprep.mubr.f32.mxu1 %v3099_v58  ;;  %1721 = vmatpush1.msra.mxu0 %v1490_v26  ;;  %v1470_v58 = vld [vmem:[%s2618_s18 + $0x100] sm:$0xff]  ;;  %v1595_v5 = vld [vmem:[%s2618_s18 + $0x4e8] sm:$0xff] }
 0x1cf   : > { %1722 = vmatprep.subr.mxu0 %v1487_v6  ;;  %1808 = vmatpush1.msra.mxu1 %v1622_v52  ;;  %v1591_v19 = vld [vmem:[%s2618_s18 + $0x4c8] sm:$0xff]  ;;  %v1590_v6 = vld [vmem:[%s2618_s18 + $0x4c0] sm:$0xff] }
 0x1d0   : > { %1199 = vmatmul.mubr.f32.gmra.mxu0 %v3111_v27  ;;  %v1467_v27 = vld [vmem:[%s2618_s18 + $0xe8] sm:$0xff]  ;;  %1809 = vmatprep.subr.mxu1 %v1619_v54  ;;  %v1574_v9 = vld [vmem:[%s2618_s18 + $0x440] sm:$0xff] }
 0x1d1   : > { %1288 = vmatmul.mubr.f32.gmra.mxu1 %v3114_v48  ;;  %1723 = vmatpush1.msra.mxu0 %v1486_v7  ;;  %v1466_v48 = vld [vmem:[%s2618_s18 + $0xe0] sm:$0xff]  ;;  %v1535_v26 = vld [vmem:[%s2618_s18 + $0x308] sm:$0xff] }
 0x1d2   : > { %1724 = vmatprep.subr.mxu0 %v1483_v10  ;;  %1810 = vmatpush1.msra.mxu1 %v1618_v36  ;;  %v1534_v7 = vld [vmem:[%s2618_s18 + $0x300] sm:$0xff]  ;;  %v1587_v10 = vld [vmem:[%s2618_s18 + $0x4a8] sm:$0xff] }
 0x1d3   : > { %1725 = vmatpush1.msra.mxu0 %v1482_v11  ;;  %1811 = vmatprep.subr.mxu1 %v1615_v56  ;;  %v1531_v11 = vld [vmem:[%s2618_s18 + $0x2e8] sm:$0xff]  ;;  %v1570_v51 = vld [vmem:[%s2618_s18 + $0x420] sm:$0xff]  ;;  %v1501_v56 = vld [vmem:[%s2618_s18 + $0x1f8] sm:$0xff] }
 0x1d4   : > { %1726 = vmatprep.subr.mxu0 %v1479_v22  ;;  %1812 = vmatpush1.msra.mxu1 %v1614_v57  ;;  %v1586_v22 = vld [vmem:[%s2618_s18 + $0x4a0] sm:$0xff]  ;;  %v1511_v20 = vld [vmem:[%s2618_s18 + $0x248] sm:$0xff] }
 0x1d5   : > { %1727 = vmatpush1.msra.mxu0 %v1478_v44  ;;  %1813 = vmatprep.subr.mxu1 %v1611_v33  ;;  %v1530_v44 = vld [vmem:[%s2618_s18 + $0x2e0] sm:$0xff]  ;;  %v1567_v52 = vld [vmem:[%s2618_s18 + $0x408] sm:$0xff] }
 0x1d6   : > { %1728 = vmatprep.subr.mxu0 %v1475_v46  ;;  %1814 = vmatpush1.msra.mxu1 %v1610_v62  ;;  %v1583_v46 = vld [vmem:[%s2618_s18 + $0x488] sm:$0xff]  ;;  %v1566_v54 = vld [vmem:[%s2618_s18 + $0x400] sm:$0xff] }
 0x1d7   : > { %1729 = vmatpush1.msra.mxu0 %v1474_v40  ;;  %1815 = vmatprep.subr.mxu1 %v1607_v45  ;;  %v1527_v40 = vld [vmem:[%s2618_s18 + $0x2c8] sm:$0xff]  ;;  %v1502_v36 = vld [vmem:[%s2618_s18 + $0x200] sm:$0xff] }
 0x1d8   : > { %1730 = vmatprep.subr.mxu0 %v1471_v41  ;;  %1816 = vmatpush1.msra.mxu1 %v1606_v63  ;;  %v1582_v41 = vld [vmem:[%s2618_s18 + $0x480] sm:$0xff]  ;;  %v1667_v63 = vld [vmem:[%s2618_s18 + $0x728] sm:$0xff] }
 0x1d9   : > { %1731 = vmatpush1.msra.mxu0 %v1470_v58  ;;  %1817 = vmatprep.subr.mxu1 %v1603_v1  ;;  %v1526_v58 = vld [vmem:[%s2618_s18 + $0x2c0] sm:$0xff]  ;;  %v1663_v1 = vld [vmem:[%s2618_s18 + $0x708] sm:$0xff] }
 0x1da   : > { %1732 = vmatprep.subr.mxu0 %v1467_v27  ;;  %1818 = vmatpush1.msra.mxu1 %v1602_v42  ;;  %v1579_v27 = vld [vmem:[%s2618_s18 + $0x468] sm:$0xff]  ;;  %v1686_v57 = vld [vmem:[%s2618_s18 + $0x7c0] sm:$0xff] }
 0x1db   : > { %1733 = vmatpush1.msra.mxu0 %v1466_v48  ;;  %1819 = vmatprep.subr.mxu1 %v1599_v25  ;;  %v1523_v48 = vld [vmem:[%s2618_s18 + $0x2a8] sm:$0xff]  ;;  %v1682_v33 = vld [vmem:[%s2618_s18 + $0x7a0] sm:$0xff] }
 0x1dc   : > { %1734 = vmatprep.subr.mxu0 %v1463_v35  ;;  %1820 = vmatpush1.msra.mxu1 %v1598_v28  ;;  %v1578_v35 = vld [vmem:[%s2618_s18 + $0x460] sm:$0xff]  ;;  %v1647_v28 = vld [vmem:[%s2618_s18 + $0x688] sm:$0xff] }
 0x1dd   : > { %1735 = vmatpush1.msra.mxu0 %v1462_v30  ;;  %1821 = vmatprep.subr.mxu1 %v1595_v5  ;;  %v1522_v30 = vld [vmem:[%s2618_s18 + $0x2a0] sm:$0xff]  ;;  %v1643_v5 = vld [vmem:[%s2618_s18 + $0x668] sm:$0xff] }
 0x1de   : > { %1736 = vmatprep.subr.mxu0 %v1459_v16  ;;  %1822 = vmatpush1.msra.mxu1 %v1594_v31  ;;  %v1575_v16 = vld [vmem:[%s2618_s18 + $0x448] sm:$0xff]  ;;  %v1674_v62 = vld [vmem:[%s2618_s18 + $0x760] sm:$0xff] }
 0x1df   : > { %1737 = vmatpush1.msra.mxu0 %v1458_v8  ;;  %1823 = vmatprep.subr.mxu1 %v1591_v19  ;;  %v1519_v8 = vld [vmem:[%s2618_s18 + $0x288] sm:$0xff]  ;;  %v1670_v45 = vld [vmem:[%s2618_s18 + $0x740] sm:$0xff] }
 0x1e0   : > { %1738 = vmatprep.subr.mxu0 %v1455_v12  ;;  %1824 = vmatpush1.msra.mxu1 %v1590_v6  ;;  %v1518_v12 = vld [vmem:[%s2618_s18 + $0x280] sm:$0xff]  ;;  %v1639_v31 = vld [vmem:[%s2618_s18 + $0x648] sm:$0xff] }
 0x1e1   : > { %1739 = vmatpush1.msra.mxu0 %v1454_v13  ;;  %1825 = vmatprep.subr.mxu1 %v1587_v10  ;;  %v1571_v13 = vld [vmem:[%s2618_s18 + $0x428] sm:$0xff]  ;;  %v1654_v42 = vld [vmem:[%s2618_s18 + $0x6c0] sm:$0xff] }
 0x1e2   : > { %1740 = vmatprep.subr.mxu0 %v1451_v14  ;;  %1826 = vmatpush1.msra.mxu1 %v1586_v22  ;;  %v1515_v14 = vld [vmem:[%s2618_s18 + $0x268] sm:$0xff]  ;;  %v1650_v25 = vld [vmem:[%s2618_s18 + $0x6a0] sm:$0xff] }
 0x1e3   : > { %1741 = vmatpush1.msra.mxu0 %v1450_v15  ;;  %1827 = vmatprep.subr.mxu1 %v1583_v46  ;;  %v1514_v15 = vld [vmem:[%s2618_s18 + $0x260] sm:$0xff] }
 0x1e4   : > { %1742 = vmatprep.subr.mxu0 %v1447_v38  ;;  %1828 = vmatpush1.msra.mxu1 %v1582_v41  ;;  %v1510_v38 = vld [vmem:[%s2618_s18 + $0x240] sm:$0xff] }
 0x1e5   : > { %1743 = vmatpush1.msra.mxu0 %v1446_v47  ;;  %1829 = vmatprep.subr.mxu1 %v1579_v27  ;;  %v1507_v47 = vld [vmem:[%s2618_s18 + $0x228] sm:$0xff]  ;;  %v1638_v19 = vld [vmem:[%s2618_s18 + $0x640] sm:$0xff] }
 0x1e6   : > { %1744 = vmatprep.subr.mxu0 %v1443_v32  ;;  %1830 = vmatpush1.msra.mxu1 %v1578_v35  ;;  %v1506_v32 = vld [vmem:[%s2618_s18 + $0x220] sm:$0xff] }
 0x1e7   : > { %1745 = vmatpush1.msra.mxu0 %v1442_v53  ;;  %1831 = vmatprep.subr.mxu1 %v1575_v16  ;;  %v1503_v53 = vld [vmem:[%s2618_s18 + $0x208] sm:$0xff]  ;;  %v1634_v6 = vld [vmem:[%s2618_s18 + $0x620] sm:$0xff] }
 0x1e8   : > { %1746 = vmatprep.subr.mxu0 %v1439_v29  ;;  %1832 = vmatpush1.msra.mxu1 %v1574_v9  ;;  %v1691_v29 = vld [vmem:[%s2618_s18 + $0x7e8] sm:$0xff]  ;;  %v1630_v10 = vld [vmem:[%s2618_s18 + $0x600] sm:$0xff] }
 0x1e9   : > { %1747 = vmatpush1.msra.mxu0 %v1438_v55  ;;  %1833 = vmatprep.subr.mxu1 %v1571_v13  ;;  %v1690_v55 = vld [vmem:[%s2618_s18 + $0x7e0] sm:$0xff] }
 0x1ea   : > { %1748 = vmatprep.subr.mxu0 %v1563_v34  ;;  %1834 = vmatpush1.msra.mxu1 %v1570_v51  ;;  %v1687_v34 = vld [vmem:[%s2618_s18 + $0x7c8] sm:$0xff]  ;;  %v3371_v22 = vld [vmem:[%s415_s17] sm:$0xf] }
 0x1eb   : > { %1749 = vmatpush2.msra.mxu0 %v1562_v21  ;;  %1835 = vmatprep.subr.mxu1 %v1567_v52  ;;  %v1683_v21 = vld [vmem:[%s2618_s18 + $0x7a8] sm:$0xff]  ;;  %v925_v46 = vrot.slane %v3371_v22, %v2956_v37 }
 0x1ec   : > { %1750 = vmatprep.subr.mxu0 %v1559_v59  ;;  %1836 = vmatpush1.msra.mxu1 %v1566_v54  ;;  %v1679_v59 = vld [vmem:[%s2618_s18 + $0x788] sm:$0xff] }
 0x1ed   : > { %1751 = vmatpush2.msra.mxu0 %v1558_v60  ;;  %1837 = vmatprep.subr.mxu1 %v1691_v29  ;;  %v1678_v60 = vld [vmem:[%s2618_s18 + $0x780] sm:$0xff] }
 0x1ee   : > { %1752 = vmatprep.subr.mxu0 %v1555_v61  ;;  %1838 = vmatpush2.msra.mxu1 %v1690_v55  ;;  %v1675_v61 = vld [vmem:[%s2618_s18 + $0x768] sm:$0xff] }
 0x1ef   : > { %1753 = vmatpush2.msra.mxu0 %v1554_v23  ;;  %1839 = vmatprep.subr.mxu1 %v1687_v34  ;;  %v1671_v23 = vld [vmem:[%s2618_s18 + $0x748] sm:$0xff] }
 0x1f0   : > { %1754 = vmatprep.subr.mxu0 %v1551_v0  ;;  %1840 = vmatpush2.msra.mxu1 %v1686_v57  ;;  %v1666_v0 = vld [vmem:[%s2618_s18 + $0x720] sm:$0xff] }
 0x1f1   : > { %1755 = vmatpush2.msra.mxu0 %v1550_v2  ;;  %1841 = vmatprep.subr.mxu1 %v1683_v21  ;;  %v1662_v2 = vld [vmem:[%s2618_s18 + $0x700] sm:$0xff] }
 0x1f2   : > { %1756 = vmatprep.subr.mxu0 %v1547_v3  ;;  %1842 = vmatpush2.msra.mxu1 %v1682_v33  ;;  %v1659_v3 = vld [vmem:[%s2618_s18 + $0x6e8] sm:$0xff] }
 0x1f3   : > { %1757 = vmatpush2.msra.mxu0 %v1546_v49  ;;  %1843 = vmatprep.subr.mxu1 %v1679_v59  ;;  %v1658_v49 = vld [vmem:[%s2618_s18 + $0x6e0] sm:$0xff] }
 0x1f4   : > { %1758 = vmatprep.subr.mxu0 %v1543_v50  ;;  %1844 = vmatpush2.msra.mxu1 %v1678_v60  ;;  %v1655_v50 = vld [vmem:[%s2618_s18 + $0x6c8] sm:$0xff] }
 0x1f5   : > { %1759 = vmatpush2.msra.mxu0 %v1542_v43  ;;  %1845 = vmatprep.subr.mxu1 %v1675_v61  ;;  %v1651_v43 = vld [vmem:[%s2618_s18 + $0x6a8] sm:$0xff] }
 0x1f6   : > { %1760 = vmatprep.subr.mxu0 %v1539_v4  ;;  %1846 = vmatpush2.msra.mxu1 %v1674_v62  ;;  %v1646_v4 = vld [vmem:[%s2618_s18 + $0x680] sm:$0xff] }
 0x1f7   : > { %1761 = vmatpush2.msra.mxu0 %v1538_v24  ;;  %1847 = vmatprep.subr.mxu1 %v1671_v23  ;;  %v1642_v24 = vld [vmem:[%s2618_s18 + $0x660] sm:$0xff] }
 0x1f8   : > { %1762 = vmatprep.subr.mxu0 %v1535_v26  ;;  %1848 = vmatpush2.msra.mxu1 %v1670_v45  ;;  %v1635_v26 = vld [vmem:[%s2618_s18 + $0x628] sm:$0xff] }
 0x1f9   : > { %1763 = vmatpush2.msra.mxu0 %v1534_v7  ;;  %1849 = vmatprep.subr.mxu1 %v1667_v63  ;;  %v1631_v7 = vld [vmem:[%s2618_s18 + $0x608] sm:$0xff] }
 0x1fa   : > { %1764 = vmatprep.subr.mxu0 %v1531_v11  ;;  %1850 = vmatpush2.msra.mxu1 %v1666_v0  ;;  %v1629_v11 = vld [vmem:[%s2618_s18 + $0x5f8] sm:$0xff] }
 0x1fb   : > { %1765 = vmatpush2.msra.mxu0 %v1530_v44  ;;  %1851 = vmatprep.subr.mxu1 %v1663_v1  ;;  %v921_v44 = vrot.slane %v3371_v22, %v2960_v39 }
 0x1fc   : > { %1766 = vmatprep.subr.mxu0 %v1527_v40  ;;  %1852 = vmatpush2.msra.mxu1 %v1662_v2 }
 0x1fd   : > { %1767 = vmatpush2.msra.mxu0 %v1526_v58  ;;  %1853 = vmatprep.subr.mxu1 %v1659_v3 }
 0x1fe   : > { %1768 = vmatprep.subr.mxu0 %v1523_v48  ;;  %1854 = vmatpush2.msra.mxu1 %v1658_v49 }
 0x1ff   : > { %1769 = vmatpush2.msra.mxu0 %v1522_v30  ;;  %1855 = vmatprep.subr.mxu1 %v1655_v50 }
 0x200   : > { %1770 = vmatprep.subr.mxu0 %v1519_v8  ;;  %1856 = vmatpush2.msra.mxu1 %v1654_v42 }
 0x201   : > { %1771 = vmatpush2.msra.mxu0 %v1518_v12  ;;  %1857 = vmatprep.subr.mxu1 %v1651_v43 }
 0x202   : > { %1772 = vmatprep.subr.mxu0 %v1515_v14  ;;  %1858 = vmatpush2.msra.mxu1 %v1650_v25 }
 0x203   : > { %1773 = vmatpush2.msra.mxu0 %v1514_v15  ;;  %1859 = vmatprep.subr.mxu1 %v1647_v28 }
 0x204   : > { %1774 = vmatprep.subr.mxu0 %v1511_v20  ;;  %1860 = vmatpush2.msra.mxu1 %v1646_v4 }
 0x205   : > { %1775 = vmatpush2.msra.mxu0 %v1510_v38  ;;  %1861 = vmatprep.subr.mxu1 %v1643_v5 }
 0x206   : > { %1776 = vmatprep.subr.mxu0 %v1507_v47  ;;  %1862 = vmatpush2.msra.mxu1 %v1642_v24 }
 0x207   : > { %1777 = vmatpush2.msra.mxu0 %v1506_v32  ;;  %1863 = vmatprep.subr.mxu1 %v1639_v31 }
 0x208   : > { %1778 = vmatprep.subr.mxu0 %v1503_v53  ;;  %1864 = vmatpush2.msra.mxu1 %v1638_v19 }
 0x209   : > { %1779 = vmatpush2.msra.mxu0 %v1502_v36  ;;  %1865 = vmatprep.subr.mxu1 %v1635_v26 }
 0x20a   : > { %1894 = vmatprep.subr.mxu0 %v1501_v56  ;;  %1866 = vmatpush2.msra.mxu1 %v1634_v6 }
 0x20b   : > { %1867 = vmatprep.subr.mxu1 %v1631_v7 }
 0x20c   : > { %1868 = vmatpush2.msra.mxu1 %v1630_v10 }
 0x20d   : > { %1983 = vmatprep.subr.mxu1 %v1629_v11 }
 0x23d   : > { %v1004_v40 = vpop.f32.mrf.mxu0 }
 0x23e   : > { %v1093_v41 = vpop.f32.mrf.mxu1  ;;  %v1005_v58 = vadd.f32 %v1004_v40, %v921_v44 }
 0x23f   : > { %v1006_v27 = vpop.f32.mrf.mxu0 }
 0x240   : > { %v1095_v48 = vpop.f32.mrf.mxu1  ;;  %v3377_v35 = vadd.f32 %v1093_v41, %v1005_v58  ;;  %v1007_v30 = vadd.f32 %v1006_v27, %v925_v46 }
 0x242   : > { %v1310_v16 = vmul.f32 0.044715, %v3377_v35  ;;  %v3380_v8 = vadd.f32 %v1095_v48, %v1007_v30 }
 0x243   : > { %v1010_v9 = vpop.f32.mrf.mxu0 }
 0x244   : > { %v1099_v12 = vpop.f32.mrf.mxu1  ;;  %v1326_v13 = vmul.f32 %v1310_v16, %v3377_v35  ;;  %v1311_v14 = vmul.f32 0.044715, %v3380_v8  ;;  %v1011_v15 = vadd.f32 %v1010_v9, %v921_v44 }
 0x245   : > { %v1012_v20 = vpop.f32.mrf.mxu0 }
 0x246   : > { %v1101_v38 = vpop.f32.mrf.mxu1  ;;  %v1342_v51 = vmul.f32 %v1326_v13, %v3377_v35  ;;  %v1327_v47 = vmul.f32 %v1311_v14, %v3380_v8  ;;  %v3386_v52 = vadd.f32 %v1099_v12, %v1011_v15  ;;  %v1013_v32 = vadd.f32 %v1012_v20, %v925_v46 }
 0x248   : > { %v1358_v54 = vadd.f32 %v1342_v51, %v3377_v35  ;;  %v1314_v53 = vmul.f32 0.044715, %v3386_v52  ;;  %v3390_v29 = vadd.f32 %v1101_v38, %v1013_v32  ;;  %v1343_v36 = vmul.f32 %v1327_v47, %v3380_v8 }
 0x249   : > { %v1016_v55 = vpop.f32.mrf.mxu0  ;;  %v1295_v47 = vmul.f32 0.5, %v3380_v8 }
 0x24a   : > { %v1105_v56 = vpop.f32.mrf.mxu1  ;;  %v1374_v34 = vmul.f32 0.7978846, %v1358_v54  ;;  %v1330_v57 = vmul.f32 %v1314_v53, %v3386_v52  ;;  %v1315_v21 = vmul.f32 0.044715, %v3390_v29  ;;  %v1017_v33 = vadd.f32 %v1016_v55, %v921_v44 }
 0x24b   : > { %v1018_v59 = vpop.f32.mrf.mxu0  ;;  %v1359_v61 = vadd.f32 %v1343_v36, %v3380_v8  ;;  %v1294_v54 = vmul.f32 0.5, %v3377_v35  ;;  %v1496_v35 = vld [vmem:[%s2618_s18 + $0x1d0] sm:$0xff]  ;;  %v1299_v8 = vmul.f32 0.5, %v3390_v29 }
 0x24c   : > { %v1107_v60 = vpop.f32.mrf.mxu1  ;;  %2378 = vtanh.f32 %v1374_v34  ;;  %v1331_v62 = vmul.f32 %v1315_v21, %v3390_v29  ;;  %v3397_v23 = vadd.f32 %v1105_v56, %v1017_v33  ;;  %v1019_v45 = vadd.f32 %v1018_v59, %v925_v46  ;;  %v1500_v34 = vld [vmem:[%s2618_s18 + $0x1f0] sm:$0xff]  ;;  %v1497_v21 = vld [vmem:[%s2618_s18 + $0x1d8] sm:$0xff] }
 0x24d   : > { %v1375_v63 = vmul.f32 0.7978846, %v1359_v61  ;;  %v1346_v0 = vmul.f32 %v1330_v57, %v3386_v52  ;;  %v1298_v61 = vmul.f32 0.5, %v3386_v52 }
 0x24e   : > { %v1318_v1 = vmul.f32 0.044715, %v3397_v23  ;;  %v3401_v2 = vadd.f32 %v1107_v60, %v1019_v45  ;;  %v1347_v3 = vmul.f32 %v1331_v62, %v3390_v29  ;;  %v1493_v60 = vld [vmem:[%s2618_s18 + $0x1b8] sm:$0xff] }
 0x24f   : > { %v1022_v49 = vpop.f32.mrf.mxu0  ;;  %2380 = vtanh.f32 %v1375_v63  ;;  %v1362_v42 = vadd.f32 %v1346_v0, %v3386_v52  ;;  %v1492_v63 = vld [vmem:[%s2618_s18 + $0x1b0] sm:$0xff] }
 0x250   : > { %v1111_v50 = vpop.f32.mrf.mxu1  ;;  %v1334_v43 = vmul.f32 %v1318_v1, %v3397_v23  ;;  %v1319_v25 = vmul.f32 0.044715, %v3401_v2  ;;  %v1023_v28 = vadd.f32 %v1022_v49, %v921_v44  ;;  %v1363_v4 = vadd.f32 %v1347_v3, %v3390_v29  ;;  %v1489_v29 = vld [vmem:[%s2618_s18 + $0x198] sm:$0xff]  ;;  %v1488_v52 = vld [vmem:[%s2618_s18 + $0x190] sm:$0xff] }
 0x251   : > { %v1024_v5 = vpop.f32.mrf.mxu0  ;;  %v1378_v24 = vmul.f32 0.7978846, %v1362_v42  ;;  %v1303_v49 = vmul.f32 0.5, %v3401_v2  ;;  %v1485_v42 = vld [vmem:[%s2618_s18 + $0x178] sm:$0xff] }
 0x252   : > { %v1335_v31 = vmul.f32 %v1319_v25, %v3401_v2  ;;  %v3409_v19 = vadd.f32 %v1111_v50, %v1023_v28  ;;  %v1025_v26 = vadd.f32 %v1024_v5, %v925_v46  ;;  %v1379_v6 = vmul.f32 0.7978846, %v1363_v4  ;;  %v1113_v7 = vpop.f32.mrf.mxu1  ;;  %v1484_v25 = vld [vmem:[%s2618_s18 + $0x170] sm:$0xff]  ;;  %v1481_v4 = vld [vmem:[%s2618_s18 + $0x158] sm:$0xff] }
 0x253   : > { %2382 = vtanh.f32 %v1378_v24  ;;  %v1350_v10 = vmul.f32 %v1334_v43, %v3397_v23  ;;  %v1302_v43 = vmul.f32 0.5, %v3397_v23 }
 0x254   : > { %v1322_v11 = vmul.f32 0.044715, %v3409_v19  ;;  %v3413_v40 = vadd.f32 %v1113_v7, %v1025_v26  ;;  %2384 = vtanh.f32 %v1379_v6  ;;  %v1351_v44 = vmul.f32 %v1335_v31, %v3401_v2  ;;  %v1480_v31 = vld [vmem:[%s2618_s18 + $0x150] sm:$0xff] }
 0x255   : > { %v1366_v41 = vadd.f32 %v1350_v10, %v3397_v23  ;;  %v1476_v6 = vld [vmem:[%s2618_s18 + $0x130] sm:$0xff] }
 0x256   : > { %v1338_v58 = vmul.f32 %v1322_v11, %v3409_v19  ;;  %v1323_v27 = vmul.f32 0.044715, %v3413_v40  ;;  %v1367_v46 = vadd.f32 %v1351_v44, %v3401_v2  ;;  %v1477_v2 = vld [vmem:[%s2618_s18 + $0x138] sm:$0xff]  ;;  %v1307_v7 = vmul.f32 0.5, %v3413_v40 }
 0x257   : > { %v1382_v48 = vmul.f32 0.7978846, %v1366_v41  ;;  %v1473_v11 = vld [vmem:[%s2618_s18 + $0x118] sm:$0xff]  ;;  %v1306_v44 = vmul.f32 0.5, %v3409_v19  ;;  %v1472_v41 = vld [vmem:[%s2618_s18 + $0x110] sm:$0xff] }
 0x258   : > { %v1339_v30 = vmul.f32 %v1323_v27, %v3413_v40  ;;  %v1383_v16 = vmul.f32 0.7978846, %v1367_v46  ;;  %v1354_v9 = vmul.f32 %v1338_v58, %v3409_v19  ;;  %v1469_v27 = vld [vmem:[%s2618_s18 + $0xf8] sm:$0xff] }
 0x259   : > { %v2379_v12 = vpop.eup %2378  ;;  %2386 = vtanh.f32 %v1382_v48  ;;  %v1468_v48 = vld [vmem:[%s2618_s18 + $0xf0] sm:$0xff] }
 0x25a   : > { %2388 = vtanh.f32 %v1383_v16  ;;  %v1355_v13 = vmul.f32 %v1339_v30, %v3413_v40  ;;  %v1370_v14 = vadd.f32 %v1354_v9, %v3409_v19  ;;  %v1406_v20 = vadd.f32 1.0, %v2379_v12  ;;  %v1464_v19 = vld [vmem:[%s2618_s18 + $0xd0] sm:$0xff]  ;;  %v1461_v30 = vld [vmem:[%s2618_s18 + $0xb8] sm:$0xff] }
 0x25b   : > { %v1460_v16 = vld [vmem:[%s2618_s18 + $0xb0] sm:$0xff]  ;;  %v1457_v9 = vld [vmem:[%s2618_s18 + $0x98] sm:$0xff] }
 0x25c   : > { %v2381_v15 = vpop.eup %2380  ;;  %v1371_v38 = vadd.f32 %v1355_v13, %v3413_v40  ;;  %v1386_v51 = vmul.f32 0.7978846, %v1370_v14  ;;  %v3429_v56 = vmul.f32 %v1406_v20, %v1294_v54  ;;  %v1465_v40 = vld [vmem:[%s2618_s18 + $0xd8] sm:$0xff]  ;;  %v1456_v12 = vld [vmem:[%s2618_s18 + $0x90] sm:$0xff] }
 0x25d   : > { %v1407_v32 = vadd.f32 1.0, %v2381_v15  ;;  %v1453_v13 = vld [vmem:[%s2618_s18 + $0x78] sm:$0xff]  ;;  %v1452_v14 = vld [vmem:[%s2618_s18 + $0x70] sm:$0xff] }
 0x25e   : > { %v1387_v53 = vmul.f32 0.7978846, %v1371_v38  ;;  %2390 = vtanh.f32 %v1386_v51  ;;  %v1449_v15 = vld [vmem:[%s2618_s18 + $0x58] sm:$0xff]  ;;  %v1448_v20 = vld [vmem:[%s2618_s18 + $0x50] sm:$0xff] }
 0x25f   : > { %v3427_v36 = vmul.f32 %v1407_v32, %v1295_v47  ;;  %v1445_v38 = vld [vmem:[%s2618_s18 + $0x38] sm:$0xff]  ;;  %v1444_v51 = vld [vmem:[%s2618_s18 + $0x30] sm:$0xff] }
 0x260   : > { %v2383_v55 = vpop.eup %2382  ;;  %2392 = vtanh.f32 %v1387_v53  ;;  %v1441_v47 = vld [vmem:[%s2618_s18 + $0x18] sm:$0xff]  ;;  %v1440_v32 = vld [vmem:[%s2618_s18 + $0x10] sm:$0xff]  ;;  %v3492_v53 = vrot.slane %v3371_v22, %v2962_v18 }
 0x261   : > { %v2385_v57 = vpop.eup %2384  ;;  %1780 = vmatprep.mubr.f32.mxu0 %v3427_v36  ;;  %v1410_v33 = vadd.f32 1.0, %v2383_v55  ;;  %v1565_v54 = vld [vmem:[%s2618_s18 + $0x3f8] sm:$0xff] }
 0x262   : > { %1781 = vmatmul.mubr.f32.vlgmr.msra.gmra.mxu0 %v3429_v56  ;;  %v1411_v59 = vadd.f32 1.0, %v2385_v57  ;;  %v1561_v55 = vld [vmem:[%s2618_s18 + $0x3d8] sm:$0xff]  ;;  %v1560_v57 = vld [vmem:[%s2618_s18 + $0x3d0] sm:$0xff] }
 0x263   : > { %1895 = vmatpush1.msra.mxu0 %v1500_v34  ;;  %v3441_v45 = vmul.f32 %v1410_v33, %v1298_v61  ;;  %v3498_v34 = vrot.slane %v3371_v22, %v2958_v17 }
 0x264   : > { %1896 = vmatprep.subr.mxu0 %v1497_v21  ;;  %v3439_v62 = vmul.f32 %v1411_v59, %v1299_v8  ;;  %v1556_v59 = vld [vmem:[%s2618_s18 + $0x3b0] sm:$0xff] }
 0x265   : > { %1897 = vmatpush1.msra.mxu0 %v1496_v35  ;;  %v1557_v35 = vld [vmem:[%s2618_s18 + $0x3b8] sm:$0xff] }
 0x266   : > { %v2387_v0 = vpop.eup %2386  ;;  %1786 = vmatprep.mubr.f32.mxu0 %v3439_v62  ;;  %1898 = vmatprep.subr.mxu0 %v1493_v60 }
 0x267   : > { %v2389_v1 = vpop.eup %2388  ;;  %1787 = vmatmul.mubr.f32.gmra.mxu0 %v3441_v45  ;;  %v1414_v3 = vadd.f32 1.0, %v2387_v0 }
 0x268   : > { %1899 = vmatpush1.msra.mxu0 %v1492_v63  ;;  %v1415_v50 = vadd.f32 1.0, %v2389_v1  ;;  %v1553_v63 = vld [vmem:[%s2618_s18 + $0x398] sm:$0xff] }
 0x269   : > { %1900 = vmatprep.subr.mxu0 %v1489_v29  ;;  %v3455_v24 = vmul.f32 %v1414_v3, %v1302_v43  ;;  %v1552_v29 = vld [vmem:[%s2618_s18 + $0x390] sm:$0xff]  ;;  %v1549_v3 = vld [vmem:[%s2618_s18 + $0x378] sm:$0xff] }
 0x26a   : > { %1901 = vmatpush1.msra.mxu0 %v1488_v52  ;;  %v3452_v28 = vmul.f32 %v1415_v50, %v1303_v49  ;;  %v1548_v43 = vld [vmem:[%s2618_s18 + $0x370] sm:$0xff] }
 0x26b   : > { %v2391_v5 = vpop.eup %2390  ;;  %1902 = vmatprep.subr.mxu0 %v1485_v42 }
 0x26c   : > { %1792 = vmatprep.mubr.f32.mxu0 %v3452_v28  ;;  %1903 = vmatpush1.msra.mxu0 %v1484_v25  ;;  %v1418_v23 = vadd.f32 1.0, %v2391_v5  ;;  %v1545_v5 = vld [vmem:[%s2618_s18 + $0x358] sm:$0xff] }
 0x26d   : > { %v2393_v26 = vpop.eup %2392  ;;  %1793 = vmatmul.mubr.f32.gmra.mxu0 %v3455_v24  ;;  %1904 = vmatprep.subr.mxu0 %v1481_v4 }
 0x26e   : > { %1905 = vmatpush1.msra.mxu0 %v1480_v31  ;;  %v1419_v10 = vadd.f32 1.0, %v2393_v26  ;;  %v3469_v46 = vmul.f32 %v1418_v23, %v1306_v44 }
 0x26f   : > { %1906 = vmatprep.subr.mxu0 %v1477_v2 }
 0x270   : > { %v3466_v58 = vmul.f32 %v1419_v10, %v1307_v7  ;;  %1907 = vmatpush1.msra.mxu0 %v1476_v6  ;;  %v1544_v6 = vld [vmem:[%s2618_s18 + $0x350] sm:$0xff] }
 0x271   : > { %1908 = vmatprep.subr.mxu0 %v1473_v11  ;;  %v1541_v11 = vld [vmem:[%s2618_s18 + $0x338] sm:$0xff] }
 0x272   : > { %1798 = vmatprep.mubr.f32.mxu0 %v3466_v58  ;;  %1909 = vmatpush1.msra.mxu0 %v1472_v41 }
 0x273   : > { %1799 = vmatmul.mubr.f32.gmra.mxu0 %v3469_v46  ;;  %1910 = vmatprep.subr.mxu0 %v1469_v27 }
 0x274   : > { %1958 = vmatprep.mubr.f32.mxu0 %v3427_v36  ;;  %1911 = vmatpush1.msra.mxu0 %v1468_v48  ;;  %v1564_v36 = vld [vmem:[%s2618_s18 + $0x3f0] sm:$0xff] }
 0x275   : > { %1912 = vmatprep.subr.mxu0 %v1465_v40  ;;  %v1540_v40 = vld [vmem:[%s2618_s18 + $0x330] sm:$0xff] }
 0x276   : > { %1913 = vmatpush1.msra.mxu0 %v1464_v19 }
 0x277   : > { %1914 = vmatprep.subr.mxu0 %v1461_v30 }
 0x278   : > { %1915 = vmatpush1.msra.mxu0 %v1460_v16 }
 0x279   : > { %1916 = vmatprep.subr.mxu0 %v1457_v9  ;;  %v1537_v9 = vld [vmem:[%s2618_s18 + $0x318] sm:$0xff] }
 0x27a   : > { %1917 = vmatpush1.msra.mxu0 %v1456_v12 }
 0x27b   : > { %1918 = vmatprep.subr.mxu0 %v1453_v13 }
 0x27c   : > { %1919 = vmatpush1.msra.mxu0 %v1452_v14 }
 0x27d   : > { %1920 = vmatprep.subr.mxu0 %v1449_v15 }
 0x27e   : > { %1921 = vmatpush1.msra.mxu0 %v1448_v20  ;;  %v1536_v20 = vld [vmem:[%s2618_s18 + $0x310] sm:$0xff] }
 0x27f   : > { %1922 = vmatprep.subr.mxu0 %v1445_v38 }
 0x280   : > { %1923 = vmatpush1.msra.mxu0 %v1444_v51 }
 0x281   : > { %1924 = vmatprep.subr.mxu0 %v1441_v47 }
 0x282   : > { %1925 = vmatpush1.msra.mxu0 %v1440_v32  ;;  %v1533_v32 = vld [vmem:[%s2618_s18 + $0x2f8] sm:$0xff] }
 0x283   : > { %1926 = vmatprep.subr.mxu0 %v1565_v54 }
 0x284   : > { %v1182_v21 = vpop.f32.mrf.mxu0  ;;  %1927 = vmatpush2.msra.mxu0 %v1564_v36 }
 0x285   : > { %v1271_v33 = vpop.f32.mrf.mxu1  ;;  %v1183_v8 = vadd.f32 %v1182_v21, %v3492_v53  ;;  %1928 = vmatprep.subr.mxu0 %v1561_v55 }
 0x286   : > { %v1184_v60 = vpop.f32.mrf.mxu0  ;;  %1929 = vmatpush2.msra.mxu0 %v1560_v57 }
 0x287   : > { %v1273_v61 = vpop.f32.mrf.mxu1  ;;  %v3505_v0 = vadd.f32 %v1271_v33, %v1183_v8  ;;  %v1185_v22 = vadd.f32 %v1184_v60, %v3498_v34  ;;  %1930 = vmatprep.subr.mxu0 %v1557_v35  ;;  %v1532_v33 = vld [vmem:[%s2618_s18 + $0x2f0] sm:$0xff] }
 0x288   : > { %v1188_v1 = vpop.f32.mrf.mxu0  ;;  %1931 = vmatpush2.msra.mxu0 %v1556_v59  ;;  %v1529_v59 = vld [vmem:[%s2618_s18 + $0x2d8] sm:$0xff] }
 0x289   : > { %v1277_v52 = vpop.f32.mrf.mxu1  ;;  %v1312_v49 = vmul.f32 0.044715, %v3505_v0  ;;  %v3511_v50 = vadd.f32 %v1273_v61, %v1185_v22  ;;  %v1189_v42 = vadd.f32 %v1188_v1, %v3492_v53  ;;  %1932 = vmatprep.subr.mxu0 %v1553_v63 }
 0x28a   : > { %v1190_v25 = vpop.f32.mrf.mxu0  ;;  %1933 = vmatpush2.msra.mxu0 %v1552_v29  ;;  %v1528_v29 = vld [vmem:[%s2618_s18 + $0x2d0] sm:$0xff] }
 0x28b   : > { %v1279_v4 = vpop.f32.mrf.mxu1  ;;  %v1328_v31 = vmul.f32 %v1312_v49, %v3505_v0  ;;  %v1313_v2 = vmul.f32 0.044715, %v3511_v50  ;;  %v3518_v26 = vadd.f32 %v1277_v52, %v1189_v42  ;;  %v1191_v23 = vadd.f32 %v1190_v25, %v3498_v34  ;;  %1934 = vmatprep.subr.mxu0 %v1549_v3  ;;  %v1525_v3 = vld [vmem:[%s2618_s18 + $0x2b8] sm:$0xff] }
 0x28c   : > { %v1194_v7 = vpop.f32.mrf.mxu0  ;;  %1935 = vmatpush2.msra.mxu0 %v1548_v43 }
 0x28d   : > { %v1283_v10 = vpop.f32.mrf.mxu1  ;;  %v1344_v44 = vmul.f32 %v1328_v31, %v3505_v0  ;;  %v1329_v41 = vmul.f32 %v1313_v2, %v3511_v50  ;;  %v1316_v27 = vmul.f32 0.044715, %v3518_v26  ;;  %v3526_v48 = vadd.f32 %v1279_v4, %v1191_v23  ;;  %1936 = vmatprep.subr.mxu0 %v1545_v5  ;;  %v1524_v5 = vld [vmem:[%s2618_s18 + $0x2b0] sm:$0xff]  ;;  %v1521_v31 = vld [vmem:[%s2618_s18 + $0x298] sm:$0xff] }
 0x28e   : > { %v1195_v19 = vadd.f32 %v1194_v7, %v3492_v53  ;;  %v1196_v30 = vpop.f32.mrf.mxu0  ;;  %1937 = vmatpush2.msra.mxu0 %v1544_v6 }
 0x28f   : > { %v1285_v16 = vpop.f32.mrf.mxu1  ;;  %v1360_v12 = vadd.f32 %v1344_v44, %v3505_v0  ;;  %v1332_v13 = vmul.f32 %v1316_v27, %v3518_v26  ;;  %v1317_v14 = vmul.f32 0.044715, %v3526_v48  ;;  %v1197_v15 = vadd.f32 %v1196_v30, %v3498_v34  ;;  %1938 = vmatprep.subr.mxu0 %v1541_v11  ;;  %v1520_v11 = vld [vmem:[%s2618_s18 + $0x290] sm:$0xff] }
 0x290   : > { %v3536_v38 = vadd.f32 %v1283_v10, %v1195_v19  ;;  %v1200_v51 = vpop.f32.mrf.mxu0  ;;  %1939 = vmatpush2.msra.mxu0 %v1540_v40  ;;  %v1345_v54 = vmul.f32 %v1329_v41, %v3511_v50  ;;  %v1517_v41 = vld [vmem:[%s2618_s18 + $0x278] sm:$0xff]  ;;  %v1516_v30 = vld [vmem:[%s2618_s18 + $0x270] sm:$0xff] }
 0x291   : > { %v1289_v47 = vpop.f32.mrf.mxu1  ;;  %v1376_v36 = vmul.f32 0.7978846, %v1360_v12  ;;  %v1333_v55 = vmul.f32 %v1317_v14, %v3526_v48  ;;  %v3541_v57 = vadd.f32 %v1285_v16, %v1197_v15  ;;  %v1201_v21 = vadd.f32 %v1200_v51, %v3492_v53  ;;  %1940 = vmatprep.subr.mxu0 %v1537_v9  ;;  %v1513_v12 = vld [vmem:[%s2618_s18 + $0x258] sm:$0xff]  ;;  %v1512_v14 = vld [vmem:[%s2618_s18 + $0x250] sm:$0xff] }
 0x292   : > { %v1320_v35 = vmul.f32 0.044715, %v3536_v38  ;;  %v1202_v8 = vpop.f32.mrf.mxu0  ;;  %1941 = vmatpush2.msra.mxu0 %v1536_v20  ;;  %v1361_v60 = vadd.f32 %v1345_v54, %v3511_v50  ;;  %v1348_v61 = vmul.f32 %v1332_v13, %v3518_v26 }
 0x293   : > { %2394 = vtanh.f32 %v1376_v36  ;;  %v1321_v63 = vmul.f32 0.044715, %v3541_v57  ;;  %v3550_v22 = vadd.f32 %v1289_v47, %v1201_v21  ;;  %v1203_v53 = vadd.f32 %v1202_v8, %v3498_v34  ;;  %1942 = vmatprep.subr.mxu0 %v1533_v32  ;;  %v1291_v52 = vpop.f32.mrf.mxu1  ;;  %v1509_v47 = vld [vmem:[%s2618_s18 + $0x238] sm:$0xff]  ;;  %v1508_v32 = vld [vmem:[%s2618_s18 + $0x230] sm:$0xff] }
 0x294   : > { %v1336_v1 = vmul.f32 %v1320_v35, %v3536_v38  ;;  %1943 = vmatpush2.msra.mxu0 %v1532_v33  ;;  %v1377_v49 = vmul.f32 0.7978846, %v1361_v60  ;;  %v1349_v42 = vmul.f32 %v1333_v55, %v3526_v48  ;;  %v1364_v43 = vadd.f32 %v1348_v61, %v3518_v26  ;;  %v1505_v55 = vld [vmem:[%s2618_s18 + $0x218] sm:$0xff]  ;;  %v1504_v21 = vld [vmem:[%s2618_s18 + $0x210] sm:$0xff] }
 0x295   : > { %v1337_v25 = vmul.f32 %v1321_v63, %v3541_v57  ;;  %v1324_v4 = vmul.f32 0.044715, %v3550_v22  ;;  %v3560_v34 = vadd.f32 %v1291_v52, %v1203_v53  ;;  %1944 = vmatprep.subr.mxu0 %v1529_v59  ;;  %v1297_v60 = vmul.f32 0.5, %v3511_v50 }
 0x296   : > { %1945 = vmatpush2.msra.mxu0 %v1528_v29  ;;  %2396 = vtanh.f32 %v1377_v49  ;;  %v1365_v2 = vadd.f32 %v1349_v42, %v3526_v48  ;;  %v1380_v23 = vmul.f32 0.7978846, %v1364_v43  ;;  %v1352_v6 = vmul.f32 %v1336_v1, %v3536_v38  ;;  %v1624_v42 = vld [vmem:[%s2618_s18 + $0x5d0] sm:$0xff] }
 0x297   : > { %v1340_v7 = vmul.f32 %v1324_v4, %v3550_v22  ;;  %v1325_v10 = vmul.f32 0.044715, %v3560_v34  ;;  %1946 = vmatprep.subr.mxu0 %v1525_v3  ;;  %v1353_v44 = vmul.f32 %v1337_v25, %v3541_v57  ;;  %v1296_v53 = vmul.f32 0.5, %v3505_v0  ;;  %v1628_v3 = vld [vmem:[%s2618_s18 + $0x5f0] sm:$0xff]  ;;  %v1621_v4 = vld [vmem:[%s2618_s18 + $0x5b8] sm:$0xff] }
 0x298   : > { %1947 = vmatpush2.msra.mxu0 %v1524_v5  ;;  %v1381_v27 = vmul.f32 0.7978846, %v1365_v2  ;;  %2398 = vtanh.f32 %v1380_v23  ;;  %v1368_v40 = vadd.f32 %v1352_v6, %v3536_v38  ;;  %v1300_v43 = vmul.f32 0.5, %v3518_v26  ;;  %v1617_v26 = vld [vmem:[%s2618_s18 + $0x598] sm:$0xff]  ;;  %v1616_v6 = vld [vmem:[%s2618_s18 + $0x590] sm:$0xff] }
 0x299   : > { %v1341_v19 = vmul.f32 %v1325_v10, %v3560_v34  ;;  %1948 = vmatprep.subr.mxu0 %v1521_v31  ;;  %v1369_v16 = vadd.f32 %v1353_v44, %v3541_v57  ;;  %v1356_v9 = vmul.f32 %v1340_v7, %v3550_v22  ;;  %v1304_v10 = vmul.f32 0.5, %v3536_v38  ;;  %v1612_v44 = vld [vmem:[%s2618_s18 + $0x570] sm:$0xff]  ;;  %v1609_v38 = vld [vmem:[%s2618_s18 + $0x558] sm:$0xff] }
 0x29a   : > { %1949 = vmatpush2.msra.mxu0 %v1520_v11  ;;  %2400 = vtanh.f32 %v1381_v27  ;;  %v1384_v13 = vmul.f32 0.7978846, %v1368_v40  ;;  %v1613_v11 = vld [vmem:[%s2618_s18 + $0x578] sm:$0xff] }
 0x29b   : > { %1950 = vmatprep.subr.mxu0 %v1517_v41  ;;  %v1385_v15 = vmul.f32 0.7978846, %v1369_v16  ;;  %v1357_v20 = vmul.f32 %v1341_v19, %v3560_v34  ;;  %v1372_v51 = vadd.f32 %v1356_v9, %v3550_v22  ;;  %v1309_v41 = vmul.f32 0.5, %v3560_v34  ;;  %v1601_v9 = vld [vmem:[%s2618_s18 + $0x518] sm:$0xff] }
 0x29c   : > { %1951 = vmatpush2.msra.mxu0 %v1516_v30  ;;  %2402 = vtanh.f32 %v1384_v13  ;;  %v1308_v30 = vmul.f32 0.5, %v3550_v22  ;;  %v1600_v22 = vld [vmem:[%s2618_s18 + $0x510] sm:$0xff] }
 0x29d   : > { %1952 = vmatprep.subr.mxu0 %v1513_v12  ;;  %2404 = vtanh.f32 %v1385_v15  ;;  %v1373_v54 = vadd.f32 %v1357_v20, %v3560_v34  ;;  %v1388_v36 = vmul.f32 0.7978846, %v1372_v51  ;;  %v1605_v34 = vld [vmem:[%s2618_s18 + $0x538] sm:$0xff]  ;;  %v1596_v13 = vld [vmem:[%s2618_s18 + $0x4f0] sm:$0xff] }
 0x29e   : > { %1953 = vmatpush2.msra.mxu0 %v1512_v14  ;;  %v1597_v12 = vld [vmem:[%s2618_s18 + $0x4f8] sm:$0xff]  ;;  %v1592_v15 = vld [vmem:[%s2618_s18 + $0x4d0] sm:$0xff] }
 0x29f   : > { %1954 = vmatprep.subr.mxu0 %v1509_v47  ;;  %v1389_v33 = vmul.f32 0.7978846, %v1373_v54  ;;  %2406 = vtanh.f32 %v1388_v36  ;;  %v1593_v14 = vld [vmem:[%s2618_s18 + $0x4d8] sm:$0xff]  ;;  %v1588_v51 = vld [vmem:[%s2618_s18 + $0x4b0] sm:$0xff] }
 0x2a0   : > { %v2395_v35 = vpop.eup %2394  ;;  %1955 = vmatpush2.msra.mxu0 %v1508_v32  ;;  %v1589_v20 = vld [vmem:[%s2618_s18 + $0x4b8] sm:$0xff]  ;;  %v1584_v32 = vld [vmem:[%s2618_s18 + $0x490] sm:$0xff] }
 0x2a1   : > { %1956 = vmatprep.subr.mxu0 %v1505_v55  ;;  %2408 = vtanh.f32 %v1389_v33  ;;  %v1408_v59 = vadd.f32 1.0, %v2395_v35  ;;  %v1585_v47 = vld [vmem:[%s2618_s18 + $0x498] sm:$0xff]  ;;  %v1580_v36 = vld [vmem:[%s2618_s18 + $0x470] sm:$0xff] }
 0x2a2   : > { %1957 = vmatpush2.msra.mxu0 %v1504_v21  ;;  %v1581_v54 = vld [vmem:[%s2618_s18 + $0x478] sm:$0xff]  ;;  %v1576_v21 = vld [vmem:[%s2618_s18 + $0x450] sm:$0xff] }
 0x2a3   : > { %v2397_v8 = vpop.eup %2396  ;;  %1959 = vmatmul.mubr.f32.vlgmr.msra.gmra.mxu0 %v3429_v56  ;;  %v3591_v52 = vmul.f32 %v1408_v59, %v1296_v53  ;;  %v1625_v56 = vld [vmem:[%s2618_s18 + $0x5d8] sm:$0xff]  ;;  %v1572_v35 = vld [vmem:[%s2618_s18 + $0x430] sm:$0xff] }
 0x2a4   : > { %v1409_v61 = vadd.f32 1.0, %v2397_v8  ;;  %1964 = vmatprep.mubr.f32.mxu0 %v3439_v62  ;;  %v1301_v62 = vmul.f32 0.5, %v3526_v48  ;;  %v1620_v48 = vld [vmem:[%s2618_s18 + $0x5b0] sm:$0xff]  ;;  %v1577_v55 = vld [vmem:[%s2618_s18 + $0x458] sm:$0xff] }
 0x2a5   : > { %v2399_v63 = vpop.eup %2398  ;;  %v1573_v33 = vld [vmem:[%s2618_s18 + $0x438] sm:$0xff]  ;;  %v1568_v59 = vld [vmem:[%s2618_s18 + $0x410] sm:$0xff] }
 0x2a6   : > { %v3589_v29 = vmul.f32 %v1409_v61, %v1297_v60  ;;  %v1412_v49 = vadd.f32 1.0, %v2399_v63  ;;  %v1569_v8 = vld [vmem:[%s2618_s18 + $0x418] sm:$0xff]  ;;  %v1692_v61 = vld [vmem:[%s2618_s18 + $0x7f0] sm:$0xff] }
 0x2a7   : > { %v2401_v1 = vpop.eup %2400  ;;  %1965 = vmatmul.mubr.f32.gmra.mxu0 %v3441_v45  ;;  %v1693_v60 = vld [vmem:[%s2618_s18 + $0x7f8] sm:$0xff]  ;;  %v1688_v53 = vld [vmem:[%s2618_s18 + $0x7d0] sm:$0xff] }
 0x2a8   : > { %1869 = vmatprep.mubr.f32.mxu1 %v3589_v29  ;;  %v1413_v50 = vadd.f32 1.0, %v2401_v1  ;;  %1970 = vmatprep.mubr.f32.mxu0 %v3452_v28  ;;  %v3605_v5 = vmul.f32 %v1412_v49, %v1300_v43  ;;  %v1305_v28 = vmul.f32 0.5, %v3541_v57  ;;  %v1689_v63 = vld [vmem:[%s2618_s18 + $0x7d8] sm:$0xff]  ;;  %v1684_v1 = vld [vmem:[%s2618_s18 + $0x7b0] sm:$0xff] }
 0x2a9   : > { %v2403_v0 = vpop.eup %2402  ;;  %1870 = vmatmul.mubr.f32.vlgmr.msra.gmra.mxu1 %v3591_v52  ;;  %v1680_v49 = vld [vmem:[%s2618_s18 + $0x790] sm:$0xff] }
 0x2aa   : > { %v2405_v25 = vpop.eup %2404  ;;  %1984 = vmatpush1.msra.mxu1 %v1628_v3  ;;  %v3602_v45 = vmul.f32 %v1413_v50, %v1301_v62  ;;  %v1416_v2 = vadd.f32 1.0, %v2403_v0  ;;  %v1681_v3 = vld [vmem:[%s2618_s18 + $0x798] sm:$0xff]  ;;  %v1676_v62 = vld [vmem:[%s2618_s18 + $0x770] sm:$0xff] }
 0x2ab   : > { %1985 = vmatprep.subr.mxu1 %v1625_v56  ;;  %v1417_v31 = vadd.f32 1.0, %v2405_v25  ;;  %1971 = vmatmul.mubr.f32.gmra.mxu0 %v3455_v24  ;;  %v1677_v56 = vld [vmem:[%s2618_s18 + $0x778] sm:$0xff]  ;;  %v1672_v0 = vld [vmem:[%s2618_s18 + $0x750] sm:$0xff] }
 0x2ac   : > { %v2407_v23 = vpop.eup %2406  ;;  %1986 = vmatpush1.msra.mxu1 %v1624_v42  ;;  %1875 = vmatprep.mubr.f32.mxu1 %v3602_v45  ;;  %v3620_v24 = vmul.f32 %v1416_v2, %v1304_v10  ;;  %v1673_v50 = vld [vmem:[%s2618_s18 + $0x758] sm:$0xff]  ;;  %v1668_v43 = vld [vmem:[%s2618_s18 + $0x730] sm:$0xff] }
 0x2ad   : > { %1987 = vmatprep.subr.mxu1 %v1621_v4  ;;  %1876 = vmatmul.mubr.f32.gmra.mxu1 %v3605_v5  ;;  %v3614_v7 = vmul.f32 %v1417_v31, %v1305_v28  ;;  %v1420_v40 = vadd.f32 1.0, %v2407_v23  ;;  %v1669_v42 = vld [vmem:[%s2618_s18 + $0x738] sm:$0xff]  ;;  %v1664_v4 = vld [vmem:[%s2618_s18 + $0x710] sm:$0xff] }
 0x2ae   : > { %v2409_v57 = vpop.eup %2408  ;;  %1988 = vmatpush1.msra.mxu1 %v1620_v48  ;;  %1976 = vmatprep.mubr.f32.mxu0 %v3466_v58  ;;  %v1608_v58 = vld [vmem:[%s2618_s18 + $0x550] sm:$0xff]  ;;  %v1665_v25 = vld [vmem:[%s2618_s18 + $0x718] sm:$0xff] }
 0x2af   : > { %1989 = vmatprep.subr.mxu1 %v1617_v26  ;;  %1881 = vmatprep.mubr.f32.mxu1 %v3614_v7  ;;  %v1421_v27 = vadd.f32 1.0, %v2409_v57  ;;  %v3633_v16 = vmul.f32 %v1420_v40, %v1308_v30  ;;  %v1661_v48 = vld [vmem:[%s2618_s18 + $0x6f8] sm:$0xff]  ;;  %v1660_v28 = vld [vmem:[%s2618_s18 + $0x6f0] sm:$0xff] }
 0x2b0   : > { %1990 = vmatpush1.msra.mxu1 %v1616_v6  ;;  %1977 = vmatmul.mubr.f32.gmra.mxu0 %v3469_v46  ;;  %v1604_v46 = vld [vmem:[%s2618_s18 + $0x530] sm:$0xff]  ;;  %v1657_v31 = vld [vmem:[%s2618_s18 + $0x6d8] sm:$0xff] }
 0x2b1   : > { %1991 = vmatprep.subr.mxu1 %v1613_v11  ;;  %1882 = vmatmul.mubr.f32.gmra.mxu1 %v3620_v24  ;;  %v3628_v19 = vmul.f32 %v1421_v27, %v1309_v41  ;;  %v1656_v2 = vld [vmem:[%s2618_s18 + $0x6d0] sm:$0xff]  ;;  %v1653_v23 = vld [vmem:[%s2618_s18 + $0x6b8] sm:$0xff] }
 0x2b2   : > { %1992 = vmatpush1.msra.mxu1 %v1612_v44  ;;  %v1652_v26 = vld [vmem:[%s2618_s18 + $0x6b0] sm:$0xff]  ;;  %v1649_v6 = vld [vmem:[%s2618_s18 + $0x698] sm:$0xff] }
 0x2b3   : > { %1993 = vmatprep.subr.mxu1 %v1609_v38  ;;  %1887 = vmatprep.mubr.f32.mxu1 %v3628_v19  ;;  %v1648_v10 = vld [vmem:[%s2618_s18 + $0x690] sm:$0xff]  ;;  %v1645_v57 = vld [vmem:[%s2618_s18 + $0x678] sm:$0xff] }
 0x2b4   : > { %1994 = vmatpush1.msra.mxu1 %v1608_v58  ;;  %v1644_v11 = vld [vmem:[%s2618_s18 + $0x670] sm:$0xff]  ;;  %v1641_v44 = vld [vmem:[%s2618_s18 + $0x658] sm:$0xff] }
 0x2b5   : > { %1995 = vmatprep.subr.mxu1 %v1605_v34  ;;  %1888 = vmatmul.mubr.f32.gmra.mxu1 %v3633_v16  ;;  %v1640_v41 = vld [vmem:[%s2618_s18 + $0x650] sm:$0xff]  ;;  %v1637_v27 = vld [vmem:[%s2618_s18 + $0x638] sm:$0xff] }
 0x2b6   : > { %1996 = vmatpush1.msra.mxu1 %v1604_v46  ;;  %2047 = vmatprep.mubr.f32.mxu1 %v3589_v29  ;;  %v1685_v29 = vld [vmem:[%s2618_s18 + $0x7b8] sm:$0xff]  ;;  %v1636_v40 = vld [vmem:[%s2618_s18 + $0x630] sm:$0xff] }
 0x2b7   : > { %1997 = vmatprep.subr.mxu1 %v1601_v9  ;;  %v1633_v38 = vld [vmem:[%s2618_s18 + $0x618] sm:$0xff]  ;;  %v1632_v58 = vld [vmem:[%s2618_s18 + $0x610] sm:$0xff] }
 0x2b8   : > { %1998 = vmatpush1.msra.mxu1 %v1600_v22 }
 0x2b9   : > { %1999 = vmatprep.subr.mxu1 %v1597_v12 }
 0x2ba   : > { %2000 = vmatpush1.msra.mxu1 %v1596_v13 }
 0x2bb   : > { %2001 = vmatprep.subr.mxu1 %v1593_v14 }
 0x2bc   : > { %2002 = vmatpush1.msra.mxu1 %v1592_v15  ;;  %v2410_v15 = vld [vmem:[#allocation2 + $0x30] sm:$0xff] }
 0x2bd   : > { %2003 = vmatprep.subr.mxu1 %v1589_v20 }
 0x2be   : > { %2004 = vmatpush1.msra.mxu1 %v1588_v51 }
 0x2bf   : > { %2005 = vmatprep.subr.mxu1 %v1585_v47 }
 0x2c0   : > { %2006 = vmatpush1.msra.mxu1 %v1584_v32 }
 0x2c1   : > { %2007 = vmatprep.subr.mxu1 %v1581_v54  ;;  %v2411_v54 = vld [vmem:[#allocation2] sm:$0xff] }
 0x2c2   : > { %2008 = vmatpush1.msra.mxu1 %v1580_v36 }
 0x2c3   : > { %2009 = vmatprep.subr.mxu1 %v1577_v55 }
 0x2c4   : > { %2010 = vmatpush1.msra.mxu1 %v1576_v21 }
 0x2c5   : > { %2011 = vmatprep.subr.mxu1 %v1573_v33  ;;  %v2412_v33 = vld [vmem:[#allocation2 + $0x50] sm:$0xff] }
 0x2c6   : > { %2012 = vmatpush1.msra.mxu1 %v1572_v35 }
 0x2c7   : > { %2013 = vmatprep.subr.mxu1 %v1569_v8 }
 0x2c8   : > { %2014 = vmatpush1.msra.mxu1 %v1568_v59 }
 0x2c9   : > { %2015 = vmatprep.subr.mxu1 %v1693_v60 }
 0x2ca   : > { %2016 = vmatpush2.msra.mxu1 %v1692_v61  ;;  %v2413_v61 = vld [vmem:[#allocation2 + $0x68] sm:$0xff] }
 0x2cb   : > { %2017 = vmatprep.subr.mxu1 %v1689_v63 }
 0x2cc   : > { %2018 = vmatpush2.msra.mxu1 %v1688_v53 }
 0x2cd   : > { %2019 = vmatprep.subr.mxu1 %v1685_v29 }
 0x2ce   : > { %2020 = vmatpush2.msra.mxu1 %v1684_v1 }
 0x2cf   : > { %2021 = vmatprep.subr.mxu1 %v1681_v3 }
 0x2d0   : > { %2022 = vmatpush2.msra.mxu1 %v1680_v49  ;;  %v2414_v49 = vld [vmem:[#allocation2 + $0x40] sm:$0xff] }
 0x2d1   : > { %2023 = vmatprep.subr.mxu1 %v1677_v56 }
 0x2d2   : > { %2024 = vmatpush2.msra.mxu1 %v1676_v62 }
 0x2d3   : > { %2025 = vmatprep.subr.mxu1 %v1673_v50 }
 0x2d4   : > { %2026 = vmatpush2.msra.mxu1 %v1672_v0 }
 0x2d5   : > { %2027 = vmatprep.subr.mxu1 %v1669_v42  ;;  %v2415_v42 = vld [vmem:[#allocation2 + $0x20] sm:$0xff] }
 0x2d6   : > { %2028 = vmatpush2.msra.mxu1 %v1668_v43 }
 0x2d7   : > { %2029 = vmatprep.subr.mxu1 %v1665_v25 }
 0x2d8   : > { %2030 = vmatpush2.msra.mxu1 %v1664_v4 }
 0x2d9   : > { %2031 = vmatprep.subr.mxu1 %v1661_v48  ;;  %v2416_v48 = vld [vmem:[#allocation2 + $0x60] sm:$0xff] }
 0x2da   : > { %2032 = vmatpush2.msra.mxu1 %v1660_v28 }
 0x2db   : > { %2033 = vmatprep.subr.mxu1 %v1657_v31 }
 0x2dc   : > { %2034 = vmatpush2.msra.mxu1 %v1656_v2  ;;  %v2417_v2 = vld [vmem:[#allocation2 + $0x70] sm:$0xff] }
 0x2dd   : > { %2035 = vmatprep.subr.mxu1 %v1653_v23 }
 0x2de   : > { %2036 = vmatpush2.msra.mxu1 %v1652_v26 }
 0x2df   : > { %2037 = vmatprep.subr.mxu1 %v1649_v6 }
 0x2e0   : > { %2038 = vmatpush2.msra.mxu1 %v1648_v10 }
 0x2e1   : > { %2039 = vmatprep.subr.mxu1 %v1645_v57 }
 0x2e2   : > { %2040 = vmatpush2.msra.mxu1 %v1644_v11 }
 0x2e3   : > { %2041 = vmatprep.subr.mxu1 %v1641_v44 }
 0x2e4   : > { %2042 = vmatpush2.msra.mxu1 %v1640_v41 }
 0x2e5   : > { %2043 = vmatprep.subr.mxu1 %v1637_v27 }
 0x2e6   : > { %2044 = vmatpush2.msra.mxu1 %v1636_v40 }
 0x2e7   : > { %2045 = vmatprep.subr.mxu1 %v1633_v38 }
 0x2e8   : > { %2046 = vmatpush2.msra.mxu1 %v1632_v58 }
 0x2e9   : > { %2048 = vmatmul.mubr.f32.vlgmr.msra.gmra.mxu1 %v3591_v52  ;;  %v1694_v52 = vld [vmem:[%s419_s19] sm:$0xf] }
 0x2ea   : > { %2053 = vmatprep.mubr.f32.mxu1 %v3602_v45  ;;  %v1699_v45 = vrot.slane %v1694_v52, %v2960_v39  ;;  %v1707_v11 = vrot.slane %v1694_v52, %v2962_v18  ;;  %v1711_v44 = vrot.slane %v1694_v52, %v2958_v17 }
 0x2ed   : > { %2054 = vmatmul.mubr.f32.gmra.mxu1 %v3605_v5  ;;  %v1703_v5 = vrot.slane %v1694_v52, %v2956_v37  ;;  %v2420_v52 = vld [vmem:[#allocation2 + $0x8] sm:$0xff] }
 0x2ee   : > { %2059 = vmatprep.mubr.f32.mxu1 %v3614_v7 }
 0x2f1   : > { %2060 = vmatmul.mubr.f32.gmra.mxu1 %v3620_v24 }
 0x2f2   : > { %2065 = vmatprep.mubr.f32.mxu1 %v3628_v19 }
 0x2f5   : > { %2066 = vmatmul.mubr.f32.gmra.mxu1 %v3633_v16 }
 0x322   : > { %v1782_v30 = vpop.f32.mrf.mxu0 }
 0x323   : > { %v1783_v22 = vadd.f32 %v1782_v30, %v1699_v45 }
 0x324   : > { %v1784_v34 = vpop.f32.mrf.mxu0 }
 0x325   : > { %v1785_v12 = vadd.f32 %v1784_v34, %v1703_v5 }
 0x327   : > { %v1788_v46 = vpop.f32.mrf.mxu0 }
 0x328   : > { %v1789_v14 = vadd.f32 %v1788_v46, %v1699_v45 }
 0x329   : > { %v1790_v9 = vpop.f32.mrf.mxu0 }
 0x32a   : > { %v1791_v32 = vadd.f32 %v1790_v9, %v1703_v5  ;;  %v2418_v9 = vld [vmem:[#allocation2 + $0x58] sm:$0xff] }
 0x32d   : > { %v1794_v7 = vpop.f32.mrf.mxu0 }
 0x32e   : > { %v1795_v37 = vadd.f32 %v1794_v7, %v1699_v45 }
 0x32f   : > { %v1796_v13 = vpop.f32.mrf.mxu0 }
 0x330   : > { %v1797_v60 = vadd.f32 %v1796_v13, %v1703_v5 }
 0x333   : > { %v1800_v39 = vpop.f32.mrf.mxu0 }
 0x334   : > { %v1801_v3 = vadd.f32 %v1800_v39, %v1699_v45  ;;  %v2422_v39 = vld [vmem:[#allocation2 + $0x10] sm:$0xff] }
 0x335   : > { %v1802_v29 = vpop.f32.mrf.mxu0 }
 0x336   : > { %v1803_v0 = vadd.f32 %v1802_v29, %v1703_v5 }
 0x363   : > { %v1960_v26 = vpop.f32.mrf.mxu0 }
 0x364   : > { %v1961_v27 = vadd.f32 %v1960_v26, %v1707_v11 }
 0x365   : > { %v1962_v6 = vpop.f32.mrf.mxu0 }
 0x366   : > { %v1963_v38 = vadd.f32 %v1962_v6, %v1711_v44 }
 0x367   : > { %v1966_v10 = vpop.f32.mrf.mxu0 }
 0x368   : > { %v1967_v46 = vadd.f32 %v1966_v10, %v1707_v11 }
 0x369   : > { %v1871_v24 = vpop.f32.mrf.mxu1  ;;  %v1968_v57 = vpop.f32.mrf.mxu0 }
 0x36a   : > { %v1872_v19 = vadd.f32 %v1871_v24, %v1783_v22  ;;  %v1969_v22 = vadd.f32 %v1968_v57, %v1711_v44  ;;  %v2419_v24 = vld [vmem:[#allocation2 + $0x18] sm:$0xff] }
 0x36b   : > { %v1873_v16 = vpop.f32.mrf.mxu1  ;;  %v1972_v41 = vpop.f32.mrf.mxu0 }
 0x36c   : > { %v2072_v20 = vadd.f32 %v2410_v15, %v1872_v19  ;;  %v1874_v51 = vadd.f32 %v1873_v16, %v1785_v12  ;;  %v1973_v17 = vadd.f32 %v1972_v41, %v1707_v11 }
 0x36d   : > { %v1877_v47 = vpop.f32.mrf.mxu1  ;;  %v1974_v30 = vpop.f32.mrf.mxu0 }
 0x36e   : > { %2088 = vst [vmem:[#allocation2 + $0x30] sm:$0xff] %v2072_v20  ;;  %v2073_v36 = vadd.f32 %v2411_v54, %v1874_v51  ;;  %v1878_v55 = vadd.f32 %v1877_v47, %v1789_v14  ;;  %v1975_v20 = vadd.f32 %v1974_v30, %v1711_v44  ;;  %v2421_v51 = vld [vmem:[#allocation2 + $0x48] sm:$0xff] }
 0x36f   : > { %v1879_v21 = vpop.f32.mrf.mxu1 }
 0x370   : > { %2089 = vst [vmem:[#allocation2] sm:$0xff] %v2073_v36  ;;  %v2076_v35 = vadd.f32 %v2412_v33, %v1878_v55  ;;  %v1880_v8 = vadd.f32 %v1879_v21, %v1791_v32  ;;  %v1978_v18 = vpop.f32.mrf.mxu0 }
 0x371   : > { %v1883_v59 = vpop.f32.mrf.mxu1  ;;  %v1979_v55 = vadd.f32 %v1978_v18, %v1707_v11 }
 0x372   : > { %2092 = vst [vmem:[#allocation2 + $0x50] sm:$0xff] %v2076_v35  ;;  %v2077_v63 = vadd.f32 %v2413_v61, %v1880_v8  ;;  %v1884_v53 = vadd.f32 %v1883_v59, %v1795_v37  ;;  %v1980_v54 = vpop.f32.mrf.mxu0  ;;  %v2423_v8 = vld [vmem:[#allocation2 + $0x38] sm:$0xff] }
 0x373   : > { %v1885_v1 = vpop.f32.mrf.mxu1  ;;  %v1981_v35 = vadd.f32 %v1980_v54, %v1711_v44 }
 0x374   : > { %2093 = vst [vmem:[#allocation2 + $0x68] sm:$0xff] %v2077_v63  ;;  %v2080_v56 = vadd.f32 %v2414_v49, %v1884_v53  ;;  %v1886_v62 = vadd.f32 %v1885_v1, %v1797_v60  ;;  %v2424_v63 = vld [vmem:[#allocation2 + $0x78] sm:$0xff]  ;;  %v2425_v1 = vld [vmem:[#allocation2 + $0x28] sm:$0xff] }
 0x375   : > { %v1889_v50 = vpop.f32.mrf.mxu1 }
 0x376   : > { %2096 = vst [vmem:[#allocation2 + $0x40] sm:$0xff] %v2080_v56  ;;  %v2081_v43 = vadd.f32 %v2415_v42, %v1886_v62  ;;  %v1890_v25 = vadd.f32 %v1889_v50, %v1801_v3 }
 0x377   : > { %v1891_v4 = vpop.f32.mrf.mxu1 }
 0x378   : > { %2097 = vst [vmem:[#allocation2 + $0x20] sm:$0xff] %v2081_v43  ;;  %v2084_v28 = vadd.f32 %v2416_v48, %v1890_v25  ;;  %v1892_v31 = vadd.f32 %v1891_v4, %v1803_v0 }
 0x37a   : > { %2100 = vst [vmem:[#allocation2 + $0x60] sm:$0xff] %v2084_v28  ;;  %v2085_v23 = vadd.f32 %v2417_v2, %v1892_v31 }
 0x37c   : > { %2101 = vst [vmem:[#allocation2 + $0x70] sm:$0xff] %v2085_v23 }
 0x3a9   : > { %v2049_v40 = vpop.f32.mrf.mxu1 }
 0x3aa   : > { %v2050_v58 = vadd.f32 %v2049_v40, %v1961_v27 }
 0x3ab   : > { %v2051_v34 = vpop.f32.mrf.mxu1 }
 0x3ac   : > { %v2074_v45 = vadd.f32 %v2418_v9, %v2050_v58  ;;  %v2052_v5 = vadd.f32 %v2051_v34, %v1963_v38 }
 0x3ad   : > { %v2055_v7 = vpop.f32.mrf.mxu1 }
 0x3ae   : > { %2090 = vst [vmem:[#allocation2 + $0x58] sm:$0xff] %v2074_v45  ;;  %v2075_v12 = vadd.f32 %v2419_v24, %v2052_v5  ;;  %v2056_v19 = vadd.f32 %v2055_v7, %v1967_v46 }
 0x3af   : > { %v2057_v13 = vpop.f32.mrf.mxu1 }
 0x3b0   : > { %2091 = vst [vmem:[#allocation2 + $0x18] sm:$0xff] %v2075_v12  ;;  %v2078_v16 = vadd.f32 %v2420_v52, %v2056_v19  ;;  %v2058_v14 = vadd.f32 %v2057_v13, %v1969_v22 }
 0x3b1   : > { %v2061_v15 = vpop.f32.mrf.mxu1 }
 0x3b2   : > { %2094 = vst [vmem:[#allocation2 + $0x8] sm:$0xff] %v2078_v16  ;;  %v2079_v47 = vadd.f32 %v2421_v51, %v2058_v14  ;;  %v2062_v32 = vadd.f32 %v2061_v15, %v1973_v17 }
 0x3b3   : > { %v2063_v36 = vpop.f32.mrf.mxu1 }
 0x3b4   : > { %2095 = vst [vmem:[#allocation2 + $0x48] sm:$0xff] %v2079_v47  ;;  %v2082_v21 = vadd.f32 %v2422_v39, %v2062_v32  ;;  %v2064_v37 = vadd.f32 %v2063_v36, %v1975_v20 }
 0x3b5   : > { %v2067_v33 = vpop.f32.mrf.mxu1 }
 0x3b6   : > { %2098 = vst [vmem:[#allocation2 + $0x10] sm:$0xff] %v2082_v21  ;;  %v2083_v59 = vadd.f32 %v2423_v8, %v2064_v37  ;;  %v2068_v60 = vadd.f32 %v2067_v33, %v1979_v55 }
 0x3b7   : > { %v2069_v61 = vpop.f32.mrf.mxu1 }
 0x3b8   : > { %2099 = vst [vmem:[#allocation2 + $0x38] sm:$0xff] %v2083_v59  ;;  %v2086_v53 = vadd.f32 %v2424_v63, %v2068_v60  ;;  %v2070_v29 = vadd.f32 %v2069_v61, %v1981_v35  ;;  %2107 = sbr.rel (%p2306_p9) target bundleno = 966 (0x3c6), region = 60 }
 0x3ba   : > { %2102 = vst [vmem:[#allocation2 + $0x78] sm:$0xff] %v2086_v53  ;;  %v2087_v3 = vadd.f32 %v2425_v1, %v2070_v29 }
 0x3bc   : > { %2103 = vst [vmem:[#allocation2 + $0x28] sm:$0xff] %v2087_v3 }
 0x3bd   : > { %v2108_v49 = vld [vmem:[#allocation2 + $0x30] sm:$0xff]  ;;  %v2109_v56 = vld [vmem:[#allocation2] sm:$0xff]  ;;  %v2110_v62 = vld [vmem:[#allocation2 + $0x58] sm:$0xff] }
 0x3be   : > { %2124 = vst [vmem:[%s3778_s7] sm:$0xff] %v2108_v49  ;;  %2125 = vst [vmem:[%s3778_s7 + $0x8] sm:$0xff] %v2109_v56  ;;  %v2111_v50 = vld [vmem:[#allocation2 + $0x18] sm:$0xff]  ;;  %v2112_v0 = vld [vmem:[#allocation2 + $0x50] sm:$0xff] }
 0x3bf   : > { %2126 = vst [vmem:[%s3778_s7 + $0x10] sm:$0xff] %v2110_v62  ;;  %v2113_v42 = vld [vmem:[#allocation2 + $0x68] sm:$0xff]  ;;  %2127 = vst [vmem:[%s3778_s7 + $0x18] sm:$0xff] %v2111_v50  ;;  %v2116_v4 = vld [vmem:[#allocation2 + $0x40] sm:$0xff] }
 0x3c0   : > { %2128 = vst [vmem:[%s3778_s7 + $0x20] sm:$0xff] %v2112_v0  ;;  %2129 = vst [vmem:[%s3778_s7 + $0x28] sm:$0xff] %v2113_v42  ;;  %v2114_v43 = vld [vmem:[#allocation2 + $0x8] sm:$0xff]  ;;  %v2117_v48 = vld [vmem:[#allocation2 + $0x20] sm:$0xff] }
 0x3c1   : > { %v2115_v25 = vld [vmem:[#allocation2 + $0x48] sm:$0xff]  ;;  %2130 = vst [vmem:[%s3778_s7 + $0x30] sm:$0xff] %v2114_v43  ;;  %2132 = vst [vmem:[%s3778_s7 + $0x40] sm:$0xff] %v2116_v4  ;;  %v2118_v28 = vld [vmem:[#allocation2 + $0x10] sm:$0xff] }
 0x3c2   : > { %2131 = vst [vmem:[%s3778_s7 + $0x38] sm:$0xff] %v2115_v25  ;;  %v2119_v31 = vld [vmem:[#allocation2 + $0x38] sm:$0xff]  ;;  %2133 = vst [vmem:[%s3778_s7 + $0x48] sm:$0xff] %v2117_v48  ;;  %v2120_v2 = vld [vmem:[#allocation2 + $0x60] sm:$0xff] }
 0x3c3   : > { %2134 = vst [vmem:[%s3778_s7 + $0x50] sm:$0xff] %v2118_v28  ;;  %2135 = vst [vmem:[%s3778_s7 + $0x58] sm:$0xff] %v2119_v31  ;;  %v2121_v23 = vld [vmem:[#allocation2 + $0x70] sm:$0xff]  ;;  %v2122_v26 = vld [vmem:[#allocation2 + $0x78] sm:$0xff] }
 0x3c4   : > { %2136 = vst [vmem:[%s3778_s7 + $0x60] sm:$0xff] %v2120_v2  ;;  %2137 = vst [vmem:[%s3778_s7 + $0x68] sm:$0xff] %v2121_v23  ;;  %v2123_v6 = vld [vmem:[#allocation2 + $0x28] sm:$0xff] }
 0x3c5   : > { %2138 = vst [vmem:[%s3778_s7 + $0x70] sm:$0xff] %v2122_v26  ;;  %2139 = vst [vmem:[%s3778_s7 + $0x78] sm:$0xff] %v2123_v6 }
 0x3c6 PF: > { %s20_s29 = sadd.s32 1, %s2504_s29   ;;  %s3786_s23 = sld [smem:[#allocation6_spill]] }
 0x3c7   : > { %p17_p10 = scmp.ge.s32.totalorder %s20_s29, 10   ;;  %s3787_s24 = smov %s2488_s25 }
 0x3c8   : > { %s3788_s25 = smov %s2492_s26  ;;  %s3789_s26 = smov %s2598_s13 }
 0x3c9   : > { %s3790_s27 = smov %s2500_s28  ;;  %19 = sbr.rel (!%p17_p10) target bundleno = 6 (0x6), region = 114 }
 0x3cc   : > { %s3791_s28 = smov %s3786_s23 }
 0x3ce   :  { %2164 = vsyncpa [#allocation4], 1 }
 0x3cf   :  { %2166 = vsyncpa [#allocation4 + $0x1], 1 }

</bundles_post_ra>
